<compile_context>
chip_gen: v5e
topology: v5e:2x2
jax: 0.10.0
libtpu: 0.0.40
codegen_flags: <defaults>
</compile_context>

<pallas_src>
import functools

import jax
import jax.numpy as jnp
import numpy as np
from jax.experimental import pallas as pl
from jax.experimental.pallas import tpu as pltpu


def _conv_kernel(x_ref, w_ref, b_ref, o_ref, *, H, W, Cin, TD):
    """One (b, depth-block) grid step of the implicit-GEMM 3x3x3 conv.

    x_ref : (TD+2, H+2, W+2, Cin) bf16   halo'd input planes for this block
    w_ref : (3, 9*Cin, Cout8)     bf16   weights, K ordered (kh, kw, c) per kd
    b_ref : (1, Cout8)            f32    bias
    o_ref : (TD*H*W, Cout8)              output rows, (t, h, w) raster order
    """
    nsub = (H + 2) * W

    # Per plane / per kw: one sublane-shifted slice + one W-aligned reshape
    # (done in f32, the most robust relayout dtype), then ONE narrow cast to
    # bf16.  ~3 relayout copies per plane instead of 27, and no full-LHS cast.
    flats = []
    for p in range(TD + 2):
        plane = x_ref[p].astype(jnp.float32)                 # (Hp, Wp, Cin)
        flats.append([
            plane[:, kw:kw + W, :].reshape(nsub, Cin).astype(jnp.bfloat16)
            for kw in range(3)])

    # K split by kd: 3 smaller dots; f32 accumulation on the MXU.
    acc = None
    for kd in range(3):
        blocks = []
        for t in range(TD):
            cols = [flats[t + kd][kw][kh * W:(kh + H) * W, :]   # (H*W, Cin)
                    for kh in range(3) for kw in range(3)]
            blocks.append(jnp.concatenate(cols, axis=1))        # (H*W, 9*Cin)
        lhs = jnp.concatenate(blocks, axis=0) if TD > 1 else blocks[0]
        part = jnp.dot(lhs, w_ref[kd], preferred_element_type=jnp.float32)
        acc = part if acc is None else acc + part

    o_ref[...] = (acc + b_ref[...]).astype(o_ref.dtype)


def _vmem_params():
    """(vmem_limit_bytes, tile_budget_bytes, target_rows) for this TPU."""
    cap = 64 * 1024 * 1024                            # conservative default (v7x)
    try:
        cap = int(pltpu.get_tpu_info().vmem_capacity_bytes)
    except Exception:
        try:
            kind = jax.devices()[0].device_kind.lower()
            if "v7" not in kind:
                cap = 128 * 1024 * 1024               # v5e / v6e
        except Exception:
            pass
    limit = max(min(cap - 16 * 1024 * 1024, int(0.75 * cap)), 24 * 1024 * 1024)
    budget = int(0.85 * limit)
    target_rows = 2048 if cap >= 128 * 1024 * 1024 else 1024
    return int(limit), budget, target_rows


def _tile_bytes(td, H, W, Cin, Cout8, out_bytes):
    """Conservative per-step VMEM estimate for depth tile td."""
    Hp, Wp = H + 2, W + 2
    rows = td * H * W
    need = (2 * (td + 2) * Hp * Wp * Cin * 2          # input block (bf16, dbl-buffered)
            + 2 * rows * Cout8 * out_bytes            # output block (dbl-buffered)
            + 2 * 27 * Cin * Cout8 * 2                # resident weight (worst case x2)
            + 3 * (td + 2) * (H + 2) * W * Cin * 2    # per-plane kw flats (bf16)
            + rows * 9 * Cin * 2                      # one kd LHS (bf16)
            + rows * Cout8 * 4)                       # f32 accumulator
    return int(need * 1.25)                           # relayout-temporary headroom


def _pick_depth_tile(D, H, W, Cin, Cout8, out_bytes, budget, target_rows):
    cands = [td for td in range(1, D + 1)
             if D % td == 0 and ((td * H * W) % 8 == 0 or td == D)]
    fit = [td for td in cands
           if _tile_bytes(td, H, W, Cin, Cout8, out_bytes) <= budget]
    if fit:
        sweet = [td for td in fit if td * H * W <= target_rows]
        return max(sweet) if sweet else min(fit)
    # TODO(synk): add an H/W halo-tiling path (and an N-tiled weight grid axis)
    # for shapes where even TD=1 exceeds the VMEM budget, mainly on v7x.
    return min(cands)


def upsample_block_3d(x, weight, bias, *, out_dtype=None):
    """UpsampleBlock3d.forward (mode='conv'): NCDHW in -> NCDHW out, 2x spatial.

    x      : (B, Cin, D, H, W)
    weight : (Cout*8, Cin, 3, 3, 3)   (nn.Conv3d(Cin, Cout*8, 3, padding=1))
    bias   : (Cout*8,)
    """
    B, Cin, D, H, W = x.shape
    Cout8 = weight.shape[0]
    assert Cout8 % 8 == 0
    Co = Cout8 // 8
    Hp, Wp = H + 2, W + 2
    out_dtype = out_dtype or x.dtype        # pass jnp.bfloat16 to halve HBM traffic
    out_bytes = np.dtype(out_dtype).itemsize

    vmem_limit, budget, target_rows = _vmem_params()
    TD = _pick_depth_tile(D, H, W, Cin, Cout8, out_bytes, budget, target_rows)
    rows = TD * H * W

    # ---- glue (XLA): channels-last bf16, zero pad, depth-halo windows ----
    x_cl = jnp.transpose(x, (0, 2, 3, 4, 1)).astype(jnp.bfloat16)
    x_pad = jnp.pad(x_cl, ((0, 0), (1, 1), (1, 1), (1, 1), (0, 0)))
    # Materialise overlapping depth windows once so each grid step is ONE DMA.
    win = np.arange(D // TD)[:, None] * TD + np.arange(TD + 2)[None, :]
    x_halo = x_pad[:, win]                  # (B, D//TD, TD+2, Hp, Wp, Cin)

    # weight (Cout8, Cin, 3,3,3) -> (kd, (kh,kw,c), o) bf16; bias -> (1, Cout8) f32.
    wmat = jnp.transpose(weight, (2, 3, 4, 1, 0)).reshape(3, 9 * Cin, Cout8)
    wmat = wmat.astype(jnp.bfloat16)
    b2d = bias.reshape(1, Cout8).astype(jnp.float32)

    kernel = functools.partial(_conv_kernel, H=H, W=W, Cin=Cin, TD=TD)

    y = pl.pallas_call(
        kernel,
        out_shape=jax.ShapeDtypeStruct((B, D * H * W, Cout8), out_dtype),
        grid_spec=pltpu.PrefetchScalarGridSpec(
            num_scalar_prefetch=0,
            grid=(B, D // TD),
            in_specs=[
                pl.BlockSpec((None, None, TD + 2, Hp, Wp, Cin),
                             lambda b, dblk: (b, dblk, 0, 0, 0, 0)),
                # Resident blocks (constant index_map => fetched once).
                # TODO(synk): for very large Cin*Cout8 (v7x, 64 MiB VMEM) add an
                # N-tile grid axis on the weight instead of keeping it resident.
                pl.BlockSpec((3, 9 * Cin, Cout8), lambda b, dblk: (0, 0, 0)),
                pl.BlockSpec((1, Cout8), lambda b, dblk: (0, 0)),
            ],
            out_specs=pl.BlockSpec((None, rows, Cout8),
                                   lambda b, dblk: (b, dblk, 0)),
        ),
        compiler_params=pltpu.CompilerParams(
            # Both axes independent -> megacore / v7x dual-TC shardable.
            dimension_semantics=("parallel", "parallel"),
            vmem_limit_bytes=vmem_limit),
    )(x_halo, wmat, b2d)

    # ---- glue (XLA): pixel_shuffle_3d fused with the NCDHW conversion into
    # one reshape+transpose (rows are (d,h,w) raster, lanes are (co,rd,rh,rw)).
    # TODO(synk): fold this permutation into the kernel's output DMA layout to
    # save one more HBM round trip of the 8x-upsampled tensor.
    y = y.reshape(B, D, H, W, Co, 2, 2, 2)
    y = jnp.transpose(y, (0, 4, 1, 5, 2, 6, 3, 7))   # (B, Co, D,rd, H,rh, W,rw)
    return y.reshape(B, Co, 2 * D, 2 * H, 2 * W)


def pixel_shuffle_3d_ref(x, r):
    # exact port of trellis pixel_shuffle_3d (pure data movement, reference only)
    B, C, D, H, W = x.shape
    Co = C // (r ** 3)
    x = x.reshape(B, Co, r, r, r, D, H, W)
    x = jnp.transpose(x, (0, 1, 5, 2, 6, 3, 7, 4))
    return x.reshape(B, Co, D * r, H * r, W * r)


if __name__ == "__main__":
    B, Cin, Cout, D, H, W = 2, 4, 4, 8, 8, 8
    Co8 = Cout * 8

    key = jax.random.PRNGKey(0)
    kx, kw_, kb = jax.random.split(key, 3)
    x = jax.random.normal(kx, (B, Cin, D, H, W), dtype=jnp.float32)
    weight = 0.1 * jax.random.normal(kw_, (Co8, Cin, 3, 3, 3), dtype=jnp.float32)
    bias = 0.1 * jax.random.normal(kb, (Co8,), dtype=jnp.float32)

    out = jax.block_until_ready(jax.jit(upsample_block_3d)(x, weight, bias))
    assert out.shape == (B, Cout, 2 * D, 2 * H, 2 * W), out.shape

    # Reference 1: matched precision (bf16 inputs, f32 accumulation) -> tight tol.
    ref_conv = jax.lax.conv_general_dilated(
        x.astype(jnp.bfloat16), weight.astype(jnp.bfloat16),
        window_strides=(1, 1, 1), padding=((1, 1), (1, 1), (1, 1)),
        dimension_numbers=("NCDHW", "OIDHW", "NCDHW"),
        preferred_element_type=jnp.float32,
    ) + bias[None, :, None, None, None]
    ref = pixel_shuffle_3d_ref(ref_conv, 2)
    np.testing.assert_allclose(np.asarray(out), np.asarray(ref),
                               rtol=5e-3, atol=5e-3)

    # Reference 2: full f32 conv -> loose tol (kernel feeds the MXU bf16).
    ref_conv32 = jax.lax.conv_general_dilated(
        x, weight, window_strides=(1, 1, 1), padding=((1, 1), (1, 1), (1, 1)),
        dimension_numbers=("NCDHW", "OIDHW", "NCDHW"),
    ) + bias[None, :, None, None, None]
    ref32 = pixel_shuffle_3d_ref(ref_conv32, 2)
    np.testing.assert_allclose(np.asarray(out), np.asarray(ref32),
                               rtol=5e-2, atol=5e-2)

    print("KERNEL_OK")
</pallas_src>

<mosaic_0001>
module attributes {stable_mosaic.version = 11 : i64} {
  func.func @_conv_kernel(%arg0: i32, %arg1: i32, %arg2: memref<1x1x10x10x10x4xbf16, #tpu.memory_space<vmem>>, %arg3: memref<3x36x32xbf16, #tpu.memory_space<vmem>>, %arg4: memref<1x32xf32, #tpu.memory_space<vmem>>, %arg5: memref<1x512x32xf32, #tpu.memory_space<vmem>>) attributes {dimension_semantics = [#tpu.dimension_semantics<parallel>, #tpu.dimension_semantics<parallel>], iteration_bounds = array<i64: 2, 1>, scalar_prefetch = 0 : i64, scratch_operands = 0 : i64, tpu.core_type = #tpu.core_type<tc>, window_params = [{transform_indices = @transform_0, window_bounds = array<i64: 1, 1, 10, 10, 10, 4>}, {pipeline_mode = #tpu.pipeline_mode<synchronous>, transform_indices = @transform_1, window_bounds = array<i64: 3, 36, 32>}, {pipeline_mode = #tpu.pipeline_mode<synchronous>, transform_indices = @transform_2, window_bounds = array<i64: 1, 32>}, {transform_indices = @transform_3, window_bounds = array<i64: 1, 512, 32>}]} {
    %c0 = arith.constant 0 : index
    %c0_0 = arith.constant 0 : index
    %c0_1 = arith.constant 0 : index
    %c0_2 = arith.constant 0 : index
    %c0_3 = arith.constant 0 : index
    %c0_4 = arith.constant 0 : index
    %0 = vector.load %arg2[%c0, %c0_0, %c0_1, %c0_2, %c0_3, %c0_4] : memref<1x1x10x10x10x4xbf16, #tpu.memory_space<vmem>>, vector<1x1x1x10x10x4xbf16>
    %1 = vector.shape_cast %0 : vector<1x1x1x10x10x4xbf16> to vector<10x10x4xbf16>
    %2 = arith.extf %1 : vector<10x10x4xbf16> to vector<10x10x4xf32>
    %3 = vector.extract_strided_slice %2 {offsets = [0, 0, 0], sizes = [10, 8, 4], strides = [1, 1, 1]} : vector<10x10x4xf32> to vector<10x8x4xf32>
    %4 = vector.shape_cast %3 : vector<10x8x4xf32> to vector<80x4xf32>
    %5 = arith.truncf %4 : vector<80x4xf32> to vector<80x4xbf16>
    %6 = vector.extract_strided_slice %2 {offsets = [0, 1, 0], sizes = [10, 8, 4], strides = [1, 1, 1]} : vector<10x10x4xf32> to vector<10x8x4xf32>
    %7 = vector.shape_cast %6 : vector<10x8x4xf32> to vector<80x4xf32>
    %8 = arith.truncf %7 : vector<80x4xf32> to vector<80x4xbf16>
    %9 = vector.extract_strided_slice %2 {offsets = [0, 2, 0], sizes = [10, 8, 4], strides = [1, 1, 1]} : vector<10x10x4xf32> to vector<10x8x4xf32>
    %10 = vector.shape_cast %9 : vector<10x8x4xf32> to vector<80x4xf32>
    %11 = arith.truncf %10 : vector<80x4xf32> to vector<80x4xbf16>
    %c0_5 = arith.constant 0 : index
    %c0_6 = arith.constant 0 : index
    %c1 = arith.constant 1 : index
    %c0_7 = arith.constant 0 : index
    %c0_8 = arith.constant 0 : index
    %c0_9 = arith.constant 0 : index
    %12 = vector.load %arg2[%c0_5, %c0_6, %c1, %c0_7, %c0_8, %c0_9] : memref<1x1x10x10x10x4xbf16, #tpu.memory_space<vmem>>, vector<1x1x1x10x10x4xbf16>
    %13 = vector.shape_cast %12 : vector<1x1x1x10x10x4xbf16> to vector<10x10x4xbf16>
    %14 = arith.extf %13 : vector<10x10x4xbf16> to vector<10x10x4xf32>
    %15 = vector.extract_strided_slice %14 {offsets = [0, 0, 0], sizes = [10, 8, 4], strides = [1, 1, 1]} : vector<10x10x4xf32> to vector<10x8x4xf32>
    %16 = vector.shape_cast %15 : vector<10x8x4xf32> to vector<80x4xf32>
    %17 = arith.truncf %16 : vector<80x4xf32> to vector<80x4xbf16>
    %18 = vector.extract_strided_slice %14 {offsets = [0, 1, 0], sizes = [10, 8, 4], strides = [1, 1, 1]} : vector<10x10x4xf32> to vector<10x8x4xf32>
    %19 = vector.shape_cast %18 : vector<10x8x4xf32> to vector<80x4xf32>
    %20 = arith.truncf %19 : vector<80x4xf32> to vector<80x4xbf16>
    %21 = vector.extract_strided_slice %14 {offsets = [0, 2, 0], sizes = [10, 8, 4], strides = [1, 1, 1]} : vector<10x10x4xf32> to vector<10x8x4xf32>
    %22 = vector.shape_cast %21 : vector<10x8x4xf32> to vector<80x4xf32>
    %23 = arith.truncf %22 : vector<80x4xf32> to vector<80x4xbf16>
    %c0_10 = arith.constant 0 : index
    %c0_11 = arith.constant 0 : index
    %c2 = arith.constant 2 : index
    %c0_12 = arith.constant 0 : index
    %c0_13 = arith.constant 0 : index
    %c0_14 = arith.constant 0 : index
    %24 = vector.load %arg2[%c0_10, %c0_11, %c2, %c0_12, %c0_13, %c0_14] : memref<1x1x10x10x10x4xbf16, #tpu.memory_space<vmem>>, vector<1x1x1x10x10x4xbf16>
    %25 = vector.shape_cast %24 : vector<1x1x1x10x10x4xbf16> to vector<10x10x4xbf16>
    %26 = arith.extf %25 : vector<10x10x4xbf16> to vector<10x10x4xf32>
    %27 = vector.extract_strided_slice %26 {offsets = [0, 0, 0], sizes = [10, 8, 4], strides = [1, 1, 1]} : vector<10x10x4xf32> to vector<10x8x4xf32>
    %28 = vector.shape_cast %27 : vector<10x8x4xf32> to vector<80x4xf32>
    %29 = arith.truncf %28 : vector<80x4xf32> to vector<80x4xbf16>
    %30 = vector.extract_strided_slice %26 {offsets = [0, 1, 0], sizes = [10, 8, 4], strides = [1, 1, 1]} : vector<10x10x4xf32> to vector<10x8x4xf32>
    %31 = vector.shape_cast %30 : vector<10x8x4xf32> to vector<80x4xf32>
    %32 = arith.truncf %31 : vector<80x4xf32> to vector<80x4xbf16>
    %33 = vector.extract_strided_slice %26 {offsets = [0, 2, 0], sizes = [10, 8, 4], strides = [1, 1, 1]} : vector<10x10x4xf32> to vector<10x8x4xf32>
    %34 = vector.shape_cast %33 : vector<10x8x4xf32> to vector<80x4xf32>
    %35 = arith.truncf %34 : vector<80x4xf32> to vector<80x4xbf16>
    %c0_15 = arith.constant 0 : index
    %c0_16 = arith.constant 0 : index
    %c3 = arith.constant 3 : index
    %c0_17 = arith.constant 0 : index
    %c0_18 = arith.constant 0 : index
    %c0_19 = arith.constant 0 : index
    %36 = vector.load %arg2[%c0_15, %c0_16, %c3, %c0_17, %c0_18, %c0_19] : memref<1x1x10x10x10x4xbf16, #tpu.memory_space<vmem>>, vector<1x1x1x10x10x4xbf16>
    %37 = vector.shape_cast %36 : vector<1x1x1x10x10x4xbf16> to vector<10x10x4xbf16>
    %38 = arith.extf %37 : vector<10x10x4xbf16> to vector<10x10x4xf32>
    %39 = vector.extract_strided_slice %38 {offsets = [0, 0, 0], sizes = [10, 8, 4], strides = [1, 1, 1]} : vector<10x10x4xf32> to vector<10x8x4xf32>
    %40 = vector.shape_cast %39 : vector<10x8x4xf32> to vector<80x4xf32>
    %41 = arith.truncf %40 : vector<80x4xf32> to vector<80x4xbf16>
    %42 = vector.extract_strided_slice %38 {offsets = [0, 1, 0], sizes = [10, 8, 4], strides = [1, 1, 1]} : vector<10x10x4xf32> to vector<10x8x4xf32>
    %43 = vector.shape_cast %42 : vector<10x8x4xf32> to vector<80x4xf32>
    %44 = arith.truncf %43 : vector<80x4xf32> to vector<80x4xbf16>
    %45 = vector.extract_strided_slice %38 {offsets = [0, 2, 0], sizes = [10, 8, 4], strides = [1, 1, 1]} : vector<10x10x4xf32> to vector<10x8x4xf32>
    %46 = vector.shape_cast %45 : vector<10x8x4xf32> to vector<80x4xf32>
    %47 = arith.truncf %46 : vector<80x4xf32> to vector<80x4xbf16>
    %c0_20 = arith.constant 0 : index
    %c0_21 = arith.constant 0 : index
    %c4 = arith.constant 4 : index
    %c0_22 = arith.constant 0 : index
    %c0_23 = arith.constant 0 : index
    %c0_24 = arith.constant 0 : index
    %48 = vector.load %arg2[%c0_20, %c0_21, %c4, %c0_22, %c0_23, %c0_24] : memref<1x1x10x10x10x4xbf16, #tpu.memory_space<vmem>>, vector<1x1x1x10x10x4xbf16>
    %49 = vector.shape_cast %48 : vector<1x1x1x10x10x4xbf16> to vector<10x10x4xbf16>
    %50 = arith.extf %49 : vector<10x10x4xbf16> to vector<10x10x4xf32>
    %51 = vector.extract_strided_slice %50 {offsets = [0, 0, 0], sizes = [10, 8, 4], strides = [1, 1, 1]} : vector<10x10x4xf32> to vector<10x8x4xf32>
    %52 = vector.shape_cast %51 : vector<10x8x4xf32> to vector<80x4xf32>
    %53 = arith.truncf %52 : vector<80x4xf32> to vector<80x4xbf16>
    %54 = vector.extract_strided_slice %50 {offsets = [0, 1, 0], sizes = [10, 8, 4], strides = [1, 1, 1]} : vector<10x10x4xf32> to vector<10x8x4xf32>
    %55 = vector.shape_cast %54 : vector<10x8x4xf32> to vector<80x4xf32>
    %56 = arith.truncf %55 : vector<80x4xf32> to vector<80x4xbf16>
    %57 = vector.extract_strided_slice %50 {offsets = [0, 2, 0], sizes = [10, 8, 4], strides = [1, 1, 1]} : vector<10x10x4xf32> to vector<10x8x4xf32>
    %58 = vector.shape_cast %57 : vector<10x8x4xf32> to vector<80x4xf32>
    %59 = arith.truncf %58 : vector<80x4xf32> to vector<80x4xbf16>
    %c0_25 = arith.constant 0 : index
    %c0_26 = arith.constant 0 : index
    %c5 = arith.constant 5 : index
    %c0_27 = arith.constant 0 : index
    %c0_28 = arith.constant 0 : index
    %c0_29 = arith.constant 0 : index
    %60 = vector.load %arg2[%c0_25, %c0_26, %c5, %c0_27, %c0_28, %c0_29] : memref<1x1x10x10x10x4xbf16, #tpu.memory_space<vmem>>, vector<1x1x1x10x10x4xbf16>
    %61 = vector.shape_cast %60 : vector<1x1x1x10x10x4xbf16> to vector<10x10x4xbf16>
    %62 = arith.extf %61 : vector<10x10x4xbf16> to vector<10x10x4xf32>
    %63 = vector.extract_strided_slice %62 {offsets = [0, 0, 0], sizes = [10, 8, 4], strides = [1, 1, 1]} : vector<10x10x4xf32> to vector<10x8x4xf32>
    %64 = vector.shape_cast %63 : vector<10x8x4xf32> to vector<80x4xf32>
    %65 = arith.truncf %64 : vector<80x4xf32> to vector<80x4xbf16>
    %66 = vector.extract_strided_slice %62 {offsets = [0, 1, 0], sizes = [10, 8, 4], strides = [1, 1, 1]} : vector<10x10x4xf32> to vector<10x8x4xf32>
    %67 = vector.shape_cast %66 : vector<10x8x4xf32> to vector<80x4xf32>
    %68 = arith.truncf %67 : vector<80x4xf32> to vector<80x4xbf16>
    %69 = vector.extract_strided_slice %62 {offsets = [0, 2, 0], sizes = [10, 8, 4], strides = [1, 1, 1]} : vector<10x10x4xf32> to vector<10x8x4xf32>
    %70 = vector.shape_cast %69 : vector<10x8x4xf32> to vector<80x4xf32>
    %71 = arith.truncf %70 : vector<80x4xf32> to vector<80x4xbf16>
    %c0_30 = arith.constant 0 : index
    %c0_31 = arith.constant 0 : index
    %c6 = arith.constant 6 : index
    %c0_32 = arith.constant 0 : index
    %c0_33 = arith.constant 0 : index
    %c0_34 = arith.constant 0 : index
    %72 = vector.load %arg2[%c0_30, %c0_31, %c6, %c0_32, %c0_33, %c0_34] : memref<1x1x10x10x10x4xbf16, #tpu.memory_space<vmem>>, vector<1x1x1x10x10x4xbf16>
    %73 = vector.shape_cast %72 : vector<1x1x1x10x10x4xbf16> to vector<10x10x4xbf16>
    %74 = arith.extf %73 : vector<10x10x4xbf16> to vector<10x10x4xf32>
    %75 = vector.extract_strided_slice %74 {offsets = [0, 0, 0], sizes = [10, 8, 4], strides = [1, 1, 1]} : vector<10x10x4xf32> to vector<10x8x4xf32>
    %76 = vector.shape_cast %75 : vector<10x8x4xf32> to vector<80x4xf32>
    %77 = arith.truncf %76 : vector<80x4xf32> to vector<80x4xbf16>
    %78 = vector.extract_strided_slice %74 {offsets = [0, 1, 0], sizes = [10, 8, 4], strides = [1, 1, 1]} : vector<10x10x4xf32> to vector<10x8x4xf32>
    %79 = vector.shape_cast %78 : vector<10x8x4xf32> to vector<80x4xf32>
    %80 = arith.truncf %79 : vector<80x4xf32> to vector<80x4xbf16>
    %81 = vector.extract_strided_slice %74 {offsets = [0, 2, 0], sizes = [10, 8, 4], strides = [1, 1, 1]} : vector<10x10x4xf32> to vector<10x8x4xf32>
    %82 = vector.shape_cast %81 : vector<10x8x4xf32> to vector<80x4xf32>
    %83 = arith.truncf %82 : vector<80x4xf32> to vector<80x4xbf16>
    %c0_35 = arith.constant 0 : index
    %c0_36 = arith.constant 0 : index
    %c7 = arith.constant 7 : index
    %c0_37 = arith.constant 0 : index
    %c0_38 = arith.constant 0 : index
    %c0_39 = arith.constant 0 : index
    %84 = vector.load %arg2[%c0_35, %c0_36, %c7, %c0_37, %c0_38, %c0_39] : memref<1x1x10x10x10x4xbf16, #tpu.memory_space<vmem>>, vector<1x1x1x10x10x4xbf16>
    %85 = vector.shape_cast %84 : vector<1x1x1x10x10x4xbf16> to vector<10x10x4xbf16>
    %86 = arith.extf %85 : vector<10x10x4xbf16> to vector<10x10x4xf32>
    %87 = vector.extract_strided_slice %86 {offsets = [0, 0, 0], sizes = [10, 8, 4], strides = [1, 1, 1]} : vector<10x10x4xf32> to vector<10x8x4xf32>
    %88 = vector.shape_cast %87 : vector<10x8x4xf32> to vector<80x4xf32>
    %89 = arith.truncf %88 : vector<80x4xf32> to vector<80x4xbf16>
    %90 = vector.extract_strided_slice %86 {offsets = [0, 1, 0], sizes = [10, 8, 4], strides = [1, 1, 1]} : vector<10x10x4xf32> to vector<10x8x4xf32>
    %91 = vector.shape_cast %90 : vector<10x8x4xf32> to vector<80x4xf32>
    %92 = arith.truncf %91 : vector<80x4xf32> to vector<80x4xbf16>
    %93 = vector.extract_strided_slice %86 {offsets = [0, 2, 0], sizes = [10, 8, 4], strides = [1, 1, 1]} : vector<10x10x4xf32> to vector<10x8x4xf32>
    %94 = vector.shape_cast %93 : vector<10x8x4xf32> to vector<80x4xf32>
    %95 = arith.truncf %94 : vector<80x4xf32> to vector<80x4xbf16>
    %c0_40 = arith.constant 0 : index
    %c0_41 = arith.constant 0 : index
    %c8 = arith.constant 8 : index
    %c0_42 = arith.constant 0 : index
    %c0_43 = arith.constant 0 : index
    %c0_44 = arith.constant 0 : index
    %96 = vector.load %arg2[%c0_40, %c0_41, %c8, %c0_42, %c0_43, %c0_44] : memref<1x1x10x10x10x4xbf16, #tpu.memory_space<vmem>>, vector<1x1x1x10x10x4xbf16>
    %97 = vector.shape_cast %96 : vector<1x1x1x10x10x4xbf16> to vector<10x10x4xbf16>
    %98 = arith.extf %97 : vector<10x10x4xbf16> to vector<10x10x4xf32>
    %99 = vector.extract_strided_slice %98 {offsets = [0, 0, 0], sizes = [10, 8, 4], strides = [1, 1, 1]} : vector<10x10x4xf32> to vector<10x8x4xf32>
    %100 = vector.shape_cast %99 : vector<10x8x4xf32> to vector<80x4xf32>
    %101 = arith.truncf %100 : vector<80x4xf32> to vector<80x4xbf16>
    %102 = vector.extract_strided_slice %98 {offsets = [0, 1, 0], sizes = [10, 8, 4], strides = [1, 1, 1]} : vector<10x10x4xf32> to vector<10x8x4xf32>
    %103 = vector.shape_cast %102 : vector<10x8x4xf32> to vector<80x4xf32>
    %104 = arith.truncf %103 : vector<80x4xf32> to vector<80x4xbf16>
    %105 = vector.extract_strided_slice %98 {offsets = [0, 2, 0], sizes = [10, 8, 4], strides = [1, 1, 1]} : vector<10x10x4xf32> to vector<10x8x4xf32>
    %106 = vector.shape_cast %105 : vector<10x8x4xf32> to vector<80x4xf32>
    %107 = arith.truncf %106 : vector<80x4xf32> to vector<80x4xbf16>
    %c0_45 = arith.constant 0 : index
    %c0_46 = arith.constant 0 : index
    %c9 = arith.constant 9 : index
    %c0_47 = arith.constant 0 : index
    %c0_48 = arith.constant 0 : index
    %c0_49 = arith.constant 0 : index
    %108 = vector.load %arg2[%c0_45, %c0_46, %c9, %c0_47, %c0_48, %c0_49] : memref<1x1x10x10x10x4xbf16, #tpu.memory_space<vmem>>, vector<1x1x1x10x10x4xbf16>
    %109 = vector.shape_cast %108 : vector<1x1x1x10x10x4xbf16> to vector<10x10x4xbf16>
    %110 = arith.extf %109 : vector<10x10x4xbf16> to vector<10x10x4xf32>
    %111 = vector.extract_strided_slice %110 {offsets = [0, 0, 0], sizes = [10, 8, 4], strides = [1, 1, 1]} : vector<10x10x4xf32> to vector<10x8x4xf32>
    %112 = vector.shape_cast %111 : vector<10x8x4xf32> to vector<80x4xf32>
    %113 = arith.truncf %112 : vector<80x4xf32> to vector<80x4xbf16>
    %114 = vector.extract_strided_slice %110 {offsets = [0, 1, 0], sizes = [10, 8, 4], strides = [1, 1, 1]} : vector<10x10x4xf32> to vector<10x8x4xf32>
    %115 = vector.shape_cast %114 : vector<10x8x4xf32> to vector<80x4xf32>
    %116 = arith.truncf %115 : vector<80x4xf32> to vector<80x4xbf16>
    %117 = vector.extract_strided_slice %110 {offsets = [0, 2, 0], sizes = [10, 8, 4], strides = [1, 1, 1]} : vector<10x10x4xf32> to vector<10x8x4xf32>
    %118 = vector.shape_cast %117 : vector<10x8x4xf32> to vector<80x4xf32>
    %119 = arith.truncf %118 : vector<80x4xf32> to vector<80x4xbf16>
    %120 = vector.extract_strided_slice %5 {offsets = [0, 0], sizes = [64, 4], strides = [1, 1]} : vector<80x4xbf16> to vector<64x4xbf16>
    %121 = vector.extract_strided_slice %8 {offsets = [0, 0], sizes = [64, 4], strides = [1, 1]} : vector<80x4xbf16> to vector<64x4xbf16>
    %122 = vector.extract_strided_slice %11 {offsets = [0, 0], sizes = [64, 4], strides = [1, 1]} : vector<80x4xbf16> to vector<64x4xbf16>
    %123 = vector.extract_strided_slice %5 {offsets = [8, 0], sizes = [64, 4], strides = [1, 1]} : vector<80x4xbf16> to vector<64x4xbf16>
    %124 = vector.extract_strided_slice %8 {offsets = [8, 0], sizes = [64, 4], strides = [1, 1]} : vector<80x4xbf16> to vector<64x4xbf16>
    %125 = vector.extract_strided_slice %11 {offsets = [8, 0], sizes = [64, 4], strides = [1, 1]} : vector<80x4xbf16> to vector<64x4xbf16>
    %126 = vector.extract_strided_slice %5 {offsets = [16, 0], sizes = [64, 4], strides = [1, 1]} : vector<80x4xbf16> to vector<64x4xbf16>
    %127 = vector.extract_strided_slice %8 {offsets = [16, 0], sizes = [64, 4], strides = [1, 1]} : vector<80x4xbf16> to vector<64x4xbf16>
    %128 = vector.extract_strided_slice %11 {offsets = [16, 0], sizes = [64, 4], strides = [1, 1]} : vector<80x4xbf16> to vector<64x4xbf16>
    %129 = tpu.concatenate %120, %121, %122, %123, %124, %125, %126, %127, %128 in 1 : vector<64x4xbf16>, vector<64x4xbf16>, vector<64x4xbf16>, vector<64x4xbf16>, vector<64x4xbf16>, vector<64x4xbf16>, vector<64x4xbf16>, vector<64x4xbf16>, vector<64x4xbf16> -> vector<64x36xbf16>
    %130 = vector.extract_strided_slice %17 {offsets = [0, 0], sizes = [64, 4], strides = [1, 1]} : vector<80x4xbf16> to vector<64x4xbf16>
    %131 = vector.extract_strided_slice %20 {offsets = [0, 0], sizes = [64, 4], strides = [1, 1]} : vector<80x4xbf16> to vector<64x4xbf16>
    %132 = vector.extract_strided_slice %23 {offsets = [0, 0], sizes = [64, 4], strides = [1, 1]} : vector<80x4xbf16> to vector<64x4xbf16>
    %133 = vector.extract_strided_slice %17 {offsets = [8, 0], sizes = [64, 4], strides = [1, 1]} : vector<80x4xbf16> to vector<64x4xbf16>
    %134 = vector.extract_strided_slice %20 {offsets = [8, 0], sizes = [64, 4], strides = [1, 1]} : vector<80x4xbf16> to vector<64x4xbf16>
    %135 = vector.extract_strided_slice %23 {offsets = [8, 0], sizes = [64, 4], strides = [1, 1]} : vector<80x4xbf16> to vector<64x4xbf16>
    %136 = vector.extract_strided_slice %17 {offsets = [16, 0], sizes = [64, 4], strides = [1, 1]} : vector<80x4xbf16> to vector<64x4xbf16>
    %137 = vector.extract_strided_slice %20 {offsets = [16, 0], sizes = [64, 4], strides = [1, 1]} : vector<80x4xbf16> to vector<64x4xbf16>
    %138 = vector.extract_strided_slice %23 {offsets = [16, 0], sizes = [64, 4], strides = [1, 1]} : vector<80x4xbf16> to vector<64x4xbf16>
    %139 = tpu.concatenate %130, %131, %132, %133, %134, %135, %136, %137, %138 in 1 : vector<64x4xbf16>, vector<64x4xbf16>, vector<64x4xbf16>, vector<64x4xbf16>, vector<64x4xbf16>, vector<64x4xbf16>, vector<64x4xbf16>, vector<64x4xbf16>, vector<64x4xbf16> -> vector<64x36xbf16>
    %140 = vector.extract_strided_slice %29 {offsets = [0, 0], sizes = [64, 4], strides = [1, 1]} : vector<80x4xbf16> to vector<64x4xbf16>
    %141 = vector.extract_strided_slice %32 {offsets = [0, 0], sizes = [64, 4], strides = [1, 1]} : vector<80x4xbf16> to vector<64x4xbf16>
    %142 = vector.extract_strided_slice %35 {offsets = [0, 0], sizes = [64, 4], strides = [1, 1]} : vector<80x4xbf16> to vector<64x4xbf16>
    %143 = vector.extract_strided_slice %29 {offsets = [8, 0], sizes = [64, 4], strides = [1, 1]} : vector<80x4xbf16> to vector<64x4xbf16>
    %144 = vector.extract_strided_slice %32 {offsets = [8, 0], sizes = [64, 4], strides = [1, 1]} : vector<80x4xbf16> to vector<64x4xbf16>
    %145 = vector.extract_strided_slice %35 {offsets = [8, 0], sizes = [64, 4], strides = [1, 1]} : vector<80x4xbf16> to vector<64x4xbf16>
    %146 = vector.extract_strided_slice %29 {offsets = [16, 0], sizes = [64, 4], strides = [1, 1]} : vector<80x4xbf16> to vector<64x4xbf16>
    %147 = vector.extract_strided_slice %32 {offsets = [16, 0], sizes = [64, 4], strides = [1, 1]} : vector<80x4xbf16> to vector<64x4xbf16>
    %148 = vector.extract_strided_slice %35 {offsets = [16, 0], sizes = [64, 4], strides = [1, 1]} : vector<80x4xbf16> to vector<64x4xbf16>
    %149 = tpu.concatenate %140, %141, %142, %143, %144, %145, %146, %147, %148 in 1 : vector<64x4xbf16>, vector<64x4xbf16>, vector<64x4xbf16>, vector<64x4xbf16>, vector<64x4xbf16>, vector<64x4xbf16>, vector<64x4xbf16>, vector<64x4xbf16>, vector<64x4xbf16> -> vector<64x36xbf16>
    %150 = vector.extract_strided_slice %41 {offsets = [0, 0], sizes = [64, 4], strides = [1, 1]} : vector<80x4xbf16> to vector<64x4xbf16>
    %151 = vector.extract_strided_slice %44 {offsets = [0, 0], sizes = [64, 4], strides = [1, 1]} : vector<80x4xbf16> to vector<64x4xbf16>
    %152 = vector.extract_strided_slice %47 {offsets = [0, 0], sizes = [64, 4], strides = [1, 1]} : vector<80x4xbf16> to vector<64x4xbf16>
    %153 = vector.extract_strided_slice %41 {offsets = [8, 0], sizes = [64, 4], strides = [1, 1]} : vector<80x4xbf16> to vector<64x4xbf16>
    %154 = vector.extract_strided_slice %44 {offsets = [8, 0], sizes = [64, 4], strides = [1, 1]} : vector<80x4xbf16> to vector<64x4xbf16>
    %155 = vector.extract_strided_slice %47 {offsets = [8, 0], sizes = [64, 4], strides = [1, 1]} : vector<80x4xbf16> to vector<64x4xbf16>
    %156 = vector.extract_strided_slice %41 {offsets = [16, 0], sizes = [64, 4], strides = [1, 1]} : vector<80x4xbf16> to vector<64x4xbf16>
    %157 = vector.extract_strided_slice %44 {offsets = [16, 0], sizes = [64, 4], strides = [1, 1]} : vector<80x4xbf16> to vector<64x4xbf16>
    %158 = vector.extract_strided_slice %47 {offsets = [16, 0], sizes = [64, 4], strides = [1, 1]} : vector<80x4xbf16> to vector<64x4xbf16>
    %159 = tpu.concatenate %150, %151, %152, %153, %154, %155, %156, %157, %158 in 1 : vector<64x4xbf16>, vector<64x4xbf16>, vector<64x4xbf16>, vector<64x4xbf16>, vector<64x4xbf16>, vector<64x4xbf16>, vector<64x4xbf16>, vector<64x4xbf16>, vector<64x4xbf16> -> vector<64x36xbf16>
    %160 = vector.extract_strided_slice %53 {offsets = [0, 0], sizes = [64, 4], strides = [1, 1]} : vector<80x4xbf16> to vector<64x4xbf16>
    %161 = vector.extract_strided_slice %56 {offsets = [0, 0], sizes = [64, 4], strides = [1, 1]} : vector<80x4xbf16> to vector<64x4xbf16>
    %162 = vector.extract_strided_slice %59 {offsets = [0, 0], sizes = [64, 4], strides = [1, 1]} : vector<80x4xbf16> to vector<64x4xbf16>
    %163 = vector.extract_strided_slice %53 {offsets = [8, 0], sizes = [64, 4], strides = [1, 1]} : vector<80x4xbf16> to vector<64x4xbf16>
    %164 = vector.extract_strided_slice %56 {offsets = [8, 0], sizes = [64, 4], strides = [1, 1]} : vector<80x4xbf16> to vector<64x4xbf16>
    %165 = vector.extract_strided_slice %59 {offsets = [8, 0], sizes = [64, 4], strides = [1, 1]} : vector<80x4xbf16> to vector<64x4xbf16>
    %166 = vector.extract_strided_slice %53 {offsets = [16, 0], sizes = [64, 4], strides = [1, 1]} : vector<80x4xbf16> to vector<64x4xbf16>
    %167 = vector.extract_strided_slice %56 {offsets = [16, 0], sizes = [64, 4], strides = [1, 1]} : vector<80x4xbf16> to vector<64x4xbf16>
    %168 = vector.extract_strided_slice %59 {offsets = [16, 0], sizes = [64, 4], strides = [1, 1]} : vector<80x4xbf16> to vector<64x4xbf16>
    %169 = tpu.concatenate %160, %161, %162, %163, %164, %165, %166, %167, %168 in 1 : vector<64x4xbf16>, vector<64x4xbf16>, vector<64x4xbf16>, vector<64x4xbf16>, vector<64x4xbf16>, vector<64x4xbf16>, vector<64x4xbf16>, vector<64x4xbf16>, vector<64x4xbf16> -> vector<64x36xbf16>
    %170 = vector.extract_strided_slice %65 {offsets = [0, 0], sizes = [64, 4], strides = [1, 1]} : vector<80x4xbf16> to vector<64x4xbf16>
    %171 = vector.extract_strided_slice %68 {offsets = [0, 0], sizes = [64, 4], strides = [1, 1]} : vector<80x4xbf16> to vector<64x4xbf16>
    %172 = vector.extract_strided_slice %71 {offsets = [0, 0], sizes = [64, 4], strides = [1, 1]} : vector<80x4xbf16> to vector<64x4xbf16>
    %173 = vector.extract_strided_slice %65 {offsets = [8, 0], sizes = [64, 4], strides = [1, 1]} : vector<80x4xbf16> to vector<64x4xbf16>
    %174 = vector.extract_strided_slice %68 {offsets = [8, 0], sizes = [64, 4], strides = [1, 1]} : vector<80x4xbf16> to vector<64x4xbf16>
    %175 = vector.extract_strided_slice %71 {offsets = [8, 0], sizes = [64, 4], strides = [1, 1]} : vector<80x4xbf16> to vector<64x4xbf16>
    %176 = vector.extract_strided_slice %65 {offsets = [16, 0], sizes = [64, 4], strides = [1, 1]} : vector<80x4xbf16> to vector<64x4xbf16>
    %177 = vector.extract_strided_slice %68 {offsets = [16, 0], sizes = [64, 4], strides = [1, 1]} : vector<80x4xbf16> to vector<64x4xbf16>
    %178 = vector.extract_strided_slice %71 {offsets = [16, 0], sizes = [64, 4], strides = [1, 1]} : vector<80x4xbf16> to vector<64x4xbf16>
    %179 = tpu.concatenate %170, %171, %172, %173, %174, %175, %176, %177, %178 in 1 : vector<64x4xbf16>, vector<64x4xbf16>, vector<64x4xbf16>, vector<64x4xbf16>, vector<64x4xbf16>, vector<64x4xbf16>, vector<64x4xbf16>, vector<64x4xbf16>, vector<64x4xbf16> -> vector<64x36xbf16>
    %180 = vector.extract_strided_slice %77 {offsets = [0, 0], sizes = [64, 4], strides = [1, 1]} : vector<80x4xbf16> to vector<64x4xbf16>
    %181 = vector.extract_strided_slice %80 {offsets = [0, 0], sizes = [64, 4], strides = [1, 1]} : vector<80x4xbf16> to vector<64x4xbf16>
    %182 = vector.extract_strided_slice %83 {offsets = [0, 0], sizes = [64, 4], strides = [1, 1]} : vector<80x4xbf16> to vector<64x4xbf16>
    %183 = vector.extract_strided_slice %77 {offsets = [8, 0], sizes = [64, 4], strides = [1, 1]} : vector<80x4xbf16> to vector<64x4xbf16>
    %184 = vector.extract_strided_slice %80 {offsets = [8, 0], sizes = [64, 4], strides = [1, 1]} : vector<80x4xbf16> to vector<64x4xbf16>
    %185 = vector.extract_strided_slice %83 {offsets = [8, 0], sizes = [64, 4], strides = [1, 1]} : vector<80x4xbf16> to vector<64x4xbf16>
    %186 = vector.extract_strided_slice %77 {offsets = [16, 0], sizes = [64, 4], strides = [1, 1]} : vector<80x4xbf16> to vector<64x4xbf16>
    %187 = vector.extract_strided_slice %80 {offsets = [16, 0], sizes = [64, 4], strides = [1, 1]} : vector<80x4xbf16> to vector<64x4xbf16>
    %188 = vector.extract_strided_slice %83 {offsets = [16, 0], sizes = [64, 4], strides = [1, 1]} : vector<80x4xbf16> to vector<64x4xbf16>
    %189 = tpu.concatenate %180, %181, %182, %183, %184, %185, %186, %187, %188 in 1 : vector<64x4xbf16>, vector<64x4xbf16>, vector<64x4xbf16>, vector<64x4xbf16>, vector<64x4xbf16>, vector<64x4xbf16>, vector<64x4xbf16>, vector<64x4xbf16>, vector<64x4xbf16> -> vector<64x36xbf16>
    %190 = vector.extract_strided_slice %89 {offsets = [0, 0], sizes = [64, 4], strides = [1, 1]} : vector<80x4xbf16> to vector<64x4xbf16>
    %191 = vector.extract_strided_slice %92 {offsets = [0, 0], sizes = [64, 4], strides = [1, 1]} : vector<80x4xbf16> to vector<64x4xbf16>
    %192 = vector.extract_strided_slice %95 {offsets = [0, 0], sizes = [64, 4], strides = [1, 1]} : vector<80x4xbf16> to vector<64x4xbf16>
    %193 = vector.extract_strided_slice %89 {offsets = [8, 0], sizes = [64, 4], strides = [1, 1]} : vector<80x4xbf16> to vector<64x4xbf16>
    %194 = vector.extract_strided_slice %92 {offsets = [8, 0], sizes = [64, 4], strides = [1, 1]} : vector<80x4xbf16> to vector<64x4xbf16>
    %195 = vector.extract_strided_slice %95 {offsets = [8, 0], sizes = [64, 4], strides = [1, 1]} : vector<80x4xbf16> to vector<64x4xbf16>
    %196 = vector.extract_strided_slice %89 {offsets = [16, 0], sizes = [64, 4], strides = [1, 1]} : vector<80x4xbf16> to vector<64x4xbf16>
    %197 = vector.extract_strided_slice %92 {offsets = [16, 0], sizes = [64, 4], strides = [1, 1]} : vector<80x4xbf16> to vector<64x4xbf16>
    %198 = vector.extract_strided_slice %95 {offsets = [16, 0], sizes = [64, 4], strides = [1, 1]} : vector<80x4xbf16> to vector<64x4xbf16>
    %199 = tpu.concatenate %190, %191, %192, %193, %194, %195, %196, %197, %198 in 1 : vector<64x4xbf16>, vector<64x4xbf16>, vector<64x4xbf16>, vector<64x4xbf16>, vector<64x4xbf16>, vector<64x4xbf16>, vector<64x4xbf16>, vector<64x4xbf16>, vector<64x4xbf16> -> vector<64x36xbf16>
    %200 = tpu.concatenate %129, %139, %149, %159, %169, %179, %189, %199 in 0 : vector<64x36xbf16>, vector<64x36xbf16>, vector<64x36xbf16>, vector<64x36xbf16>, vector<64x36xbf16>, vector<64x36xbf16>, vector<64x36xbf16>, vector<64x36xbf16> -> vector<512x36xbf16>
    %c0_50 = arith.constant 0 : index
    %c0_51 = arith.constant 0 : index
    %c0_52 = arith.constant 0 : index
    %201 = vector.load %arg3[%c0_50, %c0_51, %c0_52] : memref<3x36x32xbf16, #tpu.memory_space<vmem>>, vector<1x36x32xbf16>
    %202 = vector.shape_cast %201 : vector<1x36x32xbf16> to vector<36x32xbf16>
    %cst = arith.constant dense<0.000000e+00> : vector<512x32xf32>
    %203 = tpu.matmul %200, %202, %cst {dimension_numbers = #tpu.dot_dimension_numbers<[1], [0], [0], [1], [0, 0, 1, 1], [], []>} : vector<512x36xbf16>, vector<36x32xbf16>, vector<512x32xf32> -> vector<512x32xf32>
    %204 = vector.extract_strided_slice %17 {offsets = [0, 0], sizes = [64, 4], strides = [1, 1]} : vector<80x4xbf16> to vector<64x4xbf16>
    %205 = vector.extract_strided_slice %20 {offsets = [0, 0], sizes = [64, 4], strides = [1, 1]} : vector<80x4xbf16> to vector<64x4xbf16>
    %206 = vector.extract_strided_slice %23 {offsets = [0, 0], sizes = [64, 4], strides = [1, 1]} : vector<80x4xbf16> to vector<64x4xbf16>
    %207 = vector.extract_strided_slice %17 {offsets = [8, 0], sizes = [64, 4], strides = [1, 1]} : vector<80x4xbf16> to vector<64x4xbf16>
    %208 = vector.extract_strided_slice %20 {offsets = [8, 0], sizes = [64, 4], strides = [1, 1]} : vector<80x4xbf16> to vector<64x4xbf16>
    %209 = vector.extract_strided_slice %23 {offsets = [8, 0], sizes = [64, 4], strides = [1, 1]} : vector<80x4xbf16> to vector<64x4xbf16>
    %210 = vector.extract_strided_slice %17 {offsets = [16, 0], sizes = [64, 4], strides = [1, 1]} : vector<80x4xbf16> to vector<64x4xbf16>
    %211 = vector.extract_strided_slice %20 {offsets = [16, 0], sizes = [64, 4], strides = [1, 1]} : vector<80x4xbf16> to vector<64x4xbf16>
    %212 = vector.extract_strided_slice %23 {offsets = [16, 0], sizes = [64, 4], strides = [1, 1]} : vector<80x4xbf16> to vector<64x4xbf16>
    %213 = tpu.concatenate %204, %205, %206, %207, %208, %209, %210, %211, %212 in 1 : vector<64x4xbf16>, vector<64x4xbf16>, vector<64x4xbf16>, vector<64x4xbf16>, vector<64x4xbf16>, vector<64x4xbf16>, vector<64x4xbf16>, vector<64x4xbf16>, vector<64x4xbf16> -> vector<64x36xbf16>
    %214 = vector.extract_strided_slice %29 {offsets = [0, 0], sizes = [64, 4], strides = [1, 1]} : vector<80x4xbf16> to vector<64x4xbf16>
    %215 = vector.extract_strided_slice %32 {offsets = [0, 0], sizes = [64, 4], strides = [1, 1]} : vector<80x4xbf16> to vector<64x4xbf16>
    %216 = vector.extract_strided_slice %35 {offsets = [0, 0], sizes = [64, 4], strides = [1, 1]} : vector<80x4xbf16> to vector<64x4xbf16>
    %217 = vector.extract_strided_slice %29 {offsets = [8, 0], sizes = [64, 4], strides = [1, 1]} : vector<80x4xbf16> to vector<64x4xbf16>
    %218 = vector.extract_strided_slice %32 {offsets = [8, 0], sizes = [64, 4], strides = [1, 1]} : vector<80x4xbf16> to vector<64x4xbf16>
    %219 = vector.extract_strided_slice %35 {offsets = [8, 0], sizes = [64, 4], strides = [1, 1]} : vector<80x4xbf16> to vector<64x4xbf16>
    %220 = vector.extract_strided_slice %29 {offsets = [16, 0], sizes = [64, 4], strides = [1, 1]} : vector<80x4xbf16> to vector<64x4xbf16>
    %221 = vector.extract_strided_slice %32 {offsets = [16, 0], sizes = [64, 4], strides = [1, 1]} : vector<80x4xbf16> to vector<64x4xbf16>
    %222 = vector.extract_strided_slice %35 {offsets = [16, 0], sizes = [64, 4], strides = [1, 1]} : vector<80x4xbf16> to vector<64x4xbf16>
    %223 = tpu.concatenate %214, %215, %216, %217, %218, %219, %220, %221, %222 in 1 : vector<64x4xbf16>, vector<64x4xbf16>, vector<64x4xbf16>, vector<64x4xbf16>, vector<64x4xbf16>, vector<64x4xbf16>, vector<64x4xbf16>, vector<64x4xbf16>, vector<64x4xbf16> -> vector<64x36xbf16>
    %224 = vector.extract_strided_slice %41 {offsets = [0, 0], sizes = [64, 4], strides = [1, 1]} : vector<80x4xbf16> to vector<64x4xbf16>
    %225 = vector.extract_strided_slice %44 {offsets = [0, 0], sizes = [64, 4], strides = [1, 1]} : vector<80x4xbf16> to vector<64x4xbf16>
    %226 = vector.extract_strided_slice %47 {offsets = [0, 0], sizes = [64, 4], strides = [1, 1]} : vector<80x4xbf16> to vector<64x4xbf16>
    %227 = vector.extract_strided_slice %41 {offsets = [8, 0], sizes = [64, 4], strides = [1, 1]} : vector<80x4xbf16> to vector<64x4xbf16>
    %228 = vector.extract_strided_slice %44 {offsets = [8, 0], sizes = [64, 4], strides = [1, 1]} : vector<80x4xbf16> to vector<64x4xbf16>
    %229 = vector.extract_strided_slice %47 {offsets = [8, 0], sizes = [64, 4], strides = [1, 1]} : vector<80x4xbf16> to vector<64x4xbf16>
    %230 = vector.extract_strided_slice %41 {offsets = [16, 0], sizes = [64, 4], strides = [1, 1]} : vector<80x4xbf16> to vector<64x4xbf16>
    %231 = vector.extract_strided_slice %44 {offsets = [16, 0], sizes = [64, 4], strides = [1, 1]} : vector<80x4xbf16> to vector<64x4xbf16>
    %232 = vector.extract_strided_slice %47 {offsets = [16, 0], sizes = [64, 4], strides = [1, 1]} : vector<80x4xbf16> to vector<64x4xbf16>
    %233 = tpu.concatenate %224, %225, %226, %227, %228, %229, %230, %231, %232 in 1 : vector<64x4xbf16>, vector<64x4xbf16>, vector<64x4xbf16>, vector<64x4xbf16>, vector<64x4xbf16>, vector<64x4xbf16>, vector<64x4xbf16>, vector<64x4xbf16>, vector<64x4xbf16> -> vector<64x36xbf16>
    %234 = vector.extract_strided_slice %53 {offsets = [0, 0], sizes = [64, 4], strides = [1, 1]} : vector<80x4xbf16> to vector<64x4xbf16>
    %235 = vector.extract_strided_slice %56 {offsets = [0, 0], sizes = [64, 4], strides = [1, 1]} : vector<80x4xbf16> to vector<64x4xbf16>
    %236 = vector.extract_strided_slice %59 {offsets = [0, 0], sizes = [64, 4], strides = [1, 1]} : vector<80x4xbf16> to vector<64x4xbf16>
    %237 = vector.extract_strided_slice %53 {offsets = [8, 0], sizes = [64, 4], strides = [1, 1]} : vector<80x4xbf16> to vector<64x4xbf16>
    %238 = vector.extract_strided_slice %56 {offsets = [8, 0], sizes = [64, 4], strides = [1, 1]} : vector<80x4xbf16> to vector<64x4xbf16>
    %239 = vector.extract_strided_slice %59 {offsets = [8, 0], sizes = [64, 4], strides = [1, 1]} : vector<80x4xbf16> to vector<64x4xbf16>
    %240 = vector.extract_strided_slice %53 {offsets = [16, 0], sizes = [64, 4], strides = [1, 1]} : vector<80x4xbf16> to vector<64x4xbf16>
    %241 = vector.extract_strided_slice %56 {offsets = [16, 0], sizes = [64, 4], strides = [1, 1]} : vector<80x4xbf16> to vector<64x4xbf16>
    %242 = vector.extract_strided_slice %59 {offsets = [16, 0], sizes = [64, 4], strides = [1, 1]} : vector<80x4xbf16> to vector<64x4xbf16>
    %243 = tpu.concatenate %234, %235, %236, %237, %238, %239, %240, %241, %242 in 1 : vector<64x4xbf16>, vector<64x4xbf16>, vector<64x4xbf16>, vector<64x4xbf16>, vector<64x4xbf16>, vector<64x4xbf16>, vector<64x4xbf16>, vector<64x4xbf16>, vector<64x4xbf16> -> vector<64x36xbf16>
    %244 = vector.extract_strided_slice %65 {offsets = [0, 0], sizes = [64, 4], strides = [1, 1]} : vector<80x4xbf16> to vector<64x4xbf16>
    %245 = vector.extract_strided_slice %68 {offsets = [0, 0], sizes = [64, 4], strides = [1, 1]} : vector<80x4xbf16> to vector<64x4xbf16>
    %246 = vector.extract_strided_slice %71 {offsets = [0, 0], sizes = [64, 4], strides = [1, 1]} : vector<80x4xbf16> to vector<64x4xbf16>
    %247 = vector.extract_strided_slice %65 {offsets = [8, 0], sizes = [64, 4], strides = [1, 1]} : vector<80x4xbf16> to vector<64x4xbf16>
    %248 = vector.extract_strided_slice %68 {offsets = [8, 0], sizes = [64, 4], strides = [1, 1]} : vector<80x4xbf16> to vector<64x4xbf16>
    %249 = vector.extract_strided_slice %71 {offsets = [8, 0], sizes = [64, 4], strides = [1, 1]} : vector<80x4xbf16> to vector<64x4xbf16>
    %250 = vector.extract_strided_slice %65 {offsets = [16, 0], sizes = [64, 4], strides = [1, 1]} : vector<80x4xbf16> to vector<64x4xbf16>
    %251 = vector.extract_strided_slice %68 {offsets = [16, 0], sizes = [64, 4], strides = [1, 1]} : vector<80x4xbf16> to vector<64x4xbf16>
    %252 = vector.extract_strided_slice %71 {offsets = [16, 0], sizes = [64, 4], strides = [1, 1]} : vector<80x4xbf16> to vector<64x4xbf16>
    %253 = tpu.concatenate %244, %245, %246, %247, %248, %249, %250, %251, %252 in 1 : vector<64x4xbf16>, vector<64x4xbf16>, vector<64x4xbf16>, vector<64x4xbf16>, vector<64x4xbf16>, vector<64x4xbf16>, vector<64x4xbf16>, vector<64x4xbf16>, vector<64x4xbf16> -> vector<64x36xbf16>
    %254 = vector.extract_strided_slice %77 {offsets = [0, 0], sizes = [64, 4], strides = [1, 1]} : vector<80x4xbf16> to vector<64x4xbf16>
    %255 = vector.extract_strided_slice %80 {offsets = [0, 0], sizes = [64, 4], strides = [1, 1]} : vector<80x4xbf16> to vector<64x4xbf16>
    %256 = vector.extract_strided_slice %83 {offsets = [0, 0], sizes = [64, 4], strides = [1, 1]} : vector<80x4xbf16> to vector<64x4xbf16>
    %257 = vector.extract_strided_slice %77 {offsets = [8, 0], sizes = [64, 4], strides = [1, 1]} : vector<80x4xbf16> to vector<64x4xbf16>
    %258 = vector.extract_strided_slice %80 {offsets = [8, 0], sizes = [64, 4], strides = [1, 1]} : vector<80x4xbf16> to vector<64x4xbf16>
    %259 = vector.extract_strided_slice %83 {offsets = [8, 0], sizes = [64, 4], strides = [1, 1]} : vector<80x4xbf16> to vector<64x4xbf16>
    %260 = vector.extract_strided_slice %77 {offsets = [16, 0], sizes = [64, 4], strides = [1, 1]} : vector<80x4xbf16> to vector<64x4xbf16>
    %261 = vector.extract_strided_slice %80 {offsets = [16, 0], sizes = [64, 4], strides = [1, 1]} : vector<80x4xbf16> to vector<64x4xbf16>
    %262 = vector.extract_strided_slice %83 {offsets = [16, 0], sizes = [64, 4], strides = [1, 1]} : vector<80x4xbf16> to vector<64x4xbf16>
    %263 = tpu.concatenate %254, %255, %256, %257, %258, %259, %260, %261, %262 in 1 : vector<64x4xbf16>, vector<64x4xbf16>, vector<64x4xbf16>, vector<64x4xbf16>, vector<64x4xbf16>, vector<64x4xbf16>, vector<64x4xbf16>, vector<64x4xbf16>, vector<64x4xbf16> -> vector<64x36xbf16>
    %264 = vector.extract_strided_slice %89 {offsets = [0, 0], sizes = [64, 4], strides = [1, 1]} : vector<80x4xbf16> to vector<64x4xbf16>
    %265 = vector.extract_strided_slice %92 {offsets = [0, 0], sizes = [64, 4], strides = [1, 1]} : vector<80x4xbf16> to vector<64x4xbf16>
    %266 = vector.extract_strided_slice %95 {offsets = [0, 0], sizes = [64, 4], strides = [1, 1]} : vector<80x4xbf16> to vector<64x4xbf16>
    %267 = vector.extract_strided_slice %89 {offsets = [8, 0], sizes = [64, 4], strides = [1, 1]} : vector<80x4xbf16> to vector<64x4xbf16>
    %268 = vector.extract_strided_slice %92 {offsets = [8, 0], sizes = [64, 4], strides = [1, 1]} : vector<80x4xbf16> to vector<64x4xbf16>
    %269 = vector.extract_strided_slice %95 {offsets = [8, 0], sizes = [64, 4], strides = [1, 1]} : vector<80x4xbf16> to vector<64x4xbf16>
    %270 = vector.extract_strided_slice %89 {offsets = [16, 0], sizes = [64, 4], strides = [1, 1]} : vector<80x4xbf16> to vector<64x4xbf16>
    %271 = vector.extract_strided_slice %92 {offsets = [16, 0], sizes = [64, 4], strides = [1, 1]} : vector<80x4xbf16> to vector<64x4xbf16>
    %272 = vector.extract_strided_slice %95 {offsets = [16, 0], sizes = [64, 4], strides = [1, 1]} : vector<80x4xbf16> to vector<64x4xbf16>
    %273 = tpu.concatenate %264, %265, %266, %267, %268, %269, %270, %271, %272 in 1 : vector<64x4xbf16>, vector<64x4xbf16>, vector<64x4xbf16>, vector<64x4xbf16>, vector<64x4xbf16>, vector<64x4xbf16>, vector<64x4xbf16>, vector<64x4xbf16>, vector<64x4xbf16> -> vector<64x36xbf16>
    %274 = vector.extract_strided_slice %101 {offsets = [0, 0], sizes = [64, 4], strides = [1, 1]} : vector<80x4xbf16> to vector<64x4xbf16>
    %275 = vector.extract_strided_slice %104 {offsets = [0, 0], sizes = [64, 4], strides = [1, 1]} : vector<80x4xbf16> to vector<64x4xbf16>
    %276 = vector.extract_strided_slice %107 {offsets = [0, 0], sizes = [64, 4], strides = [1, 1]} : vector<80x4xbf16> to vector<64x4xbf16>
    %277 = vector.extract_strided_slice %101 {offsets = [8, 0], sizes = [64, 4], strides = [1, 1]} : vector<80x4xbf16> to vector<64x4xbf16>
    %278 = vector.extract_strided_slice %104 {offsets = [8, 0], sizes = [64, 4], strides = [1, 1]} : vector<80x4xbf16> to vector<64x4xbf16>
    %279 = vector.extract_strided_slice %107 {offsets = [8, 0], sizes = [64, 4], strides = [1, 1]} : vector<80x4xbf16> to vector<64x4xbf16>
    %280 = vector.extract_strided_slice %101 {offsets = [16, 0], sizes = [64, 4], strides = [1, 1]} : vector<80x4xbf16> to vector<64x4xbf16>
    %281 = vector.extract_strided_slice %104 {offsets = [16, 0], sizes = [64, 4], strides = [1, 1]} : vector<80x4xbf16> to vector<64x4xbf16>
    %282 = vector.extract_strided_slice %107 {offsets = [16, 0], sizes = [64, 4], strides = [1, 1]} : vector<80x4xbf16> to vector<64x4xbf16>
    %283 = tpu.concatenate %274, %275, %276, %277, %278, %279, %280, %281, %282 in 1 : vector<64x4xbf16>, vector<64x4xbf16>, vector<64x4xbf16>, vector<64x4xbf16>, vector<64x4xbf16>, vector<64x4xbf16>, vector<64x4xbf16>, vector<64x4xbf16>, vector<64x4xbf16> -> vector<64x36xbf16>
    %284 = tpu.concatenate %213, %223, %233, %243, %253, %263, %273, %283 in 0 : vector<64x36xbf16>, vector<64x36xbf16>, vector<64x36xbf16>, vector<64x36xbf16>, vector<64x36xbf16>, vector<64x36xbf16>, vector<64x36xbf16>, vector<64x36xbf16> -> vector<512x36xbf16>
    %c1_53 = arith.constant 1 : index
    %c0_54 = arith.constant 0 : index
    %c0_55 = arith.constant 0 : index
    %285 = vector.load %arg3[%c1_53, %c0_54, %c0_55] : memref<3x36x32xbf16, #tpu.memory_space<vmem>>, vector<1x36x32xbf16>
    %286 = vector.shape_cast %285 : vector<1x36x32xbf16> to vector<36x32xbf16>
    %cst_56 = arith.constant dense<0.000000e+00> : vector<512x32xf32>
    %287 = tpu.matmul %284, %286, %cst_56 {dimension_numbers = #tpu.dot_dimension_numbers<[1], [0], [0], [1], [0, 0, 1, 1], [], []>} : vector<512x36xbf16>, vector<36x32xbf16>, vector<512x32xf32> -> vector<512x32xf32>
    %288 = arith.addf %203, %287 : vector<512x32xf32>
    %289 = vector.extract_strided_slice %29 {offsets = [0, 0], sizes = [64, 4], strides = [1, 1]} : vector<80x4xbf16> to vector<64x4xbf16>
    %290 = vector.extract_strided_slice %32 {offsets = [0, 0], sizes = [64, 4], strides = [1, 1]} : vector<80x4xbf16> to vector<64x4xbf16>
    %291 = vector.extract_strided_slice %35 {offsets = [0, 0], sizes = [64, 4], strides = [1, 1]} : vector<80x4xbf16> to vector<64x4xbf16>
    %292 = vector.extract_strided_slice %29 {offsets = [8, 0], sizes = [64, 4], strides = [1, 1]} : vector<80x4xbf16> to vector<64x4xbf16>
    %293 = vector.extract_strided_slice %32 {offsets = [8, 0], sizes = [64, 4], strides = [1, 1]} : vector<80x4xbf16> to vector<64x4xbf16>
    %294 = vector.extract_strided_slice %35 {offsets = [8, 0], sizes = [64, 4], strides = [1, 1]} : vector<80x4xbf16> to vector<64x4xbf16>
    %295 = vector.extract_strided_slice %29 {offsets = [16, 0], sizes = [64, 4], strides = [1, 1]} : vector<80x4xbf16> to vector<64x4xbf16>
    %296 = vector.extract_strided_slice %32 {offsets = [16, 0], sizes = [64, 4], strides = [1, 1]} : vector<80x4xbf16> to vector<64x4xbf16>
    %297 = vector.extract_strided_slice %35 {offsets = [16, 0], sizes = [64, 4], strides = [1, 1]} : vector<80x4xbf16> to vector<64x4xbf16>
    %298 = tpu.concatenate %289, %290, %291, %292, %293, %294, %295, %296, %297 in 1 : vector<64x4xbf16>, vector<64x4xbf16>, vector<64x4xbf16>, vector<64x4xbf16>, vector<64x4xbf16>, vector<64x4xbf16>, vector<64x4xbf16>, vector<64x4xbf16>, vector<64x4xbf16> -> vector<64x36xbf16>
    %299 = vector.extract_strided_slice %41 {offsets = [0, 0], sizes = [64, 4], strides = [1, 1]} : vector<80x4xbf16> to vector<64x4xbf16>
    %300 = vector.extract_strided_slice %44 {offsets = [0, 0], sizes = [64, 4], strides = [1, 1]} : vector<80x4xbf16> to vector<64x4xbf16>
    %301 = vector.extract_strided_slice %47 {offsets = [0, 0], sizes = [64, 4], strides = [1, 1]} : vector<80x4xbf16> to vector<64x4xbf16>
    %302 = vector.extract_strided_slice %41 {offsets = [8, 0], sizes = [64, 4], strides = [1, 1]} : vector<80x4xbf16> to vector<64x4xbf16>
    %303 = vector.extract_strided_slice %44 {offsets = [8, 0], sizes = [64, 4], strides = [1, 1]} : vector<80x4xbf16> to vector<64x4xbf16>
    %304 = vector.extract_strided_slice %47 {offsets = [8, 0], sizes = [64, 4], strides = [1, 1]} : vector<80x4xbf16> to vector<64x4xbf16>
    %305 = vector.extract_strided_slice %41 {offsets = [16, 0], sizes = [64, 4], strides = [1, 1]} : vector<80x4xbf16> to vector<64x4xbf16>
    %306 = vector.extract_strided_slice %44 {offsets = [16, 0], sizes = [64, 4], strides = [1, 1]} : vector<80x4xbf16> to vector<64x4xbf16>
    %307 = vector.extract_strided_slice %47 {offsets = [16, 0], sizes = [64, 4], strides = [1, 1]} : vector<80x4xbf16> to vector<64x4xbf16>
    %308 = tpu.concatenate %299, %300, %301, %302, %303, %304, %305, %306, %307 in 1 : vector<64x4xbf16>, vector<64x4xbf16>, vector<64x4xbf16>, vector<64x4xbf16>, vector<64x4xbf16>, vector<64x4xbf16>, vector<64x4xbf16>, vector<64x4xbf16>, vector<64x4xbf16> -> vector<64x36xbf16>
    %309 = vector.extract_strided_slice %53 {offsets = [0, 0], sizes = [64, 4], strides = [1, 1]} : vector<80x4xbf16> to vector<64x4xbf16>
    %310 = vector.extract_strided_slice %56 {offsets = [0, 0], sizes = [64, 4], strides = [1, 1]} : vector<80x4xbf16> to vector<64x4xbf16>
    %311 = vector.extract_strided_slice %59 {offsets = [0, 0], sizes = [64, 4], strides = [1, 1]} : vector<80x4xbf16> to vector<64x4xbf16>
    %312 = vector.extract_strided_slice %53 {offsets = [8, 0], sizes = [64, 4], strides = [1, 1]} : vector<80x4xbf16> to vector<64x4xbf16>
    %313 = vector.extract_strided_slice %56 {offsets = [8, 0], sizes = [64, 4], strides = [1, 1]} : vector<80x4xbf16> to vector<64x4xbf16>
    %314 = vector.extract_strided_slice %59 {offsets = [8, 0], sizes = [64, 4], strides = [1, 1]} : vector<80x4xbf16> to vector<64x4xbf16>
    %315 = vector.extract_strided_slice %53 {offsets = [16, 0], sizes = [64, 4], strides = [1, 1]} : vector<80x4xbf16> to vector<64x4xbf16>
    %316 = vector.extract_strided_slice %56 {offsets = [16, 0], sizes = [64, 4], strides = [1, 1]} : vector<80x4xbf16> to vector<64x4xbf16>
    %317 = vector.extract_strided_slice %59 {offsets = [16, 0], sizes = [64, 4], strides = [1, 1]} : vector<80x4xbf16> to vector<64x4xbf16>
    %318 = tpu.concatenate %309, %310, %311, %312, %313, %314, %315, %316, %317 in 1 : vector<64x4xbf16>, vector<64x4xbf16>, vector<64x4xbf16>, vector<64x4xbf16>, vector<64x4xbf16>, vector<64x4xbf16>, vector<64x4xbf16>, vector<64x4xbf16>, vector<64x4xbf16> -> vector<64x36xbf16>
    %319 = vector.extract_strided_slice %65 {offsets = [0, 0], sizes = [64, 4], strides = [1, 1]} : vector<80x4xbf16> to vector<64x4xbf16>
    %320 = vector.extract_strided_slice %68 {offsets = [0, 0], sizes = [64, 4], strides = [1, 1]} : vector<80x4xbf16> to vector<64x4xbf16>
    %321 = vector.extract_strided_slice %71 {offsets = [0, 0], sizes = [64, 4], strides = [1, 1]} : vector<80x4xbf16> to vector<64x4xbf16>
    %322 = vector.extract_strided_slice %65 {offsets = [8, 0], sizes = [64, 4], strides = [1, 1]} : vector<80x4xbf16> to vector<64x4xbf16>
    %323 = vector.extract_strided_slice %68 {offsets = [8, 0], sizes = [64, 4], strides = [1, 1]} : vector<80x4xbf16> to vector<64x4xbf16>
    %324 = vector.extract_strided_slice %71 {offsets = [8, 0], sizes = [64, 4], strides = [1, 1]} : vector<80x4xbf16> to vector<64x4xbf16>
    %325 = vector.extract_strided_slice %65 {offsets = [16, 0], sizes = [64, 4], strides = [1, 1]} : vector<80x4xbf16> to vector<64x4xbf16>
    %326 = vector.extract_strided_slice %68 {offsets = [16, 0], sizes = [64, 4], strides = [1, 1]} : vector<80x4xbf16> to vector<64x4xbf16>
    %327 = vector.extract_strided_slice %71 {offsets = [16, 0], sizes = [64, 4], strides = [1, 1]} : vector<80x4xbf16> to vector<64x4xbf16>
    %328 = tpu.concatenate %319, %320, %321, %322, %323, %324, %325, %326, %327 in 1 : vector<64x4xbf16>, vector<64x4xbf16>, vector<64x4xbf16>, vector<64x4xbf16>, vector<64x4xbf16>, vector<64x4xbf16>, vector<64x4xbf16>, vector<64x4xbf16>, vector<64x4xbf16> -> vector<64x36xbf16>
    %329 = vector.extract_strided_slice %77 {offsets = [0, 0], sizes = [64, 4], strides = [1, 1]} : vector<80x4xbf16> to vector<64x4xbf16>
    %330 = vector.extract_strided_slice %80 {offsets = [0, 0], sizes = [64, 4], strides = [1, 1]} : vector<80x4xbf16> to vector<64x4xbf16>
    %331 = vector.extract_strided_slice %83 {offsets = [0, 0], sizes = [64, 4], strides = [1, 1]} : vector<80x4xbf16> to vector<64x4xbf16>
    %332 = vector.extract_strided_slice %77 {offsets = [8, 0], sizes = [64, 4], strides = [1, 1]} : vector<80x4xbf16> to vector<64x4xbf16>
    %333 = vector.extract_strided_slice %80 {offsets = [8, 0], sizes = [64, 4], strides = [1, 1]} : vector<80x4xbf16> to vector<64x4xbf16>
    %334 = vector.extract_strided_slice %83 {offsets = [8, 0], sizes = [64, 4], strides = [1, 1]} : vector<80x4xbf16> to vector<64x4xbf16>
    %335 = vector.extract_strided_slice %77 {offsets = [16, 0], sizes = [64, 4], strides = [1, 1]} : vector<80x4xbf16> to vector<64x4xbf16>
    %336 = vector.extract_strided_slice %80 {offsets = [16, 0], sizes = [64, 4], strides = [1, 1]} : vector<80x4xbf16> to vector<64x4xbf16>
    %337 = vector.extract_strided_slice %83 {offsets = [16, 0], sizes = [64, 4], strides = [1, 1]} : vector<80x4xbf16> to vector<64x4xbf16>
    %338 = tpu.concatenate %329, %330, %331, %332, %333, %334, %335, %336, %337 in 1 : vector<64x4xbf16>, vector<64x4xbf16>, vector<64x4xbf16>, vector<64x4xbf16>, vector<64x4xbf16>, vector<64x4xbf16>, vector<64x4xbf16>, vector<64x4xbf16>, vector<64x4xbf16> -> vector<64x36xbf16>
    %339 = vector.extract_strided_slice %89 {offsets = [0, 0], sizes = [64, 4], strides = [1, 1]} : vector<80x4xbf16> to vector<64x4xbf16>
    %340 = vector.extract_strided_slice %92 {offsets = [0, 0], sizes = [64, 4], strides = [1, 1]} : vector<80x4xbf16> to vector<64x4xbf16>
    %341 = vector.extract_strided_slice %95 {offsets = [0, 0], sizes = [64, 4], strides = [1, 1]} : vector<80x4xbf16> to vector<64x4xbf16>
    %342 = vector.extract_strided_slice %89 {offsets = [8, 0], sizes = [64, 4], strides = [1, 1]} : vector<80x4xbf16> to vector<64x4xbf16>
    %343 = vector.extract_strided_slice %92 {offsets = [8, 0], sizes = [64, 4], strides = [1, 1]} : vector<80x4xbf16> to vector<64x4xbf16>
    %344 = vector.extract_strided_slice %95 {offsets = [8, 0], sizes = [64, 4], strides = [1, 1]} : vector<80x4xbf16> to vector<64x4xbf16>
    %345 = vector.extract_strided_slice %89 {offsets = [16, 0], sizes = [64, 4], strides = [1, 1]} : vector<80x4xbf16> to vector<64x4xbf16>
    %346 = vector.extract_strided_slice %92 {offsets = [16, 0], sizes = [64, 4], strides = [1, 1]} : vector<80x4xbf16> to vector<64x4xbf16>
    %347 = vector.extract_strided_slice %95 {offsets = [16, 0], sizes = [64, 4], strides = [1, 1]} : vector<80x4xbf16> to vector<64x4xbf16>
    %348 = tpu.concatenate %339, %340, %341, %342, %343, %344, %345, %346, %347 in 1 : vector<64x4xbf16>, vector<64x4xbf16>, vector<64x4xbf16>, vector<64x4xbf16>, vector<64x4xbf16>, vector<64x4xbf16>, vector<64x4xbf16>, vector<64x4xbf16>, vector<64x4xbf16> -> vector<64x36xbf16>
    %349 = vector.extract_strided_slice %101 {offsets = [0, 0], sizes = [64, 4], strides = [1, 1]} : vector<80x4xbf16> to vector<64x4xbf16>
    %350 = vector.extract_strided_slice %104 {offsets = [0, 0], sizes = [64, 4], strides = [1, 1]} : vector<80x4xbf16> to vector<64x4xbf16>
    %351 = vector.extract_strided_slice %107 {offsets = [0, 0], sizes = [64, 4], strides = [1, 1]} : vector<80x4xbf16> to vector<64x4xbf16>
    %352 = vector.extract_strided_slice %101 {offsets = [8, 0], sizes = [64, 4], strides = [1, 1]} : vector<80x4xbf16> to vector<64x4xbf16>
    %353 = vector.extract_strided_slice %104 {offsets = [8, 0], sizes = [64, 4], strides = [1, 1]} : vector<80x4xbf16> to vector<64x4xbf16>
    %354 = vector.extract_strided_slice %107 {offsets = [8, 0], sizes = [64, 4], strides = [1, 1]} : vector<80x4xbf16> to vector<64x4xbf16>
    %355 = vector.extract_strided_slice %101 {offsets = [16, 0], sizes = [64, 4], strides = [1, 1]} : vector<80x4xbf16> to vector<64x4xbf16>
    %356 = vector.extract_strided_slice %104 {offsets = [16, 0], sizes = [64, 4], strides = [1, 1]} : vector<80x4xbf16> to vector<64x4xbf16>
    %357 = vector.extract_strided_slice %107 {offsets = [16, 0], sizes = [64, 4], strides = [1, 1]} : vector<80x4xbf16> to vector<64x4xbf16>
    %358 = tpu.concatenate %349, %350, %351, %352, %353, %354, %355, %356, %357 in 1 : vector<64x4xbf16>, vector<64x4xbf16>, vector<64x4xbf16>, vector<64x4xbf16>, vector<64x4xbf16>, vector<64x4xbf16>, vector<64x4xbf16>, vector<64x4xbf16>, vector<64x4xbf16> -> vector<64x36xbf16>
    %359 = vector.extract_strided_slice %113 {offsets = [0, 0], sizes = [64, 4], strides = [1, 1]} : vector<80x4xbf16> to vector<64x4xbf16>
    %360 = vector.extract_strided_slice %116 {offsets = [0, 0], sizes = [64, 4], strides = [1, 1]} : vector<80x4xbf16> to vector<64x4xbf16>
    %361 = vector.extract_strided_slice %119 {offsets = [0, 0], sizes = [64, 4], strides = [1, 1]} : vector<80x4xbf16> to vector<64x4xbf16>
    %362 = vector.extract_strided_slice %113 {offsets = [8, 0], sizes = [64, 4], strides = [1, 1]} : vector<80x4xbf16> to vector<64x4xbf16>
    %363 = vector.extract_strided_slice %116 {offsets = [8, 0], sizes = [64, 4], strides = [1, 1]} : vector<80x4xbf16> to vector<64x4xbf16>
    %364 = vector.extract_strided_slice %119 {offsets = [8, 0], sizes = [64, 4], strides = [1, 1]} : vector<80x4xbf16> to vector<64x4xbf16>
    %365 = vector.extract_strided_slice %113 {offsets = [16, 0], sizes = [64, 4], strides = [1, 1]} : vector<80x4xbf16> to vector<64x4xbf16>
    %366 = vector.extract_strided_slice %116 {offsets = [16, 0], sizes = [64, 4], strides = [1, 1]} : vector<80x4xbf16> to vector<64x4xbf16>
    %367 = vector.extract_strided_slice %119 {offsets = [16, 0], sizes = [64, 4], strides = [1, 1]} : vector<80x4xbf16> to vector<64x4xbf16>
    %368 = tpu.concatenate %359, %360, %361, %362, %363, %364, %365, %366, %367 in 1 : vector<64x4xbf16>, vector<64x4xbf16>, vector<64x4xbf16>, vector<64x4xbf16>, vector<64x4xbf16>, vector<64x4xbf16>, vector<64x4xbf16>, vector<64x4xbf16>, vector<64x4xbf16> -> vector<64x36xbf16>
    %369 = tpu.concatenate %298, %308, %318, %328, %338, %348, %358, %368 in 0 : vector<64x36xbf16>, vector<64x36xbf16>, vector<64x36xbf16>, vector<64x36xbf16>, vector<64x36xbf16>, vector<64x36xbf16>, vector<64x36xbf16>, vector<64x36xbf16> -> vector<512x36xbf16>
    %c2_57 = arith.constant 2 : index
    %c0_58 = arith.constant 0 : index
    %c0_59 = arith.constant 0 : index
    %370 = vector.load %arg3[%c2_57, %c0_58, %c0_59] : memref<3x36x32xbf16, #tpu.memory_space<vmem>>, vector<1x36x32xbf16>
    %371 = vector.shape_cast %370 : vector<1x36x32xbf16> to vector<36x32xbf16>
    %cst_60 = arith.constant dense<0.000000e+00> : vector<512x32xf32>
    %372 = tpu.matmul %369, %371, %cst_60 {dimension_numbers = #tpu.dot_dimension_numbers<[1], [0], [0], [1], [0, 0, 1, 1], [], []>} : vector<512x36xbf16>, vector<36x32xbf16>, vector<512x32xf32> -> vector<512x32xf32>
    %373 = arith.addf %288, %372 : vector<512x32xf32>
    %c0_61 = arith.constant 0 : index
    %c0_62 = arith.constant 0 : index
    %374 = vector.load %arg4[%c0_61, %c0_62] : memref<1x32xf32, #tpu.memory_space<vmem>>, vector<1x32xf32>
    %375 = vector.broadcast %374 : vector<1x32xf32> to vector<512x32xf32>
    %376 = arith.addf %373, %375 : vector<512x32xf32>
    %c0_63 = arith.constant 0 : index
    %c0_64 = arith.constant 0 : index
    %c0_65 = arith.constant 0 : index
    %377 = vector.load %arg5[%c0_63, %c0_64, %c0_65] : memref<1x512x32xf32, #tpu.memory_space<vmem>>, vector<1x512x32xf32>
    %378 = vector.shape_cast %377 : vector<1x512x32xf32> to vector<512x32xf32>
    %379 = vector.shape_cast %376 : vector<512x32xf32> to vector<1x512x32xf32>
    tpu.vector_store %arg5[%c0_63, %c0_64, %c0_65], %379 {strides = array<i32>} : memref<1x512x32xf32, #tpu.memory_space<vmem>>, vector<1x512x32xf32>,
    return
  }
  func.func @transform_0(%arg0: i32, %arg1: i32) -> (i32, i32, i32, i32, i32, i32) {
    %c0_i32 = arith.constant 0 : i32
    %c0_i32_0 = arith.constant 0 : i32
    %c0_i32_1 = arith.constant 0 : i32
    %c0_i32_2 = arith.constant 0 : i32
    %c0_i32_3 = arith.constant 0 : i32
    return %arg0, %arg1, %c0_i32, %c0_i32_0, %c0_i32_1, %c0_i32_2 : i32, i32, i32, i32, i32, i32
  }
  func.func @transform_1(%arg0: i32, %arg1: i32) -> (i32, i32, i32) {
    %c0_i32 = arith.constant 0 : i32
    %c0_i32_0 = arith.constant 0 : i32
    %c0_i32_1 = arith.constant 0 : i32
    %c0_i32_2 = arith.constant 0 : i32
    return %c0_i32, %c0_i32_0, %c0_i32_1 : i32, i32, i32
  }
  func.func @transform_2(%arg0: i32, %arg1: i32) -> (i32, i32) {
    %c0_i32 = arith.constant 0 : i32
    %c0_i32_0 = arith.constant 0 : i32
    %c0_i32_1 = arith.constant 0 : i32
    return %c0_i32, %c0_i32_0 : i32, i32
  }
  func.func @transform_3(%arg0: i32, %arg1: i32) -> (i32, i32, i32) {
    %c0_i32 = arith.constant 0 : i32
    %c0_i32_0 = arith.constant 0 : i32
    return %arg0, %arg1, %c0_i32 : i32, i32, i32
  }
}

</mosaic_0001>

<bundles_post_ra>
// kernel: upsample_block_3d.1
= control target key start
LH: loop header
LB: loop body
LE: loop exit
PB: predicated region body
PF: predicated region fallthrough
CT: control target
= control target key end

     0   :  { %8 = vsyncpa [#allocation3], 0  ;;  %s5566_s12 = smov 0   ;;  %s5568_s13 = smov 0   ;;  %s9293_s0 = inlined_call_operand.vmem [shape: bf16[2,1,10,10,10,4], index: 0, kind: input, shape index: {}]   ;;  %s9294_s1 = inlined_call_operand.vmem [shape: bf16[3,36,32], index: 1, kind: input, shape index: {}]   ;;  %s9295_s2 = inlined_call_operand.hbm [shape: f32[1,32], index: 2, kind: input, shape index: {}]   ;;  %s9296_s3 = inlined_call_operand.vmem [shape: f32[2,512,32], index: 3, kind: output, shape index: {}]  }
   0x1   :  { %s5570_s14 = smov 0  }
   0x2 LB: > { %s5091_s15 = sadd.s32 4294967295, %s5535_s14   ;;  %s26_s16 = sadd.s32 1, %s5531_s13  ;;  %s5535_s14 = sphi %s5570_s14, %s14_s14   ;;  %s5531_s13 = sphi %s5568_s13, %s9499_s13   ;;  %s5527_s12 = sphi %s5566_s12, %s9498_s12  }
   0x3   : > { %p28_p0 = scmp.ge.s32.totalorder %s26_s16, 2  ;;  %p5093_p1 = scmp.ge.s32.totalorder %s5535_s14, 1 }
   0x4   : > { %p129_p2 = scmp.lt.s32.totalorder %s5535_s14, 3  ;;  %p5438_p4 = scmp.eq.s32.totalorder %s5091_s15, 0 }
   0x5   : > { %s9501_s16 = smov (%p28_p0, %s26_s16), 0  ;;  %s144_s19 = sshll.u32 %s9295_s2, 4  ;;  %s145_s19 = int_to_ptr.hbm [resolvable:$true] %s144_s19 }
   0x6   : > { %p130_p3 = pnand %p5093_p1, %p129_p2  ;;  %s5537_s20 = smov [#allocation2]  }
   0x7   : > { %s146_s21 = sshll.u32 %s5537_s20, 4  ;;  %s147_s21 = int_to_ptr.vmem [resolvable:$true] %s146_s21 }
   0x8   : > { %p5434_p5 = pneg %p130_p3  ;;  %171 = sbr.rel (%p130_p3) target bundleno = 1191 (0x4a7), region = 32 }
   0xa   : > { %p5435_p6 = pnand %p5438_p4, %p5434_p5 }
   0xc   : > { %5437 = dma.hbm_to_vmem [thread:$0]  (!%p5435_p6), %s145_s19, 16, %s147_s21, [#allocation3]  }
   0xd   : > { %5522 = dma.done.wait (%p5438_p4), [#allocation3], 16  }
   0xe   : > { %5524 = vsyncadd (%p5438_p4), [#allocation3], 4294967280  ;;  %p204_p7 = scmp.lt.s32.totalorder %s5527_s12, 1  ;;  %vm294_vm0 = vcmask 1046528   ;;  %vm345_vm1 = vcmask 1045504   ;;  %s5538_s26 = smov 12  }
   0xf   : > { %s5539_s27 = smov 4   ;;  %s5540_s28 = smov 8   ;;  %vm4005_vm2 = vcmask 1041408   ;;  %vm2086_vm3 = vcmask 31744   ;;  %vm2099_vm4 = vcmask 64512   ;;  %vm2108_vm5 = vcmask 97280  }
  0x10   : > { %s9503_s12 = smov (!%p204_p7, %s5527_s12), 1  ;;  %s5541_s29 = smov 16   ;;  %vm2117_vm6 = vcmask 130048   ;;  %vm2126_vm7 = vcmask 162816   ;;  %vm2135_vm8 = vcmask 195584   ;;  %vm2144_vm9 = vcmask 228352  }
  0x11   : > { %s5429_s22 = smul.u32 800, %s9503_s12  ;;  %s5542_s30 = smov 20   ;;  %vm2153_vm10 = vcmask 261120   ;;  %vm3940_vm11 = vcmask 293888  }
  0x12   : > { %s5543_s4 = smov 24   ;;  %s5544_s5 = smov 28  }
  0x13   : > { %s5594_s25 = scalar_lea.vmem %s9293_s0, %s5429_s22  ;;  %s5545_s6 = smov 32  }
  0x14   : > { %v226_v0 = vld [vmem:[%s5594_s25 + $0x8] sm:$0xf]  ;;  %v228_v1 = vld [vmem:[%s5594_s25 + $0x10] sm:$0xf]  ;;  %v224_v2 = vld [vmem:[%s5594_s25] sm:$0xf] }
  0x15   : > { %v246_v3 = vunpack.c.l.bf16 %v226_v0  ;;  %v5599_v4 = vunpack.c.l.bf16 %v228_v1  ;;  %v244_v5 = vunpack.c.l.bf16 %v224_v2  ;;  %v232_v6 = vld [vmem:[%s5594_s25 + $0x20] sm:$0xf]  ;;  %v5603_v7 = vld [vmem:[%s5594_s25 + $0x24] sm:$0x1]  ;;  %v234_v8 = vld [vmem:[%s5594_s25 + $0x28] sm:$0xf] }
  0x16   : > { %v5607_v9 = vld [vmem:[%s5594_s25 + $0x2c] sm:$0x1]  ;;  %v5609_v10 = vunpack.c.l.bf16 %v232_v6  ;;  %v253_v11 = vunpack.c.l.bf16 %v5603_v7  ;;  %v5612_v12 = vunpack.c.l.bf16 %v234_v8  ;;  %v225_v13 = vld [vmem:[%s5594_s25 + $0x4] sm:$0x1]  ;;  %v236_v39 = vld [vmem:[%s5594_s25 + $0x30] sm:$0xf] }
  0x17   : > { %v265_v14 = vpack.c.bf16 %v246_v3, %v246_v3  ;;  %v266_v15 = vpack.c.bf16 %v5599_v4, %v5599_v4  ;;  %v264_v16 = vpack.c.bf16 %v244_v5, %v244_v5  ;;  %v255_v17 = vunpack.c.l.bf16 %v5607_v9  ;;  %v227_v18 = vld [vmem:[%s5594_s25 + $0xc] sm:$0x1]  ;;  %v237_v44 = vld [vmem:[%s5594_s25 + $0x34] sm:$0x1]  ;;  %v238_v49 = vld [vmem:[%s5594_s25 + $0x38] sm:$0xf] }
  0x18   : > { %v307_v19 = vrot.slane %v5609_v10, 1  ;;  %v308_v20 = vrot.slane %v253_v11, 1  ;;  %v310_v21 = vrot.slane %v5612_v12, 1  ;;  %v245_v22 = vunpack.c.l.bf16 %v225_v13  ;;  %v5648_v50 = vld [vmem:[%s5594_s25 + $0x3c] sm:$0x1]  ;;  %s5413_s11 = sshll.u32 %s9503_s12, 9 }
  0x19   : > { %v5623_v23 = vunpack.c.l.b16 %v265_v14  ;;  %v5625_v24 = vunpack.c.l.b16 %v266_v15  ;;  %v5627_v25 = vunpack.c.l.b16 %v264_v16  ;;  %v311_v26 = vrot.slane %v255_v17, 1  ;;  %v229_v55 = vld [vmem:[%s5594_s25 + $0x14] sm:$0x1]  ;;  %v230_v0 = vld [vmem:[%s5594_s25 + $0x18] sm:$0xf]  ;;  %s7722_s17 = scalar_lea.vmem %s9296_s3, %s5413_s11 }
  0x1a   : > { %v309_v27 = vsel %vm294_vm0, %v307_v19, %v308_v20  ;;  %v247_v28 = vunpack.c.l.bf16 %v227_v18  ;;  %v295_v29 = vrot.slane %v244_v5, 1  ;;  %v296_v30 = vrot.slane %v245_v22, 1  ;;  %v231_v1 = vld [vmem:[%s5594_s25 + $0x1c] sm:$0x1] }
  0x1b   : > { %v2013_v31 = vpack.c.b16 %v5625_v24, %v5623_v23  ;;  %v312_v33 = vsel %vm294_vm0, %v310_v21, %v311_v26  ;;  %v339_v34 = vpack.c.bf16 %v309_v27, %v309_v27  ;;  %v298_v37 = vrot.slane %v246_v3, 1 }
  0x1c   : > { %v340_v35 = vpack.c.bf16 %v312_v33, %v312_v33  ;;  %v297_v36 = vsel %vm294_vm0, %v295_v29, %v296_v30  ;;  %v299_v38 = vrot.slane %v247_v28, 1  ;;  %v346_v42 = vrot.slane %v244_v5, 2 }
  0x1d   : > { %2017 = vrot.lane.b32.xlu2 %v2013_v31, %s5538_s26  ;;  %v5640_v40 = vunpack.c.l.b16 %v339_v34  ;;  %v335_v41 = vpack.c.bf16 %v297_v36, %v297_v36  ;;  %v347_v43 = vrot.slane %v245_v22, 2  ;;  %v349_v47 = vrot.slane %v246_v3, 2 }
  0x1e   : > { %v5643_v45 = vunpack.c.l.b16 %v340_v35  ;;  %v300_v46 = vsel %vm294_vm0, %v298_v37, %v299_v38  ;;  %v350_v48 = vrot.slane %v247_v28, 2  ;;  %v5651_v54 = vunpack.c.l.bf16 %v236_v39 }
  0x1f   : > { %v336_v51 = vpack.c.bf16 %v300_v46, %v300_v46  ;;  %v1963_v52 = vunpack.c.l.b16 %v335_v41  ;;  %v348_v53 = vsel %vm345_vm1, %v346_v42, %v347_v43  ;;  %v257_v59 = vunpack.c.l.bf16 %v237_v44 }
  0x20   : > { %v5656_v56 = vpack.c.b16 %v5643_v45, %v5640_v40  ;;  %v351_v57 = vsel %vm345_vm1, %v349_v47, %v350_v48  ;;  %v386_v58 = vpack.c.bf16 %v348_v53, %v348_v53  ;;  %v5661_v62 = vunpack.c.l.bf16 %v238_v49 }
  0x21   : > { %v5659_v60 = vunpack.c.l.b16 %v336_v51  ;;  %v387_v61 = vpack.c.bf16 %v351_v57, %v351_v57  ;;  %v259_v63 = vunpack.c.l.bf16 %v5648_v50  ;;  %v313_v3 = vrot.slane %v5651_v54, 1 }
  0x22   : > { %1979 = vrot.lane.b32.xlu1 %v5656_v56, %s5539_s27  ;;  %v1991_v2 = vunpack.c.l.b16 %v386_v58  ;;  %v314_v5 = vrot.slane %v257_v59, 1  ;;  %v249_v6 = vunpack.c.l.bf16 %v229_v55  ;;  %v316_v14 = vrot.slane %v5661_v62, 1  ;;  %v240_v55 = vld [vmem:[%s5594_s25 + $0x40] sm:$0xf] }
  0x23   : > { %v1971_v8 = vpack.c.b16 %v5659_v60, %v1963_v52  ;;  %v5670_v13 = vunpack.c.l.b16 %v387_v61  ;;  %v317_v15 = vrot.slane %v259_v63, 1  ;;  %v5674_v18 = vunpack.c.l.bf16 %v230_v0 }
  0x24   : > { %v315_v16 = vsel %vm294_vm0, %v313_v3, %v314_v5  ;;  %v251_v19 = vunpack.c.l.bf16 %v231_v1  ;;  %v301_v20 = vrot.slane %v5599_v4, 1  ;;  %v302_v27 = vrot.slane %v249_v6, 1 }
  0x25   : > { %1975 = vrot.lane.b32.xlu0 %v1971_v8, %s5539_s27  ;;  %v1999_v21 = vpack.c.b16 %v5670_v13, %v1991_v2  ;;  %v318_v22 = vsel %vm294_vm0, %v316_v14, %v317_v15  ;;  %v341_v26 = vpack.c.bf16 %v315_v16, %v315_v16  ;;  %v304_v29 = vrot.slane %v5674_v18, 1 }
  0x26   : > { %v342_v28 = vpack.c.bf16 %v318_v22, %v318_v22  ;;  %v305_v30 = vrot.slane %v251_v19, 1  ;;  %v352_v31 = vrot.slane %v5599_v4, 2  ;;  %v303_v34 = vsel %vm294_vm0, %v301_v20, %v302_v27 }
  0x27   : > { %2003 = vrot.lane.b32.xlu2 %v1999_v21, %s5540_s28  ;;  %v5683_v33 = vunpack.c.l.b16 %v341_v26  ;;  %v353_v35 = vrot.slane %v249_v6, 2  ;;  %v355_v36 = vrot.slane %v5674_v18, 2  ;;  %v337_v39 = vpack.c.bf16 %v303_v34, %v303_v34 }
  0x28   : > { %v5687_v37 = vunpack.c.l.b16 %v342_v28  ;;  %v306_v38 = vsel %vm294_vm0, %v304_v29, %v305_v30  ;;  %v356_v41 = vrot.slane %v251_v19, 2  ;;  %v364_v43 = vrot.slane %v5651_v54, 2 }
  0x29   : > { %v338_v42 = vpack.c.bf16 %v306_v38, %v306_v38  ;;  %v354_v4 = vsel %vm345_vm1, %v352_v31, %v353_v35  ;;  %v365_v44 = vrot.slane %v257_v59, 2  ;;  %v5696_v47 = vunpack.c.l.b16 %v337_v39 }
  0x2a   : > { %v5694_v46 = vpack.c.b16 %v5687_v37, %v5683_v33  ;;  %v357_v48 = vsel %vm345_vm1, %v355_v36, %v356_v41  ;;  %v388_v49 = vpack.c.bf16 %v354_v4, %v354_v4  ;;  %v367_v53 = vrot.slane %v5661_v62, 2  ;;  %v241_v36 = vld [vmem:[%s5594_s25 + $0x44] sm:$0x1] }
  0x2b   : > { %v5699_v50 = vunpack.c.l.b16 %v338_v42  ;;  %v389_v51 = vpack.c.bf16 %v357_v48, %v357_v48  ;;  %v366_v52 = vsel %vm345_vm1, %v364_v43, %v365_v44  ;;  %v368_v58 = vrot.slane %v259_v63, 2 }
  0x2c   : > { %1981 = vrot.lane.b32.xlu1 %v5694_v46, %s5539_s27  ;;  %v5706_v57 = vunpack.c.l.b16 %v388_v49  ;;  %v392_v59 = vpack.c.bf16 %v366_v52, %v366_v52  ;;  %v358_v61 = vrot.slane %v5609_v10, 2  ;;  %v359_v2 = vrot.slane %v253_v11, 2 }
  0x2d   : > { %v5711_v0 = vpack.c.b16 %v5699_v50, %v5696_v47  ;;  %v1994_v1 = vunpack.c.l.b16 %v389_v51  ;;  %v361_v3 = vrot.slane %v5612_v12, 2  ;;  %v369_v5 = vsel %vm345_vm1, %v367_v53, %v368_v58 }
  0x2e   : > { %v5717_v6 = vunpack.c.l.b16 %v392_v59  ;;  %v362_v63 = vrot.slane %v255_v17, 2  ;;  %v260_v8 = vunpack.c.l.bf16 %v240_v55  ;;  %v393_v15 = vpack.c.bf16 %v369_v5, %v369_v5 }
  0x2f   : > { %1977 = vrot.lane.b32.xlu0 %v5711_v0, %s5539_s27  ;;  %v5724_v14 = vpack.c.b16 %v1994_v1, %v5706_v57  ;;  %v360_v7 = vsel %vm345_vm1, %v358_v61, %v359_v2  ;;  %v271_v11 = vpack.c.bf16 %v5661_v62, %v5661_v62  ;;  %v269_v9 = vpack.c.bf16 %v5612_v12, %v5612_v12  ;;  %v243_v2 = vld [vmem:[%s5594_s25 + $0x4c] sm:$0x1] }
  0x30   : > { %v363_v16 = vsel %vm345_vm1, %v361_v3, %v362_v63  ;;  %v390_v19 = vpack.c.bf16 %v360_v7, %v360_v7  ;;  %v272_v20 = vpack.c.bf16 %v260_v8, %v260_v8  ;;  %v1998_v17 = vunpack.c.l.b16 %v393_v15  ;;  %v5799_v3 = vld [vmem:[%s5594_s25 + $0x54] sm:$0x1]  ;;  %v5805_v15 = vld [vmem:[%s5594_s25 + $0x5c] sm:$0x1] }
  0x31   : > { %2005 = vrot.lane.b32.xlu2 %v5724_v14, %s5540_s28  ;;  %v391_v21 = vpack.c.bf16 %v363_v16, %v363_v16  ;;  %v5734_v22 = vunpack.c.l.b16 %v271_v11  ;;  %v270_v26 = vpack.c.bf16 %v5651_v54, %v5651_v54  ;;  %v267_v12 = vpack.c.bf16 %v5674_v18, %v5674_v18 }
  0x32   : > { %v1995_v27 = vunpack.c.l.b16 %v390_v19  ;;  %v5738_v62 = vunpack.c.l.b16 %v272_v20  ;;  %v5741_v28 = vpack.c.b16 %v1998_v17, %v5717_v6  ;;  %v268_v30 = vpack.c.bf16 %v5609_v10, %v5609_v10 }
  0x33   : > { %v1996_v29 = vunpack.c.l.b16 %v391_v21  ;;  %v5753_v34 = vunpack.c.l.b16 %v269_v9  ;;  %v1949_v35 = vunpack.c.l.b16 %v270_v26  ;;  %v1946_v38 = vunpack.c.l.b16 %v267_v12  ;;  %v5821_v21 = vld [vmem:[%s5594_s25 + $0x84] sm:$0x1] }
  0x34   : > { %2009 = vrot.lane.b32.xlu1 %v5741_v28, %s5540_s28  ;;  %v2016_v54 = vpack.c.b16 %v5738_v62, %v5734_v22  ;;  %v1947_v18 = vunpack.c.l.b16 %v268_v30  ;;  %v261_v39 = vunpack.c.l.bf16 %v241_v36  ;;  %v319_v42 = vrot.slane %v260_v8, 1 }
  0x35   : > { %v5749_v31 = vpack.c.b16 %v1996_v29, %v1995_v27  ;;  %v2015_v10 = vpack.c.b16 %v1949_v35, %v5753_v34  ;;  %v2029_v43 = vpack.c.b16 %v5683_v33, %v5643_v45  ;;  %v2028_v48 = vpack.c.b16 %v5640_v40, %v5699_v50  ;;  %v242_v33 = vld [vmem:[%s5594_s25 + $0x48] sm:$0xf] }
  0x36   : > { %v2014_v41 = vpack.c.b16 %v1947_v18, %v1946_v38  ;;  %v320_v4 = vrot.slane %v261_v39, 1  ;;  %v370_v49 = vrot.slane %v260_v8, 2  ;;  %v371_v51 = vrot.slane %v261_v39, 2  ;;  %v5103_v8 = vld [vmem:[%s5594_s25 + $0x58] sm:$0xf] }
  0x37   : > { %2007 = vrot.lane.b32.xlu0 %v5749_v31, %s5540_s28  ;;  %v2027_v52 = vpack.c.b16 %v5696_v47, %v5659_v60  ;;  %v2042_v55 = vpack.c.b16 %v1995_v27, %v1994_v1  ;;  %v2041_v40 = vpack.c.b16 %v5706_v57, %v5670_v13  ;;  %v5779_v47 = vunpack.c.l.bf16 %v242_v33 }
  0x38   : > { %v321_v44 = vsel %vm294_vm0, %v319_v42, %v320_v4  ;;  %v372_v45 = vsel %vm345_vm1, %v370_v49, %v371_v51  ;;  %v5785_v59 = vpack.c.b16 %v1946_v38, %v5625_v24  ;;  %v2043_v57 = vpack.c.b16 %v5717_v6, %v1996_v29  ;;  %v5101_v24 = vld [vmem:[%s5594_s25 + $0x50] sm:$0xf]  ;;  %v5831_v29 = vld [vmem:[%s5594_s25 + $0x8c] sm:$0x1] }
  0x39   : > { %2023 = vrot.lane.b32.xlu2 %v2016_v54, %s5538_s26  ;;  %v343_v53 = vpack.c.bf16 %v321_v44, %v321_v44  ;;  %v394_v60 = vpack.c.bf16 %v372_v45, %v372_v45  ;;  %v273_v1 = vpack.c.bf16 %v5779_v47, %v5779_v47  ;;  %v263_v63 = vunpack.c.l.bf16 %v243_v2  ;;  %v5110_v44 = vld [vmem:[%s5594_s25 + $0x74] sm:$0x1] }
  0x3a   : > { %v5808_v7 = vunpack.c.l.bf16 %v5101_v24  ;;  %v418_v6 = vunpack.c.l.bf16 %v5799_v3  ;;  %v5813_v11 = vpack.c.b16 %v5734_v22, %v1949_v35  ;;  %v5815_v16 = vunpack.c.l.bf16 %v5103_v8  ;;  %v5115_v22 = vld [vmem:[%s5594_s25 + $0x88] sm:$0xf] }
  0x3b   : > { %v5774_v58 = vunpack.c.l.b16 %v343_v53  ;;  %v5787_v61 = vunpack.c.l.b16 %v394_v60  ;;  %v420_v19 = vunpack.c.l.bf16 %v5805_v15  ;;  %v322_v20 = vrot.slane %v5779_v47, 1  ;;  %v5112_v53 = vld [vmem:[%s5594_s25 + $0x7c] sm:$0x1]  ;;  %v5106_v60 = vld [vmem:[%s5594_s25 + $0x64] sm:$0x1] }
  0x3c   : > { %2021 = vrot.lane.b32.xlu1 %v2015_v10, %s5538_s26  ;;  %9362 = vst [vmem:[#allocation5_spill] sm:$0xff] %v5808_v7  ;;  %v323_v9 = vrot.slane %v263_v63, 1  ;;  %v5824_v26 = vpack.c.b16 %v5753_v34, %v1947_v18  ;;  %v467_v27 = vrot.slane %v5808_v7, 1  ;;  %v470_v12 = vrot.slane %v5815_v16, 1 }
  0x3d   : > { %v2030_v50 = vpack.c.b16 %v5774_v58, %v5687_v37  ;;  %v2044_v13 = vpack.c.b16 %v5787_v61, %v1998_v17  ;;  %v2054_v37 = vunpack.c.l.b16 %v273_v1  ;;  %9363 = vst [vmem:[#allocation6_spill] sm:$0xff] %v5813_v11  ;;  %v5113_v17 = vld [vmem:[%s5594_s25 + $0x80] sm:$0xf]  ;;  %v471_v30 = vrot.slane %v420_v19, 1 }
  0x3e   : > { %v5838_v54 = vunpack.c.l.bf16 %v5113_v17  ;;  %v430_v34 = vunpack.c.l.bf16 %v5821_v21  ;;  %v5841_v35 = vunpack.c.l.bf16 %v5115_v22  ;;  %v432_v36 = vunpack.c.l.bf16 %v5831_v29 }
  0x3f   : > { %2019 = vrot.lane.b32.xlu0 %v2014_v41, %s5538_s26  ;;  %v2055_v5 = vpack.c.b16 %v2054_v37, %v5738_v62  ;;  %v468_v62 = vrot.slane %v418_v6, 1  ;;  %v324_v38 = vsel %vm294_vm0, %v322_v20, %v323_v9  ;;  %v373_v39 = vrot.slane %v5779_v47, 2  ;;  %v5107_v47 = vld [vmem:[%s5594_s25 + $0x68] sm:$0xf] }
  0x40   : > { %v374_v10 = vrot.slane %v263_v63, 2  ;;  %v472_v41 = vsel %vm294_vm0, %v470_v12, %v471_v30  ;;  %v485_v42 = vrot.slane %v5838_v54, 1  ;;  %v486_v4 = vrot.slane %v430_v34, 1 }
  0x41   : > { %2035 = vrot.lane.b32.xlu2 %v2029_v43, %s5541_s29  ;;  %v469_v18 = vsel %vm294_vm0, %v467_v27, %v468_v62  ;;  %v5109_v43 = vld [vmem:[%s5594_s25 + $0x70] sm:$0xf]  ;;  %v488_v51 = vrot.slane %v5841_v35, 1  ;;  %v508_v45 = vpack.c.bf16 %v472_v41, %v472_v41  ;;  %v422_v8 = vunpack.c.l.bf16 %v5106_v60 }
  0x42   : > { %v507_v49 = vpack.c.bf16 %v469_v18, %v469_v18  ;;  %v375_v33 = vsel %vm345_vm1, %v373_v39, %v374_v10  ;;  %v487_v1 = vsel %vm294_vm0, %v485_v42, %v486_v4  ;;  %v5879_v20 = vunpack.c.l.bf16 %v5107_v47 }
  0x43   : > { %v395_v17 = vpack.c.bf16 %v375_v33, %v375_v33  ;;  %v513_v27 = vpack.c.bf16 %v487_v1, %v487_v1  ;;  %v474_v39 = vrot.slane %v422_v8, 1 }
  0x44   : > { %2033 = vrot.lane.b32.xlu1 %v2028_v48, %s5541_s29  ;;  %v344_v48 = vpack.c.bf16 %v324_v38, %v324_v38  ;;  %v2190_v24 = vunpack.c.l.b16 %v507_v49  ;;  %v476_v10 = vrot.slane %v5879_v20, 1 }
  0x45   : > { %v2076_v4 = vunpack.c.l.b16 %v395_v17  ;;  %v520_v17 = vrot.slane %v5815_v16, 2 }
  0x46   : > { %v2065_v2 = vunpack.c.l.b16 %v344_v48 }
  0x47   : > { %2031 = vrot.lane.b32.xlu0 %v2027_v52, %s5541_s29  ;;  %v489_v52 = vrot.slane %v432_v36, 1  ;;  %v2077_v60 = vpack.c.b16 %v2076_v4, %v5787_v61  ;;  %v518_v61 = vrot.slane %v418_v6, 2 }
  0x48   : > { %v2066_v38 = vpack.c.b16 %v2065_v2, %v5774_v58 }
  0x49   : > { %2047 = vrot.lane.b32.xlu2 %v2042_v55, %s5542_s30  ;;  %v5105_v55 = vld [vmem:[%s5594_s25 + $0x60] sm:$0xf] }
  0x4a   : > { %v5877_v63 = vunpack.c.l.bf16 %v5105_v55  ;;  %v524_v55 = vrot.slane %v422_v8, 2  ;;  %v517_v8 = vrot.slane %v5808_v7, 2 }
  0x4c   : > { %2045 = vrot.lane.b32.xlu1 %v2041_v40, %s5542_s30  ;;  %v5864_v40 = vunpack.c.l.bf16 %v5109_v43  ;;  %v473_v18 = vrot.slane %v5877_v63, 1 }
  0x4e   : > { %v479_v62 = vrot.slane %v5864_v40, 1  ;;  %v529_v48 = vrot.slane %v5864_v40, 2  ;;  %v441_v21 = vpack.c.bf16 %v5864_v40, %v5864_v40 }
  0x4f   : > { %2037 = vrot.lane.b32.xlu0 %v2030_v50, %s5541_s29  ;;  %v5108_v50 = vld [vmem:[%s5594_s25 + $0x6c] sm:$0x1] }
  0x50   : > { %v424_v9 = vunpack.c.l.bf16 %v5108_v50 }
  0x51   : > { %2056 = vrot.lane.b32.xlu2 %v5785_v59, %s5543_s4 }
  0x52   : > { %v477_v41 = vrot.slane %v424_v9, 1  ;;  %v527_v33 = vrot.slane %v424_v9, 2 }
  0x54   : > { %2051 = vrot.lane.b32.xlu1 %v2044_v13, %s5542_s30  ;;  %v426_v13 = vunpack.c.l.bf16 %v5110_v44 }
  0x56   : > { %v480_v12 = vrot.slane %v426_v13, 1  ;;  %v530_v49 = vrot.slane %v426_v13, 2 }
  0x57   : > { %2049 = vrot.lane.b32.xlu0 %v2043_v57, %s5542_s30  ;;  %v428_v57 = vunpack.c.l.bf16 %v5112_v53  ;;  %v523_v53 = vrot.slane %v5877_v63, 2 }
  0x58   : > { %v481_v44 = vsel %vm294_vm0, %v479_v62, %v480_v12 }
  0x59   : > { %2062 = vrot.lane.b32.xlu2 %v2055_v5, %s5543_s4  ;;  %v490_v5 = vsel %vm294_vm0, %v488_v51, %v489_v52  ;;  %v483_v30 = vrot.slane %v428_v57, 1  ;;  %v533_v52 = vrot.slane %v428_v57, 2  ;;  %v511_v47 = vpack.c.bf16 %v481_v44, %v481_v44 }
  0x5a   : > { %v514_v22 = vpack.c.bf16 %v490_v5, %v490_v5  ;;  %v531_v57 = vsel %vm345_vm1, %v529_v48, %v530_v49  ;;  %v525_v5 = vsel %vm345_vm1, %v523_v53, %v524_v55  ;;  %v535_v48 = vrot.slane %v5838_v54, 2 }
  0x5b   : > { %v5923_v62 = vunpack.c.l.b16 %v511_v47  ;;  %v561_v12 = vpack.c.bf16 %v531_v57, %v531_v57  ;;  %v559_v6 = vpack.c.bf16 %v525_v5, %v525_v5  ;;  %v536_v49 = vrot.slane %v430_v34, 2 }
  0x5c   : > { %2060 = vrot.lane.b32.xlu1 %v5813_v11, %s5543_s4  ;;  %v5895_v43 = vunpack.c.l.b16 %v514_v22  ;;  %v439_v47 = vpack.c.bf16 %v5877_v63, %v5877_v63 }
  0x5d   : > { %v537_v55 = vsel %vm345_vm1, %v535_v48, %v536_v49 }
  0x5e   : > { %v563_v57 = vpack.c.bf16 %v537_v55, %v537_v55 }
  0x5f   : > { %2058 = vrot.lane.b32.xlu0 %v5824_v26, %s5543_s4 }
  0x60   : > { %v2224_v63 = vunpack.c.l.b16 %v563_v57 }
  0x61   : > { %2071 = vrot.lane.b32.xlu2 %v5694_v46, %s5544_s5  ;;  %v5111_v46 = vld [vmem:[%s5594_s25 + $0x78] sm:$0xf] }
  0x62   : > { %v5872_v37 = vunpack.c.l.bf16 %v5111_v46  ;;  %v475_v46 = vsel %vm294_vm0, %v473_v18, %v474_v39 }
  0x63   : > { %v509_v1 = vpack.c.bf16 %v475_v46, %v475_v46 }
  0x64   : > { %2069 = vrot.lane.b32.xlu1 %v5656_v56, %s5544_s5  ;;  %v5881_v56 = vunpack.c.l.b16 %v508_v45  ;;  %v532_v51 = vrot.slane %v5872_v37, 2  ;;  %v526_v45 = vrot.slane %v5879_v20, 2 }
  0x66   : > { %v2198_v42 = vpack.c.b16 %v5881_v56, %v2190_v24  ;;  %v534_v2 = vsel %vm345_vm1, %v532_v51, %v533_v52  ;;  %v528_v9 = vsel %vm345_vm1, %v526_v45, %v527_v33  ;;  %v538_v51 = vrot.slane %v5841_v35, 2 }
  0x67   : > { %2067 = vrot.lane.b32.xlu0 %v5711_v0, %s5544_s5  ;;  %v482_v0 = vrot.slane %v5872_v37, 1  ;;  %v560_v15 = vpack.c.bf16 %v528_v9, %v528_v9  ;;  %v539_v52 = vrot.slane %v432_v36, 2  ;;  %v5118_v36 = vld [vmem:[%s5594_s25 + $0x94] sm:$0x1]  ;;  %v5988_v33 = vunpack.c.l.b16 %v441_v21 }
  0x69   : > { %2080 = vrot.lane.b32.xlu2 %v5749_v31, %s5545_s6  ;;  %v5893_v31 = vunpack.c.l.b16 %v513_v27  ;;  %v484_v58 = vsel %vm294_vm0, %v482_v0, %v483_v30  ;;  %v521_v27 = vrot.slane %v420_v19, 2  ;;  %v562_v0 = vpack.c.bf16 %v534_v2, %v534_v2 }
  0x6a   : > { %v512_v50 = vpack.c.bf16 %v484_v58, %v484_v58  ;;  %v5927_v30 = vunpack.c.l.b16 %v509_v1  ;;  %v519_v19 = vsel %vm345_vm1, %v517_v8, %v518_v61  ;;  %v5953_v4 = vunpack.c.l.b16 %v560_v15 }
  0x6b   : > { %v5912_v24 = vpack.c.b16 %v5895_v43, %v5893_v31  ;;  %v522_v18 = vsel %vm345_vm1, %v520_v17, %v521_v27  ;;  %v557_v44 = vpack.c.bf16 %v519_v19, %v519_v19  ;;  %v540_v45 = vsel %vm345_vm1, %v538_v51, %v539_v52 }
  0x6c   : > { %2078 = vrot.lane.b32.xlu1 %v5724_v14, %s5545_s6  ;;  %v478_v14 = vsel %vm294_vm0, %v476_v10, %v477_v41  ;;  %v5925_v22 = vunpack.c.l.b16 %v512_v50  ;;  %v5943_v10 = vunpack.c.l.b16 %v561_v12  ;;  %v5945_v41 = vunpack.c.l.b16 %v562_v0  ;;  %v5117_v50 = vld [vmem:[%s5594_s25 + $0x90] sm:$0xf] }
  0x6d   : > { %v510_v13 = vpack.c.bf16 %v478_v14, %v478_v14  ;;  %v558_v58 = vpack.c.bf16 %v522_v18, %v522_v18  ;;  %v440_v14 = vpack.c.bf16 %v5879_v20, %v5879_v20  ;;  %v2218_v34 = vunpack.c.l.b16 %v557_v44 }
  0x6e   : > { %v5941_v39 = vpack.c.b16 %v5925_v22, %v5923_v62  ;;  %v5965_v46 = vpack.c.b16 %v5945_v41, %v5943_v10  ;;  %v434_v1 = vunpack.c.l.bf16 %v5118_v36  ;;  %v564_v2 = vpack.c.bf16 %v540_v45, %v540_v45 }
  0x6f   : > { %2073 = vrot.lane.b32.xlu0 %v2066_v38, %s5544_s5  ;;  %v5929_v38 = vunpack.c.l.b16 %v510_v13  ;;  %v5973_v29 = vunpack.c.l.b16 %v558_v58  ;;  %v5986_v40 = vunpack.c.l.b16 %v440_v14  ;;  %v433_v5 = vunpack.c.l.bf16 %v5117_v50 }
  0x70   : > { %v6002_v61 = vunpack.c.l.b16 %v439_v47  ;;  %v492_v17 = vrot.slane %v434_v1, 1  ;;  %v6005_v27 = vunpack.c.l.b16 %v564_v2  ;;  %v444_v0 = vpack.c.bf16 %v5841_v35, %v5841_v35  ;;  %v5119_v2 = vld [vmem:[%s5594_s25 + $0x98] sm:$0xf] }
  0x71   : > { %2202 = vrot.lane.b32.xlu2 %v2198_v42, %s5539_s27  ;;  %v5951_v42 = vunpack.c.l.b16 %v559_v6  ;;  %v2226_v13 = vpack.c.b16 %v5973_v29, %v2218_v34  ;;  %v2241_v8 = vpack.c.b16 %v5988_v33, %v5986_v40  ;;  %v445_v6 = vpack.c.bf16 %v433_v5, %v433_v5 }
  0x72   : > { %v6016_v18 = vpack.c.b16 %v6005_v27, %v2224_v63  ;;  %v442_v44 = vpack.c.bf16 %v5872_v37, %v5872_v37  ;;  %v443_v58 = vpack.c.bf16 %v5838_v54, %v5838_v54  ;;  %v2254_v48 = vpack.c.b16 %v5927_v30, %v5881_v56 }
  0x73   : > { %v5978_v53 = vpack.c.b16 %v5953_v4, %v5951_v42  ;;  %v6025_v35 = vunpack.c.l.b16 %v444_v0  ;;  %v6027_v49 = vunpack.c.l.b16 %v445_v6  ;;  %v2256_v55 = vpack.c.b16 %v5893_v31, %v5925_v22  ;;  %v5125_v0 = vld [vmem:[%s5594_s25 + $0xb0] sm:$0xf]  ;;  %v6103_v6 = vld [vmem:[%s5594_s25 + $0xb4] sm:$0x1] }
  0x74   : > { %2084 = vrot.lane.b32.xlu1 %v2077_v60, %s5545_s6  ;;  %v438_v60 = vpack.c.bf16 %v5815_v16, %v5815_v16  ;;  %v491_v16 = vrot.slane %v433_v5, 1  ;;  %v2175_v52 = vunpack.c.l.b16 %v442_v44  ;;  %v6031_v14 = vunpack.c.l.b16 %v443_v58 }
  0x75   : > { %v2243_v54 = vpack.c.b16 %v6027_v49, %v6025_v35  ;;  %v541_v47 = vrot.slane %v433_v5, 2  ;;  %v542_v50 = vrot.slane %v434_v1, 2  ;;  %v2268_v1 = vpack.c.b16 %v5951_v42, %v5973_v29 }
  0x76   : > { %v6000_v9 = vunpack.c.l.b16 %v438_v60  ;;  %v493_v15 = vsel %vm294_vm0, %v491_v16, %v492_v17  ;;  %v2255_v60 = vpack.c.b16 %v5923_v62, %v5929_v38  ;;  %v2269_v62 = vpack.c.b16 %v5943_v10, %v5953_v4 }
  0x77   : > { %2082 = vrot.lane.b32.xlu0 %v5741_v28, %s5545_s6  ;;  %v5933_v3 = vpop.permute.xlu2 %2017  ;;  %v5949_v28 = vpack.c.b16 %v5929_v38, %v5927_v30  ;;  %v515_v51 = vpack.c.bf16 %v493_v15, %v493_v15  ;;  %v2242_v30 = vpack.c.b16 %v6031_v14, %v2175_v52  ;;  %v543_v31 = vsel %vm345_vm1, %v541_v47, %v542_v50 }
  0x78   : > { %9364 = vst [vmem:[#allocation7_spill] sm:$0xff] %v6000_v9  ;;  %v2240_v12 = vpack.c.b16 %v6002_v61, %v6000_v9  ;;  %v6072_v38 = vunpack.c.l.bf16 %v5119_v2  ;;  %v565_v5 = vpack.c.bf16 %v543_v31, %v543_v31 }
  0x79   : > { %2208 = vrot.lane.b32.xlu2 %v5912_v24, %s5539_s27  ;;  %v6036_v37 = vunpack.c.l.b16 %v515_v51  ;;  %v6109_v51 = vunpack.c.l.bf16 %v5125_v0 }
  0x7a   : > { %v494_v16 = vrot.slane %v6072_v38, 1  ;;  %v6088_v4 = vunpack.c.l.b16 %v565_v5  ;;  %v446_v42 = vpack.c.bf16 %v6072_v38, %v6072_v38 }
  0x7b   : > { %v2257_v34 = vpack.c.b16 %v6036_v37, %v5895_v43  ;;  %v2270_v43 = vpack.c.b16 %v2224_v63, %v5945_v41  ;;  %v6083_v63 = vpack.c.b16 %v2175_v52, %v5988_v33  ;;  %v6099_v33 = vpack.c.b16 %v5986_v40, %v6002_v61  ;;  %v6116_v40 = vld [vmem:[%s5594_s25 + $0xbc] sm:$0x1]  ;;  %v5121_v61 = vld [vmem:[%s5594_s25 + $0xa0] sm:$0xf] }
  0x7c   : > { %2206 = vrot.lane.b32.xlu1 %v5941_v39, %s5539_s27  ;;  %v2271_v44 = vpack.c.b16 %v6088_v4, %v6005_v27  ;;  %v2281_v58 = vunpack.c.l.b16 %v446_v42  ;;  %v9298_v52 = vunpack.c.l.bf16 %v6103_v6  ;;  %v644_v2 = vrot.slane %v6109_v51, 1 }
  0x7d   : > { %9366 = vst [vmem:[#allocation9_spill] sm:$0xff] %v6083_v63  ;;  %v6144_v42 = vpack.c.b16 %v6025_v35, %v6031_v14 }
  0x7e   : > { %9368 = vst [vmem:[#allocation11_spill] sm:$0xff] %v6099_v33  ;;  %v2282_v27 = vpack.c.b16 %v2281_v58, %v6027_v49  ;;  %v645_v31 = vrot.slane %v9298_v52, 1 }
  0x7f   : > { %2204 = vrot.lane.b32.xlu0 %v5949_v28, %s5539_s27  ;;  %9371 = vst [vmem:[#allocation14_spill] sm:$0xff] %v6144_v42 }
  0x81   : > { %2234 = vrot.lane.b32.xlu2 %v5965_v46, %s5540_s28  ;;  %v5984_v20 = vpop.permute.xlu2 %2003 }
  0x84   : > { %2232 = vrot.lane.b32.xlu1 %v5978_v53, %s5540_s28 }
  0x87   : > { %2230 = vrot.lane.b32.xlu0 %v2226_v13, %s5540_s28  ;;  %v6059_v13 = vld [vmem:[%s5594_s25 + $0x9c] sm:$0x1] }
  0x88   : > { %v436_v22 = vunpack.c.l.bf16 %v6059_v13 }
  0x89   : > { %2246 = vrot.lane.b32.xlu2 %v2241_v8, %s5538_s26 }
  0x8a   : > { %v495_v17 = vrot.slane %v436_v22, 1  ;;  %v545_v52 = vrot.slane %v436_v22, 2 }
  0x8b   : > { %v6013_v19 = vpop.permute.xlu2 %2005 }
  0x8c   : > { %2244 = vrot.lane.b32.xlu1 %v2240_v12, %s5538_s26  ;;  %v496_v29 = vsel %vm294_vm0, %v494_v16, %v495_v17 }
  0x8f   : > { %2236 = vrot.lane.b32.xlu0 %v6016_v18, %s5540_s28 }
  0x91   : > { %2258 = vrot.lane.b32.xlu2 %v2254_v48, %s5541_s29  ;;  %v516_v48 = vpack.c.bf16 %v496_v29, %v496_v29  ;;  %v3699_v29 = vld [vmem:[%s9294_s1 + $0x10] sm:$0x3] }
  0x93   : > { %v6038_v56 = vpop.permute.xlu2 %2023  ;;  %v2292_v47 = vunpack.c.l.b16 %v516_v48 }
  0x94   : > { %9365 = vst [vmem:[#allocation8_spill] sm:$0xff] %v6038_v56  ;;  %v6041_v21 = vpop.permute.xlu1 %1979  ;;  %2250 = vrot.lane.b32.xlu1 %v2243_v54, %s5538_s26  ;;  %v5127_v54 = vld [vmem:[%s5594_s25 + $0xb8] sm:$0xf] }
  0x95   : > { %v6126_v50 = vunpack.c.l.bf16 %v5127_v54  ;;  %v2293_v0 = vpack.c.b16 %v2292_v47, %v6036_v37 }
  0x97   : > { %2248 = vrot.lane.b32.xlu0 %v2242_v30, %s5538_s26  ;;  %v6047_v36 = vpop.permute.xlu0 %1975  ;;  %v5122_v30 = vld [vmem:[%s5594_s25 + $0xa4] sm:$0x1] }
  0x98   : > { %v589_v5 = vunpack.c.l.bf16 %v5122_v30  ;;  %v544_v30 = vrot.slane %v6072_v38, 2 }
  0x99   : > { %2264 = vrot.lane.b32.xlu2 %v2257_v34, %s5541_s29  ;;  %v5123_v34 = vld [vmem:[%s5594_s25 + $0xa8] sm:$0xf] }
  0x9a   : > { %v6138_v16 = vunpack.c.l.bf16 %v5123_v34  ;;  %v639_v14 = vrot.slane %v589_v5, 1  ;;  %v5133_v34 = vld [vmem:[%s5594_s25 + $0xd0] sm:$0xf] }
  0x9b   : > { %v6052_v45 = vpop.permute.xlu2 %2035 }
  0x9c   : > { %2262 = vrot.lane.b32.xlu1 %v2256_v55, %s5541_s29  ;;  %v5124_v55 = vld [vmem:[%s5594_s25 + $0xac] sm:$0x1]  ;;  %v641_v48 = vrot.slane %v6138_v16, 1 }
  0x9d   : > { %v591_v49 = vunpack.c.l.bf16 %v5124_v55 }
  0x9e   : > { %v6061_v57 = vpop.permute.xlu1 %1981 }
  0x9f   : > { %2260 = vrot.lane.b32.xlu0 %v2255_v60, %s5541_s29  ;;  %v642_v54 = vrot.slane %v591_v49, 1 }
  0xa1   : > { %v6067_v8 = vpop.permute.xlu0 %1977  ;;  %2276 = vrot.lane.b32.xlu2 %v2270_v43, %s5542_s30  ;;  %v9297_v43 = vunpack.c.l.bf16 %v6116_v40  ;;  %v643_v38 = vsel %vm294_vm0, %v641_v48, %v642_v54 }
  0xa3   : > { %v6074_v41 = vpop.permute.xlu2 %2047  ;;  %v648_v58 = vrot.slane %v9297_v43, 1 }
  0xa4   : > { %2274 = vrot.lane.b32.xlu1 %v2269_v62, %s5542_s30 }
  0xa6   : > { %v6086_v10 = vpop.permute.xlu1 %2009 }
  0xa7   : > { %2272 = vrot.lane.b32.xlu0 %v2268_v1, %s5542_s30  ;;  %9367 = vst [vmem:[#allocation10_spill] sm:$0xff] %v6086_v10  ;;  %v6136_v1 = vunpack.c.l.bf16 %v5121_v61  ;;  %v4187_v61 = vunpack.c.l.b16 %v3699_v29 }
  0xa9   : > { %v6093_v12 = vpop.permute.xlu0 %2007  ;;  %2285 = vrot.lane.b32.xlu2 %v6083_v63, %s5543_s4  ;;  %9369 = vst [vmem:[#allocation12_spill] sm:$0xff] %v6136_v1  ;;  %v638_v35 = vrot.slane %v6136_v1, 1  ;;  %v4190_v32 = vpack.c.b16 %v4187_v61, %v4187_v61  ;;  %v692_v61 = vrot.slane %v591_v49, 2  ;;  %v5129_v49 = vld [vmem:[%s5594_s25 + $0xc0] sm:$0xf] }
  0xab   : > { %v6105_v15 = vpop.permute.xlu2 %2056  ;;  %v640_v29 = vsel %vm294_vm0, %v638_v35, %v639_v14  ;;  %v6185_v35 = vunpack.c.l.bf16 %v5133_v34  ;;  %v5130_v34 = vld [vmem:[%s5594_s25 + $0xc4] sm:$0x1] }
  0xac   : > { %2283 = vrot.lane.b32.xlu1 %v6099_v33, %s5543_s4  ;;  %v678_v54 = vpack.c.bf16 %v640_v29, %v640_v29 }
  0xae   : > { %v6123_v60 = vpop.permute.xlu1 %2021 }
  0xaf   : > { %2278 = vrot.lane.b32.xlu0 %v2271_v44, %s5542_s30  ;;  %v647_v44 = vrot.slane %v6126_v50, 1 }
  0xb1   : > { %v6132_v62 = vpop.permute.xlu0 %2019  ;;  %2294 = vrot.lane.b32.xlu2 %v5949_v28, %s5544_s5  ;;  %v646_v28 = vsel %vm294_vm0, %v644_v2, %v645_v31  ;;  %v649_v55 = vsel %vm294_vm0, %v647_v44, %v648_v58  ;;  %v5135_v2 = vld [vmem:[%s5594_s25 + $0xd8] sm:$0xf]  ;;  %v6169_v31 = vld [vmem:[%s5594_s25 + $0xdc] sm:$0x1]  ;;  %v689_v44 = vrot.slane %v589_v5, 2  ;;  %v691_v58 = vrot.slane %v6138_v16, 2 }
  0xb2   : > { %v680_v47 = vpack.c.bf16 %v646_v28, %v646_v28  ;;  %v688_v28 = vrot.slane %v6136_v1, 2  ;;  %v6188_v13 = vunpack.c.l.bf16 %v5135_v2  ;;  %v603_v22 = vunpack.c.l.bf16 %v6169_v31  ;;  %v6195_v5 = vld [vmem:[%s9294_s1 + $0x8] sm:$0xff] }
  0xb3   : > { %v6140_v17 = vpop.permute.xlu2 %2062  ;;  %9373 = vst [vmem:[#allocation16_spill] sm:$0xff] %v6195_v5  ;;  %v5132_v2 = vld [vmem:[%s5594_s25 + $0xcc] sm:$0x1]  ;;  %v679_v1 = vpack.c.bf16 %v643_v38, %v643_v38  ;;  %v546_v31 = vsel %vm345_vm1, %v544_v30, %v545_v52  ;;  %v693_v33 = vsel %vm345_vm1, %v691_v58, %v692_v61  ;;  %v6218_v52 = vld [vmem:[%s9294_s1] sm:$0xff]  ;;  %v6220_v30 = vunpack.c.l.bf16 %v5129_v49 }
  0xb4   : > { %9370 = vst [vmem:[#allocation13_spill] sm:$0xff] %v6140_v17  ;;  %2289 = vrot.lane.b32.xlu1 %v2282_v27, %s5543_s4  ;;  %v6165_v27 = vld [vmem:[%s5594_s25 + $0xd4] sm:$0x1]  ;;  %v6200_v48 = vunpack.c.l.b16 %v680_v47  ;;  %v690_v63 = vsel %vm345_vm1, %v688_v28, %v689_v44  ;;  %v659_v47 = vrot.slane %v6188_v13, 1  ;;  %v660_v29 = vrot.slane %v603_v22, 1 }
  0xb5   : > { %v601_v14 = vunpack.c.l.bf16 %v6165_v27  ;;  %v5131_v27 = vld [vmem:[%s5594_s25 + $0xc8] sm:$0xf]  ;;  %9374 = vst [vmem:[#allocation17_spill] sm:$0xff] %v6218_v52  ;;  %v597_v38 = vunpack.c.l.bf16 %v5130_v34  ;;  %v566_v61 = vpack.c.bf16 %v546_v31, %v546_v31  ;;  %v729_v7 = vpack.c.bf16 %v693_v33, %v693_v33 }
  0xb6   : > { %v6159_v37 = vpop.permute.xlu1 %2033  ;;  %v6222_v28 = vunpack.c.l.bf16 %v5131_v27  ;;  %v2409_v17 = vunpack.c.l.b16 %v678_v54  ;;  %v6232_v56 = vunpack.c.l.b16 %v679_v1  ;;  %v661_v34 = vsel %vm294_vm0, %v659_v47, %v660_v29 }
  0xb7   : > { %2287 = vrot.lane.b32.xlu0 %v6144_v42, %s5543_s4  ;;  %v6181_v42 = vsel %vm4005_vm2, %v4190_v32, 0  ;;  %v681_v32 = vpack.c.bf16 %v649_v55, %v649_v55  ;;  %v657_v55 = vrot.slane %v601_v14, 1  ;;  %v650_v27 = vrot.slane %v6220_v30, 1 }
  0xb8   : > { %9372 = vst [vmem:[#allocation15_spill] sm:$0xff] %v6181_v42  ;;  %4209 = vmatpush.bf16.msra.mxu1 %v6181_v42  ;;  %v2303_v33 = vunpack.c.l.b16 %v566_v61  ;;  %v6245_v54 = vunpack.c.l.b16 %v729_v7  ;;  %v706_v31 = vrot.slane %v6185_v35, 2  ;;  %v710_v47 = vrot.slane %v603_v22, 2 }
  0xb9   : > { %v6171_v43 = vpop.permute.xlu0 %2031  ;;  %2300 = vrot.lane.b32.xlu2 %v2293_v0, %s5544_s5  ;;  %v6228_v58 = vunpack.c.l.b16 %v681_v32  ;;  %v701_v22 = vrot.slane %v597_v38, 2 }
  0xbb   : > { %v6183_v0 = vpop.permute.xlu2 %2071 }
  0xbc   : > { %2298 = vrot.lane.b32.xlu1 %v5912_v24, %s5544_s5  ;;  %v656_v24 = vrot.slane %v6185_v35, 1  ;;  %4210 = vmatpush.bf16.msra.mxu1 %v6195_v5  ;;  %v728_v5 = vpack.c.bf16 %v690_v63, %v690_v63  ;;  %v6243_v63 = vpack.c.b16 %v6228_v58, %v6200_v48 }
  0xbe   : > { %v6210_v9 = vpop.permute.xlu1 %2045  ;;  %v658_v49 = vsel %vm294_vm0, %v656_v24, %v657_v55  ;;  %9376 = vst [vmem:[#allocation19_spill] sm:$0xff] %v6243_v63  ;;  %v2437_v1 = vunpack.c.l.b16 %v728_v5  ;;  %v707_v24 = vrot.slane %v601_v14, 2  ;;  %v709_v55 = vrot.slane %v6188_v13, 2 }
  0xbf   : > { %2296 = vrot.lane.b32.xlu0 %v5941_v39, %s5544_s5  ;;  %v599_v39 = vunpack.c.l.bf16 %v5132_v2  ;;  %v651_v2 = vrot.slane %v597_v38, 1  ;;  %v700_v14 = vrot.slane %v6220_v30, 2  ;;  %v694_v38 = vrot.slane %v6109_v51, 2 }
  0xc0   : > { %4211 = vmatpush.bf16.msra.mxu1 %v6218_v52  ;;  %v685_v52 = vpack.c.bf16 %v661_v34, %v661_v34  ;;  %v2445_v34 = vpack.c.b16 %v6245_v54, %v2437_v1 }
  0xc1   : > { %v6224_v44 = vpop.permute.xlu0 %2037  ;;  %2309 = vrot.lane.b32.xlu2 %v6016_v18, %s5545_s6  ;;  %v653_v18 = vrot.slane %v6222_v28, 1  ;;  %v654_v32 = vrot.slane %v599_v39, 1  ;;  %v652_v61 = vsel %vm294_vm0, %v650_v27, %v651_v2  ;;  %v704_v10 = vrot.slane %v599_v39, 2 }
  0xc2   : > { %9375 = vst [vmem:[#allocation18_spill] sm:$0xff] %v6224_v44  ;;  %v2417_v44 = vpack.c.b16 %v6232_v56, %v2409_v17  ;;  %v708_v17 = vsel %vm345_vm1, %v706_v31, %v707_v24  ;;  %v711_v27 = vsel %vm345_vm1, %v709_v55, %v710_v47  ;;  %v9378_v39 = vunpack.c.l.bf16 %v6103_v6 }
  0xc3   : > { %v6230_v42 = vpop.permute.xlu2 %2080  ;;  %v655_v7 = vsel %vm294_vm0, %v653_v18, %v654_v32  ;;  %v6270_v32 = vunpack.c.l.b16 %v685_v52  ;;  %v734_v31 = vpack.c.bf16 %v708_v17, %v708_v17  ;;  %v735_v24 = vpack.c.bf16 %v711_v27, %v711_v27 }
  0xc4   : > { %2307 = vrot.lane.b32.xlu1 %v5965_v46, %s5545_s6  ;;  %v684_v46 = vpack.c.bf16 %v658_v49, %v658_v49  ;;  %v2304_v49 = vpack.c.b16 %v2303_v33, %v6088_v4  ;;  %v695_v11 = vrot.slane %v9378_v39, 2  ;;  %v697_v4 = vrot.slane %v6126_v50, 2 }
  0xc5   : > { %v9379_v33 = vunpack.c.l.bf16 %v6116_v40  ;;  %v702_v55 = vsel %vm345_vm1, %v700_v14, %v701_v22  ;;  %v6297_v14 = vunpack.c.l.b16 %v734_v31 }
  0xc6   : > { %v6251_v29 = vpop.permute.xlu1 %2051  ;;  %v6268_v18 = vunpack.c.l.b16 %v684_v46 }
  0xc7   : > { %2305 = vrot.lane.b32.xlu0 %v5978_v53, %s5545_s6  ;;  %9377 = vst [vmem:[#allocation20_spill] sm:$0xff] %v6251_v29  ;;  %v703_v53 = vrot.slane %v6222_v28, 2  ;;  %v683_v29 = vpack.c.bf16 %v655_v7, %v655_v7  ;;  %v698_v1 = vrot.slane %v9379_v33, 2  ;;  %v696_v7 = vsel %vm345_vm1, %v694_v38, %v695_v11 }
  0xc9   : > { %v6256_v5 = vpop.permute.xlu0 %2049  ;;  %2423 = vrot.lane.b32.xlu2 %v6243_v63, %s5539_s27  ;;  %v682_v63 = vpack.c.bf16 %v652_v61, %v652_v61  ;;  %v705_v52 = vsel %vm345_vm1, %v703_v53, %v704_v10  ;;  %v6286_v46 = vunpack.c.l.b16 %v683_v29  ;;  %v732_v61 = vpack.c.bf16 %v702_v55, %v702_v55 }
  0xca   : > { %v733_v40 = vpack.c.bf16 %v705_v52, %v705_v52  ;;  %v6295_v10 = vpack.c.b16 %v6270_v32, %v6268_v18  ;;  %v9380_v29 = vpack.c.b16 %v5623_v23, %v5627_v25  ;;  %v613_v25 = vpack.c.bf16 %v6222_v28, %v6222_v28 }
  0xcb   : > { %v6266_v2 = vpop.permute.xlu2 %2202  ;;  %v6284_v6 = vunpack.c.l.b16 %v682_v63  ;;  %v6299_v63 = vunpack.c.l.b16 %v735_v24  ;;  %v6312_v27 = vunpack.c.l.b16 %v732_v61  ;;  %v611_v55 = vpack.c.bf16 %v6126_v50, %v6126_v50 }
  0xcc   : > { %2421 = vrot.lane.b32.xlu1 %v2417_v44, %s5539_s27  ;;  %v699_v44 = vsel %vm345_vm1, %v697_v4, %v698_v1  ;;  %v2089_v11 = vsel %vm2086_vm3, %v9380_v29, %v6047_v36  ;;  %v6314_v38 = vunpack.c.l.b16 %v733_v40  ;;  %v614_v36 = vpack.c.bf16 %v6185_v35, %v6185_v35  ;;  %v5137_v29 = vld [vmem:[%s5594_s25 + $0xe0] sm:$0xf] }
  0xcd   : > { %v6310_v53 = vpack.c.b16 %v6286_v46, %v6284_v6  ;;  %v2101_v39 = vsel %vm2099_vm4, %v2089_v11, %v5984_v20  ;;  %v6322_v23 = vpack.c.b16 %v6299_v63, %v6297_v14  ;;  %v6344_v31 = vunpack.c.l.b16 %v613_v25 }
  0xce   : > { %v6282_v47 = vpop.permute.xlu1 %2060  ;;  %v2110_v1 = vsel %vm2108_vm5, %v2101_v39, %v5933_v3  ;;  %v6340_v28 = vpack.c.b16 %v6314_v38, %v6312_v27  ;;  %v6346_v24 = vunpack.c.l.b16 %v614_v36  ;;  %v612_v3 = vpack.c.bf16 %v6220_v30, %v6220_v30 }
  0xcf   : > { %2311 = vrot.lane.b32.xlu0 %v2304_v49, %s5545_s6  ;;  %v730_v49 = vpack.c.bf16 %v696_v7, %v696_v7  ;;  %v2119_v52 = vsel %vm2117_vm6, %v2110_v1, %v6171_v43  ;;  %v609_v50 = vpack.c.bf16 %v6138_v16, %v6138_v16  ;;  %v610_v30 = vpack.c.bf16 %v6109_v51, %v6109_v51 }
  0xd0   : > { %v2128_v61 = vsel %vm2126_vm7, %v2119_v52, %v6210_v9  ;;  %v2461_v9 = vpack.c.b16 %v6346_v24, %v6344_v31  ;;  %v6372_v43 = vunpack.c.l.b16 %v611_v55  ;;  %v6374_v11 = vunpack.c.l.b16 %v612_v3 }
  0xd1   : > { %v6290_v17 = vpop.permute.xlu0 %2058  ;;  %2449 = vrot.lane.b32.xlu2 %v2445_v34, %s5540_s28  ;;  %v731_v34 = vpack.c.bf16 %v699_v44, %v699_v44  ;;  %v6332_v33 = vunpack.c.l.b16 %v730_v49  ;;  %v5138_v44 = vld [vmem:[%s5594_s25 + $0xe4] sm:$0x1]  ;;  %v2137_v49 = vsel %vm2135_vm8, %v2128_v61, %v6105_v15  ;;  %v6381_v39 = vunpack.c.l.b16 %v609_v50 }
  0xd2   : > { %v605_v16 = vunpack.c.l.bf16 %v5138_v44  ;;  %v6383_v25 = vunpack.c.l.b16 %v610_v30  ;;  %v604_v36 = vunpack.c.l.bf16 %v5137_v29  ;;  %v2460_v15 = vpack.c.b16 %v6374_v11, %v6372_v43 }
  0xd3   : > { %v6306_v22 = vpop.permute.xlu2 %2208  ;;  %v6334_v20 = vunpack.c.l.b16 %v731_v34  ;;  %9381 = vst [vmem:[#allocation21_spill] sm:$0xff] %v6381_v39  ;;  %v2092_v52 = vsel %vm2086_vm3, %v5785_v59, %v6067_v8  ;;  %v615_v30 = vpack.c.bf16 %v6188_v13, %v6188_v13  ;;  %v2474_v29 = vpack.c.b16 %v6284_v6, %v6228_v58 }
  0xd4   : > { %2427 = vrot.lane.b32.xlu1 %v6295_v10, %s5539_s27  ;;  %v663_v3 = vrot.slane %v605_v16, 1  ;;  %v2459_v50 = vpack.c.b16 %v6383_v25, %v6381_v39  ;;  %v616_v44 = vpack.c.bf16 %v604_v36, %v604_v36  ;;  %v712_v59 = vrot.slane %v604_v36, 2 }
  0xd5   : > { %v6360_v7 = vpack.c.b16 %v6334_v20, %v6332_v33  ;;  %v713_v8 = vrot.slane %v605_v16, 2  ;;  %v2396_v13 = vunpack.c.l.b16 %v615_v30 }
  0xd6   : > { %v6330_v4 = vpop.permute.xlu1 %2069 }
  0xd7   : > { %2425 = vrot.lane.b32.xlu0 %v6310_v53, %s5539_s27 }
  0xd9   : > { %v2068_v35 = vpop.permute.xlu0 %2067  ;;  %2455 = vrot.lane.b32.xlu2 %v6322_v23, %s5540_s28 }
  0xda   : > { %v2146_v51 = vsel %vm2144_vm9, %v2137_v49, %v2068_v35  ;;  %v662_v35 = vrot.slane %v604_v36, 1  ;;  %v714_v36 = vsel %vm345_vm1, %v712_v59, %v713_v8  ;;  %v5139_v59 = vld [vmem:[%s5594_s25 + $0xe8] sm:$0xf] }
  0xdb   : > { %v6356_v40 = vpop.permute.xlu2 %2234  ;;  %v9383_v8 = vld [vmem:[#allocation6_spill] sm:$0xff] }
  0xdc   : > { %2453 = vrot.lane.b32.xlu1 %v6340_v28, %s5540_s28  ;;  %v664_v49 = vsel %vm294_vm0, %v662_v35, %v663_v3 }
  0xdd   : > { %v686_v16 = vpack.c.bf16 %v664_v49, %v664_v49 }
  0xde   : > { %v2079_v34 = vpop.permute.xlu1 %2078 }
  0xdf   : > { %2451 = vrot.lane.b32.xlu0 %v6360_v7, %s5540_s28  ;;  %v2155_v1 = vsel %vm2153_vm10, %v2146_v51, %v2079_v34 }
  0xe0   : > { %5334 = vmatmul.msk.bf16.vlgmr.msra.gmra.mxu1 %vm3940_vm11, %v2155_v1  ;;  %v6412_v1 = vunpack.c.l.b16 %v616_v44 }
  0xe1   : > { %v6386_v55 = vpop.permute.xlu0 %2073  ;;  %2467 = vrot.lane.b32.xlu2 %v2461_v9, %s5538_s26  ;;  %v2103_v9 = vsel %vm2099_vm4, %v2092_v52, %v6013_v19  ;;  %v2473_v19 = vpack.c.b16 %v6200_v48, %v6232_v56  ;;  %v2487_v56 = vpack.c.b16 %v6332_v33, %v6245_v54  ;;  %v6432_v48 = vunpack.c.l.b16 %v686_v16 }
  0xe2   : > { %v2112_v51 = vsel %vm2108_vm5, %v2103_v9, %v6132_v62  ;;  %v2462_v35 = vpack.c.b16 %v6412_v1, %v2396_v13  ;;  %v736_v52 = vpack.c.bf16 %v714_v36, %v714_v36  ;;  %v2475_v33 = vpack.c.b16 %v6268_v18, %v6286_v46 }
  0xe3   : > { %v6395_v61 = vpop.permute.xlu2 %2246  ;;  %v2121_v58 = vsel %vm2117_vm6, %v2112_v51, %v6159_v37  ;;  %v2098_v51 = vsel %vm2086_vm3, %v9383_v8, %v6061_v57 }
  0xe4   : > { %2465 = vrot.lane.b32.xlu1 %v2460_v15, %s5538_s26  ;;  %v2130_v62 = vsel %vm2126_vm7, %v2121_v58, %v6074_v41  ;;  %v6445_v54 = vunpack.c.l.b16 %v736_v52 }
  0xe5   : > { %v2139_v3 = vsel %vm2135_vm8, %v2130_v62, %v6290_v17  ;;  %v2476_v17 = vpack.c.b16 %v6432_v48, %v6270_v32 }
  0xe6   : > { %v6410_v34 = vpop.permute.xlu1 %2084  ;;  %v2148_v37 = vsel %vm2144_vm9, %v2139_v3, %v6330_v4  ;;  %v2490_v44 = vpack.c.b16 %v6445_v54, %v6299_v63  ;;  %v5140_v63 = vld [vmem:[%s5594_s25 + $0xec] sm:$0x1] }
  0xe7   : > { %2463 = vrot.lane.b32.xlu0 %v2459_v50, %s5538_s26  ;;  %v2157_v50 = vsel %vm2153_vm10, %v2148_v37, %v6230_v42  ;;  %v2095_v42 = vsel %vm2086_vm3, %v5824_v26, %v6041_v21  ;;  %v2489_v26 = vpack.c.b16 %v6297_v14, %v6314_v38  ;;  %v607_v14 = vunpack.c.l.bf16 %v5140_v63 }
  0xe8   : > { %v2105_v32 = vsel %vm2099_vm4, %v2095_v42, %v6093_v12  ;;  %v606_v38 = vunpack.c.l.bf16 %v5139_v59 }
  0xe9   : > { %v2083_v6 = vpop.permute.xlu0 %2082  ;;  %2479 = vrot.lane.b32.xlu2 %v2474_v29, %s5541_s29  ;;  %v2114_v29 = vsel %vm2108_vm5, %v2105_v32, %v6123_v60  ;;  %v2488_v60 = vpack.c.b16 %v6312_v27, %v6334_v20  ;;  %v5149_v20 = vld [vmem:[%s5594_s25 + $0x110] sm:$0xf]  ;;  %v666_v36 = vrot.slane %v607_v14, 1  ;;  %v9389_v32 = vld [vmem:[#allocation20_spill] sm:$0xff] }
  0xea   : > { %v2123_v21 = vsel %vm2117_vm6, %v2114_v29, %v6052_v45  ;;  %v6483_v45 = vpack.c.b16 %v2396_v13, %v6346_v24  ;;  %v6502_v24 = vpack.c.b16 %v6344_v31, %v6374_v11  ;;  %v5151_v13 = vld [vmem:[%s5594_s25 + $0x118] sm:$0xf]  ;;  %v665_v57 = vrot.slane %v606_v38, 1 }
  0xeb   : > { %v6422_v15 = vpop.permute.xlu2 %2258  ;;  %v2132_v12 = vsel %vm2126_vm7, %v2123_v21, %v6256_v5  ;;  %v617_v3 = vpack.c.bf16 %v606_v38, %v606_v38  ;;  %v715_v31 = vrot.slane %v606_v38, 2  ;;  %v716_v11 = vrot.slane %v607_v14, 2 }
  0xec   : > { %2477 = vrot.lane.b32.xlu1 %v2473_v19, %s5541_s29  ;;  %v2141_v49 = vsel %vm2135_vm8, %v2132_v12, %v6282_v47  ;;  %9382 = vst [vmem:[#allocation22_spill] sm:$0xff] %v6483_v45  ;;  %v9385_v19 = vld [vmem:[#allocation10_spill] sm:$0xff]  ;;  %v6519_v37 = vunpack.c.l.bf16 %v5149_v20  ;;  %v6522_v52 = vunpack.c.l.bf16 %v5151_v13  ;;  %v667_v42 = vsel %vm294_vm0, %v665_v57, %v666_v36  ;;  %v6561_v13 = vld [vmem:[%s5594_s25 + $0xf4] sm:$0x1] }
  0xed   : > { %v2150_v27 = vsel %vm2144_vm9, %v2141_v49, %v6183_v0  ;;  %9384 = vst [vmem:[#allocation6_spill] sm:$0xff] %v6502_v24  ;;  %v6505_v0 = vld [vmem:[%s5594_s25 + $0x114] sm:$0x1]  ;;  %v2107_v16 = vsel %vm2099_vm4, %v2098_v51, %v9385_v19  ;;  %v2500_v21 = vunpack.c.l.b16 %v617_v3  ;;  %v717_v12 = vsel %vm345_vm1, %v715_v31, %v716_v11  ;;  %v6555_v20 = vld [vmem:[%s5594_s25 + $0x10c] sm:$0x1] }
  0xee   : > { %v6435_v41 = vpop.permute.xlu1 %2206  ;;  %v2159_v47 = vsel %vm2153_vm10, %v2150_v27, %v2083_v6  ;;  %v6509_v6 = vld [vmem:[%s5594_s25 + $0x11c] sm:$0x1]  ;;  %v821_v63 = vrot.slane %v6519_v37, 1  ;;  %v824_v59 = vrot.slane %v6522_v52, 1  ;;  %v5147_v27 = vld [vmem:[%s5594_s25 + $0x108] sm:$0xf]  ;;  %v737_v31 = vpack.c.bf16 %v717_v12, %v717_v12 }
  0xef   : > { %2469 = vrot.lane.b32.xlu0 %v2462_v35, %s5538_s26  ;;  %v6517_v35 = vpack.c.b16 %v6372_v43, %v6383_v25  ;;  %v9388_v43 = vld [vmem:[#allocation18_spill] sm:$0xff]  ;;  %v2501_v3 = vpack.c.b16 %v2500_v21, %v6412_v1  ;;  %v6569_v11 = vunpack.c.l.bf16 %v5147_v27  ;;  %v9401_v39 = vunpack.c.l.bf16 %v6509_v6 }
  0xf0   : > { %5335 = vmatmul.msk.bf16.gmra.mxu1 %vm3940_vm11, %v2157_v50  ;;  %v9310_v50 = vunpack.c.l.bf16 %v6509_v6  ;;  %v5141_v51 = vld [vmem:[%s5594_s25 + $0xf0] sm:$0xf] }
  0xf1   : > { %v6439_v30 = vpop.permute.xlu0 %2204  ;;  %2491 = vrot.lane.b32.xlu2 %v2487_v56, %s5542_s30  ;;  %9386 = vst [vmem:[#allocation10_spill] sm:$0xff] %v6517_v35  ;;  %v9311_v56 = vunpack.c.l.bf16 %v6505_v0 }
  0xf2   : > { %v825_v14 = vrot.slane %v9310_v50, 1 }
  0xf3   : > { %v6447_v4 = vpop.permute.xlu2 %2264  ;;  %v822_v49 = vrot.slane %v9311_v56, 1  ;;  %v5416_v56 = vld [vmem:[%s9294_s1 + $0x14] sm:$0xff] }
  0xf4   : > { %2483 = vrot.lane.b32.xlu1 %v2476_v17, %s5541_s29  ;;  %v9387_v17 = vld [vmem:[#allocation8_spill] sm:$0xff]  ;;  %v826_v21 = vsel %vm294_vm0, %v824_v59, %v825_v14 }
  0xf6   : > { %v6462_v9 = vpop.permute.xlu1 %2232 }
  0xf7   : > { %2481 = vrot.lane.b32.xlu0 %v2475_v33, %s5541_s29  ;;  %v2116_v33 = vsel %vm2108_vm5, %v2107_v16, %v9387_v17  ;;  %v9390_v16 = vld [vmem:[#allocation13_spill] sm:$0xff]  ;;  %v5144_v17 = vld [vmem:[%s5594_s25 + $0xfc] sm:$0x1] }
  0xf8   : > { %v2125_v25 = vsel %vm2117_vm6, %v2116_v33, %v9388_v43  ;;  %v5285_v33 = vld [vmem:[%s9294_s1 + $0x24] sm:$0x3]  ;;  %v823_v43 = vsel %vm294_vm0, %v821_v63, %v822_v49  ;;  %v762_v63 = vunpack.c.l.bf16 %v5144_v17 }
  0xf9   : > { %v6464_v18 = vpop.permute.xlu0 %2230  ;;  %2497 = vrot.lane.b32.xlu2 %v2490_v44, %s5542_s30  ;;  %v5145_v44 = vld [vmem:[%s5594_s25 + $0x100] sm:$0xf]  ;;  %v2134_v29 = vsel %vm2126_vm7, %v2125_v25, %v9389_v32  ;;  %v766_v25 = vunpack.c.l.bf16 %v6555_v20  ;;  %v9392_v32 = vld [vmem:[#allocation19_spill] sm:$0xff]  ;;  %v3934_v49 = vunpack.c.l.b16 %v5285_v33 }
  0xfa   : > { %v6557_v8 = vunpack.c.l.bf16 %v5145_v44  ;;  %v2143_v57 = vsel %vm2135_vm8, %v2134_v29, %v9390_v16  ;;  %v760_v44 = vunpack.c.l.bf16 %v6561_v13  ;;  %v853_v13 = vpack.c.bf16 %v823_v43, %v823_v43 }
  0xfb   : > { %v6473_v46 = vpop.permute.xlu2 %2276  ;;  %v2152_v1 = vsel %vm2144_vm9, %v2143_v57, %v6386_v55  ;;  %v819_v16 = vrot.slane %v766_v25, 1  ;;  %v3937_v57 = vpack.c.b16 %v3934_v49, %v3934_v49  ;;  %v813_v33 = vrot.slane %v762_v63, 1  ;;  %v6618_v49 = vld [vmem:[%s5594_s25 + $0x124] sm:$0x1] }
  0xfc   : > { %2495 = vrot.lane.b32.xlu1 %v2489_v26, %s5542_s30  ;;  %v815_v12 = vrot.slane %v6557_v8, 1  ;;  %v2161_v55 = vsel %vm2153_vm10, %v2152_v1, %v6410_v34  ;;  %v810_v14 = vrot.slane %v760_v44, 1  ;;  %v854_v34 = vpack.c.bf16 %v826_v21, %v826_v21 }
  0xfd   : > { %v4007_v43 = vsel %vm4005_vm2, %v3937_v57, 0  ;;  %v868_v57 = vrot.slane %v6569_v11, 2 }
  0xfe   : > { %v6486_v5 = vpop.permute.xlu1 %2244  ;;  %4014 = vmatpush.bf16.msra.mxu0 %v4007_v43  ;;  %5420 = vmatpush.bf16.msra.mxu3 %v4007_v43  ;;  %v5155_v43 = vld [vmem:[%s5594_s25 + $0x128] sm:$0xf] }
  0xff   : > { %2493 = vrot.lane.b32.xlu0 %v2488_v60, %s5542_s30  ;;  %v6541_v60 = vld [vmem:[%s5594_s25 + $0x104] sm:$0x1] }
 0x100   : > { %5336 = vmatmul.msk.bf16.gmra.mxu1 %vm3940_vm11, %v2159_v47  ;;  %v687_v47 = vpack.c.bf16 %v667_v42, %v667_v42  ;;  %v764_v19 = vunpack.c.l.bf16 %v6541_v60  ;;  %v6578_v42 = vunpack.c.l.bf16 %v5141_v51  ;;  %v2522_v51 = vunpack.c.l.b16 %v737_v31 }
 0x101   : > { %v6495_v58 = vpop.permute.xlu0 %2236  ;;  %2506 = vrot.lane.b32.xlu2 %v6483_v45, %s5543_s4 }
 0x102   : > { %9391 = vst [vmem:[#allocation8_spill] sm:$0xff] %v6578_v42  ;;  %v2511_v29 = vunpack.c.l.b16 %v687_v47  ;;  %v816_v60 = vrot.slane %v764_v19, 1  ;;  %v818_v47 = vrot.slane %v6569_v11, 1  ;;  %v809_v59 = vrot.slane %v6578_v42, 1 }
 0x103   : > { %v6513_v62 = vpop.permute.xlu2 %2285 }
 0x104   : > { %2504 = vrot.lane.b32.xlu1 %v6502_v24, %s5543_s4  ;;  %v817_v31 = vsel %vm294_vm0, %v815_v12, %v816_v60  ;;  %v811_v21 = vsel %vm294_vm0, %v809_v59, %v810_v14  ;;  %v865_v12 = vrot.slane %v6557_v8, 2  ;;  %v5153_v60 = vld [vmem:[%s5594_s25 + $0x120] sm:$0xf]  ;;  %v860_v59 = vrot.slane %v760_v44, 2 }
 0x105   : > { %v6639_v44 = vunpack.c.l.bf16 %v5155_v43 }
 0x106   : > { %v6537_v26 = vpop.permute.xlu1 %2250 }
 0x107   : > { %2502 = vrot.lane.b32.xlu0 %v6517_v35, %s5543_s4  ;;  %v830_v24 = vrot.slane %v6639_v44, 1 }
 0x109   : > { %v6550_v38 = vpop.permute.xlu0 %2248  ;;  %2515 = vrot.lane.b32.xlu2 %v6310_v53, %s5544_s5  ;;  %v5143_v53 = vld [vmem:[%s5594_s25 + $0xf8] sm:$0xf] }
 0x10a   : > { %v6587_v27 = vunpack.c.l.bf16 %v5143_v53 }
 0x10b   : > { %v6566_v36 = vpop.permute.xlu2 %2294 }
 0x10c   : > { %2513 = vrot.lane.b32.xlu1 %v9392_v32, %s5544_s5  ;;  %v812_v17 = vrot.slane %v6587_v27, 1  ;;  %v2523_v32 = vpack.c.b16 %v2522_v51, %v6445_v54  ;;  %v6621_v54 = vunpack.c.l.b16 %v854_v34  ;;  %v866_v51 = vrot.slane %v764_v19, 2 }
 0x10d   : > { %v849_v34 = vpack.c.bf16 %v811_v21, %v811_v21  ;;  %v863_v19 = vrot.slane %v762_v63, 2 }
 0x10e   : > { %v6590_v20 = vpop.permute.xlu1 %2262  ;;  %v814_v50 = vsel %vm294_vm0, %v812_v17, %v813_v33  ;;  %v6636_v17 = vunpack.c.l.bf16 %v5153_v60  ;;  %v867_v21 = vsel %vm345_vm1, %v865_v12, %v866_v51 }
 0x10f   : > { %2508 = vrot.lane.b32.xlu0 %v2501_v3, %s5543_s4  ;;  %v2512_v3 = vpack.c.b16 %v2511_v29, %v6432_v48  ;;  %v6611_v48 = vunpack.c.l.b16 %v853_v13  ;;  %v820_v29 = vsel %vm294_vm0, %v818_v47, %v819_v16  ;;  %v5156_v13 = vld [vmem:[%s5594_s25 + $0x12c] sm:$0x1]  ;;  %v869_v47 = vrot.slane %v766_v25, 2 }
 0x110   : > { %5337 = vmatmul.msk.bf16.gmra.mxu1 %vm3940_vm11, %v2161_v55  ;;  %v851_v55 = vpack.c.bf16 %v817_v31, %v817_v31  ;;  %v859_v16 = vrot.slane %v6578_v42, 2  ;;  %v862_v31 = vrot.slane %v6587_v27, 2  ;;  %v772_v25 = vunpack.c.l.bf16 %v6618_v49 }
 0x111   : > { %v6596_v53 = vpop.permute.xlu0 %2260  ;;  %2524 = vrot.lane.b32.xlu2 %v6360_v7, %s5545_s6  ;;  %v5417_v7 = vld [vmem:[%s9294_s1 + $0x1c] sm:$0xff]  ;;  %v774_v33 = vunpack.c.l.bf16 %v5156_v13  ;;  %v6646_v63 = vpack.c.b16 %v6621_v54, %v6611_v48  ;;  %v870_v60 = vsel %vm345_vm1, %v868_v57, %v869_v47  ;;  %v2628_v13 = vunpack.c.l.b16 %v849_v34 }
 0x112   : > { %4015 = vmatpush.bf16.msra.mxu0 %v5417_v7  ;;  %5421 = vmatpush.bf16.msra.mxu3 %v5417_v7  ;;  %v861_v42 = vsel %vm345_vm1, %v859_v16, %v860_v59  ;;  %v6653_v43 = vunpack.c.l.b16 %v851_v55  ;;  %v828_v45 = vrot.slane %v772_v25, 1  ;;  %v901_v55 = vpack.c.bf16 %v867_v21, %v867_v21  ;;  %v9395_v16 = vld [vmem:[#allocation15_spill] sm:$0xff]  ;;  %v9396_v34 = vld [vmem:[#allocation5_spill] sm:$0xff] }
 0x113   : > { %v6605_v1 = vpop.permute.xlu2 %2300  ;;  %9394 = vst [vmem:[#allocation20_spill] sm:$0xff] %v6646_v63  ;;  %v831_v12 = vrot.slane %v774_v33, 1  ;;  %v902_v57 = vpack.c.bf16 %v870_v60, %v870_v60  ;;  %v899_v47 = vpack.c.bf16 %v861_v42, %v861_v42 }
 0x114   : > { %9393 = vst [vmem:[#allocation18_spill] sm:$0xff] %v6605_v1  ;;  %2519 = vrot.lane.b32.xlu1 %v2512_v3, %s5544_s5  ;;  %v852_v3 = vpack.c.bf16 %v820_v29, %v820_v29  ;;  %v850_v29 = vpack.c.bf16 %v814_v50, %v814_v50  ;;  %v827_v50 = vrot.slane %v6636_v17, 1 }
 0x115   : > { %v6684_v21 = vunpack.c.l.b16 %v902_v57  ;;  %v2656_v60 = vunpack.c.l.b16 %v899_v47  ;;  %v871_v57 = vrot.slane %v6519_v37, 2  ;;  %v9400_v47 = vunpack.c.l.bf16 %v6505_v0 }
 0x116   : > { %v6630_v14 = vpop.permute.xlu1 %2274  ;;  %v6655_v7 = vunpack.c.l.b16 %v852_v3  ;;  %4016 = vmatpush.bf16.msra.mxu0 %v5416_v56  ;;  %5422 = vmatpush.bf16.msra.mxu3 %v5416_v56  ;;  %v6662_v51 = vunpack.c.l.b16 %v850_v29  ;;  %v6682_v29 = vunpack.c.l.b16 %v901_v55  ;;  %v780_v55 = vpack.c.bf16 %v6587_v27, %v6587_v27 }
 0x117   : > { %2517 = vrot.lane.b32.xlu0 %v6295_v10, %s5544_s5  ;;  %v781_v27 = vpack.c.bf16 %v6557_v8, %v6557_v8 }
 0x118   : > { %v6673_v56 = vpack.c.b16 %v6655_v7, %v6653_v43 }
 0x119   : > { %v6641_v10 = vpop.permute.xlu0 %2272  ;;  %2530 = vrot.lane.b32.xlu2 %v2523_v32, %s5545_s6  ;;  %v864_v32 = vsel %vm345_vm1, %v862_v31, %v863_v19  ;;  %v437_v31 = vpack.c.bf16 %v9396_v34, %v9396_v34  ;;  %v832_v19 = vsel %vm294_vm0, %v830_v24, %v831_v12  ;;  %v878_v34 = vrot.slane %v772_v25, 2 }
 0x11a   : > { %5423 = vmatpush.bf16.msrb.mxu3 %v9395_v16  ;;  %v900_v3 = vpack.c.bf16 %v864_v32, %v864_v32  ;;  %9397 = vst [vmem:[#allocation13_spill] sm:$0xff] %v6673_v56  ;;  %v9398_v32 = vld [vmem:[#allocation16_spill] sm:$0xff]  ;;  %v877_v16 = vrot.slane %v6636_v17, 2  ;;  %v881_v24 = vrot.slane %v774_v33, 2  ;;  %v874_v25 = vrot.slane %v6522_v52, 2 }
 0x11b   : > { %v6651_v49 = vpop.permute.xlu2 %2309  ;;  %v875_v33 = vrot.slane %v9401_v39, 2 }
 0x11c   : > { %2528 = vrot.lane.b32.xlu1 %v6322_v23, %s5545_s6  ;;  %v829_v23 = vsel %vm294_vm0, %v827_v50, %v828_v45  ;;  %v880_v45 = vrot.slane %v6639_v44, 2  ;;  %v6691_v12 = vunpack.c.l.b16 %v900_v3  ;;  %v6705_v3 = vpack.c.b16 %v6684_v21, %v6682_v29 }
 0x11d   : > { %v855_v35 = vpack.c.bf16 %v829_v23, %v829_v23  ;;  %v9402_v23 = vld [vmem:[#allocation17_spill] sm:$0xff]  ;;  %v879_v0 = vsel %vm345_vm1, %v877_v16, %v878_v34 }
 0x11e   : > { %v6667_v59 = vpop.permute.xlu1 %2283  ;;  %5424 = vmatpush.bf16.msrb.mxu3 %v9398_v32  ;;  %v872_v32 = vrot.slane %v9400_v47, 2  ;;  %v882_v47 = vsel %vm345_vm1, %v880_v45, %v881_v24  ;;  %v2664_v1 = vpack.c.b16 %v6691_v12, %v2656_v60  ;;  %v905_v34 = vpack.c.bf16 %v879_v0, %v879_v0  ;;  %v9403_v24 = vld [vmem:[#allocation7_spill] sm:$0xff] }
 0x11f   : > { %2526 = vrot.lane.b32.xlu0 %v6340_v28, %s5545_s6  ;;  %v2636_v28 = vpack.c.b16 %v6662_v51, %v2628_v13  ;;  %v856_v13 = vpack.c.bf16 %v832_v19, %v832_v19  ;;  %v2170_v19 = vunpack.c.l.b16 %v437_v31  ;;  %v6716_v6 = vunpack.c.l.b16 %v855_v35 }
 0x120   : > { %v873_v8 = vsel %vm345_vm1, %v871_v57, %v872_v32  ;;  %v876_v31 = vsel %vm345_vm1, %v874_v25, %v875_v33  ;;  %v906_v35 = vpack.c.bf16 %v882_v47, %v882_v47  ;;  %v786_v25 = vpack.c.bf16 %v6639_v44, %v6639_v44 }
 0x121   : > { %v6677_v42 = vpop.permute.xlu0 %2278  ;;  %2644 = vrot.lane.b32.xlu2 %v6646_v63, %s5539_s27  ;;  %v6721_v63 = vunpack.c.l.b16 %v780_v55  ;;  %v903_v57 = vpack.c.bf16 %v873_v8, %v873_v8  ;;  %v904_v32 = vpack.c.bf16 %v876_v31, %v876_v31 }
 0x122   : > { %5425 = vmatpush.bf16.msrb.mxu3 %v9402_v23  ;;  %v6765_v31 = vunpack.c.l.b16 %v786_v25 }
 0x123   : > { %v6689_v50 = vpop.permute.xlu2 %2423  ;;  %v6759_v44 = vunpack.c.l.b16 %v903_v57  ;;  %v6761_v47 = vunpack.c.l.b16 %v904_v32  ;;  %v782_v57 = vpack.c.bf16 %v6569_v11, %v6569_v11  ;;  %v783_v32 = vpack.c.bf16 %v6519_v37, %v6519_v37  ;;  %v5158_v11 = vld [vmem:[%s5594_s25 + $0x134] sm:$0x1] }
 0x124   : > { %9399 = vst [vmem:[#allocation19_spill] sm:$0xff] %v6689_v50  ;;  %2642 = vrot.lane.b32.xlu1 %v6673_v56, %s5539_s27  ;;  %v5157_v50 = vld [vmem:[%s5594_s25 + $0x130] sm:$0xf]  ;;  %v6718_v56 = vunpack.c.l.b16 %v856_v13  ;;  %v2178_v13 = vpack.c.b16 %v9403_v24, %v2170_v19  ;;  %v785_v24 = vpack.c.bf16 %v6636_v17, %v6636_v17 }
 0x125   : > { %v6731_v45 = vunpack.c.l.bf16 %v5157_v50  ;;  %v6745_v50 = vunpack.c.l.b16 %v905_v34 }
 0x126   : > { %v6714_v39 = vpop.permute.xlu1 %2289  ;;  %v6738_v55 = vpack.c.b16 %v6718_v56, %v6716_v6  ;;  %v2315_v19 = vsel %vm2086_vm3, %v2178_v13, %v6266_v2 }
 0x127   : > { %2640 = vrot.lane.b32.xlu0 %v2636_v28, %s5539_s27  ;;  %v6729_v28 = vunpack.c.l.b16 %v781_v27  ;;  %v6747_v27 = vunpack.c.l.b16 %v906_v35  ;;  %v787_v23 = vpack.c.bf16 %v6731_v45, %v6731_v45  ;;  %v2326_v0 = vsel %vm2099_vm4, %v2315_v19, %v6464_v18 }
 0x128   : > { %v2334_v8 = vsel %vm2108_vm5, %v2326_v0, %v6486_v5  ;;  %v784_v35 = vpack.c.bf16 %v6522_v52, %v6522_v52  ;;  %v6782_v5 = vpack.c.b16 %v6761_v47, %v6759_v44  ;;  %v2611_v19 = vunpack.c.l.b16 %v782_v57 }
 0x129   : > { %v6725_v16 = vpop.permute.xlu0 %2287  ;;  %2670 = vrot.lane.b32.xlu2 %v6705_v3, %s5540_s28  ;;  %v2678_v33 = vpack.c.b16 %v6729_v28, %v6721_v63  ;;  %v6770_v2 = vpack.c.b16 %v6747_v27, %v6745_v50  ;;  %v6772_v18 = vunpack.c.l.b16 %v787_v23  ;;  %v2342_v25 = vsel %vm2117_vm6, %v2334_v8, %v6422_v15 }
 0x12a   : > { %v2350_v52 = vsel %vm2126_vm7, %v2342_v25, %v6641_v10  ;;  %v6798_v23 = vunpack.c.l.b16 %v785_v24  ;;  %v6805_v10 = vunpack.c.l.b16 %v783_v32  ;;  %v776_v0 = vunpack.c.l.bf16 %v5158_v11 }
 0x12b   : > { %v6734_v60 = vpop.permute.xlu2 %2449  ;;  %v2681_v17 = vpack.c.b16 %v6772_v18, %v6765_v31  ;;  %v2358_v37 = vsel %vm2135_vm8, %v2350_v52, %v6667_v59  ;;  %v833_v32 = vrot.slane %v6731_v45, 1 }
 0x12c   : > { %2668 = vrot.lane.b32.xlu1 %v2664_v1, %s5540_s28  ;;  %v2366_v25 = vsel %vm2144_vm9, %v2358_v37, %v6566_v36  ;;  %v2679_v57 = vpack.c.b16 %v6805_v10, %v2611_v19  ;;  %v834_v52 = vrot.slane %v776_v0, 1  ;;  %v2694_v36 = vpack.c.b16 %v6716_v6, %v6621_v54 }
 0x12d   : > { %v2693_v54 = vpack.c.b16 %v6611_v48, %v6655_v7  ;;  %v883_v6 = vrot.slane %v6731_v45, 2  ;;  %v2707_v48 = vpack.c.b16 %v6759_v44, %v6684_v21  ;;  %v2706_v21 = vpack.c.b16 %v6682_v29, %v6691_v12 }
 0x12e   : > { %v6757_v1 = vpop.permute.xlu1 %2298  ;;  %v6879_v12 = vpack.c.b16 %v2611_v19, %v6729_v28 }
 0x12f   : > { %2646 = vrot.lane.b32.xlu0 %v6738_v55, %s5539_s27 }
 0x131   : > { %v2297_v34 = vpop.permute.xlu0 %2296  ;;  %2682 = vrot.lane.b32.xlu2 %v2678_v33, %s5538_s26  ;;  %v6796_v33 = vunpack.c.l.b16 %v784_v35 }
 0x133   : > { %v6778_v13 = vpop.permute.xlu2 %2455  ;;  %v2680_v35 = vpack.c.b16 %v6798_v23, %v6796_v33 }
 0x134   : > { %2674 = vrot.lane.b32.xlu1 %v6770_v2, %s5540_s28 }
 0x136   : > { %v2308_v15 = vpop.permute.xlu1 %2307 }
 0x137   : > { %2672 = vrot.lane.b32.xlu0 %v6782_v5, %s5540_s28 }
 0x139   : > { %v2306_v8 = vpop.permute.xlu0 %2305  ;;  %2688 = vrot.lane.b32.xlu2 %v2681_v17, %s5538_s26  ;;  %v9404_v17 = vld [vmem:[#allocation11_spill] sm:$0xff] }
 0x13a   : > { %v2374_v24 = vsel %vm2153_vm10, %v2366_v25, %v2306_v8  ;;  %v2318_v11 = vsel %vm2086_vm3, %v9404_v17, %v6439_v30  ;;  %v835_v25 = vsel %vm294_vm0, %v833_v32, %v834_v52  ;;  %v884_v30 = vrot.slane %v776_v0, 2 }
 0x13b   : > { %5294 = vmatmul.msk.bf16.vlgmr.msra.gmra.mxu0 %vm3940_vm11, %v2374_v24  ;;  %5338 = vmatmul.msk.bf16.gmra.mxu1 %vm3940_vm11, %v2374_v24  ;;  %v6815_v59 = vpop.permute.xlu2 %2467  ;;  %v2328_v8 = vsel %vm2099_vm4, %v2318_v11, %v6462_v9  ;;  %v2692_v9 = vpack.c.b16 %v6653_v43, %v6662_v51  ;;  %v857_v17 = vpack.c.bf16 %v835_v25, %v835_v25  ;;  %v9405_v11 = vld [vmem:[#allocation9_spill] sm:$0xff] }
 0x13c   : > { %2686 = vrot.lane.b32.xlu1 %v2680_v35, %s5538_s26  ;;  %v2336_v35 = vsel %vm2108_vm5, %v2328_v8, %v6395_v61  ;;  %v885_v7 = vsel %vm345_vm1, %v883_v6, %v884_v30  ;;  %v5159_v61 = vld [vmem:[%s5594_s25 + $0x138] sm:$0xf]  ;;  %v2321_v8 = vsel %vm2086_vm3, %v9405_v11, %v6435_v41  ;;  %v5160_v6 = vld [vmem:[%s5594_s25 + $0x13c] sm:$0x1]  ;;  %v5161_v30 = vld [vmem:[%s5594_s25 + $0x140] sm:$0xf] }
 0x13d   : > { %v2344_v32 = vsel %vm2117_vm6, %v2336_v35, %v6596_v53  ;;  %v6855_v43 = vunpack.c.l.b16 %v857_v17  ;;  %v907_v44 = vpack.c.bf16 %v885_v7, %v885_v7  ;;  %v6865_v0 = vunpack.c.l.bf16 %v5159_v61  ;;  %v6903_v35 = vld [vmem:[%s5594_s25 + $0x144] sm:$0x1]  ;;  %v5163_v17 = vld [vmem:[%s5594_s25 + $0x148] sm:$0xf] }
 0x13e   : > { %v6826_v37 = vpop.permute.xlu1 %2421  ;;  %v2352_v52 = vsel %vm2126_vm7, %v2344_v32, %v6630_v14  ;;  %v6913_v32 = vld [vmem:[%s5594_s25 + $0x14c] sm:$0x1] }
 0x13f   : > { %2684 = vrot.lane.b32.xlu0 %v2679_v57, %s5538_s26  ;;  %v2360_v53 = vsel %vm2135_vm8, %v2352_v52, %v6513_v62  ;;  %v2695_v29 = vpack.c.b16 %v6855_v43, %v6718_v56  ;;  %v788_v41 = vpack.c.bf16 %v6865_v0, %v6865_v0  ;;  %v9406_v52 = vld [vmem:[#allocation14_spill] sm:$0xff] }
 0x140   : > { %v2368_v51 = vsel %vm2144_vm9, %v2360_v53, %v2297_v34  ;;  %v6881_v34 = vunpack.c.l.b16 %v907_v44  ;;  %v6927_v53 = vunpack.c.l.bf16 %v5161_v30  ;;  %v6977_v30 = vld [vmem:[%s5594_s25 + $0x17c] sm:$0x1] }
 0x141   : > { %v6831_v24 = vpop.permute.xlu0 %2311  ;;  %2700 = vrot.lane.b32.xlu2 %v2694_v36, %s5541_s29  ;;  %v2376_v36 = vsel %vm2153_vm10, %v2368_v51, %v2308_v15  ;;  %v2330_v15 = vsel %vm2099_vm4, %v2321_v8, %v6356_v40  ;;  %v2719_v40 = vunpack.c.l.b16 %v788_v41  ;;  %v9322_v51 = vunpack.c.l.bf16 %v6903_v35  ;;  %9412 = vst [vmem:[#allocation11_spill] sm:$0xff] %v6977_v30 }
 0x142   : > { %v2338_v25 = vsel %vm2108_vm5, %v2330_v15, %v6550_v38  ;;  %9407 = vst [vmem:[#allocation15_spill] sm:$0xff] %v6927_v53  ;;  %v980_v41 = vrot.slane %v6927_v53, 1 }
 0x143   : > { %v6839_v57 = vpop.permute.xlu2 %2479  ;;  %v2346_v28 = vsel %vm2117_vm6, %v2338_v25, %v6590_v20  ;;  %v2708_v20 = vpack.c.b16 %v6745_v50, %v6761_v47  ;;  %v2720_v50 = vpack.c.b16 %v2719_v40, %v6772_v18  ;;  %v778_v47 = vunpack.c.l.bf16 %v5160_v6  ;;  %v6973_v40 = vld [vmem:[%s5594_s25 + $0x174] sm:$0x1]  ;;  %v5175_v6 = vld [vmem:[%s5594_s25 + $0x178] sm:$0xf] }
 0x144   : > { %2698 = vrot.lane.b32.xlu1 %v2693_v54, %s5541_s29  ;;  %v2709_v54 = vpack.c.b16 %v6881_v34, %v6747_v27  ;;  %v2354_v38 = vsel %vm2126_vm7, %v2346_v28, %v6473_v46  ;;  %v5370_v27 = vld [vmem:[%s9294_s1 + $0x38] sm:$0x3]  ;;  %v981_v15 = vrot.slane %v9322_v51, 1  ;;  %v6969_v28 = vpack.c.b16 %v6796_v33, %v6805_v10  ;;  %9411 = vst [vmem:[#allocation7_spill] sm:$0xff] %v6973_v40 }
 0x145   : > { %v2362_v7 = vsel %vm2135_vm8, %v2354_v38, %v6725_v16  ;;  %v4607_v46 = vunpack.c.l.b16 %v5370_v27 }
 0x146   : > { %v6853_v45 = vpop.permute.xlu1 %2427  ;;  %v2370_v61 = vsel %vm2144_vm9, %v2362_v7, %v6757_v1  ;;  %v982_v33 = vsel %vm294_vm0, %v980_v41, %v981_v15  ;;  %v7018_v41 = vld [vmem:[%s5594_s25 + $0x16c] sm:$0x1] }
 0x147   : > { %2696 = vrot.lane.b32.xlu0 %v2692_v9, %s5541_s29  ;;  %v4610_v44 = vpack.c.b16 %v4607_v46, %v4607_v46  ;;  %v2378_v8 = vsel %vm2153_vm10, %v2370_v61, %v6651_v49  ;;  %v9319_v46 = vunpack.c.l.bf16 %v6973_v40  ;;  %v6996_v61 = vunpack.c.l.bf16 %v5175_v6  ;;  %9417 = vst [vmem:[#allocation23_spill] sm:$0xff] %v7018_v41 }
 0x148   : > { %v1020_v15 = vpack.c.bf16 %v982_v33, %v982_v33 }
 0x149   : > { %v6860_v14 = vpop.permute.xlu0 %2425  ;;  %2712 = vrot.lane.b32.xlu2 %v2707_v48, %s5542_s30  ;;  %v2324_v48 = vsel %vm2086_vm3, %v9406_v52, %v6306_v22  ;;  %v9320_v22 = vunpack.c.l.bf16 %v6913_v32  ;;  %v886_v52 = vrot.slane %v6865_v0, 2  ;;  %9415 = vst [vmem:[#allocation14_spill] sm:$0xff] %v6996_v61 }
 0x14a   : > { %v2332_v16 = vsel %vm2099_vm4, %v2324_v48, %v6495_v58  ;;  %v6950_v58 = vpack.c.b16 %v6765_v31, %v6798_v23  ;;  %v5419_v31 = vld [vmem:[%s9294_s1 + $0x30] sm:$0xff]  ;;  %v887_v48 = vrot.slane %v778_v47, 2 }
 0x14b   : > { %5295 = vmatmul.msk.bf16.gmra.mxu0 %vm3940_vm11, %v2376_v36  ;;  %5339 = vmatmul.msk.bf16.gmra.mxu1 %vm3940_vm11, %v2376_v36  ;;  %v6873_v62 = vpop.permute.xlu2 %2491  ;;  %v2340_v18 = vsel %vm2108_vm5, %v2332_v16, %v6537_v26  ;;  %v6941_v36 = vsel %vm4005_vm2, %v4610_v44, 0  ;;  %v836_v26 = vrot.slane %v6865_v0, 1  ;;  %v984_v25 = vrot.slane %v9320_v22, 1  ;;  %v5418_v0 = vld [vmem:[%s9294_s1 + $0x28] sm:$0xff]  ;;  %v5169_v44 = vld [vmem:[%s5594_s25 + $0x160] sm:$0xf] }
 0x14c   : > { %2710 = vrot.lane.b32.xlu1 %v2706_v21, %s5542_s30  ;;  %v6930_v21 = vunpack.c.l.bf16 %v5163_v17  ;;  %9409 = vst [vmem:[#allocation16_spill] sm:$0xff] %v6941_v36  ;;  %4629 = vmatpush.bf16.msra.mxu2 %v6941_v36  ;;  %v2348_v38 = vsel %vm2117_vm6, %v2340_v18, %v6447_v4  ;;  %v7037_v33 = vunpack.c.l.bf16 %v5169_v44 }
 0x14d   : > { %9410 = vst [vmem:[#allocation17_spill] sm:$0xff] %v6950_v58 }
 0x14e   : > { %v6890_v56 = vpop.permute.xlu1 %2453  ;;  %9408 = vst [vmem:[#allocation5_spill] sm:$0xff] %v6930_v21  ;;  %v983_v49 = vrot.slane %v6930_v21, 1 }
 0x14f   : > { %2702 = vrot.lane.b32.xlu0 %v2695_v29, %s5541_s29  ;;  %v837_v29 = vrot.slane %v778_v47, 1  ;;  %v2356_v47 = vsel %vm2126_vm7, %v2348_v38, %v6677_v42  ;;  %v999_v38 = vrot.slane %v9319_v46, 1  ;;  %9418 = vst [vmem:[#allocation24_spill] sm:$0xff] %v7037_v33 }
 0x150   : > { %4630 = vmatpush.bf16.msra.mxu2 %v5419_v31  ;;  %v985_v10 = vsel %vm294_vm0, %v983_v49, %v984_v25  ;;  %v2364_v16 = vsel %vm2135_vm8, %v2356_v47, %v6714_v39  ;;  %v888_v25 = vsel %vm345_vm1, %v886_v52, %v887_v48  ;;  %v5165_v39 = vld [vmem:[%s5594_s25 + $0x150] sm:$0xf]  ;;  %v7023_v31 = vld [vmem:[%s5594_s25 + $0x154] sm:$0x1]  ;;  %v2847_v48 = vunpack.c.l.b16 %v1020_v15 }
 0x151   : > { %v6894_v19 = vpop.permute.xlu0 %2451  ;;  %2721 = vrot.lane.b32.xlu2 %v6879_v12, %s5543_s4  ;;  %v838_v27 = vsel %vm294_vm0, %v836_v26, %v837_v29  ;;  %v7014_v26 = vld [vmem:[%s5594_s25 + $0x164] sm:$0x1]  ;;  %v5171_v29 = vld [vmem:[%s5594_s25 + $0x168] sm:$0xf]  ;;  %v1021_v49 = vpack.c.bf16 %v985_v10, %v985_v10  ;;  %v7047_v22 = vunpack.c.l.bf16 %v5165_v39  ;;  %v935_v44 = vunpack.c.l.bf16 %v7023_v31 }
 0x152   : > { %v858_v42 = vpack.c.bf16 %v838_v27, %v838_v27  ;;  %v7035_v27 = vld [vmem:[%s5594_s25 + $0x15c] sm:$0x1]  ;;  %v7040_v52 = vunpack.c.l.bf16 %v5171_v29  ;;  %v9421_v47 = vld [vmem:[#allocation18_spill] sm:$0xff]  ;;  %v9426_v15 = vunpack.c.l.bf16 %v7014_v26 }
 0x153   : > { %v6907_v9 = vpop.permute.xlu2 %2497  ;;  %v2372_v46 = vsel %vm2144_vm9, %v2364_v16, %v9421_v47  ;;  %v937_v10 = vunpack.c.l.bf16 %v7035_v27  ;;  %v7060_v39 = vunpack.c.l.b16 %v1021_v49  ;;  %v908_v47 = vpack.c.bf16 %v888_v25, %v888_v25 }
 0x154   : > { %2716 = vrot.lane.b32.xlu1 %v2709_v54, %s5542_s30  ;;  %v5173_v54 = vld [vmem:[%s5594_s25 + $0x170] sm:$0xf]  ;;  %4631 = vmatpush.bf16.msra.mxu2 %v5418_v0  ;;  %9419 = vst [vmem:[#allocation25_spill] sm:$0xff] %v7040_v52  ;;  %v9420_v0 = vld [vmem:[#allocation20_spill] sm:$0xff]  ;;  %v2380_v29 = vsel %vm2153_vm10, %v2372_v46, %v6831_v24  ;;  %v2730_v51 = vunpack.c.l.b16 %v858_v42  ;;  %v992_v42 = vrot.slane %v7037_v33, 1  ;;  %v993_v27 = vrot.slane %v9426_v15, 1 }
 0x155   : > { %v6993_v7 = vunpack.c.l.bf16 %v5173_v54  ;;  %v5167_v54 = vld [vmem:[%s5594_s25 + $0x158] sm:$0xf]  ;;  %9422 = vst [vmem:[#allocation20_spill] sm:$0xff] %v7047_v22  ;;  %v7069_v46 = vld [vmem:[%s5594_s25 + $0x23c] sm:$0x1]  ;;  %v9427_v49 = vunpack.c.l.bf16 %v7018_v41 }
 0x156   : > { %v6936_v1 = vpop.permute.xlu1 %2465  ;;  %v5223_v24 = vld [vmem:[%s5594_s25 + $0x238] sm:$0xf] }
 0x157   : > { %2714 = vrot.lane.b32.xlu0 %v2708_v20, %s5542_s30  ;;  %v9413_v20 = vld [vmem:[#allocation12_spill] sm:$0xff]  ;;  %9414 = vst [vmem:[#allocation9_spill] sm:$0xff] %v6993_v7  ;;  %v996_v40 = vrot.slane %v9427_v49, 1 }
 0x158   : > { %v608_v17 = vpack.c.bf16 %v9413_v20, %v9413_v20  ;;  %9416 = vst [vmem:[#allocation12_spill] sm:$0xff] %v7014_v26  ;;  %v1001_v20 = vrot.slane %v6996_v61, 1  ;;  %v7065_v61 = vld [vmem:[%s5594_s25 + $0x234] sm:$0x1]  ;;  %v7086_v26 = vunpack.c.l.bf16 %v5223_v24  ;;  %v994_v24 = vsel %vm294_vm0, %v992_v42, %v993_v27 }
 0x159   : > { %v6943_v11 = vpop.permute.xlu0 %2463  ;;  %2727 = vrot.lane.b32.xlu2 %v2720_v50, %s5543_s4  ;;  %v9321_v50 = vunpack.c.l.bf16 %v6977_v30  ;;  %v9424_v30 = vld [vmem:[#allocation13_spill] sm:$0xff] }
 0x15a   : > { %v7007_v18 = vunpack.c.l.b16 %v608_v17  ;;  %9425 = vst [vmem:[#allocation13_spill] sm:$0xff] %v7060_v39 }
 0x15b   : > { %5296 = vmatmul.msk.bf16.gmra.mxu0 %vm3940_vm11, %v2378_v8  ;;  %5340 = vmatmul.msk.bf16.gmra.mxu1 %vm3940_vm11, %v2378_v8  ;;  %v6965_v23 = vpop.permute.xlu2 %2506  ;;  %v1002_v17 = vrot.slane %v9321_v50, 1  ;;  %v7050_v50 = vunpack.c.l.bf16 %v5167_v54 }
 0x15c   : > { %2725 = vrot.lane.b32.xlu1 %v6950_v58, %s5543_s4 }
 0x15d   : > { %9423 = vst [vmem:[#allocation18_spill] sm:$0xff] %v7050_v50  ;;  %v1003_v54 = vsel %vm294_vm0, %v1001_v20, %v1002_v17  ;;  %v989_v20 = vrot.slane %v7050_v50, 1 }
 0x15e   : > { %v6991_v4 = vpop.permute.xlu1 %2477  ;;  %v1027_v36 = vpack.c.bf16 %v1003_v54, %v1003_v54 }
 0x15f   : > { %2723 = vrot.lane.b32.xlu0 %v6969_v28, %s5543_s4 }
 0x161   : > { %v7009_v8 = vpop.permute.xlu0 %2469  ;;  %2736 = vrot.lane.b32.xlu2 %v6738_v55, %s5544_s5  ;;  %v998_v55 = vrot.slane %v6993_v7, 1  ;;  %v990_v7 = vrot.slane %v937_v10, 1 }
 0x163   : > { %v7026_v6 = vpop.permute.xlu2 %2515  ;;  %v1000_v31 = vsel %vm294_vm0, %v998_v55, %v999_v38  ;;  %v986_v55 = vrot.slane %v7047_v22, 1  ;;  %v987_v38 = vrot.slane %v935_v44, 1 }
 0x164   : > { %2734 = vrot.lane.b32.xlu1 %v9420_v0, %s5544_s5  ;;  %v5221_v0 = vld [vmem:[%s5594_s25 + $0x230] sm:$0xf]  ;;  %v1026_v33 = vpack.c.bf16 %v1000_v31, %v1000_v31  ;;  %v9429_v31 = vunpack.c.l.bf16 %v7069_v46 }
 0x165   : > { %v7083_v17 = vunpack.c.l.bf16 %v5221_v0  ;;  %v2855_v0 = vpack.c.b16 %v7060_v39, %v2847_v48  ;;  %v1496_v48 = vrot.slane %v7086_v26, 1 }
 0x166   : > { %v7058_v16 = vpop.permute.xlu1 %2483  ;;  %v1497_v54 = vrot.slane %v9429_v31, 1  ;;  %v7113_v27 = vunpack.c.l.b16 %v1026_v33  ;;  %v1040_v31 = vrot.slane %v937_v10, 2 }
 0x167   : > { %2732 = vrot.lane.b32.xlu0 %v9424_v30, %s5544_s5  ;;  %v995_v30 = vrot.slane %v7040_v52, 1  ;;  %v2741_v52 = vunpack.c.l.b16 %v908_v47  ;;  %v1493_v15 = vrot.slane %v7083_v17, 1 }
 0x169   : > { %v7077_v25 = vpop.permute.xlu0 %2481  ;;  %2745 = vrot.lane.b32.xlu2 %v6782_v5, %s5545_s6  ;;  %v2731_v5 = vpack.c.b16 %v2730_v51, %v6855_v43  ;;  %v997_v41 = vsel %vm294_vm0, %v995_v30, %v996_v40  ;;  %v991_v43 = vsel %vm294_vm0, %v989_v20, %v990_v7  ;;  %v9428_v51 = vunpack.c.l.bf16 %v7065_v61  ;;  %v5225_v30 = vld [vmem:[%s5594_s25 + $0x240] sm:$0xf] }
 0x16a   : > { %v2742_v42 = vpack.c.b16 %v2741_v52, %v6881_v34  ;;  %v7115_v7 = vunpack.c.l.b16 %v1027_v36  ;;  %v1037_v20 = vrot.slane %v935_v44, 2  ;;  %v1023_v33 = vpack.c.bf16 %v991_v43, %v991_v43 }
 0x16b   : > { %5297 = vmatmul.msk.bf16.gmra.mxu0 %vm3940_vm11, %v2380_v29  ;;  %5341 = vmatmul.msk.bf16.gmra.mxu1 %vm3940_vm11, %v2380_v29  ;;  %v7091_v49 = vpop.permute.xlu2 %2524  ;;  %v988_v29 = vsel %vm294_vm0, %v986_v55, %v987_v38  ;;  %v1494_v47 = vrot.slane %v9428_v51, 1  ;;  %v7119_v55 = vld [vmem:[%s5594_s25 + $0x244] sm:$0x1]  ;;  %v1036_v38 = vrot.slane %v7047_v22, 2  ;;  %v1039_v51 = vrot.slane %v7050_v50, 2 }
 0x16c   : > { %2743 = vrot.lane.b32.xlu1 %v6705_v3, %s5545_s6  ;;  %v9430_v3 = vld [vmem:[#allocation21_spill] sm:$0xff]  ;;  %9432 = vst [vmem:[#allocation26_spill] sm:$0xff] %v7115_v7  ;;  %v1022_v34 = vpack.c.bf16 %v988_v29, %v988_v29  ;;  %v1498_v52 = vsel %vm294_vm0, %v1496_v48, %v1497_v54  ;;  %v7128_v58 = vunpack.c.l.bf16 %v5225_v30  ;;  %v9339_v22 = vunpack.c.l.bf16 %v7119_v55 }
 0x16d   : > { %v2397_v39 = vpack.c.b16 %v9430_v3, %v7007_v18  ;;  %9431 = vst [vmem:[#allocation21_spill] sm:$0xff] %v7113_v27  ;;  %v1025_v3 = vpack.c.bf16 %v997_v41, %v997_v41  ;;  %v1495_v36 = vsel %vm294_vm0, %v1493_v15, %v1494_v47  ;;  %v1030_v41 = vrot.slane %v6927_v53, 2  ;;  %v5229_v53 = vld [vmem:[%s5594_s25 + $0x250] sm:$0xf] }
 0x16e   : > { %v7110_v40 = vpop.permute.xlu1 %2495  ;;  %v1038_v29 = vsel %vm345_vm1, %v1036_v38, %v1037_v20  ;;  %v1041_v43 = vsel %vm345_vm1, %v1039_v51, %v1040_v31  ;;  %v1033_v47 = vrot.slane %v6930_v21, 2  ;;  %v9435_v48 = vunpack.c.l.bf16 %v6913_v32 }
 0x16f   : > { %2738 = vrot.lane.b32.xlu0 %v2731_v5, %s5544_s5  ;;  %v1024_v5 = vpack.c.bf16 %v994_v24, %v994_v24  ;;  %v2534_v44 = vsel %vm2086_vm3, %v2397_v39, %v6826_v37  ;;  %v9434_v24 = vunpack.c.l.bf16 %v6903_v35  ;;  %v7150_v54 = vunpack.c.l.b16 %v1025_v3  ;;  %v5227_v3 = vld [vmem:[%s5594_s25 + $0x248] sm:$0xf] }
 0x170   : > { %v1034_v37 = vrot.slane %v9435_v48, 2  ;;  %v1533_v30 = vpack.c.bf16 %v1495_v36, %v1495_v36  ;;  %v1534_v35 = vpack.c.bf16 %v1498_v52, %v1498_v52  ;;  %v7154_v38 = vunpack.c.l.b16 %v1023_v33 }
 0x171   : > { %v7123_v18 = vpop.permute.xlu0 %2493  ;;  %2859 = vrot.lane.b32.xlu2 %v2855_v0, %s5539_s27  ;;  %v7137_v0 = vpack.c.b16 %v7115_v7, %v7113_v27  ;;  %v1031_v15 = vrot.slane %v9434_v24, 2  ;;  %v7148_v39 = vunpack.c.l.b16 %v1024_v5  ;;  %9437 = vst [vmem:[#allocation29_spill] sm:$0xff] %v7150_v54  ;;  %v7152_v24 = vunpack.c.l.b16 %v1022_v34  ;;  %v5228_v34 = vld [vmem:[%s5594_s25 + $0x24c] sm:$0x1] }
 0x172   : > { %9439 = vst [vmem:[#allocation31_spill] sm:$0xff] %v7154_v38  ;;  %v1499_v20 = vrot.slane %v7128_v58, 1  ;;  %v1500_v32 = vrot.slane %v9339_v22, 1  ;;  %v2545_v51 = vsel %vm2099_vm4, %v2534_v44, %v6734_v60  ;;  %v1072_v31 = vpack.c.bf16 %v1038_v29, %v1038_v29 }
 0x173   : > { %v7133_v10 = vpop.permute.xlu2 %2530  ;;  %9433 = vst [vmem:[#allocation27_spill] sm:$0xff] %v7137_v0  ;;  %v1073_v5 = vpack.c.bf16 %v1041_v43, %v1041_v43  ;;  %v2553_v33 = vsel %vm2108_vm5, %v2545_v51, %v6943_v11  ;;  %v1032_v36 = vsel %vm345_vm1, %v1030_v41, %v1031_v15  ;;  %v1035_v52 = vsel %vm345_vm1, %v1033_v47, %v1034_v37 }
 0x174   : > { %2749 = vrot.lane.b32.xlu1 %v2742_v42, %s5545_s6  ;;  %9436 = vst [vmem:[#allocation28_spill] sm:$0xff] %v7148_v39  ;;  %v2561_v48 = vsel %vm2117_vm6, %v2553_v33, %v6991_v4  ;;  %v3504_v44 = vunpack.c.l.b16 %v1533_v30  ;;  %v7179_v29 = vunpack.c.l.b16 %v1534_v35  ;;  %v7183_v11 = vpack.c.b16 %v7154_v38, %v7152_v24 }
 0x175   : > { %9438 = vst [vmem:[#allocation30_spill] sm:$0xff] %v7152_v24  ;;  %v1501_v41 = vsel %vm294_vm0, %v1499_v20, %v1500_v32  ;;  %v7186_v15 = vunpack.c.l.bf16 %v5227_v3  ;;  %v1450_v4 = vunpack.c.l.bf16 %v5228_v34  ;;  %v7190_v47 = vunpack.c.l.b16 %v1072_v31  ;;  %v7476_v24 = vpop.f32.mrf.mxu1 }
 0x176   : > { %v7163_v42 = vpop.permute.xlu1 %2504  ;;  %9441 = vst [vmem:[#allocation33_spill] sm:$0xff] %v7183_v11  ;;  %v7192_v37 = vunpack.c.l.b16 %v1073_v5  ;;  %v1070_v51 = vpack.c.bf16 %v1032_v36, %v1032_v36  ;;  %v1071_v33 = vpack.c.bf16 %v1035_v52, %v1035_v52  ;;  %v1543_v30 = vrot.slane %v7083_v17, 2 }
 0x177   : > { %2747 = vrot.lane.b32.xlu0 %v6770_v2, %s5545_s6  ;;  %v7177_v2 = vpack.c.b16 %v7150_v54, %v7148_v39  ;;  %9442 = vst [vmem:[#allocation34_spill] sm:$0xff] %v7190_v47  ;;  %v9444_v35 = vunpack.c.l.bf16 %v7065_v61  ;;  %v1546_v7 = vrot.slane %v7086_v26, 2  ;;  %v9445_v20 = vunpack.c.l.bf16 %v7069_v46 }
 0x178   : > { %9443 = vst [vmem:[#allocation35_spill] sm:$0xff] %v7192_v37  ;;  %v3512_v31 = vpack.c.b16 %v7179_v29, %v3504_v44  ;;  %v1535_v3 = vpack.c.bf16 %v1501_v41, %v1501_v41  ;;  %v2569_v5 = vsel %vm2126_vm7, %v2561_v48, %v6873_v62  ;;  %v1502_v34 = vrot.slane %v7186_v15, 1 }
 0x179   : > { %v2503_v60 = vpop.permute.xlu0 %2502  ;;  %2865 = vrot.lane.b32.xlu2 %v7137_v0, %s5539_s27  ;;  %9440 = vst [vmem:[#allocation32_spill] sm:$0xff] %v7177_v2  ;;  %v1544_v22 = vrot.slane %v9444_v35, 2  ;;  %v1547_v32 = vrot.slane %v9445_v20, 2  ;;  %v1503_v36 = vrot.slane %v1450_v4, 1  ;;  %v2875_v46 = vunpack.c.l.b16 %v1070_v51  ;;  %v5230_v0 = vld [vmem:[%s5594_s25 + $0x254] sm:$0x1] }
 0x17a   : > { %v2577_v61 = vsel %vm2135_vm8, %v2569_v5, %v2503_v60  ;;  %v7209_v35 = vunpack.c.l.b16 %v1071_v33  ;;  %v7214_v44 = vpack.c.b16 %v7192_v37, %v7190_v47  ;;  %v3506_v51 = vunpack.c.l.b16 %v1535_v3 }
 0x17b   : > { %v7188_v43 = vpop.permute.xlu2 %2644  ;;  %v1545_v62 = vsel %vm345_vm1, %v1543_v30, %v1544_v22  ;;  %v1548_v48 = vsel %vm345_vm1, %v1546_v7, %v1547_v32  ;;  %v1464_v33 = vpack.c.bf16 %v7086_v26, %v7086_v26  ;;  %v1465_v5 = vpack.c.bf16 %v7128_v58, %v7128_v58 }
 0x17c   : > { %2863 = vrot.lane.b32.xlu1 %v7177_v2, %s5539_s27  ;;  %9446 = vst [vmem:[#allocation36_spill] sm:$0xff] %v7209_v35  ;;  %v1504_v22 = vsel %vm294_vm0, %v1502_v34, %v1503_v36  ;;  %v2883_v30 = vpack.c.b16 %v7209_v35, %v2875_v46  ;;  %v1584_v32 = vpack.c.bf16 %v1548_v48, %v1548_v48  ;;  %v1549_v26 = vrot.slane %v7128_v58, 2  ;;  %v9450_v48 = vld [vmem:[#allocation10_spill] sm:$0xff] }
 0x17d   : > { %9447 = vst [vmem:[#allocation37_spill] sm:$0xff] %v7214_v44  ;;  %v3568_v34 = vpack.c.b16 %v3506_v51, %v7179_v29  ;;  %v7240_v36 = vunpack.c.l.b16 %v1464_v33  ;;  %v1552_v46 = vrot.slane %v7186_v15, 2  ;;  %v1466_v33 = vpack.c.bf16 %v7186_v15, %v7186_v15 }
 0x17e   : > { %v2514_v52 = vpop.permute.xlu1 %2513 }
 0x17f   : > { %2861 = vrot.lane.b32.xlu0 %v7183_v11, %s5539_s27  ;;  %v2585_v20 = vsel %vm2144_vm9, %v2577_v61, %v2514_v52  ;;  %v3486_v61 = vunpack.c.l.b16 %v1465_v5  ;;  %v1536_v52 = vpack.c.bf16 %v1504_v22, %v1504_v22 }
 0x180   : > { %v2593_v60 = vsel %vm2153_vm10, %v2585_v20, %v7091_v49  ;;  %v1583_v49 = vpack.c.bf16 %v1545_v62, %v1545_v62  ;;  %v1553_v20 = vrot.slane %v1450_v4, 2  ;;  %v9449_v62 = vld [vmem:[#allocation19_spill] sm:$0xff] }
 0x181   : > { %v7218_v41 = vpop.permute.xlu0 %2508  ;;  %3516 = vrot.lane.b32.xlu2 %v3512_v31, %s5539_s27  ;;  %5298 = vmatmul.msk.bf16.gmra.mxu0 %vm3940_vm11, %v2593_v60  ;;  %v9448_v31 = vunpack.c.l.bf16 %v7119_v55 }
 0x182   : > { %5342 = vmatmul.msk.bf16.gmra.mxu1 %vm3940_vm11, %v2593_v60  ;;  %5379 = vmatmul.msk.bf16.vlgmr.msra.gmra.mxu2 %vm3940_vm11, %v2593_v60  ;;  %v2537_v60 = vsel %vm2086_vm3, %v9450_v48, %v9449_v62  ;;  %v3532_v55 = vunpack.c.l.b16 %v1583_v49  ;;  %v7262_v49 = vunpack.c.l.b16 %v1536_v52  ;;  %v7265_v62 = vunpack.c.l.bf16 %v5229_v53 }
 0x183   : > { %v7231_v7 = vpop.permute.xlu2 %2670  ;;  %v1550_v3 = vrot.slane %v9448_v31, 2  ;;  %v3533_v31 = vunpack.c.l.b16 %v1584_v32  ;;  %v2547_v29 = vsel %vm2099_vm4, %v2537_v60, %v6894_v19  ;;  %v1554_v32 = vsel %vm345_vm1, %v1552_v46, %v1553_v20 }
 0x184   : > { %2889 = vrot.lane.b32.xlu1 %v7214_v44, %s5540_s28  ;;  %v2555_v5 = vsel %vm2108_vm5, %v2547_v29, %v6936_v1  ;;  %v1452_v19 = vunpack.c.l.bf16 %v5230_v0  ;;  %v7271_v48 = vunpack.c.l.b16 %v1466_v33  ;;  %v3513_v53 = vpack.c.b16 %v7262_v49, %v3506_v51  ;;  %v5232_v29 = vld [vmem:[%s5594_s25 + $0x25c] sm:$0x1] }
 0x185   : > { %v1551_v4 = vsel %vm345_vm1, %v1549_v26, %v1550_v3  ;;  %v3540_v26 = vpack.c.b16 %v3533_v31, %v3532_v55  ;;  %v2563_v1 = vsel %vm2117_vm6, %v2555_v5, %v6839_v57  ;;  %v1586_v52 = vpack.c.bf16 %v1554_v32, %v1554_v32  ;;  %v5231_v55 = vld [vmem:[%s5594_s25 + $0x258] sm:$0xf] }
 0x186   : > { %v7247_v58 = vpop.permute.xlu1 %2519  ;;  %v1585_v3 = vpack.c.bf16 %v1551_v4, %v1551_v4  ;;  %v1555_v46 = vrot.slane %v7265_v62, 2  ;;  %v1556_v20 = vrot.slane %v1452_v19, 2  ;;  %v7284_v33 = vpack.c.b16 %v7271_v48, %v3486_v61 }
 0x187   : > { %2887 = vrot.lane.b32.xlu0 %v2883_v30, %s5540_s28  ;;  %v3554_v30 = vpack.c.b16 %v3486_v61, %v7240_v36  ;;  %v3535_v4 = vunpack.c.l.b16 %v1586_v52  ;;  %v1506_v5 = vrot.slane %v1452_v19, 1 }
 0x188   : > { %v3534_v57 = vunpack.c.l.b16 %v1585_v3  ;;  %v1557_v32 = vsel %vm345_vm1, %v1555_v46, %v1556_v20  ;;  %v1454_v3 = vunpack.c.l.bf16 %v5232_v29  ;;  %v9451_v46 = vld [vmem:[#allocation6_spill] sm:$0xff] }
 0x189   : > { %v7258_v22 = vpop.permute.xlu0 %2517  ;;  %3572 = vrot.lane.b32.xlu2 %v3568_v34, %s5541_s29  ;;  %v2571_v34 = vsel %vm2126_vm7, %v2563_v1, %v7123_v18  ;;  %v1587_v19 = vpack.c.bf16 %v1557_v32, %v1557_v32  ;;  %v2540_v20 = vsel %vm2086_vm3, %v9451_v46, %v6860_v14 }
 0x18a   : > { %v2579_v0 = vsel %vm2135_vm8, %v2571_v34, %v7163_v42  ;;  %v1505_v42 = vrot.slane %v7265_v62, 1  ;;  %v3582_v1 = vpack.c.b16 %v3534_v57, %v3533_v31  ;;  %v2549_v31 = vsel %vm2099_vm4, %v2540_v20, %v6890_v56 }
 0x18b   : > { %v7267_v15 = vpop.permute.xlu2 %2682  ;;  %v2587_v51 = vsel %vm2144_vm9, %v2579_v0, %v7026_v6  ;;  %v3541_v6 = vpack.c.b16 %v3535_v4, %v3534_v57  ;;  %v1559_v0 = vrot.slane %v1454_v3, 2  ;;  %v3536_v57 = vunpack.c.l.b16 %v1587_v19 }
 0x18c   : > { %3558 = vrot.lane.b32.xlu1 %v3554_v30, %s5538_s26  ;;  %v1507_v34 = vsel %vm294_vm0, %v1505_v42, %v1506_v5  ;;  %v1509_v5 = vrot.slane %v1454_v3, 1  ;;  %v2557_v14 = vsel %vm2108_vm5, %v2549_v31, %v6815_v59  ;;  %v1467_v56 = vpack.c.bf16 %v7265_v62, %v7265_v62 }
 0x18d   : > { %v1537_v29 = vpack.c.bf16 %v1507_v34, %v1507_v34  ;;  %v2565_v32 = vsel %vm2117_vm6, %v2557_v14, %v7077_v25  ;;  %v3583_v34 = vpack.c.b16 %v3536_v57, %v3535_v4 }
 0x18e   : > { %v2529_v60 = vpop.permute.xlu1 %2528  ;;  %v2573_v19 = vsel %vm2126_vm7, %v2565_v32, %v7110_v40  ;;  %v3488_v62 = vunpack.c.l.b16 %v1467_v56  ;;  %v5235_v56 = vld [vmem:[%s5594_s25 + $0x268] sm:$0xf] }
 0x18f   : > { %3544 = vrot.lane.b32.xlu0 %v3540_v26, %s5540_s28  ;;  %v7292_v26 = vunpack.c.l.bf16 %v5231_v55  ;;  %v2581_v25 = vsel %vm2135_vm8, %v2573_v19, %v6965_v23  ;;  %v5236_v19 = vld [vmem:[%s5594_s25 + $0x26c] sm:$0x1] }
 0x190   : > { %v2589_v40 = vsel %vm2144_vm9, %v2581_v25, %v7258_v22  ;;  %v3555_v22 = vpack.c.b16 %v3488_v62, %v7271_v48 }
 0x191   : > { %v2527_v18 = vpop.permute.xlu0 %2526  ;;  %3608 = vrot.lane.b32.xlu2 %v3513_v53, %s5544_s5  ;;  %v1558_v52 = vrot.slane %v7292_v26, 2  ;;  %v1508_v42 = vrot.slane %v7292_v26, 1  ;;  %v2597_v31 = vsel %vm2153_vm10, %v2589_v40, %v2529_v60 }
 0x192   : > { %v2595_v30 = vsel %vm2153_vm10, %v2587_v51, %v2527_v18 }
 0x193   : > { %5299 = vmatmul.msk.bf16.gmra.mxu0 %vm3940_vm11, %v2595_v30  ;;  %5343 = vmatmul.msk.bf16.gmra.mxu1 %vm3940_vm11, %v2595_v30  ;;  %v7296_v61 = vpop.permute.xlu2 %2688  ;;  %v1560_v51 = vsel %vm345_vm1, %v1558_v52, %v1559_v0  ;;  %v1510_v3 = vsel %vm294_vm0, %v1508_v42, %v1509_v5  ;;  %v5233_v0 = vld [vmem:[%s5594_s25 + $0x260] sm:$0xf] }
 0x194   : > { %5380 = vmatmul.msk.bf16.gmra.mxu2 %vm3940_vm11, %v2595_v30  ;;  %3597 = vrot.lane.b32.xlu1 %v7284_v33, %s5543_s4  ;;  %v1588_v52 = vpack.c.bf16 %v1560_v51, %v1560_v51  ;;  %v1455_v20 = vunpack.c.l.bf16 %v5233_v0  ;;  %v9452_v51 = vld [vmem:[#allocation22_spill] sm:$0xff]  ;;  %v1457_v0 = vunpack.c.l.bf16 %v5235_v56  ;;  %v5238_v56 = vld [vmem:[%s5594_s25 + $0x274] sm:$0x1] }
 0x195   : > { %v2543_v42 = vsel %vm2086_vm3, %v9452_v51, %v6853_v45 }
 0x196   : > { %v7307_v55 = vpop.permute.xlu1 %2642  ;;  %v7340_v4 = vunpack.c.l.b16 %v1588_v52  ;;  %v1469_v14 = vpack.c.bf16 %v1455_v20, %v1455_v20 }
 0x197   : > { %3586 = vrot.lane.b32.xlu0 %v3582_v1, %s5542_s30  ;;  %v3508_v1 = vunpack.c.l.b16 %v1537_v29  ;;  %v5234_v29 = vld [vmem:[%s5594_s25 + $0x264] sm:$0x1] }
 0x198   : > { %v3542_v60 = vpack.c.b16 %v7340_v4, %v3536_v57  ;;  %v1456_v32 = vunpack.c.l.bf16 %v5234_v29  ;;  %v1470_v29 = vpack.c.bf16 %v1457_v0, %v1457_v0 }
 0x199   : > { %v7311_v18 = vpop.permute.xlu0 %2640  ;;  %3546 = vrot.lane.b32.xlu2 %v3541_v6, %s5540_s28  ;;  %v3569_v46 = vpack.c.b16 %v3508_v1, %v7262_v49  ;;  %v1468_v49 = vpack.c.bf16 %v7292_v26, %v7292_v26 }
 0x19a   : > { %v1562_v40 = vrot.slane %v1456_v32, 2 }
 0x19b   : > { %v7318_v30 = vpop.permute.xlu2 %2700  ;;  %v3489_v26 = vunpack.c.l.b16 %v1468_v49 }
 0x19c   : > { %3518 = vrot.lane.b32.xlu1 %v3513_v53, %s5539_s27 }
 0x19e   : > { %v7330_v59 = vpop.permute.xlu1 %2668 }
 0x19f   : > { %3619 = vrot.lane.b32.xlu0 %v3541_v6, %s5545_s6  ;;  %v1538_v6 = vpack.c.bf16 %v1510_v3, %v1510_v3  ;;  %v3490_v3 = vunpack.c.l.b16 %v1469_v14 }
 0x1a1   : > { %v7337_v53 = vpop.permute.xlu0 %2646  ;;  %3588 = vrot.lane.b32.xlu2 %v3583_v34, %s5542_s30  ;;  %v7357_v5 = vunpack.c.l.b16 %v1538_v6  ;;  %v2551_v34 = vsel %vm2099_vm4, %v2543_v42, %v6778_v13  ;;  %v1458_v6 = vunpack.c.l.bf16 %v5236_v19  ;;  %v7376_v13 = vpack.c.b16 %v3489_v26, %v3488_v62 }
 0x1a2   : > { %v2559_v45 = vsel %vm2108_vm5, %v2551_v34, %v7009_v8  ;;  %v1511_v8 = vrot.slane %v1455_v20, 1  ;;  %v1514_v42 = vrot.slane %v1457_v0, 1  ;;  %v1564_v34 = vrot.slane %v1457_v0, 2 }
 0x1a3   : > { %5300 = vmatmul.msk.bf16.gmra.mxu0 %vm3940_vm11, %v2597_v31  ;;  %5344 = vmatmul.msk.bf16.gmra.mxu1 %vm3940_vm11, %v2597_v31  ;;  %v7345_v23 = vpop.permute.xlu2 %2712  ;;  %v3514_v57 = vpack.c.b16 %v7357_v5, %v3508_v1  ;;  %v2567_v25 = vsel %vm2117_vm6, %v2559_v45, %v7058_v16  ;;  %9453 = vst [vmem:[#allocation19_spill] sm:$0xff] %v7376_v13  ;;  %v1515_v14 = vrot.slane %v1458_v6, 1  ;;  %v1565_v45 = vrot.slane %v1458_v6, 2 }
 0x1a4   : > { %5381 = vmatmul.msk.bf16.gmra.mxu2 %vm3940_vm11, %v2597_v31  ;;  %3574 = vrot.lane.b32.xlu1 %v3569_v46, %s5541_s29  ;;  %v1561_v46 = vrot.slane %v1455_v20, 2  ;;  %v2575_v49 = vsel %vm2126_vm7, %v2567_v25, %v6907_v9  ;;  %v3556_v1 = vpack.c.b16 %v3490_v3, %v3489_v26  ;;  %v5237_v9 = vld [vmem:[%s5594_s25 + $0x270] sm:$0xf] }
 0x1a5   : > { %v2583_v16 = vsel %vm2135_vm8, %v2575_v49, %v7218_v41  ;;  %v7396_v41 = vunpack.c.l.b16 %v1470_v29  ;;  %v1516_v25 = vsel %vm294_vm0, %v1514_v42, %v1515_v14  ;;  %v1566_v49 = vsel %vm345_vm1, %v1564_v34, %v1565_v45 }
 0x1a6   : > { %v7361_v48 = vpop.permute.xlu1 %2674  ;;  %v1563_v51 = vsel %vm345_vm1, %v1561_v46, %v1562_v40  ;;  %v2591_v62 = vsel %vm2144_vm9, %v2583_v16, %v7247_v58  ;;  %v1459_v46 = vunpack.c.l.bf16 %v5237_v9  ;;  %v1460_v40 = vunpack.c.l.bf16 %v5238_v56  ;;  %v5239_v16 = vld [vmem:[%s5594_s25 + $0x278] sm:$0xf] }
 0x1a7   : > { %3560 = vrot.lane.b32.xlu0 %v3555_v22, %s5538_s26  ;;  %v1512_v22 = vrot.slane %v1456_v32, 1  ;;  %v1589_v19 = vpack.c.bf16 %v1563_v51, %v1563_v51  ;;  %v2599_v58 = vsel %vm2153_vm10, %v2591_v62, %v7133_v10  ;;  %v7408_v0 = vpack.c.b16 %v7396_v41, %v3490_v3  ;;  %v7413_v51 = vld [vmem:[%s5594_s25 + $0x27c] sm:$0x1] }
 0x1a8   : > { %v1540_v6 = vpack.c.bf16 %v1516_v25, %v1516_v25  ;;  %v1518_v29 = vrot.slane %v1460_v40, 1  ;;  %v1590_v62 = vpack.c.bf16 %v1566_v49, %v1566_v49  ;;  %v7423_v56 = vunpack.c.l.bf16 %v5239_v16  ;;  %v5242_v16 = vld [vmem:[%s5594_s25 + $0x284] sm:$0x1] }
 0x1a9   : > { %v7368_v52 = vpop.permute.xlu0 %2672  ;;  %3621 = vrot.lane.b32.xlu2 %v3542_v60, %s5545_s6  ;;  %v1513_v32 = vsel %vm294_vm0, %v1511_v8, %v1512_v22  ;;  %9454 = vst [vmem:[#allocation10_spill] sm:$0xff] %v7408_v0  ;;  %v3538_v10 = vunpack.c.l.b16 %v1589_v19  ;;  %v1568_v27 = vrot.slane %v1460_v40, 2 }
 0x1aa   : > { %v1539_v22 = vpack.c.bf16 %v1513_v32, %v1513_v32  ;;  %v3511_v9 = vunpack.c.l.b16 %v1540_v6  ;;  %v7430_v45 = vunpack.c.l.b16 %v1590_v62  ;;  %v1520_v25 = vrot.slane %v7423_v56, 1  ;;  %v5241_v6 = vld [vmem:[%s5594_s25 + $0x280] sm:$0xf] }
 0x1ab   : > { %v7374_v31 = vpop.permute.xlu2 %2721  ;;  %v3584_v3 = vpack.c.b16 %v3538_v10, %v7340_v4  ;;  %v7446_v54 = vunpack.c.l.bf16 %v5241_v6 }
 0x1ac   : > { %3610 = vrot.lane.b32.xlu1 %v3514_v57, %s5544_s5  ;;  %v3510_v14 = vunpack.c.l.b16 %v1539_v22 }
 0x1ae   : > { %v7388_v20 = vpop.permute.xlu1 %2686  ;;  %v3570_v34 = vpack.c.b16 %v3510_v14, %v7357_v5  ;;  %v1471_v5 = vpack.c.bf16 %v1459_v46, %v1459_v46 }
 0x1af   : > { %3599 = vrot.lane.b32.xlu0 %v7376_v13, %s5543_s4 }
 0x1b1   : > { %v7393_v26 = vpop.permute.xlu0 %2684  ;;  %3562 = vrot.lane.b32.xlu2 %v3556_v1, %s5538_s26  ;;  %v1517_v1 = vrot.slane %v1459_v46, 1 }
 0x1b3   : > { %5301 = vmatmul.msk.bf16.gmra.mxu0 %vm3940_vm11, %v2599_v58  ;;  %5345 = vmatmul.msk.bf16.gmra.mxu1 %vm3940_vm11, %v2599_v58  ;;  %v7403_v8 = vpop.permute.xlu2 %2727  ;;  %v1519_v32 = vsel %vm294_vm0, %v1517_v1, %v1518_v29  ;;  %v5243_v1 = vld [vmem:[%s5594_s25 + $0x288] sm:$0xf]  ;;  %v5244_v29 = vld [vmem:[%s5594_s25 + $0x28c] sm:$0x1] }
 0x1b4   : > { %5382 = vmatmul.msk.bf16.gmra.mxu2 %vm3940_vm11, %v2599_v58  ;;  %3548 = vrot.lane.b32.xlu1 %v3542_v60, %s5540_s28  ;;  %v3515_v58 = vpack.c.b16 %v3511_v9, %v3510_v14  ;;  %v1541_v4 = vpack.c.bf16 %v1519_v32, %v1519_v32  ;;  %v1567_v32 = vrot.slane %v1459_v46, 2  ;;  %v7448_v2 = vunpack.c.l.bf16 %v5243_v1  ;;  %v9455_v1 = vld [vmem:[#allocation8_spill] sm:$0xff] }
 0x1b5   : > { %v1617_v39 = vunpack.c.l.bf16 %v5244_v29  ;;  %v1714_v46 = vrot.slane %v7446_v54, 2  ;;  %v779_v29 = vpack.c.bf16 %v9455_v1, %v9455_v1 }
 0x1b6   : > { %v7416_v42 = vpop.permute.xlu1 %2698  ;;  %v3567_v14 = vunpack.c.l.b16 %v1541_v4 }
 0x1b7   : > { %3520 = vrot.lane.b32.xlu0 %v3514_v57, %s5539_s27  ;;  %v1462_v57 = vunpack.c.l.bf16 %v7413_v51  ;;  %v3543_v51 = vpack.c.b16 %v7430_v45, %v3538_v10  ;;  %v7452_v10 = vunpack.c.l.b16 %v1471_v5  ;;  %v1718_v6 = vrot.slane %v1617_v39, 2 }
 0x1b8   : > { %v3571_v37 = vpack.c.b16 %v3567_v14, %v3511_v9  ;;  %v1472_v9 = vpack.c.bf16 %v7423_v56, %v7423_v56 }
 0x1b9   : > { %v7418_v60 = vpop.permute.xlu0 %2696  ;;  %3601 = vrot.lane.b32.xlu2 %v7408_v0, %s5543_s4  ;;  %v1521_v22 = vrot.slane %v1462_v57, 1  ;;  %v3557_v5 = vpack.c.b16 %v7452_v10, %v7396_v41  ;;  %v1667_v41 = vrot.slane %v7448_v2, 1  ;;  %v1668_v0 = vrot.slane %v1617_v39, 1 }
 0x1bb   : > { %v7427_v19 = vpop.permute.xlu2 %2736 }
 0x1bc   : > { %3590 = vrot.lane.b32.xlu1 %v3584_v3, %s5542_s30  ;;  %v1522_v3 = vsel %vm294_vm0, %v1520_v25, %v1521_v22  ;;  %v1569_v25 = vsel %vm345_vm1, %v1567_v32, %v1568_v27  ;;  %v1717_v22 = vrot.slane %v7448_v2, 2  ;;  %v5245_v27 = vld [vmem:[%s5594_s25 + $0x290] sm:$0xf] }
 0x1bd   : > { %v1542_v4 = vpack.c.bf16 %v1522_v3, %v1522_v3  ;;  %v5246_v3 = vld [vmem:[%s5594_s25 + $0x294] sm:$0x1]  ;;  %v1591_v11 = vpack.c.bf16 %v1569_v25, %v1569_v25  ;;  %v7480_v13 = vunpack.c.l.bf16 %v5245_v27  ;;  %v1570_v25 = vrot.slane %v7423_v56, 2 }
 0x1be   : > { %v7436_v49 = vpop.permute.xlu1 %2710  ;;  %v1719_v1 = vsel %vm345_vm1, %v1717_v22, %v1718_v6  ;;  %v1619_v21 = vunpack.c.l.bf16 %v5246_v3  ;;  %v1669_v27 = vsel %vm294_vm0, %v1667_v41, %v1668_v0 }
 0x1bf   : > { %3576 = vrot.lane.b32.xlu0 %v3570_v34, %s5541_s29  ;;  %v1615_v34 = vunpack.c.l.bf16 %v5242_v16  ;;  %v3606_v44 = vunpack.c.l.b16 %v1542_v4  ;;  %v3595_v4 = vunpack.c.l.b16 %v1472_v9  ;;  %v1755_v22 = vpack.c.bf16 %v1719_v1, %v1719_v1 }
 0x1c0   : > { %v7484_v39 = vunpack.c.l.b16 %v1591_v11  ;;  %v1720_v56 = vrot.slane %v7480_v13, 2  ;;  %v1721_v9 = vrot.slane %v1619_v21, 2  ;;  %v5248_v11 = vld [vmem:[%s5594_s25 + $0x29c] sm:$0x1]  ;;  %v1705_v3 = vpack.c.bf16 %v1669_v27, %v1669_v27 }
 0x1c1   : > { %v7442_v62 = vpop.permute.xlu0 %2702  ;;  %3522 = vrot.lane.b32.xlu2 %v3515_v58, %s5539_s27  ;;  %v1715_v40 = vrot.slane %v1615_v34, 2  ;;  %v1665_v47 = vrot.slane %v1615_v34, 1  ;;  %v1571_v34 = vrot.slane %v1462_v57, 2  ;;  %v3757_v0 = vunpack.c.l.b16 %v1755_v22 }
 0x1c2   : > { %v1670_v1 = vrot.slane %v7480_v13, 1  ;;  %v3729_v22 = vunpack.c.l.b16 %v1705_v3 }
 0x1c3   : > { %v7450_v38 = vpop.permute.xlu2 %2745  ;;  %v1716_v35 = vsel %vm345_vm1, %v1714_v46, %v1715_v40  ;;  %v3607_v46 = vpack.c.b16 %v3606_v44, %v3567_v14  ;;  %v5247_v44 = vld [vmem:[%s5594_s25 + $0x298] sm:$0xf] }
 0x1c4   : > { %3623 = vrot.lane.b32.xlu1 %v3543_v51, %s5545_s6  ;;  %v1754_v40 = vpack.c.bf16 %v1716_v35, %v1716_v35  ;;  %v1572_v35 = vsel %vm345_vm1, %v1570_v25, %v1571_v34  ;;  %v1621_v25 = vunpack.c.l.bf16 %v5248_v11 }
 0x1c6   : > { %v7459_v16 = vpop.permute.xlu1 %2716 }
 0x1c7   : > { %3612 = vrot.lane.b32.xlu0 %v3515_v58, %s5544_s5  ;;  %v1664_v58 = vrot.slane %v7446_v54, 1 }
 0x1c9   : > { %v7469_v32 = vpop.permute.xlu0 %2714  ;;  %3578 = vrot.lane.b32.xlu2 %v3571_v37, %s5541_s29  ;;  %v2608_v37 = vunpack.c.l.b16 %v779_v29  ;;  %v1666_v6 = vsel %vm294_vm0, %v1664_v58, %v1665_v47  ;;  %v3756_v47 = vunpack.c.l.b16 %v1754_v40  ;;  %v3585_v58 = vpack.c.b16 %v7484_v39, %v7430_v45 }
 0x1cb   : > { %v7478_v50 = vpop.permute.xlu2 %2859  ;;  %v2616_v57 = vpack.c.b16 %v6721_v63, %v2608_v37  ;;  %v1671_v63 = vrot.slane %v1619_v21, 1  ;;  %v1722_v37 = vsel %vm345_vm1, %v1720_v56, %v1721_v9  ;;  %v3764_v45 = vpack.c.b16 %v3757_v0, %v3756_v47 }
 0x1cc   : > { %3564 = vrot.lane.b32.xlu1 %v3557_v5, %s5538_s26  ;;  %v3596_v5 = vpack.c.b16 %v3595_v4, %v7452_v10  ;;  %v1592_v10 = vpack.c.bf16 %v1572_v35, %v1572_v35  ;;  %v7506_v4 = vunpack.c.l.bf16 %v5247_v44 }
 0x1cd   : > { %v2753_v34 = vsel %vm2086_vm3, %v2616_v57, %v7311_v18  ;;  %v1672_v27 = vsel %vm294_vm0, %v1670_v1, %v1671_v63  ;;  %v1724_v57 = vrot.slane %v1621_v25, 2 }
 0x1ce   : > { %v7489_v29 = vpop.permute.xlu1 %2725  ;;  %v2764_v40 = vsel %vm2099_vm4, %v2753_v34, %v7330_v59  ;;  %v3617_v9 = vunpack.c.l.b16 %v1592_v10  ;;  %v1723_v18 = vrot.slane %v7506_v4, 2  ;;  %v1706_v11 = vpack.c.bf16 %v1672_v27, %v1672_v27 }
 0x1cf   : > { %3550 = vrot.lane.b32.xlu0 %v3543_v51, %s5540_s28  ;;  %v1704_v51 = vpack.c.bf16 %v1666_v6, %v1666_v6  ;;  %v1756_v6 = vpack.c.bf16 %v1722_v37, %v1722_v37  ;;  %v2772_v35 = vsel %vm2108_vm5, %v2764_v40, %v7267_v15  ;;  %v1673_v3 = vrot.slane %v7506_v4, 1 }
 0x1d0   : > { %v2780_v59 = vsel %vm2117_vm6, %v2772_v35, %v7418_v60  ;;  %v3618_v63 = vpack.c.b16 %v3617_v9, %v7484_v39  ;;  %v1635_v15 = vpack.c.bf16 %v7448_v2, %v7448_v2  ;;  %v1636_v60 = vpack.c.bf16 %v7480_v13, %v7480_v13 }
 0x1d1   : > { %v7497_v14 = vpop.permute.xlu0 %2723  ;;  %3614 = vrot.lane.b32.xlu2 %v3607_v46, %s5544_s5  ;;  %v7510_v46 = vpop.f32.mrf.mxu1  ;;  %v3728_v21 = vunpack.c.l.b16 %v1704_v51  ;;  %v2788_v47 = vsel %vm2126_vm7, %v2780_v59, %v7436_v49  ;;  %v3758_v51 = vunpack.c.l.b16 %v1756_v6  ;;  %v1725_v10 = vsel %vm345_vm1, %v1723_v18, %v1724_v57  ;;  %v5249_v6 = vld [vmem:[%s5594_s25 + $0x2a0] sm:$0xf] }
 0x1d2   : > { %v3730_v49 = vunpack.c.l.b16 %v1706_v11  ;;  %v2796_v37 = vsel %vm2135_vm8, %v2788_v47, %v7374_v31  ;;  %v1757_v34 = vpack.c.bf16 %v1725_v10, %v1725_v10  ;;  %v7544_v13 = vunpack.c.l.b16 %v1635_v15  ;;  %v5251_v15 = vld [vmem:[%s5594_s25 + $0x2a8] sm:$0xf]  ;;  %v5252_v10 = vld [vmem:[%s5594_s25 + $0x2ac] sm:$0x1] }
 0x1d3   : > { %v7503_v41 = vpop.permute.xlu2 %2865  ;;  %v3736_v44 = vpack.c.b16 %v3729_v22, %v3728_v21  ;;  %v3710_v21 = vunpack.c.l.b16 %v1636_v60  ;;  %v1622_v57 = vunpack.c.l.bf16 %v5249_v6  ;;  %v2756_v35 = vsel %vm2086_vm3, %v6879_v12, %v7307_v55 }
 0x1d4   : > { %3603 = vrot.lane.b32.xlu1 %v3596_v5, %s5543_s4  ;;  %v3792_v31 = vpack.c.b16 %v3730_v49, %v3729_v22  ;;  %v7554_v18 = vunpack.c.l.b16 %v1757_v34  ;;  %v1637_v22 = vpack.c.bf16 %v7506_v4, %v7506_v4  ;;  %v2766_v47 = vsel %vm2099_vm4, %v2756_v35, %v7231_v7 }
 0x1d5   : > { %v2774_v55 = vsel %vm2108_vm5, %v2766_v47, %v7393_v26  ;;  %v1624_v26 = vunpack.c.l.bf16 %v5251_v15  ;;  %v1726_v34 = vrot.slane %v1622_v57, 2  ;;  %v5253_v47 = vld [vmem:[%s5594_s25 + $0x2b0] sm:$0xf] }
 0x1d6   : > { %v7517_v56 = vpop.permute.xlu1 %2734  ;;  %v3711_v4 = vunpack.c.l.b16 %v1637_v22  ;;  %v2782_v60 = vsel %vm2117_vm6, %v2774_v55, %v7416_v42  ;;  %v1625_v42 = vunpack.c.l.bf16 %v5252_v10 }
 0x1d7   : > { %3592 = vrot.lane.b32.xlu0 %v3585_v58, %s5542_s30  ;;  %v1674_v58 = vrot.slane %v1621_v25, 1  ;;  %v3806_v25 = vpack.c.b16 %v3758_v51, %v3757_v0  ;;  %v1679_v22 = vrot.slane %v1624_v26, 1 }
 0x1d8   : > { %v7590_v6 = vpack.c.b16 %v3711_v4, %v3710_v21 }
 0x1d9   : > { %v2733_v5 = vpop.permute.xlu0 %2732  ;;  %3768 = vrot.lane.b32.xlu2 %v3764_v45, %s5540_s28  ;;  %v1675_v40 = vsel %vm294_vm0, %v1673_v3, %v1674_v58  ;;  %v7540_v39 = vpop.f32.mrf.mxu1  ;;  %v3765_v3 = vpack.c.b16 %v7554_v18, %v3758_v51  ;;  %v1638_v58 = vpack.c.bf16 %v1622_v57, %v1622_v57 }
 0x1da   : > { %v2804_v45 = vsel %vm2144_vm9, %v2796_v37, %v2733_v5  ;;  %v1707_v0 = vpack.c.bf16 %v1675_v40, %v1675_v40  ;;  %v3778_v5 = vpack.c.b16 %v3710_v21, %v7544_v13 }
 0x1db   : > { %v7528_v1 = vpop.permute.xlu2 %3516 }
 0x1dc   : > { %3740 = vrot.lane.b32.xlu1 %v3736_v44, %s5539_s27  ;;  %v5250_v44 = vld [vmem:[%s5594_s25 + $0x2a4] sm:$0x1]  ;;  %v7566_v11 = vunpack.c.l.b16 %v1707_v0 }
 0x1dd   : > { %v1623_v12 = vunpack.c.l.bf16 %v5250_v44  ;;  %v1680_v44 = vrot.slane %v1625_v42, 1 }
 0x1de   : > { %v2744_v2 = vpop.permute.xlu1 %2743  ;;  %v3737_v51 = vpack.c.b16 %v7566_v11, %v3730_v49  ;;  %v1676_v49 = vrot.slane %v1622_v57, 1 }
 0x1df   : > { %3625 = vrot.lane.b32.xlu0 %v3618_v63, %s5545_s6  ;;  %v2812_v27 = vsel %vm2153_vm10, %v2804_v45, %v2744_v2  ;;  %v1727_v40 = vrot.slane %v1623_v12, 2  ;;  %v2790_v45 = vsel %vm2126_vm7, %v2782_v60, %v7345_v23 }
 0x1e0   : > { %5302 = vmatmul.msk.bf16.gmra.mxu0 %vm3940_vm11, %v2812_v27  ;;  %5346 = vmatmul.msk.bf16.gmra.mxu1 %vm3940_vm11, %v2812_v27 }
 0x1e1   : > { %v7548_v9 = vpop.permute.xlu0 %2738  ;;  %5383 = vmatmul.msk.bf16.gmra.mxu2 %vm3940_vm11, %v2812_v27  ;;  %3810 = vrot.lane.b32.xlu2 %v3806_v25, %s5542_s30  ;;  %v7580_v37 = vpop.f32.mrf.mxu1  ;;  %v3712_v25 = vunpack.c.l.b16 %v1638_v58  ;;  %v2798_v27 = vsel %vm2135_vm8, %v2790_v45, %v7497_v14  ;;  %v1728_v23 = vsel %vm345_vm1, %v1726_v34, %v1727_v40  ;;  %v1681_v34 = vsel %vm294_vm0, %v1679_v22, %v1680_v44  ;;  %v5255_v22 = vld [vmem:[%s5594_s25 + $0x2b8] sm:$0xf]  ;;  %v5256_v44 = vld [vmem:[%s5594_s25 + $0x2bc] sm:$0x1] }
 0x1e2   : > { %v2806_v0 = vsel %vm2144_vm9, %v2798_v27, %v7517_v56  ;;  %v7607_v56 = vld [vmem:[%s5594_s25 + $0x2b4] sm:$0x1]  ;;  %v7622_v40 = vunpack.c.l.bf16 %v5253_v47  ;;  %v2759_v27 = vsel %vm2086_vm3, %v6969_v28, %v7188_v43  ;;  %v1463_v28 = vpack.c.bf16 %v7083_v17, %v7083_v17 }
 0x1e3   : > { %v7559_v59 = vpop.permute.xlu2 %3572  ;;  %v3779_v35 = vpack.c.b16 %v3712_v25, %v3711_v4  ;;  %v2814_v14 = vsel %vm2153_vm10, %v2806_v0, %v7450_v38  ;;  %v1729_v4 = vrot.slane %v1624_v26, 2  ;;  %v1730_v38 = vrot.slane %v1625_v42, 2 }
 0x1e4   : > { %3796 = vrot.lane.b32.xlu1 %v3792_v31, %s5541_s29  ;;  %v1677_v31 = vrot.slane %v1623_v12, 1  ;;  %v1758_v12 = vpack.c.bf16 %v1728_v23, %v1728_v23  ;;  %v1627_v45 = vunpack.c.l.bf16 %v7607_v56  ;;  %v1629_v47 = vunpack.c.l.bf16 %v5256_v44 }
 0x1e6   : > { %v7574_v63 = vpop.permute.xlu1 %2749  ;;  %v1678_v57 = vsel %vm294_vm0, %v1676_v49, %v1677_v31  ;;  %v4018_v49 = vpop.f32.mrf.mxu0  ;;  %v3760_v42 = vunpack.c.l.b16 %v1758_v12  ;;  %v1683_v23 = vrot.slane %v1627_v45, 1  ;;  %v3484_v12 = vunpack.c.l.b16 %v1463_v28 }
 0x1e7   : > { %3782 = vrot.lane.b32.xlu0 %v3778_v5, %s5538_s26  ;;  %v1639_v5 = vpack.c.bf16 %v1624_v26, %v1624_v26  ;;  %v1708_v10 = vpack.c.bf16 %v1678_v57, %v1678_v57  ;;  %v2768_v26 = vsel %vm2099_vm4, %v2759_v27, %v7368_v52 }
 0x1e8   : > { %v2776_v31 = vsel %vm2108_vm5, %v2768_v26, %v7388_v20 }
 0x1e9   : > { %v7582_v7 = vpop.permute.xlu0 %2747  ;;  %3843 = vrot.lane.b32.xlu2 %v3765_v3, %s5545_s6  ;;  %v7615_v55 = vunpack.c.l.b16 %v1639_v5  ;;  %v7617_v15 = vpop.f32.mrf.mxu1  ;;  %v1731_v5 = vsel %vm345_vm1, %v1729_v4, %v1730_v38  ;;  %v3732_v52 = vunpack.c.l.b16 %v1708_v10  ;;  %v2784_v57 = vsel %vm2117_vm6, %v2776_v31, %v7318_v30 }
 0x1ea   : > { %v2792_v56 = vsel %vm2126_vm7, %v2784_v57, %v7469_v32  ;;  %v1733_v57 = vrot.slane %v1627_v45, 2 }
 0x1eb   : > { %v7588_v2 = vpop.permute.xlu2 %3608  ;;  %v7634_v0 = vpack.c.b16 %v7615_v55, %v3712_v25  ;;  %v3807_v25 = vpack.c.b16 %v3760_v42, %v7554_v18  ;;  %v3793_v18 = vpack.c.b16 %v3732_v52, %v7566_v11  ;;  %v2800_v30 = vsel %vm2135_vm8, %v2792_v56, %v7489_v29 }
 0x1ec   : > { %3832 = vrot.lane.b32.xlu1 %v3737_v51, %s5544_s5  ;;  %v3492_v11 = vpack.c.b16 %v7240_v36, %v3484_v12  ;;  %v2808_v29 = vsel %vm2144_vm9, %v2800_v30, %v7427_v19  ;;  %v4214_v56 = vadd.f32 %v7476_v24, %v4018_v49  ;;  %v7703_v12 = vld [vmem:[#allocation2] ss:$0 sm:$0xff] }
 0x1ed   : > { %v2816_v28 = vsel %vm2153_vm10, %v2808_v29, %v7582_v7 }
 0x1ee   : > { %v7600_v21 = vpop.permute.xlu1 %2863  ;;  %v7669_v27 = vpop.f32.mrf.mxu0  ;;  %v3629_v44 = vsel %vm2086_vm3, %v3492_v11, %v7528_v1  ;;  %v5258_v11 = vld [vmem:[%s5594_s25 + $0x2c4] sm:$0x1] }
 0x1ef   : > { %3821 = vrot.lane.b32.xlu0 %v7590_v6, %s5543_s4 }
 0x1f0   : > { %5303 = vmatmul.msk.bf16.gmra.mxu0 %vm3940_vm11, %v2814_v14  ;;  %5347 = vmatmul.msk.bf16.gmra.mxu1 %vm3940_vm11, %v2814_v14 }
 0x1f1   : > { %v7609_v58 = vpop.permute.xlu0 %2861  ;;  %5384 = vmatmul.msk.bf16.gmra.mxu2 %vm3940_vm11, %v2814_v14  ;;  %3784 = vrot.lane.b32.xlu2 %v3779_v35, %s5538_s26  ;;  %v1709_v35 = vpack.c.bf16 %v1681_v34, %v1681_v34  ;;  %v1759_v14 = vpack.c.bf16 %v1731_v5, %v1731_v5  ;;  %v7664_v10 = vpop.f32.mrf.mxu1 }
 0x1f3   : > { %v7619_v60 = vpop.permute.xlu2 %3546  ;;  %v7652_v17 = vunpack.c.l.b16 %v1709_v35  ;;  %v7667_v34 = vunpack.c.l.b16 %v1759_v14  ;;  %v1686_v35 = vrot.slane %v1629_v47, 1  ;;  %v1732_v14 = vrot.slane %v7622_v40, 2 }
 0x1f4   : > { %3770 = vrot.lane.b32.xlu1 %v3765_v3, %s5540_s28  ;;  %v1682_v3 = vrot.slane %v7622_v40, 1 }
 0x1f5   : > { %v3738_v32 = vpack.c.b16 %v7652_v17, %v3732_v52  ;;  %v3766_v36 = vpack.c.b16 %v7667_v34, %v3760_v42 }
 0x1f6   : > { %v7640_v43 = vpop.permute.xlu1 %2889  ;;  %v1684_v38 = vsel %vm294_vm0, %v1682_v3, %v1683_v23  ;;  %v9456_v3 = vld [vmem:[#allocation17_spill] sm:$0xff]  ;;  %v7715_v29 = vpop.f32.mrf.mxu0 }
 0x1f7   : > { %3742 = vrot.lane.b32.xlu0 %v3737_v51, %s5539_s27  ;;  %v7654_v51 = vunpack.c.l.bf16 %v5255_v22  ;;  %v1710_v26 = vpack.c.bf16 %v1684_v38, %v1684_v38  ;;  %v2762_v23 = vsel %vm2086_vm3, %v9456_v3, %v7337_v53  ;;  %v1640_v22 = vpack.c.bf16 %v7622_v40, %v7622_v40 }
 0x1f8   : > { %v2770_v19 = vsel %vm2099_vm4, %v2762_v23, %v7361_v48 }
 0x1f9   : > { %v7645_v20 = vpop.permute.xlu0 %2887  ;;  %3823 = vrot.lane.b32.xlu2 %v7634_v0, %s5543_s4  ;;  %v1685_v31 = vrot.slane %v7654_v51, 1  ;;  %v3734_v7 = vunpack.c.l.b16 %v1710_v26  ;;  %v2778_v48 = vsel %vm2108_vm5, %v2770_v19, %v7296_v61  ;;  %v3714_v1 = vunpack.c.l.b16 %v1640_v22  ;;  %v7708_v45 = vpop.f32.mrf.mxu1 }
 0x1fa   : > { %v2786_v38 = vsel %vm2117_vm6, %v2778_v48, %v7442_v62  ;;  %v1735_v26 = vrot.slane %v7654_v51, 2  ;;  %v1641_v3 = vpack.c.bf16 %v7654_v51, %v7654_v51 }
 0x1fb   : > { %v7658_v4 = vpop.permute.xlu2 %3588  ;;  %v1687_v53 = vsel %vm294_vm0, %v1685_v31, %v1686_v35  ;;  %v3794_v40 = vpack.c.b16 %v3734_v7, %v7652_v17  ;;  %v1736_v31 = vrot.slane %v1629_v47, 2  ;;  %v5257_v35 = vld [vmem:[%s5594_s25 + $0x2c0] sm:$0xf]  ;;  %v2794_v62 = vsel %vm2126_vm7, %v2786_v38, %v7459_v16 }
 0x1fc   : > { %3812 = vrot.lane.b32.xlu1 %v3807_v25, %s5542_s30  ;;  %v1734_v17 = vsel %vm345_vm1, %v1732_v14, %v1733_v57  ;;  %v3780_v47 = vpack.c.b16 %v3714_v1, %v7615_v55  ;;  %v7734_v23 = vunpack.c.l.bf16 %v5257_v35  ;;  %v2802_v51 = vsel %vm2135_vm8, %v2794_v62, %v7403_v8  ;;  %v5259_v57 = vld [vmem:[%s5594_s25 + $0x2c8] sm:$0xf] }
 0x1fd   : > { %v1760_v19 = vpack.c.bf16 %v1734_v17, %v1734_v17  ;;  %v7752_v14 = vunpack.c.l.b16 %v1641_v3 }
 0x1fe   : > { %v3559_v5 = vpop.permute.xlu1 %3558  ;;  %v1738_v8 = vrot.slane %v7734_v23, 2 }
 0x1ff   : > { %3798 = vrot.lane.b32.xlu0 %v3793_v18, %s5541_s29  ;;  %v1711_v18 = vpack.c.bf16 %v1687_v53, %v1687_v53  ;;  %v1737_v53 = vsel %vm345_vm1, %v1735_v26, %v1736_v31 }
 0x200   : > { %5304 = vmatmul.msk.bf16.gmra.mxu0 %vm3940_vm11, %v2816_v28  ;;  %5348 = vmatmul.msk.bf16.gmra.mxu1 %vm3940_vm11, %v2816_v28  ;;  %v1761_v38 = vpack.c.bf16 %v1737_v53, %v1737_v53 }
 0x201   : > { %v3545_v52 = vpop.permute.xlu0 %3544  ;;  %5385 = vmatmul.msk.bf16.gmra.mxu2 %vm3940_vm11, %v2816_v28  ;;  %3744 = vrot.lane.b32.xlu2 %v3738_v32, %s5539_s27  ;;  %v7727_v28 = vunpack.c.l.b16 %v1711_v18  ;;  %v7764_v26 = vpop.f32.mrf.mxu1 }
 0x202   : > { %v3640_v42 = vsel %vm2099_vm4, %v3629_v44, %v3545_v52  ;;  %v1631_v52 = vunpack.c.l.bf16 %v5258_v11  ;;  %v2810_v44 = vsel %vm2144_vm9, %v2802_v51, %v7548_v9  ;;  %v7772_v11 = vpack.c.b16 %v7752_v14, %v3714_v1 }
 0x203   : > { %v7694_v25 = vpop.permute.xlu2 %3621  ;;  %v3648_v24 = vsel %vm2108_vm5, %v3640_v42, %v3559_v5  ;;  %v7750_v42 = vpack.c.b16 %v7727_v28, %v3734_v7  ;;  %v7780_v17 = vunpack.c.l.b16 %v1761_v38 }
 0x204   : > { %3845 = vrot.lane.b32.xlu1 %v3766_v36, %s5545_s6  ;;  %v3656_v16 = vsel %vm2117_vm6, %v3648_v24, %v7559_v59  ;;  %v4216_v59 = vadd.f32 %v7510_v46, %v7669_v27  ;;  %v3762_v27 = vunpack.c.l.b16 %v1760_v19  ;;  %v1689_v7 = vrot.slane %v1631_v52, 1 }
 0x205   : > { %v4633_v30 = vpop.f32.mrf.mxu2  ;;  %v2818_v24 = vsel %vm2153_vm10, %v2810_v44, %v7574_v63  ;;  %v4025_v63 = vpop.f32.mrf.mxu0 }
 0x206   : > { %v4793_v61 = vadd.f32 %v4633_v30, %v4214_v56  ;;  %v3598_v49 = vpop.permute.xlu1 %3597  ;;  %v5260_v56 = vld [vmem:[%s5594_s25 + $0x2cc] sm:$0x1]  ;;  %v1739_v30 = vrot.slane %v1631_v52, 2  ;;  %v3808_v1 = vpack.c.b16 %v3762_v27, %v7667_v34  ;;  %v3767_v19 = vpack.c.b16 %v7780_v17, %v3762_v27 }
 0x207   : > { %3834 = vrot.lane.b32.xlu0 %v3738_v32, %s5544_s5  ;;  %v1642_v27 = vpack.c.bf16 %v7734_v23, %v7734_v23 }
 0x208   : > { %v4861_v32 = vadd.f32 %v7703_v12, %v4793_v61  ;;  %v7762_v61 = vunpack.c.l.bf16 %v5259_v57 }
 0x209   : > { %v3587_v5 = vpop.permute.xlu0 %3586  ;;  %3800 = vrot.lane.b32.xlu2 %v3794_v40, %s5541_s29  ;;  %v1688_v40 = vrot.slane %v7734_v23, 1  ;;  %v5475_v23 = vld [vmem:[%s9294_s1 + $0x28] sm:$0xff] }
 0x20a   : > { %4925 = vst.msk [vmem:[%s7722_s17] sm:$0xff] %vm2153_vm10, %v4861_v32  ;;  %v3664_v22 = vsel %vm2126_vm7, %v3656_v16, %v3587_v5  ;;  %v1740_v32 = vsel %vm345_vm1, %v1738_v8, %v1739_v30  ;;  %v9457_v16 = vld [vmem:[#allocation16_spill] sm:$0xff]  ;;  %v5203_v8 = vld [vmem:[%s5594_s25 + $0x1e8] sm:$0xf] }
 0x20b   : > { %v7739_v55 = vpop.permute.xlu2 %3562  ;;  %v3672_v48 = vsel %vm2135_vm8, %v3664_v22, %v3598_v49  ;;  %v1633_v49 = vunpack.c.l.bf16 %v5260_v56  ;;  %v1690_v5 = vsel %vm294_vm0, %v1688_v40, %v1689_v7  ;;  %v1762_v52 = vpack.c.bf16 %v1740_v32, %v1740_v32  ;;  %v5204_v40 = vld [vmem:[%s5594_s25 + $0x1ec] sm:$0x1] }
 0x20c   : > { %3786 = vrot.lane.b32.xlu1 %v3780_v47, %s5538_s26  ;;  %v1741_v47 = vrot.slane %v7762_v61, 2  ;;  %v4219_v22 = vadd.f32 %v7540_v39, %v7715_v29  ;;  %v1712_v34 = vpack.c.bf16 %v1690_v5, %v1690_v5  ;;  %v1691_v56 = vrot.slane %v7762_v61, 1  ;;  %v5202_v39 = vld [vmem:[%s5594_s25 + $0x1e4] sm:$0x1]  ;;  %v5474_v29 = vld [vmem:[%s9294_s1 + $0x30] sm:$0xff] }
 0x20d   : > { %v4635_v18 = vpop.f32.mrf.mxu2  ;;  %v1742_v3 = vrot.slane %v1633_v49, 2  ;;  %v7808_v38 = vunpack.c.l.b16 %v1762_v52  ;;  %v7828_v32 = vunpack.c.l.bf16 %v5203_v8  ;;  %v1275_v5 = vunpack.c.l.bf16 %v5204_v40 }
 0x20e   : > { %v4794_v46 = vadd.f32 %v4635_v18, %v4216_v59  ;;  %v3519_v9 = vpop.permute.xlu1 %3518  ;;  %v5201_v18 = vld [vmem:[%s5594_s25 + $0x1e0] sm:$0xf]  ;;  %v7841_v52 = vunpack.c.l.b16 %v1642_v27  ;;  %v1643_v40 = vpack.c.bf16 %v7762_v61, %v7762_v61 }
 0x20f   : > { %3772 = vrot.lane.b32.xlu0 %v3766_v36, %s5540_s28  ;;  %v3680_v36 = vsel %vm2144_vm9, %v3672_v48, %v7588_v2  ;;  %v3632_v53 = vsel %vm2086_vm3, %v7284_v33, %v3519_v9  ;;  %v1743_v57 = vsel %vm345_vm1, %v1741_v47, %v1742_v3  ;;  %v1692_v48 = vrot.slane %v1633_v49, 1 }
 0x210   : > { %v4862_v31 = vadd.f32 %v7703_v12, %v4794_v46  ;;  %5305 = vmatmul.msk.bf16.gmra.mxu0 %vm3940_vm11, %v2818_v24  ;;  %5349 = vmatmul.msk.bf16.gmra.mxu1 %vm3940_vm11, %v2818_v24  ;;  %v3642_v46 = vsel %vm2099_vm4, %v3632_v53, %v7619_v60  ;;  %v7815_v9 = vunpack.c.l.b16 %v1712_v34  ;;  %v1763_v49 = vpack.c.bf16 %v1743_v57, %v1743_v57 }
 0x211   : > { %v3620_v35 = vpop.permute.xlu0 %3619  ;;  %5386 = vmatmul.msk.bf16.gmra.mxu2 %vm3940_vm11, %v2818_v24  ;;  %3836 = vrot.lane.b32.xlu2 %v7750_v42, %s5544_s5  ;;  %v1693_v60 = vsel %vm294_vm0, %v1691_v56, %v1692_v48  ;;  %v3809_v3 = vpack.c.b16 %v7808_v38, %v7780_v17  ;;  %v1375_v17 = vrot.slane %v7828_v32, 2  ;;  %v1376_v48 = vrot.slane %v1275_v5, 2 }
 0x212   : > { %v7775_v62 = vsel %vm2153_vm10, %v3680_v36, %v3620_v35  ;;  %4926 = vst.msk [vmem:[%s7722_s17 + $0x8] sm:$0xff] %vm2153_vm10, %v4862_v31  ;;  %v7823_v31 = vunpack.c.l.bf16 %v5201_v18  ;;  %v1273_v35 = vunpack.c.l.bf16 %v5202_v39  ;;  %v4028_v36 = vpop.f32.mrf.mxu0  ;;  %v3841_v53 = vunpack.c.l.b16 %v1763_v49 }
 0x213   : > { %5318 = vmatmul.msk.bf16.vlgmr.msra.gmra.mxu3 %vm3940_vm11, %v7775_v62  ;;  %v7787_v2 = vpop.permute.xlu2 %3601  ;;  %v1325_v18 = vrot.slane %v7828_v32, 1  ;;  %v1326_v39 = vrot.slane %v1275_v5, 1 }
 0x214   : > { %5426 = vmatpush.bf16.msra.mxu3 %v9457_v16  ;;  %3825 = vrot.lane.b32.xlu1 %v7772_v11, %s5543_s4  ;;  %v3795_v16 = vpack.c.b16 %v7815_v9, %v7727_v28  ;;  %v1322_v57 = vrot.slane %v7823_v31, 1  ;;  %v1323_v28 = vrot.slane %v1273_v35, 1 }
 0x216   : > { %v3575_v59 = vpop.permute.xlu1 %3574  ;;  %v1324_v61 = vsel %vm294_vm0, %v1322_v57, %v1323_v28 }
 0x217   : > { %3814 = vrot.lane.b32.xlu0 %v3808_v1, %s5542_s30  ;;  %v4638_v51 = vpop.f32.mrf.mxu2  ;;  %v4221_v1 = vadd.f32 %v7580_v37, %v4025_v63  ;;  %v1713_v37 = vpack.c.bf16 %v1693_v60, %v1693_v60  ;;  %v1372_v63 = vrot.slane %v7823_v31, 2 }
 0x218   : > { %v4795_v44 = vadd.f32 %v4638_v51, %v4219_v22  ;;  %5427 = vmatpush.bf16.msra.mxu3 %v5474_v29  ;;  %v5205_v51 = vld [vmem:[%s5594_s25 + $0x1f0] sm:$0xf] }
 0x219   : > { %v3561_v33 = vpop.permute.xlu0 %3560  ;;  %3774 = vrot.lane.b32.xlu2 %v3767_v19, %s5540_s28  ;;  %v7857_v8 = vunpack.c.l.bf16 %v5205_v51  ;;  %v3830_v60 = vunpack.c.l.b16 %v1713_v37 }
 0x21a   : > { %v4863_v30 = vadd.f32 %v7703_v12, %v4795_v44  ;;  %v3650_v7 = vsel %vm2108_vm5, %v3642_v46, %v3561_v33  ;;  %v7847_v44 = vld [vmem:[%s5594_s25 + $0x1f4] sm:$0x1] }
 0x21b   : > { %v7821_v24 = vpop.permute.xlu2 %3522  ;;  %v3658_v47 = vsel %vm2117_vm6, %v3650_v7, %v3575_v59  ;;  %v4224_v7 = vadd.f32 %v7617_v15, %v4028_v36  ;;  %v1377_v15 = vsel %vm345_vm1, %v1375_v17, %v1376_v48  ;;  %v1327_v36 = vsel %vm294_vm0, %v1325_v18, %v1326_v39 }
 0x21c   : > { %4927 = vst.msk [vmem:[%s7722_s17 + $0x10] sm:$0xff] %vm2153_vm10, %v4863_v30  ;;  %5428 = vmatpush.bf16.msra.mxu3 %v5475_v23  ;;  %3746 = vrot.lane.b32.xlu1 %v7750_v42, %s5539_s27  ;;  %v1373_v42 = vrot.slane %v1273_v35, 2  ;;  %v1277_v30 = vunpack.c.l.bf16 %v7847_v44  ;;  %v3842_v35 = vpack.c.b16 %v3841_v53, %v7808_v38  ;;  %v4030_v23 = vpop.f32.mrf.mxu0  ;;  %v3819_v38 = vunpack.c.l.b16 %v1643_v40 }
 0x21d   : > { %v1413_v51 = vpack.c.bf16 %v1377_v15, %v1377_v15  ;;  %v1363_v17 = vpack.c.bf16 %v1327_v36, %v1327_v36  ;;  %v5207_v15 = vld [vmem:[%s5594_s25 + $0x1f8] sm:$0xf]  ;;  %v5208_v36 = vld [vmem:[%s5594_s25 + $0x1fc] sm:$0x1] }
 0x21e   : > { %v3611_v34 = vpop.permute.xlu1 %3610 }
 0x21f   : > { %3847 = vrot.lane.b32.xlu0 %v3767_v19, %s5545_s6  ;;  %v4640_v22 = vpop.f32.mrf.mxu2  ;;  %v3666_v19 = vsel %vm2126_vm7, %v3658_v47, %v7658_v4  ;;  %v3781_v4 = vpack.c.b16 %v7841_v52, %v7752_v14  ;;  %v1374_v14 = vsel %vm345_vm1, %v1372_v63, %v1373_v42  ;;  %v3831_v42 = vpack.c.b16 %v3830_v60, %v7815_v9  ;;  %v9460_v9 = vld [vmem:[#allocation19_spill] sm:$0xff] }
 0x220   : > { %v4796_v59 = vadd.f32 %v4640_v22, %v4221_v1  ;;  %v1329_v1 = vrot.slane %v1277_v30, 1  ;;  %v9459_v22 = vld [vmem:[#allocation20_spill] sm:$0xff]  ;;  %v1412_v37 = vpack.c.bf16 %v1374_v14, %v1374_v14 }
 0x221   : > { %v3600_v56 = vpop.permute.xlu0 %3599  ;;  %3816 = vrot.lane.b32.xlu2 %v3809_v3, %s5542_s30  ;;  %v9458_v3 = vld [vmem:[#allocation5_spill] sm:$0xff] }
 0x222   : > { %v4864_v29 = vadd.f32 %v7703_v12, %v4796_v59  ;;  %v3674_v33 = vsel %vm2135_vm8, %v3666_v19, %v3600_v56  ;;  %v1362_v59 = vpack.c.bf16 %v1324_v61, %v1324_v61  ;;  %v3820_v56 = vpack.c.b16 %v3819_v38, %v7841_v52 }
 0x223   : > { %v3682_v46 = vsel %vm2144_vm9, %v3674_v33, %v3611_v34  ;;  %v7861_v27 = vpop.permute.xlu2 %3578  ;;  %v952_v34 = vpack.c.bf16 %v9459_v22, %v9459_v22  ;;  %v7906_v33 = vunpack.c.l.b16 %v1413_v51  ;;  %v4226_v52 = vadd.f32 %v7664_v10, %v4030_v23 }
 0x224   : > { %4928 = vst.msk [vmem:[%s7722_s17 + $0x18] sm:$0xff] %vm2153_vm10, %v4864_v29  ;;  %v7872_v49 = vsel %vm2153_vm10, %v3682_v46, %v7694_v25  ;;  %3802 = vrot.lane.b32.xlu1 %v3795_v16, %s5541_s29  ;;  %v1328_v25 = vrot.slane %v7857_v8, 1  ;;  %v951_v16 = vpack.c.bf16 %v9458_v3, %v9458_v3  ;;  %v3313_v29 = vunpack.c.l.b16 %v1412_v37 }
 0x225   : > { %5319 = vmatmul.msk.bf16.gmra.mxu3 %vm3940_vm11, %v7872_v49  ;;  %v7899_v18 = vunpack.c.l.b16 %v952_v34  ;;  %v3285_v46 = vunpack.c.l.b16 %v1362_v59  ;;  %v1293_v10 = vpack.c.bf16 %v7828_v32, %v7828_v32  ;;  %v1379_v22 = vrot.slane %v1277_v30, 2 }
 0x226   : > { %v3549_v47 = vpop.permute.xlu1 %3548  ;;  %v1330_v28 = vsel %vm294_vm0, %v1328_v25, %v1329_v1  ;;  %v7897_v48 = vunpack.c.l.b16 %v951_v16  ;;  %v4033_v25 = vpop.f32.mrf.mxu0  ;;  %v1378_v16 = vrot.slane %v7857_v8, 2  ;;  %v1294_v37 = vpack.c.bf16 %v7857_v8, %v7857_v8 }
 0x227   : > { %3788 = vrot.lane.b32.xlu0 %v3781_v4, %s5538_s26  ;;  %v4643_v5 = vpop.f32.mrf.mxu2  ;;  %v3286_v4 = vunpack.c.l.b16 %v1363_v17  ;;  %v1364_v40 = vpack.c.bf16 %v1330_v28, %v1330_v28  ;;  %v1278_v32 = vunpack.c.l.bf16 %v5207_v15  ;;  %v7940_v17 = vunpack.c.l.b16 %v1293_v10 }
 0x228   : > { %v4797_v53 = vadd.f32 %v4643_v5, %v4224_v7  ;;  %v2897_v7 = vpack.c.b16 %v7899_v18, %v7897_v48  ;;  %v3321_v5 = vpack.c.b16 %v7906_v33, %v3313_v29  ;;  %v1380_v30 = vsel %vm345_vm1, %v1378_v16, %v1379_v22 }
 0x229   : > { %v3521_v63 = vpop.permute.xlu0 %3520  ;;  %3849 = vrot.lane.b32.xlu2 %v3842_v35, %s5545_s6  ;;  %v3293_v38 = vpack.c.b16 %v3286_v4, %v3285_v46  ;;  %v7916_v3 = vunpack.c.l.b16 %v1364_v40  ;;  %v3267_v8 = vunpack.c.l.b16 %v1294_v37  ;;  %v9462_v46 = vld [vmem:[#allocation13_spill] sm:$0xff]  ;;  %v1381_v37 = vrot.slane %v1278_v32, 2 }
 0x22a   : > { %v4865_v57 = vadd.f32 %v7703_v12, %v4797_v53  ;;  %v3635_v39 = vsel %vm2086_vm3, %v9460_v9, %v3521_v63  ;;  %v1279_v63 = vunpack.c.l.bf16 %v5208_v36 }
 0x22b   : > { %v7894_v19 = vpop.permute.xlu2 %3614  ;;  %v3644_v35 = vsel %vm2099_vm4, %v3635_v39, %v3549_v47  ;;  %v3349_v44 = vpack.c.b16 %v7916_v3, %v3286_v4  ;;  %v9463_v4 = vld [vmem:[#allocation30_spill] sm:$0xff] }
 0x22c   : > { %4929 = vst.msk [vmem:[%s7722_s17 + $0x20] sm:$0xff] %vm2153_vm10, %v4865_v57  ;;  %3838 = vrot.lane.b32.xlu1 %v3831_v42, %s5544_s5  ;;  %v3652_v47 = vsel %vm2108_vm5, %v3644_v35, %v7739_v55  ;;  %v4229_v55 = vadd.f32 %v7708_v45, %v4033_v25  ;;  %v1331_v57 = vrot.slane %v1278_v32, 1  ;;  %v1332_v28 = vrot.slane %v1279_v63, 1 }
 0x22d   : > { %v2911_v40 = vpack.c.b16 %v9463_v4, %v9462_v46 }
 0x22e   : > { %v3591_v14 = vpop.permute.xlu1 %3590  ;;  %v1333_v15 = vsel %vm294_vm0, %v1331_v57, %v1332_v28 }
 0x22f   : > { %3827 = vrot.lane.b32.xlu0 %v3820_v56, %s5543_s4  ;;  %v4645_v60 = vpop.f32.mrf.mxu2  ;;  %v9461_v56 = vld [vmem:[#allocation18_spill] sm:$0xff] }
 0x230   : > { %v4798_v61 = vadd.f32 %v4645_v60, %v4226_v52  ;;  %v953_v9 = vpack.c.bf16 %v9461_v56, %v9461_v56  ;;  %v1414_v52 = vpack.c.bf16 %v1380_v30, %v1380_v30  ;;  %v4035_v60 = vpop.f32.mrf.mxu0  ;;  %v9466_v30 = vld [vmem:[#allocation34_spill] sm:$0xff] }
 0x231   : > { %v3577_v1 = vpop.permute.xlu0 %3576  ;;  %2901 = vrot.lane.b32.xlu2 %v2897_v7, %s5538_s26 }
 0x232   : > { %v4866_v23 = vadd.f32 %v7703_v12, %v4798_v61  ;;  %v3660_v34 = vsel %vm2117_vm6, %v3652_v47, %v3577_v1  ;;  %v3335_v61 = vpack.c.b16 %v3267_v8, %v7940_v17  ;;  %v3315_v25 = vunpack.c.l.b16 %v1414_v52  ;;  %v5210_v52 = vld [vmem:[%s5594_s25 + $0x204] sm:$0x1] }
 0x233   : > { %v7928_v53 = vpop.permute.xlu2 %3768  ;;  %v3668_v42 = vsel %vm2126_vm7, %v3660_v34, %v3591_v14  ;;  %v4231_v1 = vadd.f32 %v7764_v26, %v4035_v60 }
 0x234   : > { %4930 = vst.msk [vmem:[%s7722_s17 + $0x28] sm:$0xff] %vm2153_vm10, %v4866_v23  ;;  %3325 = vrot.lane.b32.xlu1 %v3321_v5, %s5540_s28  ;;  %v3676_v39 = vsel %vm2135_vm8, %v3668_v42, %v7787_v2  ;;  %v7956_v2 = vunpack.c.l.b16 %v953_v9  ;;  %v1365_v5 = vpack.c.bf16 %v1333_v15, %v1333_v15  ;;  %v3363_v22 = vpack.c.b16 %v3315_v25, %v7906_v33  ;;  %v9464_v42 = vld [vmem:[#allocation10_spill] sm:$0xff]  ;;  %v5209_v9 = vld [vmem:[%s5594_s25 + $0x200] sm:$0xf] }
 0x235   : > { %v7997_v46 = vunpack.c.l.bf16 %v5209_v9  ;;  %v1281_v15 = vunpack.c.l.bf16 %v5210_v52 }
 0x236   : > { %v3624_v59 = vpop.permute.xlu1 %3623  ;;  %v7969_v23 = vpack.c.b16 %v7956_v2, %v7899_v18  ;;  %v7975_v26 = vunpack.c.l.b16 %v1365_v5  ;;  %v9465_v18 = vld [vmem:[#allocation36_spill] sm:$0xff] }
 0x237   : > { %3297 = vrot.lane.b32.xlu0 %v3293_v38, %s5539_s27  ;;  %v4648_v51 = vpop.f32.mrf.mxu2 }
 0x238   : > { %v4799_v45 = vadd.f32 %v4648_v51, %v4229_v55  ;;  %v1382_v55 = vrot.slane %v1279_v63, 2  ;;  %v2925_v51 = vpack.c.b16 %v9466_v30, %v9465_v18  ;;  %v3294_v63 = vpack.c.b16 %v7975_v26, %v7916_v3  ;;  %v4038_v30 = vpop.f32.mrf.mxu0 }
 0x239   : > { %v3613_v29 = vpop.permute.xlu0 %3612  ;;  %3353 = vrot.lane.b32.xlu2 %v3349_v44, %s5541_s29  ;;  %v3638_v44 = vsel %vm2086_vm3, %v9464_v42, %v7821_v24  ;;  %v1334_v42 = vrot.slane %v7997_v46, 1 }
 0x23a   : > { %v4867_v7 = vadd.f32 %v7703_v12, %v4799_v45  ;;  %v3684_v35 = vsel %vm2144_vm9, %v3676_v39, %v3613_v29  ;;  %v1383_v28 = vsel %vm345_vm1, %v1381_v37, %v1382_v55 }
 0x23b   : > { %v7952_v14 = vsel %vm2153_vm10, %v3684_v35, %v3624_v59  ;;  %v7962_v36 = vpop.permute.xlu2 %3810  ;;  %v1295_v59 = vpack.c.bf16 %v1278_v32, %v1278_v32  ;;  %v1415_v39 = vpack.c.bf16 %v1383_v28, %v1383_v28  ;;  %v9467_v35 = vld [vmem:[#allocation33_spill] sm:$0xff] }
 0x23c   : > { %4931 = vst.msk [vmem:[%s7722_s17 + $0x30] sm:$0xff] %vm2153_vm10, %v4867_v7  ;;  %5320 = vmatmul.msk.bf16.gmra.mxu3 %vm3940_vm11, %v7952_v14  ;;  %2915 = vrot.lane.b32.xlu1 %v2911_v40, %s5541_s29  ;;  %v1634_v40 = vpack.c.bf16 %v7446_v54, %v7446_v54  ;;  %v9468_v54 = vld [vmem:[#allocation24_spill] sm:$0xff] }
 0x23d   : > { %v3268_v32 = vunpack.c.l.b16 %v1295_v59  ;;  %v8009_v60 = vunpack.c.l.b16 %v1415_v39  ;;  %v1042_v5 = vrot.slane %v9468_v54, 2  ;;  %v954_v18 = vpack.c.bf16 %v9468_v54, %v9468_v54  ;;  %v4233_v59 = vpop.f32.mrf.mxu1 }
 0x23e   : > { %v3565_v10 = vpop.permute.xlu1 %3564 }
 0x23f   : > { %3339 = vrot.lane.b32.xlu0 %v3335_v61, %s5538_s26  ;;  %v4650_v38 = vpop.f32.mrf.mxu2  ;;  %v8000_v4 = vpack.c.b16 %v3268_v32, %v3267_v8  ;;  %v1296_v61 = vpack.c.bf16 %v7997_v46, %v7997_v46  ;;  %v3708_v8 = vunpack.c.l.b16 %v1634_v40 }
 0x240   : > { %v4800_v47 = vadd.f32 %v4650_v38, %v4231_v1  ;;  %v9469_v38 = vld [vmem:[#allocation12_spill] sm:$0xff]  ;;  %v4040_v54 = vpop.f32.mrf.mxu0 }
 0x241   : > { %v3551_v16 = vpop.permute.xlu0 %3550  ;;  %2940 = vrot.lane.b32.xlu2 %v7969_v23, %s5543_s4  ;;  %v8026_v55 = vunpack.c.l.b16 %v1296_v61 }
 0x242   : > { %v4868_v34 = vadd.f32 %v7703_v12, %v4800_v47  ;;  %v3646_v33 = vsel %vm2099_vm4, %v3638_v44, %v3551_v16  ;;  %v1335_v44 = vrot.slane %v1281_v15, 1 }
 0x243   : > { %v7985_v57 = vpop.permute.xlu2 %3843  ;;  %v3654_v24 = vsel %vm2108_vm5, %v3646_v33, %v3565_v10  ;;  %v9470_v10 = vunpack.c.l.bf16 %v9469_v38  ;;  %v3336_v33 = vpack.c.b16 %v8026_v55, %v3268_v32 }
 0x244   : > { %4932 = vst.msk [vmem:[%s7722_s17 + $0x38] sm:$0xff] %vm2153_vm10, %v4868_v34  ;;  %3367 = vrot.lane.b32.xlu1 %v3363_v22, %s5542_s30  ;;  %v3662_v29 = vsel %vm2117_vm6, %v3654_v24, %v7861_v27  ;;  %v3322_v34 = vpack.c.b16 %v8009_v60, %v3315_v25  ;;  %v1336_v28 = vsel %vm294_vm0, %v1334_v42, %v1335_v44  ;;  %v8040_v24 = vunpack.c.l.b16 %v954_v18  ;;  %v9474_v42 = vld [vmem:[#allocation23_spill] sm:$0xff] }
 0x245   : > { %v1043_v47 = vrot.slane %v9470_v10, 2  ;;  %v9475_v44 = vunpack.c.l.bf16 %v9474_v42 }
 0x246   : > { %v3604_v56 = vpop.permute.xlu1 %3603 }
 0x247   : > { %2929 = vrot.lane.b32.xlu0 %v2925_v51, %s5542_s30  ;;  %v3716_v51 = vpack.c.b16 %v7544_v13, %v3708_v8  ;;  %v1384_v8 = vrot.slane %v7997_v46, 2  ;;  %v9473_v46 = vld [vmem:[#allocation25_spill] sm:$0xff]  ;;  %v1046_v18 = vrot.slane %v9475_v44, 2 }
 0x249   : > { %v3593_v45 = vpop.permute.xlu0 %3592  ;;  %3389 = vrot.lane.b32.xlu2 %v3294_v63, %s5544_s5 }
 0x24a   : > { %v3670_v3 = vsel %vm2126_vm7, %v3662_v29, %v3593_v45  ;;  %v5211_v45 = vld [vmem:[%s5594_s25 + $0x208] sm:$0xf]  ;;  %v2898_v29 = vpack.c.b16 %v8040_v24, %v7956_v2 }
 0x24b   : > { %v8005_v7 = vpop.permute.xlu2 %3784  ;;  %v3678_v27 = vsel %vm2135_vm8, %v3670_v3, %v3604_v56  ;;  %v9471_v56 = vld [vmem:[#allocation37_spill] sm:$0xff]  ;;  %v1366_v3 = vpack.c.bf16 %v1336_v28, %v1336_v28  ;;  %v8053_v52 = vunpack.c.l.bf16 %v5211_v45 }
 0x24c   : > { %2951 = vrot.lane.b32.xlu1 %v9467_v35, %s5544_s5  ;;  %v3686_v22 = vsel %vm2144_vm9, %v3678_v27, %v7894_v19  ;;  %v1044_v19 = vsel %vm345_vm1, %v1042_v5, %v1043_v47  ;;  %v5212_v27 = vld [vmem:[%s5594_s25 + $0x20c] sm:$0x1]  ;;  %v9472_v5 = vld [vmem:[#allocation35_spill] sm:$0xff] }
 0x24d   : > { %v8061_v2 = vunpack.c.l.b16 %v1366_v3  ;;  %v1297_v10 = vpack.c.bf16 %v8053_v52, %v8053_v52  ;;  %v1283_v47 = vunpack.c.l.bf16 %v5212_v27 }
 0x24e   : > { %v3741_v1 = vpop.permute.xlu1 %3740 }
 0x24f   : > { %3378 = vrot.lane.b32.xlu0 %v8000_v4, %s5543_s4  ;;  %v3853_v13 = vsel %vm2086_vm3, %v3716_v51, %v3741_v1  ;;  %v1385_v1 = vrot.slane %v1281_v15, 2  ;;  %v1045_v15 = vrot.slane %v9473_v46, 2  ;;  %v3350_v28 = vpack.c.b16 %v8061_v2, %v7975_v26 }
 0x250   : > { %v3864_v32 = vsel %vm2099_vm4, %v3853_v13, %v7928_v53  ;;  %v8081_v13 = vunpack.c.l.b16 %v1297_v10 }
 0x251   : > { %v3626_v16 = vpop.permute.xlu0 %3625  ;;  %3299 = vrot.lane.b32.xlu2 %v3294_v63, %s5539_s27  ;;  %v1074_v63 = vpack.c.bf16 %v1044_v19, %v1044_v19  ;;  %v1386_v51 = vsel %vm345_vm1, %v1384_v8, %v1385_v1  ;;  %v955_v19 = vpack.c.bf16 %v9473_v46, %v9473_v46 }
 0x252   : > { %v8023_v37 = vsel %vm2153_vm10, %v3686_v22, %v3626_v16  ;;  %v4235_v16 = vpop.f32.mrf.mxu1 }
 0x253   : > { %5321 = vmatmul.msk.bf16.gmra.mxu3 %vm3940_vm11, %v8023_v37  ;;  %v8035_v25 = vpop.permute.xlu2 %3823  ;;  %v8051_v40 = vunpack.c.l.b16 %v1074_v63 }
 0x254   : > { %3400 = vrot.lane.b32.xlu1 %v3322_v34, %s5545_s6 }
 0x255   : > { %v2926_v38 = vpack.c.b16 %v8051_v40, %v9472_v5 }
 0x256   : > { %v3797_v9 = vpop.permute.xlu1 %3796 }
 0x257   : > { %2962 = vrot.lane.b32.xlu0 %v9471_v56, %s5545_s6  ;;  %v1337_v56 = vrot.slane %v8053_v52, 1 }
 0x259   : > { %v3783_v39 = vpop.permute.xlu0 %3782  ;;  %3341 = vrot.lane.b32.xlu2 %v3336_v33, %s5538_s26 }
 0x25a   : > { %v3872_v35 = vsel %vm2108_vm5, %v3864_v32, %v3783_v39  ;;  %v9476_v39 = vld [vmem:[#allocation31_spill] sm:$0xff]  ;;  %v1416_v32 = vpack.c.bf16 %v1386_v51, %v1386_v51  ;;  %v4238_v46 = vpop.f32.mrf.mxu1  ;;  %v4236_v51 = vadd.f32 %v4235_v16, %v4040_v54 }
 0x25b   : > { %v8057_v61 = vpop.permute.xlu2 %3744  ;;  %v3880_v53 = vsel %vm2117_vm6, %v3872_v35, %v3797_v9  ;;  %v1338_v9 = vrot.slane %v1283_v47, 1  ;;  %v4234_v35 = vadd.f32 %v4233_v59, %v4038_v30  ;;  %v8102_v59 = vunpack.c.l.b16 %v955_v19  ;;  %v5213_v16 = vld [vmem:[%s5594_s25 + $0x210] sm:$0xf] }
 0x25c   : > { %2903 = vrot.lane.b32.xlu1 %v2898_v29, %s5538_s26  ;;  %v3888_v33 = vsel %vm2126_vm7, %v3880_v53, %v7962_v36  ;;  %v9477_v29 = vld [vmem:[#allocation28_spill] sm:$0xff]  ;;  %v1047_v36 = vsel %vm345_vm1, %v1045_v15, %v1046_v18  ;;  %v8099_v53 = vpack.c.b16 %v8081_v13, %v8026_v55  ;;  %v8105_v10 = vunpack.c.l.b16 %v1416_v32 }
 0x25d   : > { %v2912_v3 = vpack.c.b16 %v9477_v29, %v9476_v39  ;;  %v1075_v5 = vpack.c.bf16 %v1047_v36, %v1047_v36  ;;  %v1339_v30 = vsel %vm294_vm0, %v1337_v56, %v1338_v9  ;;  %v8116_v44 = vpack.c.b16 %v8102_v59, %v8040_v24 }
 0x25e   : > { %v3833_v22 = vpop.permute.xlu1 %3832  ;;  %v1367_v42 = vpack.c.bf16 %v1339_v30, %v1339_v30  ;;  %v3364_v18 = vpack.c.b16 %v8105_v10, %v8009_v60  ;;  %v8143_v29 = vunpack.c.l.bf16 %v5213_v16 }
 0x25f   : > { %3327 = vrot.lane.b32.xlu0 %v3322_v34, %s5540_s28  ;;  %v8112_v55 = vunpack.c.l.b16 %v1075_v5 }
 0x260   : > { %v8127_v56 = vunpack.c.l.b16 %v1367_v42 }
 0x261   : > { %v3822_v63 = vpop.permute.xlu0 %3821  ;;  %2931 = vrot.lane.b32.xlu2 %v2926_v38, %s5542_s30  ;;  %v2885_v60 = vpack.c.b16 %v8112_v55, %v8051_v40 }
 0x262   : > { %v3896_v34 = vsel %vm2135_vm8, %v3888_v33, %v3822_v63  ;;  %v1387_v63 = vrot.slane %v8053_v52, 2  ;;  %v3295_v39 = vpack.c.b16 %v8127_v56, %v8061_v2 }
 0x263   : > { %v3904_v45 = vsel %vm2144_vm9, %v3896_v34, %v3833_v22  ;;  %v8092_v27 = vpop.permute.xlu2 %3800 }
 0x264   : > { %v8090_v26 = vsel %vm2153_vm10, %v3904_v45, %v7985_v57  ;;  %v4653_v8 = vpop.f32.mrf.mxu2  ;;  %3355 = vrot.lane.b32.xlu1 %v3350_v28, %s5541_s29  ;;  %v4043_v57 = vpop.f32.mrf.mxu0  ;;  %v1388_v28 = vrot.slane %v1283_v47, 2 }
 0x265   : > { %9478 = vst [vmem:[#allocation6_spill] sm:$0xff] %v8090_v26  ;;  %5322 = vmatmul.msk.bf16.gmra.mxu3 %vm3940_vm11, %v8090_v26  ;;  %v4801_v1 = vadd.f32 %v4653_v8, %v4234_v35  ;;  %v5214_v35 = vld [vmem:[%s5594_s25 + $0x214] sm:$0x1]  ;;  %v4239_v8 = vadd.f32 %v4238_v46, %v4043_v57  ;;  %v9480_v57 = vld [vmem:[#allocation9_spill] sm:$0xff] }
 0x266   : > { %v3771_v38 = vpop.permute.xlu1 %3770  ;;  %v1389_v47 = vsel %vm345_vm1, %v1387_v63, %v1388_v28  ;;  %v1048_v46 = vrot.slane %v9480_v57, 2 }
 0x267   : > { %2917 = vrot.lane.b32.xlu0 %v2912_v3, %s5541_s29  ;;  %v4869_v22 = vadd.f32 %v7703_v12, %v4801_v1  ;;  %v4240_v3 = vpop.f32.mrf.mxu1  ;;  %v1417_v36 = vpack.c.bf16 %v1389_v47, %v1389_v47 }
 0x269   : > { %v3743_v15 = vpop.permute.xlu0 %3742  ;;  %4933 = vst.msk [vmem:[%s7722_s17 + $0x40] sm:$0xff] %vm2153_vm10, %v4869_v22  ;;  %3380 = vrot.lane.b32.xlu2 %v8099_v53, %s5543_s4  ;;  %v9479_v22 = vld [vmem:[#allocation32_spill] sm:$0xff]  ;;  %v8155_v42 = vunpack.c.l.b16 %v1417_v36 }
 0x26a   : > { %v3856_v19 = vsel %vm2086_vm3, %v7590_v6, %v3743_v15 }
 0x26b   : > { %v8122_v33 = vpop.permute.xlu2 %3836  ;;  %v3866_v54 = vsel %vm2099_vm4, %v3856_v19, %v3771_v38  ;;  %v1285_v38 = vunpack.c.l.bf16 %v5214_v35 }
 0x26c   : > { %v4655_v34 = vpop.f32.mrf.mxu2  ;;  %2942 = vrot.lane.b32.xlu1 %v8116_v44, %s5543_s4  ;;  %v4045_v9 = vpop.f32.mrf.mxu0  ;;  %v3874_v40 = vsel %vm2108_vm5, %v3866_v54, %v8005_v7  ;;  %v1298_v7 = vpack.c.bf16 %v8143_v29, %v8143_v29 }
 0x26d   : > { %v4802_v24 = vadd.f32 %v4655_v34, %v4236_v51  ;;  %v1341_v16 = vrot.slane %v1285_v38, 1 }
 0x26e   : > { %v3813_v6 = vpop.permute.xlu1 %3812  ;;  %v8167_v54 = vunpack.c.l.b16 %v1298_v7 }
 0x26f   : > { %3369 = vrot.lane.b32.xlu0 %v3364_v18, %s5542_s30  ;;  %v4870_v52 = vadd.f32 %v7703_v12, %v4802_v24  ;;  %v9481_v18 = vld [vmem:[#allocation7_spill] sm:$0xff]  ;;  %v4243_v36 = vpop.f32.mrf.mxu1 }
 0x270   : > { %v9482_v51 = vunpack.c.l.bf16 %v9481_v18  ;;  %v8204_v18 = vld [vmem:[%s5594_s25 + $0x21c] sm:$0x1] }
 0x271   : > { %v3799_v45 = vpop.permute.xlu0 %3798  ;;  %4934 = vst.msk [vmem:[%s7722_s17 + $0x48] sm:$0xff] %vm2153_vm10, %v4870_v52  ;;  %2964 = vrot.lane.b32.xlu2 %v2885_v60, %s5545_s6  ;;  %v956_v52 = vpack.c.bf16 %v9480_v57, %v9480_v57 }
 0x272   : > { %v3882_v32 = vsel %vm2117_vm6, %v3874_v40, %v3799_v45  ;;  %v1049_v19 = vrot.slane %v9482_v51, 2 }
 0x273   : > { %v8147_v1 = vpop.permute.xlu2 %3774  ;;  %v3890_v2 = vsel %vm2126_vm7, %v3882_v32, %v3813_v6  ;;  %v1340_v6 = vrot.slane %v8143_v29, 1  ;;  %v4241_v32 = vadd.f32 %v4240_v3, %v4045_v9  ;;  %v8187_v9 = vunpack.c.l.b16 %v956_v52 }
 0x274   : > { %v4658_v5 = vpop.f32.mrf.mxu2  ;;  %3391 = vrot.lane.b32.xlu1 %v3295_v39, %s5544_s5  ;;  %v3898_v28 = vsel %vm2135_vm8, %v3890_v2, %v8035_v25  ;;  %v4048_v47 = vpop.f32.mrf.mxu0  ;;  %v3323_v25 = vpack.c.b16 %v8155_v42, %v8105_v10  ;;  %v1050_v40 = vsel %vm345_vm1, %v1048_v46, %v1049_v19  ;;  %v3859_v46 = vsel %vm2086_vm3, %v7634_v0, %v8057_v61 }
 0x275   : > { %v4803_v30 = vadd.f32 %v4658_v5, %v4239_v8  ;;  %v3337_v5 = vpack.c.b16 %v8167_v54, %v8081_v13  ;;  %v1076_v2 = vpack.c.bf16 %v1050_v40, %v1050_v40  ;;  %v1342_v10 = vsel %vm294_vm0, %v1340_v6, %v1341_v16  ;;  %v9484_v40 = vld [vmem:[#allocation14_spill] sm:$0xff] }
 0x276   : > { %v3846_v15 = vpop.permute.xlu1 %3845  ;;  %v4244_v51 = vadd.f32 %v4243_v36, %v4048_v47  ;;  %v1287_v52 = vunpack.c.l.bf16 %v8204_v18  ;;  %v9485_v36 = vld [vmem:[#allocation11_spill] sm:$0xff] }
 0x277   : > { %2953 = vrot.lane.b32.xlu0 %v9479_v22, %s5544_s5  ;;  %v4871_v63 = vadd.f32 %v7703_v12, %v4803_v30  ;;  %v5215_v30 = vld [vmem:[%s5594_s25 + $0x218] sm:$0xf]  ;;  %v8198_v13 = vunpack.c.l.b16 %v1076_v2  ;;  %v4245_v47 = vpop.f32.mrf.mxu1 }
 0x278   : > { %v8193_v57 = vunpack.c.l.bf16 %v5215_v30 }
 0x279   : > { %v3835_v34 = vpop.permute.xlu0 %3834  ;;  %4935 = vst.msk [vmem:[%s7722_s17 + $0x50] sm:$0xff] %vm2153_vm10, %v4871_v63  ;;  %2891 = vrot.lane.b32.xlu2 %v2885_v60, %s5540_s28  ;;  %v2927_v61 = vpack.c.b16 %v8198_v13, %v8112_v55 }
 0x27a   : > { %v3906_v24 = vsel %vm2144_vm9, %v3898_v28, %v3835_v34  ;;  %v1391_v28 = vrot.slane %v1285_v38, 2  ;;  %v1299_v16 = vpack.c.bf16 %v8193_v57, %v8193_v57 }
 0x27b   : > { %v8173_v45 = vsel %vm2153_vm10, %v3906_v24, %v3846_v15  ;;  %v8180_v60 = vpop.permute.xlu2 %3816  ;;  %v1368_v15 = vpack.c.bf16 %v1342_v10, %v1342_v10 }
 0x27c   : > { %9483 = vst [vmem:[#allocation22_spill] sm:$0xff] %v8173_v45  ;;  %5323 = vmatmul.msk.bf16.gmra.mxu3 %vm3940_vm11, %v8173_v45  ;;  %v4660_v35 = vpop.f32.mrf.mxu2  ;;  %3301 = vrot.lane.b32.xlu1 %v3295_v39, %s5539_s27  ;;  %v2899_v39 = vpack.c.b16 %v8187_v9, %v8102_v59  ;;  %v1390_v59 = vrot.slane %v8143_v29, 2  ;;  %v4050_v34 = vpop.f32.mrf.mxu0  ;;  %v8227_v30 = vunpack.c.l.b16 %v1299_v16 }
 0x27d   : > { %v4804_v8 = vadd.f32 %v4660_v35, %v4241_v32  ;;  %v8211_v6 = vunpack.c.l.b16 %v1368_v15  ;;  %v1051_v32 = vrot.slane %v9484_v40, 2  ;;  %v9486_v35 = vunpack.c.l.bf16 %v9485_v36  ;;  %v9487_v15 = vld [vmem:[#allocation29_spill] sm:$0xff] }
 0x27e   : > { %v3787_v3 = vpop.permute.xlu1 %3786  ;;  %v1392_v2 = vsel %vm345_vm1, %v1390_v59, %v1391_v28 }
 0x27f   : > { %3402 = vrot.lane.b32.xlu0 %v3323_v25, %s5545_s6  ;;  %v4872_v7 = vadd.f32 %v7703_v12, %v4804_v8  ;;  %v1052_v8 = vrot.slane %v9486_v35, 2  ;;  %v3351_v55 = vpack.c.b16 %v8211_v6, %v8127_v56  ;;  %v1418_v18 = vpack.c.bf16 %v1392_v2, %v1392_v2  ;;  %v4248_v36 = vpop.f32.mrf.mxu1 }
 0x281   : > { %v3773_v22 = vpop.permute.xlu0 %3772  ;;  %4936 = vst.msk [vmem:[%s7722_s17 + $0x58] sm:$0xff] %vm2153_vm10, %v4872_v7  ;;  %3343 = vrot.lane.b32.xlu2 %v3337_v5, %s5538_s26  ;;  %v1343_v7 = vrot.slane %v8193_v57, 1 }
 0x282   : > { %v3868_v19 = vsel %vm2099_vm4, %v3859_v46, %v3773_v22  ;;  %v1344_v22 = vrot.slane %v1287_v52, 1  ;;  %v9488_v46 = vld [vmem:[#allocation21_spill] sm:$0xff] }
 0x283   : > { %v8207_v63 = vpop.permute.xlu2 %3849  ;;  %v3876_v29 = vsel %vm2108_vm5, %v3868_v19, %v3787_v3  ;;  %v957_v3 = vpack.c.bf16 %v9484_v40, %v9484_v40  ;;  %v2913_v56 = vpack.c.b16 %v9488_v46, %v9487_v15  ;;  %v4246_v19 = vadd.f32 %v4245_v47, %v4050_v34 }
 0x284   : > { %v4663_v24 = vpop.f32.mrf.mxu2  ;;  %2905 = vrot.lane.b32.xlu1 %v2899_v39, %s5538_s26  ;;  %v4053_v40 = vpop.f32.mrf.mxu0  ;;  %v8253_v47 = vunpack.c.l.b16 %v1418_v18 }
 0x285   : > { %v4805_v0 = vadd.f32 %v4663_v24, %v4244_v51  ;;  %v1053_v51 = vsel %vm345_vm1, %v1051_v32, %v1052_v8 }
 0x286   : > { %v3826_v38 = vpop.permute.xlu1 %3825 }
 0x287   : > { %3329 = vrot.lane.b32.xlu0 %v3323_v25, %s5540_s28  ;;  %v4873_v5 = vadd.f32 %v7703_v12, %v4805_v0  ;;  %v3884_v25 = vsel %vm2117_vm6, %v3876_v29, %v8092_v27  ;;  %v8246_v27 = vpack.c.b16 %v8227_v30, %v8167_v54  ;;  %v1077_v0 = vpack.c.bf16 %v1053_v51, %v1053_v51  ;;  %v4250_v51 = vpop.f32.mrf.mxu1 }
 0x288   : > { %v8250_v29 = vunpack.c.l.b16 %v957_v3  ;;  %v1394_v3 = vrot.slane %v1287_v52, 2  ;;  %v5476_v52 = vld [vmem:[#allocation2] ss:$0 sm:$0xff] }
 0x289   : > { %v3815_v10 = vpop.permute.xlu0 %3814  ;;  %4937 = vst.msk [vmem:[%s7722_s17 + $0x60] sm:$0xff] %vm2153_vm10, %v4873_v5  ;;  %2933 = vrot.lane.b32.xlu2 %v2927_v61, %s5542_s30  ;;  %v1345_v61 = vsel %vm294_vm0, %v1343_v7, %v1344_v22  ;;  %v8265_v5 = vunpack.c.l.b16 %v1077_v0 }
 0x28a   : > { %v3892_v39 = vsel %vm2126_vm7, %v3884_v25, %v3815_v10  ;;  %v8269_v2 = vpack.c.b16 %v8250_v29, %v8187_v9 }
 0x28b   : > { %v8241_v59 = vpop.permute.xlu2 %2901  ;;  %v3900_v24 = vsel %vm2135_vm8, %v3892_v39, %v3826_v38  ;;  %v1369_v38 = vpack.c.bf16 %v1345_v61, %v1345_v61  ;;  %v2886_v22 = vpack.c.b16 %v8265_v5, %v8198_v13  ;;  %v5177_v13 = vld [vmem:[%s5594_s25 + $0x180] sm:$0xf] }
 0x28c   : > { %v4665_v28 = vpop.f32.mrf.mxu2  ;;  %3357 = vrot.lane.b32.xlu1 %v3351_v55, %s5541_s29  ;;  %v3908_v54 = vsel %vm2144_vm9, %v3900_v24, %v8122_v33  ;;  %v4249_v33 = vadd.f32 %v4248_v36, %v4053_v40  ;;  %v1393_v55 = vrot.slane %v8193_v57, 2  ;;  %v4055_v46 = vpop.f32.mrf.mxu0  ;;  %v5217_v24 = vld [vmem:[%s5594_s25 + $0x220] sm:$0xf]  ;;  %v5178_v40 = vld [vmem:[%s5594_s25 + $0x184] sm:$0x1] }
 0x28d   : > { %v4806_v16 = vadd.f32 %v4665_v28, %v4246_v19  ;;  %v8280_v9 = vunpack.c.l.b16 %v1369_v38  ;;  %v4251_v0 = vadd.f32 %v4250_v51, %v4055_v46  ;;  %v1288_v36 = vunpack.c.l.bf16 %v5217_v24  ;;  %v5179_v24 = vld [vmem:[%s5594_s25 + $0x188] sm:$0xf] }
 0x28e   : > { %v3747_v34 = vpop.permute.xlu1 %3746  ;;  %v1395_v15 = vsel %vm345_vm1, %v1393_v55, %v1394_v3 }
 0x28f   : > { %2919 = vrot.lane.b32.xlu0 %v2913_v56, %s5541_s29  ;;  %v4874_v32 = vadd.f32 %v7703_v12, %v4806_v16  ;;  %v3365_v12 = vpack.c.b16 %v8253_v47, %v8155_v42  ;;  %v3862_v42 = vsel %vm2086_vm3, %v7772_v11, %v3747_v34  ;;  %v3296_v18 = vpack.c.b16 %v8280_v9, %v8211_v6  ;;  %v5218_v16 = vld [vmem:[%s5594_s25 + $0x224] sm:$0x1] }
 0x290   : > { %v3870_v11 = vsel %vm2099_vm4, %v3862_v42, %v8147_v1  ;;  %v1419_v28 = vpack.c.bf16 %v1395_v15, %v1395_v15  ;;  %v946_v34 = vunpack.c.l.bf16 %v5177_v13  ;;  %v1300_v15 = vpack.c.bf16 %v1288_v36, %v1288_v36 }
 0x291   : > { %v3848_v35 = vpop.permute.xlu0 %3847  ;;  %4938 = vst.msk [vmem:[%s7722_s17 + $0x68] sm:$0xff] %vm2153_vm10, %v4874_v32  ;;  %3382 = vrot.lane.b32.xlu2 %v8246_v27, %s5543_s4 }
 0x292   : > { %v8261_v8 = vsel %vm2153_vm10, %v3908_v54, %v3848_v35  ;;  %v1289_v35 = vunpack.c.l.bf16 %v5218_v16  ;;  %v9490_v54 = vld [vmem:[#allocation27_spill] sm:$0xff]  ;;  %v8323_v51 = vunpack.c.l.b16 %v1300_v15  ;;  %v1054_v16 = vrot.slane %v946_v34, 2 }
 0x293   : > { %9489 = vst [vmem:[#allocation8_spill] sm:$0xff] %v8261_v8  ;;  %5324 = vmatmul.msk.bf16.gmra.mxu3 %vm3940_vm11, %v8261_v8  ;;  %v8275_v10 = vpop.permute.xlu2 %3353  ;;  %v9492_v15 = vld [vmem:[#allocation15_spill] sm:$0xff] }
 0x294   : > { %v4668_v25 = vpop.f32.mrf.mxu2  ;;  %2944 = vrot.lane.b32.xlu1 %v8269_v2, %s5543_s4 }
 0x295   : > { %v4807_v7 = vadd.f32 %v4668_v25, %v4249_v33  ;;  %v947_v33 = vunpack.c.l.bf16 %v5178_v40 }
 0x296   : > { %v3803_v57 = vpop.permute.xlu1 %3802 }
 0x297   : > { %3371 = vrot.lane.b32.xlu0 %v3365_v12, %s5542_s30  ;;  %v4875_v39 = vadd.f32 %v5476_v52, %v4807_v7  ;;  %v8306_v12 = vunpack.c.l.b16 %v1419_v28  ;;  %v958_v7 = vpack.c.bf16 %v946_v34, %v946_v34 }
 0x299   : > { %v3789_v56 = vpop.permute.xlu0 %3788  ;;  %4939 = vst.msk [vmem:[%s7722_s17 + $0x70] sm:$0xff] %vm2153_vm10, %v4875_v39  ;;  %2966 = vrot.lane.b32.xlu2 %v2886_v22, %s5545_s6  ;;  %v1347_v39 = vrot.slane %v1289_v35, 1 }
 0x29a   : > { %v3878_v19 = vsel %vm2108_vm5, %v3870_v11, %v3789_v56  ;;  %v1004_v56 = vrot.slane %v946_v34, 1  ;;  %v1005_v11 = vrot.slane %v947_v33, 1  ;;  %v1397_v34 = vrot.slane %v1289_v35, 2 }
 0x29b   : > { %v8299_v61 = vpop.permute.xlu2 %2940  ;;  %v3886_v1 = vsel %vm2117_vm6, %v3878_v19, %v3803_v57  ;;  %v1346_v57 = vrot.slane %v1288_v36, 1 }
 0x29c   : > { %v4670_v6 = vpop.f32.mrf.mxu2  ;;  %3393 = vrot.lane.b32.xlu1 %v3296_v18, %s5544_s5  ;;  %v3894_v3 = vsel %vm2126_vm7, %v3886_v1, %v8180_v60  ;;  %v1006_v28 = vsel %vm294_vm0, %v1004_v56, %v1005_v11  ;;  %v5219_v1 = vld [vmem:[%s5594_s25 + $0x228] sm:$0xf] }
 0x29d   : > { %v4808_v32 = vadd.f32 %v4670_v6, %v4251_v0  ;;  %v1055_v0 = vrot.slane %v947_v33, 2 }
 0x29e   : > { %v3839_v38 = vpop.permute.xlu1 %3838 }
 0x29f   : > { %2955 = vrot.lane.b32.xlu0 %v9490_v54, %s5544_s5  ;;  %v4876_v55 = vadd.f32 %v5476_v52, %v4808_v32  ;;  %v3324_v52 = vpack.c.b16 %v8306_v12, %v8253_v47  ;;  %v1348_v47 = vsel %vm294_vm0, %v1346_v57, %v1347_v39  ;;  %v5220_v32 = vld [vmem:[%s5594_s25 + $0x22c] sm:$0x1] }
 0x2a0   : > { %v1370_v6 = vpack.c.bf16 %v1348_v47, %v1348_v47  ;;  %v8345_v54 = vld [vmem:[%s5594_s25 + $0x18c] sm:$0x1] }
 0x2a1   : > { %v3828_v25 = vpop.permute.xlu0 %3827  ;;  %4940 = vst.msk [vmem:[%s7722_s17 + $0x78] sm:$0xff] %vm2153_vm10, %v4876_v55  ;;  %2893 = vrot.lane.b32.xlu2 %v2886_v22, %s5540_s28  ;;  %v8328_v22 = vunpack.c.l.b16 %v958_v7  ;;  %v8349_v55 = vunpack.c.l.bf16 %v5179_v24  ;;  %v1290_v7 = vunpack.c.l.bf16 %v5219_v1  ;;  %v8380_v1 = vld [vmem:[%s5594_s25 + $0x194] sm:$0x1] }
 0x2a2   : > { %v3902_v42 = vsel %vm2135_vm8, %v3894_v3, %v3828_v25  ;;  %v1396_v3 = vrot.slane %v1288_v36, 2  ;;  %v8355_v57 = vunpack.c.l.b16 %v1370_v6  ;;  %v1292_v36 = vpack.c.bf16 %v7823_v31, %v7823_v31 }
 0x2a3   : > { %v3910_v46 = vsel %vm2144_vm9, %v3902_v42, %v3839_v38  ;;  %v8321_v13 = vpop.permute.xlu2 %3389  ;;  %v1056_v38 = vsel %vm345_vm1, %v1054_v16, %v1055_v0  ;;  %v1291_v42 = vunpack.c.l.bf16 %v5220_v32  ;;  %v959_v11 = vpack.c.bf16 %v8349_v55, %v8349_v55 }
 0x2a4   : > { %v8319_v60 = vsel %vm2153_vm10, %v3910_v46, %v8207_v63  ;;  %3303 = vrot.lane.b32.xlu1 %v3296_v18, %s5539_s27  ;;  %v3338_v63 = vpack.c.b16 %v8323_v51, %v8227_v30  ;;  %v2900_v18 = vpack.c.b16 %v8328_v22, %v8250_v29  ;;  %v1028_v30 = vpack.c.bf16 %v1006_v28, %v1006_v28 }
 0x2a5   : > { %9491 = vst [vmem:[#allocation17_spill] sm:$0xff] %v8319_v60  ;;  %5325 = vmatmul.msk.bf16.gmra.mxu3 %vm3940_vm11, %v8319_v60  ;;  %v1078_v33 = vpack.c.bf16 %v1056_v38, %v1056_v38  ;;  %v949_v29 = vunpack.c.l.bf16 %v8345_v54  ;;  %v950_v46 = vpack.c.bf16 %v9492_v15, %v9492_v15  ;;  %v1398_v47 = vsel %vm345_vm1, %v1396_v3, %v1397_v34  ;;  %v9493_v54 = vld [vmem:[#allocation26_spill] sm:$0xff]  ;;  %v5183_v38 = vld [vmem:[%s5594_s25 + $0x198] sm:$0xf]  ;;  %v8387_v3 = vld [vmem:[%s5594_s25 + $0x19c] sm:$0x1] }
 0x2a6   : > { %v8334_v19 = vpop.permute.xlu1 %3325  ;;  %v8366_v56 = vunpack.c.l.b16 %v1028_v30  ;;  %v1349_v28 = vrot.slane %v1290_v7, 1  ;;  %v1350_v24 = vrot.slane %v1291_v42, 1  ;;  %v1007_v31 = vrot.slane %v8349_v55, 1 }
 0x2a7   : > { %3404 = vrot.lane.b32.xlu0 %v3324_v52, %s5545_s6  ;;  %v8357_v39 = vunpack.c.l.b16 %v1078_v33  ;;  %v1008_v16 = vrot.slane %v949_v29, 1  ;;  %v3352_v0 = vpack.c.b16 %v8355_v57, %v8280_v9  ;;  %v2827_v6 = vunpack.c.l.b16 %v950_v46 }
 0x2a8   : > { %v3265_v32 = vunpack.c.l.b16 %v1292_v36  ;;  %v1420_v30 = vpack.c.bf16 %v1398_v47, %v1398_v47  ;;  %v1301_v34 = vpack.c.bf16 %v1290_v7, %v1290_v7  ;;  %v2938_v15 = vunpack.c.l.b16 %v959_v11 }
 0x2a9   : > { %v8338_v40 = vpop.permute.xlu0 %3297  ;;  %3345 = vrot.lane.b32.xlu2 %v3338_v63, %s5538_s26  ;;  %v2928_v63 = vpack.c.b16 %v8357_v39, %v8265_v5  ;;  %v2914_v5 = vpack.c.b16 %v8366_v56, %v9493_v54  ;;  %v1351_v9 = vsel %vm294_vm0, %v1349_v28, %v1350_v24  ;;  %v1009_v46 = vsel %vm294_vm0, %v1007_v31, %v1008_v16 }
 0x2aa   : > { %v1399_v36 = vrot.slane %v1290_v7, 2  ;;  %v1102_v54 = vunpack.c.l.bf16 %v8380_v1  ;;  %v3376_v47 = vunpack.c.l.b16 %v1301_v34  ;;  %v8397_v8 = vunpack.c.l.bf16 %v5183_v38 }
 0x2ab   : > { %v8351_v25 = vpop.permute.xlu2 %3299  ;;  %v1104_v45 = vunpack.c.l.bf16 %v8387_v3  ;;  %v3273_v26 = vpack.c.b16 %v7940_v17, %v3265_v32  ;;  %v8402_v28 = vunpack.c.l.b16 %v1420_v30  ;;  %v1371_v24 = vpack.c.bf16 %v1351_v9, %v1351_v9  ;;  %v5185_v3 = vld [vmem:[%s5594_s25 + $0x1a0] sm:$0xf] }
 0x2ac   : > { %2907 = vrot.lane.b32.xlu1 %v2900_v18, %s5538_s26  ;;  %v5181_v18 = vld [vmem:[%s5594_s25 + $0x190] sm:$0xf]  ;;  %v3377_v31 = vpack.c.b16 %v3376_v47, %v8323_v51  ;;  %v2835_v7 = vpack.c.b16 %v7897_v48, %v2827_v6  ;;  %v1029_v16 = vpack.c.bf16 %v1009_v46, %v1009_v46  ;;  %v1152_v32 = vrot.slane %v1102_v54, 1 }
 0x2ad   : > { %v8393_v60 = vunpack.c.l.bf16 %v5181_v18  ;;  %v1154_v30 = vrot.slane %v8397_v8, 1  ;;  %v1155_v38 = vrot.slane %v1104_v45, 1  ;;  %v3410_v48 = vsel %vm2086_vm3, %v3273_v26, %v8338_v40 }
 0x2ae   : > { %v8364_v35 = vpop.permute.xlu1 %2915  ;;  %v3366_v51 = vpack.c.b16 %v8402_v28, %v8306_v12  ;;  %v2972_v34 = vsel %vm2086_vm3, %v2835_v7, %v7478_v50  ;;  %v8427_v12 = vunpack.c.l.bf16 %v5185_v3  ;;  %v3421_v40 = vsel %vm2099_vm4, %v3410_v48, %v8334_v19  ;;  %v5187_v3 = vld [vmem:[%s5594_s25 + $0x1a8] sm:$0xf] }
 0x2af   : > { %3331 = vrot.lane.b32.xlu0 %v3324_v52, %s5540_s28  ;;  %v1151_v1 = vrot.slane %v8393_v60, 1 }
 0x2b0   : > { %v1207_v48 = vrot.slane %v8427_v12, 2 }
 0x2b1   : > { %v8374_v52 = vpop.permute.xlu0 %3339  ;;  %2935 = vrot.lane.b32.xlu2 %v2928_v63, %s5542_s30  ;;  %v1400_v63 = vrot.slane %v1291_v42, 2  ;;  %v2939_v42 = vpack.c.b16 %v2938_v15, %v8328_v22  ;;  %v3387_v22 = vunpack.c.l.b16 %v1371_v24  ;;  %v2949_v15 = vunpack.c.l.b16 %v1029_v16 }
 0x2b2   : > { %v1153_v26 = vsel %vm294_vm0, %v1151_v1, %v1152_v32  ;;  %v1202_v32 = vrot.slane %v1102_v54, 2 }
 0x2b3   : > { %v8389_v33 = vpop.permute.xlu2 %3341  ;;  %v1401_v17 = vsel %vm345_vm1, %v1399_v36, %v1400_v63  ;;  %v2983_v36 = vsel %vm2099_vm4, %v2972_v34, %v7645_v20  ;;  %v1156_v63 = vsel %vm294_vm0, %v1154_v30, %v1155_v38  ;;  %v3388_v7 = vpack.c.b16 %v3387_v22, %v8355_v57 }
 0x2b4   : > { %3359 = vrot.lane.b32.xlu1 %v3352_v0, %s5541_s29  ;;  %v1057_v0 = vrot.slane %v8349_v55, 2  ;;  %v5186_v55 = vld [vmem:[%s5594_s25 + $0x1a4] sm:$0x1]  ;;  %v1421_v9 = vpack.c.bf16 %v1401_v17, %v1401_v17  ;;  %v2991_v24 = vsel %vm2108_vm5, %v2983_v36, %v8241_v59  ;;  %v1191_v16 = vpack.c.bf16 %v1153_v26, %v1153_v26 }
 0x2b5   : > { %v1106_v50 = vunpack.c.l.bf16 %v5186_v55  ;;  %v1192_v1 = vpack.c.bf16 %v1156_v63, %v1156_v63  ;;  %v1157_v59 = vrot.slane %v8427_v12, 1  ;;  %v1205_v30 = vrot.slane %v1104_v45, 2 }
 0x2b6   : > { %v3368_v11 = vpop.permute.xlu1 %3367  ;;  %v8439_v19 = vunpack.c.l.b16 %v1421_v9  ;;  %v2999_v54 = vsel %vm2117_vm6, %v2991_v24, %v8364_v35  ;;  %v1107_v36 = vunpack.c.l.bf16 %v5187_v3 }
 0x2b7   : > { %2921 = vrot.lane.b32.xlu0 %v2914_v5, %s5541_s29  ;;  %v1058_v5 = vrot.slane %v949_v29, 2  ;;  %v1158_v57 = vrot.slane %v1106_v50, 1 }
 0x2b9   : > { %v2930_v18 = vpop.permute.xlu0 %2929  ;;  %3384 = vrot.lane.b32.xlu2 %v3377_v31, %s5543_s4  ;;  %v1059_v6 = vsel %vm345_vm1, %v1057_v0, %v1058_v5  ;;  %v3429_v31 = vsel %vm2108_vm5, %v3421_v40, %v8374_v52  ;;  %v1201_v52 = vrot.slane %v8393_v60, 2 }
 0x2ba   : > { %v1079_v46 = vpack.c.bf16 %v1059_v6, %v1059_v6  ;;  %v3437_v5 = vsel %vm2117_vm6, %v3429_v31, %v8275_v10  ;;  %v3007_v45 = vsel %vm2126_vm7, %v2999_v54, %v2930_v18  ;;  %v3399_v31 = vpack.c.b16 %v8439_v19, %v8402_v28 }
 0x2bb   : > { %v8421_v29 = vpop.permute.xlu2 %2931  ;;  %v3445_v38 = vsel %vm2126_vm7, %v3437_v5, %v3368_v11  ;;  %v1203_v22 = vsel %vm345_vm1, %v1201_v52, %v1202_v32  ;;  %v3066_v11 = vunpack.c.l.b16 %v1191_v16  ;;  %v3015_v18 = vsel %vm2135_vm8, %v3007_v45, %v8299_v61 }
 0x2bc   : > { %2946 = vrot.lane.b32.xlu1 %v2939_v42, %s5543_s4  ;;  %v2960_v47 = vunpack.c.l.b16 %v1079_v46  ;;  %v2950_v42 = vpack.c.b16 %v2949_v15, %v8366_v56  ;;  %v1204_v56 = vrot.slane %v8397_v8, 2  ;;  %v1241_v34 = vpack.c.bf16 %v1203_v22, %v1203_v22 }
 0x2bd   : > { %v3067_v15 = vunpack.c.l.b16 %v1192_v1  ;;  %v1159_v46 = vsel %vm294_vm0, %v1157_v59, %v1158_v57  ;;  %v1160_v1 = vrot.slane %v1107_v36, 1  ;;  %v1122_v28 = vpack.c.bf16 %v8397_v8, %v8397_v8 }
 0x2be   : > { %v2952_v20 = vpop.permute.xlu1 %2951  ;;  %v2961_v0 = vpack.c.b16 %v2960_v47, %v8357_v39  ;;  %v5188_v39 = vld [vmem:[%s5594_s25 + $0x1ac] sm:$0x1]  ;;  %v1206_v6 = vsel %vm345_vm1, %v1204_v56, %v1205_v30  ;;  %v3094_v40 = vunpack.c.l.b16 %v1241_v34  ;;  %v1210_v19 = vrot.slane %v1107_v36, 2  ;;  %v5190_v34 = vld [vmem:[%s5594_s25 + $0x1b4] sm:$0x1] }
 0x2bf   : > { %3373 = vrot.lane.b32.xlu0 %v3366_v51, %s5542_s30  ;;  %v1208_v51 = vrot.slane %v1106_v50, 2  ;;  %v1242_v9 = vpack.c.bf16 %v1206_v6, %v1206_v6  ;;  %v1108_v26 = vunpack.c.l.bf16 %v5188_v39  ;;  %v5189_v6 = vld [vmem:[%s5594_s25 + $0x1b0] sm:$0xf] }
 0x2c1   : > { %v3379_v17 = vpop.permute.xlu0 %3378  ;;  %2968 = vrot.lane.b32.xlu2 %v2961_v0, %s5545_s6  ;;  %v1209_v50 = vsel %vm345_vm1, %v1207_v48, %v1208_v51  ;;  %v3095_v47 = vunpack.c.l.b16 %v1242_v9  ;;  %v1161_v59 = vrot.slane %v1108_v26, 1  ;;  %v1211_v52 = vrot.slane %v1108_v26, 2 }
 0x2c2   : > { %v3453_v10 = vsel %vm2135_vm8, %v3445_v38, %v3379_v17  ;;  %v1243_v61 = vpack.c.bf16 %v1209_v50, %v1209_v50 }
 0x2c3   : > { %v8456_v55 = vpop.permute.xlu2 %3380  ;;  %v3461_v63 = vsel %vm2144_vm9, %v3453_v10, %v8321_v13  ;;  %v1193_v13 = vpack.c.bf16 %v1159_v46, %v1159_v46  ;;  %v3102_v0 = vpack.c.b16 %v3095_v47, %v3094_v40  ;;  %v1162_v57 = vsel %vm294_vm0, %v1160_v1, %v1161_v59 }
 0x2c4   : > { %3395 = vrot.lane.b32.xlu1 %v3388_v7, %s5544_s5  ;;  %v3023_v7 = vsel %vm2144_vm9, %v3015_v18, %v2952_v20  ;;  %v1123_v20 = vpack.c.bf16 %v8427_v12, %v8427_v12  ;;  %v3096_v56 = vunpack.c.l.b16 %v1243_v61  ;;  %v8490_v12 = vunpack.c.l.b16 %v1122_v28  ;;  %v5191_v18 = vld [vmem:[%s5594_s25 + $0x1b8] sm:$0xf] }
 0x2c5   : > { %v3068_v5 = vunpack.c.l.b16 %v1193_v13  ;;  %v1212_v38 = vsel %vm345_vm1, %v1210_v19, %v1211_v52  ;;  %v1194_v51 = vpack.c.bf16 %v1162_v57, %v1162_v57  ;;  %v1124_v10 = vpack.c.bf16 %v1107_v36, %v1107_v36 }
 0x2c6   : > { %v3401_v35 = vpop.permute.xlu1 %3400  ;;  %v3048_v30 = vunpack.c.l.b16 %v1123_v20  ;;  %v3144_v3 = vpack.c.b16 %v3096_v56, %v3095_v47  ;;  %v1244_v22 = vpack.c.bf16 %v1212_v38, %v1212_v38  ;;  %v1110_v46 = vunpack.c.l.bf16 %v5190_v34 }
 0x2c7   : > { %2957 = vrot.lane.b32.xlu0 %v2950_v42, %s5544_s5  ;;  %v8469_v24 = vsel %vm2153_vm10, %v3461_v63, %v3401_v35  ;;  %v3074_v42 = vpack.c.b16 %v3067_v15, %v3066_v11  ;;  %v3130_v48 = vpack.c.b16 %v3068_v5, %v3067_v15  ;;  %v8502_v11 = vunpack.c.l.b16 %v1194_v51 }
 0x2c8   : > { %5358 = vmatmul.msk.bf16.vlgmr.msrb.gmra.mxu3 %vm3940_vm11, %v8469_v24  ;;  %v3116_v54 = vpack.c.b16 %v3048_v30, %v8490_v12  ;;  %v8504_v9 = vunpack.c.l.b16 %v1244_v22  ;;  %v1109_v15 = vunpack.c.l.bf16 %v5189_v6  ;;  %v3049_v36 = vunpack.c.l.b16 %v1124_v10 }
 0x2c9   : > { %v2963_v16 = vpop.permute.xlu0 %2962  ;;  %3106 = vrot.lane.b32.xlu2 %v3102_v0, %s5540_s28  ;;  %v3075_v35 = vpack.c.b16 %v8502_v11, %v3068_v5  ;;  %v1214_v47 = vrot.slane %v1110_v46, 2 }
 0x2ca   : > { %v3031_v17 = vsel %vm2153_vm10, %v3023_v7, %v2963_v16  ;;  %v3103_v63 = vpack.c.b16 %v8504_v9, %v3096_v56  ;;  %v1213_v50 = vrot.slane %v1109_v15, 2  ;;  %v8513_v7 = vpack.c.b16 %v3049_v36, %v3048_v30 }
 0x2cb   : > { %5306 = vmatmul.msk.bf16.gmra.mxu0 %vm3940_vm11, %v3031_v17  ;;  %5350 = vmatmul.msk.bf16.gmra.mxu1 %vm3940_vm11, %v3031_v17  ;;  %v8484_v32 = vpop.permute.xlu2 %2964  ;;  %v1163_v16 = vrot.slane %v1109_v15, 1  ;;  %v1125_v0 = vpack.c.bf16 %v1109_v15, %v1109_v15  ;;  %v2975_v30 = vsel %vm2086_vm3, %v7969_v23, %v7609_v58 }
 0x2cc   : > { %5387 = vmatmul.msk.bf16.gmra.mxu2 %vm3940_vm11, %v3031_v17  ;;  %3078 = vrot.lane.b32.xlu1 %v3074_v42, %s5539_s27  ;;  %v1164_v42 = vrot.slane %v1110_v46, 1  ;;  %v1111_v17 = vunpack.c.l.bf16 %v5191_v18  ;;  %v1215_v59 = vsel %vm345_vm1, %v1213_v50, %v1214_v47  ;;  %v5194_v47 = vld [vmem:[%s5594_s25 + $0x1c4] sm:$0x1] }
 0x2cd   : > { %v3050_v61 = vunpack.c.l.b16 %v1125_v0  ;;  %v1245_v5 = vpack.c.bf16 %v1215_v59, %v1215_v59 }
 0x2ce   : > { %v2904_v8 = vpop.permute.xlu1 %2903  ;;  %v1165_v20 = vsel %vm294_vm0, %v1163_v16, %v1164_v42  ;;  %v1216_v57 = vrot.slane %v1111_v17, 2  ;;  %v1126_v10 = vpack.c.bf16 %v1111_v17, %v1111_v17 }
 0x2cf   : > { %3406 = vrot.lane.b32.xlu0 %v3399_v31, %s5545_s6  ;;  %v5192_v31 = vld [vmem:[%s5594_s25 + $0x1bc] sm:$0x1]  ;;  %v3117_v19 = vpack.c.b16 %v3050_v61, %v3049_v36  ;;  %v1195_v38 = vpack.c.bf16 %v1165_v20, %v1165_v20  ;;  %v3098_v58 = vunpack.c.l.b16 %v1245_v5 }
 0x2d0   : > { %v1112_v1 = vunpack.c.l.bf16 %v5192_v31  ;;  %v8545_v50 = vunpack.c.l.b16 %v1126_v10 }
 0x2d1   : > { %v8493_v39 = vpop.permute.xlu0 %3327  ;;  %3148 = vrot.lane.b32.xlu2 %v3144_v3, %s5542_s30  ;;  %v2985_v3 = vsel %vm2099_vm4, %v2975_v30, %v7640_v43  ;;  %v3070_v34 = vunpack.c.l.b16 %v1195_v38  ;;  %v3413_v43 = vsel %vm2086_vm3, %v8000_v4, %v8351_v25  ;;  %v3145_v4 = vpack.c.b16 %v3098_v58, %v8504_v9 }
 0x2d2   : > { %v1217_v56 = vrot.slane %v1112_v1, 2  ;;  %v1167_v51 = vrot.slane %v1112_v1, 1  ;;  %v2993_v22 = vsel %vm2108_vm5, %v2985_v3, %v2904_v8  ;;  %v3423_v46 = vsel %vm2099_vm4, %v3413_v43, %v8493_v39 }
 0x2d3   : > { %v8498_v45 = vpop.permute.xlu2 %2891  ;;  %v8553_v39 = vpack.c.b16 %v8545_v50, %v3050_v61 }
 0x2d4   : > { %3134 = vrot.lane.b32.xlu1 %v3130_v48, %s5541_s29  ;;  %v1166_v48 = vrot.slane %v1111_v17, 1  ;;  %v1218_v23 = vsel %vm345_vm1, %v1216_v57, %v1217_v56  ;;  %v1114_v17 = vunpack.c.l.bf16 %v5194_v47  ;;  %v5197_v47 = vld [vmem:[%s5594_s25 + $0x1d0] sm:$0xf] }
 0x2d6   : > { %v8507_v26 = vpop.permute.xlu1 %3355  ;;  %v1168_v15 = vsel %vm294_vm0, %v1166_v48, %v1167_v51  ;;  %v1220_v10 = vrot.slane %v1114_v17, 2 }
 0x2d7   : > { %3120 = vrot.lane.b32.xlu0 %v3116_v54, %s5538_s26  ;;  %v1196_v16 = vpack.c.bf16 %v1168_v15, %v1168_v15 }
 0x2d9   : > { %v2918_v40 = vpop.permute.xlu0 %2917  ;;  %3181 = vrot.lane.b32.xlu2 %v3103_v63, %s5545_s6 }
 0x2da   : > { %v3001_v6 = vsel %vm2117_vm6, %v2993_v22, %v2918_v40  ;;  %v1246_v40 = vpack.c.bf16 %v1218_v23, %v1218_v23 }
 0x2db   : > { %v8515_v13 = vpop.permute.xlu2 %3343  ;;  %v3009_v36 = vsel %vm2126_vm7, %v3001_v6, %v8421_v29  ;;  %v3431_v29 = vsel %vm2108_vm5, %v3423_v46, %v8389_v33 }
 0x2dc   : > { %3170 = vrot.lane.b32.xlu1 %v3075_v35, %s5544_s5  ;;  %v3439_v9 = vsel %vm2117_vm6, %v3431_v29, %v8507_v26  ;;  %v8565_v1 = vunpack.c.l.b16 %v1246_v40  ;;  %v5196_v26 = vld [vmem:[%s5594_s25 + $0x1cc] sm:$0x1] }
 0x2dd   : > { %v1116_v30 = vunpack.c.l.bf16 %v5196_v26 }
 0x2de   : > { %v2943_v28 = vpop.permute.xlu1 %2942 }
 0x2df   : > { %3159 = vrot.lane.b32.xlu0 %v8513_v7, %s5543_s4  ;;  %v3017_v18 = vsel %vm2135_vm8, %v3009_v36, %v2943_v28  ;;  %v3071_v28 = vunpack.c.l.b16 %v1196_v16  ;;  %v1173_v43 = vrot.slane %v1116_v30, 1 }
 0x2e1   : > { %v3370_v52 = vpop.permute.xlu0 %3369  ;;  %3122 = vrot.lane.b32.xlu2 %v3117_v19, %s5538_s26  ;;  %v3104_v19 = vpack.c.b16 %v8565_v1, %v3098_v58  ;;  %v3076_v48 = vpack.c.b16 %v3071_v28, %v3070_v34 }
 0x2e2   : > { %v3447_v59 = vsel %vm2126_vm7, %v3439_v9, %v3370_v52  ;;  %v5195_v52 = vld [vmem:[%s5594_s25 + $0x1c8] sm:$0xf] }
 0x2e3   : > { %v8529_v54 = vpop.permute.xlu2 %2933  ;;  %v3455_v20 = vsel %vm2135_vm8, %v3447_v59, %v8456_v55  ;;  %v1115_v51 = vunpack.c.l.bf16 %v5195_v52  ;;  %v8606_v59 = vpop.f32.mrf.mxu3 }
 0x2e4   : > { %3108 = vrot.lane.b32.xlu1 %v3103_v63, %s5540_s28  ;;  %v5193_v63 = vld [vmem:[%s5594_s25 + $0x1c0] sm:$0xf] }
 0x2e5   : > { %v1113_v0 = vunpack.c.l.bf16 %v5193_v63  ;;  %v1172_v23 = vrot.slane %v1115_v51, 1  ;;  %v1128_v40 = vpack.c.bf16 %v1115_v51, %v1115_v51 }
 0x2e6   : > { %v3392_v8 = vpop.permute.xlu1 %3391 }
 0x2e7   : > { %3080 = vrot.lane.b32.xlu0 %v3075_v35, %s5539_s27  ;;  %v3131_v35 = vpack.c.b16 %v3070_v34, %v8502_v11  ;;  %v1169_v33 = vrot.slane %v1113_v0, 1  ;;  %v3463_v5 = vsel %vm2144_vm9, %v3455_v20, %v3392_v8  ;;  %v1127_v56 = vpack.c.bf16 %v1113_v0, %v1113_v0 }
 0x2e8   : > { %v1219_v55 = vrot.slane %v1113_v0, 2  ;;  %v1174_v63 = vsel %vm294_vm0, %v1172_v23, %v1173_v43  ;;  %v1117_v0 = vunpack.c.l.bf16 %v5197_v47 }
 0x2e9   : > { %v2954_v31 = vpop.permute.xlu0 %2953  ;;  %3161 = vrot.lane.b32.xlu2 %v8553_v39, %s5543_s4  ;;  %v3052_v58 = vunpack.c.l.b16 %v1127_v56  ;;  %v1198_v16 = vpack.c.bf16 %v1174_v63, %v1174_v63  ;;  %v5199_v56 = vld [vmem:[%s5594_s25 + $0x1d8] sm:$0xf] }
 0x2ea   : > { %v3025_v25 = vsel %vm2144_vm9, %v3017_v18, %v2954_v31  ;;  %v1221_v34 = vsel %vm345_vm1, %v1219_v55, %v1220_v10  ;;  %v5198_v18 = vld [vmem:[%s5594_s25 + $0x1d4] sm:$0x1]  ;;  %v1175_v20 = vrot.slane %v1117_v0, 1  ;;  %v1225_v23 = vrot.slane %v1117_v0, 2 }
 0x2eb   : > { %v3033_v42 = vsel %vm2153_vm10, %v3025_v25, %v8484_v32  ;;  %v8563_v11 = vpop.permute.xlu2 %3382  ;;  %v1170_v32 = vrot.slane %v1114_v17, 1  ;;  %v3118_v36 = vpack.c.b16 %v3052_v58, %v8545_v50  ;;  %v1222_v25 = vrot.slane %v1115_v51, 2 }
 0x2ec   : > { %5307 = vmatmul.msk.bf16.gmra.mxu0 %vm3940_vm11, %v3033_v42  ;;  %5351 = vmatmul.msk.bf16.gmra.mxu1 %vm3940_vm11, %v3033_v42  ;;  %v1118_v50 = vunpack.c.l.bf16 %v5198_v18  ;;  %v1119_v51 = vunpack.c.l.bf16 %v5199_v56  ;;  %v1129_v18 = vpack.c.bf16 %v1117_v0, %v1117_v0 }
 0x2ed   : > { %5388 = vmatmul.msk.bf16.gmra.mxu2 %vm3940_vm11, %v3033_v42  ;;  %3150 = vrot.lane.b32.xlu1 %v3145_v4, %s5542_s30  ;;  %v1171_v38 = vsel %vm294_vm0, %v1169_v33, %v1170_v32  ;;  %v1247_v4 = vpack.c.bf16 %v1221_v34, %v1221_v34  ;;  %v8602_v42 = vunpack.c.l.b16 %v1128_v40  ;;  %v8609_v32 = vunpack.c.l.b16 %v1198_v16 }
 0x2ee   : > { %v8574_v61 = vpop.permute.xlu1 %3301  ;;  %v1197_v6 = vpack.c.bf16 %v1171_v38, %v1171_v38  ;;  %v1176_v52 = vrot.slane %v1118_v50, 1  ;;  %v1226_v43 = vrot.slane %v1118_v50, 2  ;;  %v2978_v34 = vsel %vm2086_vm3, %v8116_v44, %v7600_v21 }
 0x2ef   : > { %3136 = vrot.lane.b32.xlu0 %v3131_v35, %s5541_s29  ;;  %v1223_v35 = vrot.slane %v1116_v30, 2  ;;  %v3100_v9 = vunpack.c.l.b16 %v1247_v4  ;;  %v5200_v30 = vld [vmem:[%s5594_s25 + $0x1dc] sm:$0x1]  ;;  %v2987_v63 = vsel %vm2099_vm4, %v2978_v34, %v8498_v45  ;;  %v3416_v21 = vsel %vm2086_vm3, %v8099_v53, %v8574_v61 }
 0x2f0   : > { %v3072_v15 = vunpack.c.l.b16 %v1197_v6  ;;  %v1177_v38 = vsel %vm294_vm0, %v1175_v20, %v1176_v52  ;;  %v1120_v55 = vunpack.c.l.bf16 %v5200_v30  ;;  %v8648_v50 = vunpack.c.l.b16 %v1129_v18 }
 0x2f1   : > { %v3403_v57 = vpop.permute.xlu0 %3402  ;;  %3082 = vrot.lane.b32.xlu2 %v3076_v48, %s5539_s27  ;;  %v1224_v33 = vsel %vm345_vm1, %v1222_v25, %v1223_v35  ;;  %v1199_v6 = vpack.c.bf16 %v1177_v38, %v1177_v38  ;;  %v1130_v61 = vpack.c.bf16 %v1119_v51, %v1119_v51  ;;  %v1228_v52 = vrot.slane %v1119_v51, 2 }
 0x2f2   : > { %v8583_v3 = vsel %vm2153_vm10, %v3463_v5, %v3403_v57  ;;  %v3132_v31 = vpack.c.b16 %v3072_v15, %v3071_v28  ;;  %v8612_v28 = vpack.c.b16 %v8602_v42, %v3052_v58  ;;  %v3146_v5 = vpack.c.b16 %v3100_v9, %v8565_v1 }
 0x2f3   : > { %5359 = vmatmul.msk.bf16.gmra.mxu3 %vm3940_vm11, %v8583_v3  ;;  %v8587_v22 = vpop.permute.xlu2 %2966  ;;  %v1248_v57 = vpack.c.bf16 %v1224_v33, %v1224_v33  ;;  %v1179_v40 = vrot.slane %v1120_v55, 1  ;;  %v8634_v25 = vunpack.c.l.b16 %v1199_v6  ;;  %v3119_v38 = vpack.c.b16 %v8648_v50, %v8602_v42  ;;  %v5263_v6 = vld [vmem:[%s5594_s25 + $0x2d8] sm:$0xf] }
 0x2f4   : > { %v3157_v42 = vunpack.c.l.b16 %v1130_v61 }
 0x2f5   : > { %3183 = vrot.lane.b32.xlu1 %v3104_v19, %s5545_s6  ;;  %v3101_v1 = vunpack.c.l.b16 %v1248_v57  ;;  %v3133_v53 = vpack.c.b16 %v8634_v25, %v8609_v32 }
 0x2f6   : > { %v2906_v8 = vpop.permute.xlu1 %2905 }
 0x2f7   : > { %3172 = vrot.lane.b32.xlu0 %v3076_v48, %s5544_s5  ;;  %v3105_v47 = vpack.c.b16 %v3101_v1, %v3100_v9  ;;  %v2995_v4 = vsel %vm2108_vm5, %v2987_v63, %v2906_v8 }
 0x2f9   : > { %v8593_v46 = vpop.permute.xlu0 %3329  ;;  %3138 = vrot.lane.b32.xlu2 %v3132_v31, %s5541_s29  ;;  %v1227_v31 = vsel %vm345_vm1, %v1225_v23, %v1226_v43  ;;  %v5264_v23 = vld [vmem:[%s5594_s25 + $0x2dc] sm:$0x1]  ;;  %v8677_v43 = vunpack.c.l.bf16 %v5263_v6 }
 0x2fa   : > { %v1249_v35 = vpack.c.bf16 %v1227_v31, %v1227_v31  ;;  %v3425_v8 = vsel %vm2099_vm4, %v3416_v21, %v8593_v46 }
 0x2fb   : > { %v8599_v29 = vpop.permute.xlu2 %2893  ;;  %v3433_v56 = vsel %vm2108_vm5, %v3425_v8, %v8515_v13  ;;  %v1838_v18 = vrot.slane %v8677_v43, 1 }
 0x2fc   : > { %v8643_v45 = vunpack.c.l.b16 %v1249_v35 }
 0x2fd   : > { %3124 = vrot.lane.b32.xlu1 %v3118_v36, %s5538_s26  ;;  %v1178_v36 = vrot.slane %v1119_v51, 1 }
 0x2fe   : > { %v3358_v17 = vpop.permute.xlu1 %3357  ;;  %v3147_v30 = vpack.c.b16 %v8643_v45, %v3101_v1 }
 0x2ff   : > { %3110 = vrot.lane.b32.xlu0 %v3104_v19, %s5540_s28  ;;  %v3077_v19 = vpack.c.b16 %v8609_v32, %v3072_v15  ;;  %v8628_v15 = vpop.f32.mrf.mxu3  ;;  %v1180_v44 = vsel %vm294_vm0, %v1178_v36, %v1179_v40  ;;  %v3441_v32 = vsel %vm2117_vm6, %v3433_v56, %v3358_v17  ;;  %v1788_v36 = vunpack.c.l.bf16 %v5264_v23 }
 0x300   : > { %v1200_v20 = vpack.c.bf16 %v1180_v44, %v1180_v44 }
 0x301   : > { %v2920_v26 = vpop.permute.xlu0 %2919  ;;  %3174 = vrot.lane.b32.xlu2 %v3077_v19, %s5544_s5  ;;  %v1889_v8 = vrot.slane %v1788_v36, 2 }
 0x302   : > { %v3003_v16 = vsel %vm2117_vm6, %v2995_v4, %v2920_v26  ;;  %v3168_v34 = vunpack.c.l.b16 %v1200_v20 }
 0x303   : > { %v8621_v48 = vpop.permute.xlu2 %3345  ;;  %v3011_v33 = vsel %vm2126_vm7, %v3003_v16, %v8529_v54  ;;  %v1888_v16 = vrot.slane %v8677_v43, 2 }
 0x304   : > { %v3169_v61 = vpack.c.b16 %v3168_v34, %v8634_v25 }
 0x305   : > { %3163 = vrot.lane.b32.xlu1 %v8612_v28, %s5543_s4 }
 0x306   : > { %v2945_v10 = vpop.permute.xlu1 %2944 }
 0x307   : > { %3152 = vrot.lane.b32.xlu0 %v3146_v5, %s5542_s30  ;;  %v3019_v26 = vsel %vm2135_vm8, %v3011_v33, %v2945_v10  ;;  %v1229_v5 = vrot.slane %v1120_v55, 2  ;;  %v8657_v57 = vpop.f32.mrf.mxu3  ;;  %v5261_v55 = vld [vmem:[%s5594_s25 + $0x2d0] sm:$0xf]  ;;  %v5262_v10 = vld [vmem:[%s5594_s25 + $0x2d4] sm:$0x1] }
 0x308   : > { %v8675_v1 = vunpack.c.l.bf16 %v5261_v55  ;;  %v1786_v17 = vunpack.c.l.bf16 %v5262_v10 }
 0x309   : > { %v3372_v58 = vpop.permute.xlu0 %3371  ;;  %3112 = vrot.lane.b32.xlu2 %v3105_v47, %s5540_s28  ;;  %v1230_v51 = vsel %vm345_vm1, %v1228_v52, %v1229_v5  ;;  %v1890_v5 = vsel %vm345_vm1, %v1888_v16, %v1889_v8  ;;  %v5268_v16 = vld [vmem:[%s5594_s25 + $0x2ec] sm:$0x1] }
 0x30a   : > { %v1250_v13 = vpack.c.bf16 %v1230_v51, %v1230_v51  ;;  %v1835_v63 = vrot.slane %v8675_v1, 1  ;;  %v1885_v4 = vrot.slane %v8675_v1, 2  ;;  %v1886_v35 = vrot.slane %v1786_v17, 2 }
 0x30b   : > { %v8650_v9 = vpop.permute.xlu2 %2935  ;;  %v1792_v8 = vunpack.c.l.bf16 %v5268_v16 }
 0x30c   : > { %v3179_v40 = vunpack.c.l.b16 %v1250_v13  ;;  %v1887_v20 = vsel %vm345_vm1, %v1885_v4, %v1886_v35  ;;  %v5267_v35 = vld [vmem:[%s5594_s25 + $0x2e8] sm:$0xf] }
 0x30d   : > { %3084 = vrot.lane.b32.xlu1 %v3077_v19, %s5539_s27  ;;  %v1925_v56 = vpack.c.bf16 %v1887_v20, %v1887_v20 }
 0x30e   : > { %v3394_v0 = vpop.permute.xlu1 %3393 }
 0x30f   : > { %3185 = vrot.lane.b32.xlu0 %v3105_v47, %s5545_s6  ;;  %v1836_v47 = vrot.slane %v1786_v17, 1 }
 0x311   : > { %v2956_v46 = vpop.permute.xlu0 %2955  ;;  %3154 = vrot.lane.b32.xlu2 %v3147_v30, %s5542_s30  ;;  %v1837_v44 = vsel %vm294_vm0, %v1835_v63, %v1836_v47  ;;  %v1926_v30 = vpack.c.bf16 %v1890_v5, %v1890_v5  ;;  %v1895_v5 = vrot.slane %v1792_v8, 2 }
 0x312   : > { %v3027_v54 = vsel %vm2144_vm9, %v3019_v26, %v2956_v46  ;;  %v1875_v25 = vpack.c.bf16 %v1837_v44, %v1837_v44  ;;  %v1791_v44 = vunpack.c.l.bf16 %v5267_v35 }
 0x313   : > { %v3035_v19 = vsel %vm2153_vm10, %v3027_v54, %v8587_v22  ;;  %v3449_v22 = vsel %vm2126_vm7, %v3441_v32, %v3372_v58  ;;  %v1839_v58 = vrot.slane %v1788_v36, 1  ;;  %v8695_v26 = vpop.permute.xlu2 %3384  ;;  %v5265_v32 = vld [vmem:[%s5594_s25 + $0x2e0] sm:$0xf]  ;;  %v4430_v10 = vunpack.c.l.b16 %v1926_v30 }
 0x314   : > { %5308 = vmatmul.msk.bf16.gmra.mxu0 %vm3940_vm11, %v3035_v19  ;;  %5352 = vmatmul.msk.bf16.gmra.mxu1 %vm3940_vm11, %v3035_v19  ;;  %v3457_v21 = vsel %vm2135_vm8, %v3449_v22, %v8563_v11  ;;  %v3180_v11 = vpack.c.b16 %v3179_v40, %v8643_v45  ;;  %v8711_v51 = vunpack.c.l.bf16 %v5265_v32  ;;  %v4429_v45 = vunpack.c.l.b16 %v1925_v56 }
 0x315   : > { %5389 = vmatmul.msk.bf16.gmra.mxu2 %vm3940_vm11, %v3035_v19  ;;  %3140 = vrot.lane.b32.xlu1 %v3133_v53, %s5541_s29  ;;  %v3465_v33 = vsel %vm2144_vm9, %v3457_v21, %v3394_v0  ;;  %v1840_v46 = vsel %vm294_vm0, %v1838_v18, %v1839_v58  ;;  %v3158_v0 = vpack.c.b16 %v3157_v42, %v8648_v50  ;;  %v5266_v19 = vld [vmem:[%s5594_s25 + $0x2e4] sm:$0x1]  ;;  %v4401_v23 = vunpack.c.l.b16 %v1875_v25 }
 0x316   : > { %v8686_v31 = vpop.permute.xlu1 %3303  ;;  %v1876_v54 = vpack.c.bf16 %v1840_v46, %v1840_v46  ;;  %v1790_v55 = vunpack.c.l.bf16 %v5266_v19  ;;  %v1841_v6 = vrot.slane %v8711_v51, 1  ;;  %v1891_v22 = vrot.slane %v8711_v51, 2 }
 0x317   : > { %3126 = vrot.lane.b32.xlu0 %v3119_v38, %s5538_s26  ;;  %v8709_v38 = vpop.f32.mrf.mxu3  ;;  %v4437_v40 = vpack.c.b16 %v4430_v10, %v4429_v45 }
 0x318   : > { %v1842_v50 = vrot.slane %v1790_v55, 1  ;;  %v4402_v17 = vunpack.c.l.b16 %v1876_v54  ;;  %v1892_v42 = vrot.slane %v1790_v55, 2 }
 0x319   : > { %v3405_v53 = vpop.permute.xlu0 %3404  ;;  %3187 = vrot.lane.b32.xlu2 %v3180_v11, %s5545_s6  ;;  %v1894_v11 = vrot.slane %v1791_v44, 2 }
 0x31a   : > { %v8700_v52 = vsel %vm2153_vm10, %v3465_v33, %v3405_v53  ;;  %v1843_v34 = vsel %vm294_vm0, %v1841_v6, %v1842_v50  ;;  %v1893_v63 = vsel %vm345_vm1, %v1891_v22, %v1892_v42  ;;  %v4409_v58 = vpack.c.b16 %v4402_v17, %v4401_v23 }
 0x31b   : > { %5360 = vmatmul.msk.bf16.gmra.mxu3 %vm3940_vm11, %v8700_v52  ;;  %v1927_v47 = vpack.c.bf16 %v1893_v63, %v1893_v63  ;;  %v8720_v18 = vpop.permute.xlu2 %2968  ;;  %v1877_v4 = vpack.c.bf16 %v1843_v34, %v1843_v34  ;;  %v1844_v53 = vrot.slane %v1791_v44, 1  ;;  %v1896_v54 = vsel %vm345_vm1, %v1894_v11, %v1895_v5  ;;  %v5271_v11 = vld [vmem:[%s5594_s25 + $0x2f8] sm:$0xf] }
 0x31c   : > { %v1928_v30 = vpack.c.bf16 %v1896_v54, %v1896_v54  ;;  %v2981_v34 = vsel %vm2086_vm3, %v8269_v2, %v7503_v41  ;;  %v1795_v54 = vunpack.c.l.bf16 %v5271_v11 }
 0x31d   : > { %3176 = vrot.lane.b32.xlu1 %v3169_v61, %s5544_s5  ;;  %v4431_v33 = vunpack.c.l.b16 %v1927_v47  ;;  %v1845_v61 = vrot.slane %v1792_v8, 1  ;;  %v4403_v20 = vunpack.c.l.b16 %v1877_v4  ;;  %v2989_v47 = vsel %vm2099_vm4, %v2981_v34, %v8599_v29  ;;  %v5270_v4 = vld [vmem:[%s5594_s25 + $0x2f4] sm:$0x1]  ;;  %v5272_v34 = vld [vmem:[%s5594_s25 + $0x2fc] sm:$0x1] }
 0x31e   : > { %v2908_v13 = vpop.permute.xlu1 %2907  ;;  %v8733_v45 = vunpack.c.l.b16 %v1928_v30  ;;  %v1794_v16 = vunpack.c.l.bf16 %v5270_v4  ;;  %v3419_v29 = vsel %vm2086_vm3, %v8246_v27, %v8686_v31  ;;  %v1807_v27 = vpack.c.bf16 %v8711_v51, %v8711_v51 }
 0x31f   : > { %3165 = vrot.lane.b32.xlu0 %v3158_v0, %s5543_s4  ;;  %v8724_v21 = vpop.f32.mrf.mxu3  ;;  %v1846_v56 = vsel %vm294_vm0, %v1844_v53, %v1845_v61  ;;  %v4479_v25 = vpack.c.b16 %v4431_v33, %v4430_v10  ;;  %v4465_v32 = vpack.c.b16 %v4403_v20, %v4402_v17  ;;  %v5269_v10 = vld [vmem:[%s5594_s25 + $0x2f0] sm:$0xf]  ;;  %v2997_v35 = vsel %vm2108_vm5, %v2989_v47, %v2908_v13 }
 0x320   : > { %v1878_v19 = vpack.c.bf16 %v1846_v56, %v1846_v56  ;;  %v8741_v22 = vunpack.c.l.bf16 %v5269_v10  ;;  %v4438_v17 = vpack.c.b16 %v8733_v45, %v4431_v33  ;;  %v1898_v53 = vrot.slane %v1794_v16, 2 }
 0x321   : > { %v3332_v36 = vpop.permute.xlu0 %3331  ;;  %v1806_v56 = vpack.c.bf16 %v8677_v43, %v8677_v43  ;;  %v1900_v4 = vrot.slane %v1795_v54, 2 }
 0x322   : > { %v8738_v23 = vunpack.c.l.b16 %v1878_v19  ;;  %v1809_v63 = vpack.c.bf16 %v8741_v22, %v8741_v22  ;;  %v1897_v33 = vrot.slane %v8741_v22, 2  ;;  %v3427_v61 = vsel %vm2099_vm4, %v3419_v29, %v3332_v36 }
 0x323   : > { %v8730_v55 = vpop.permute.xlu2 %3106  ;;  %v4383_v19 = vunpack.c.l.b16 %v1807_v27  ;;  %v3435_v43 = vsel %vm2108_vm5, %v3427_v61, %v8621_v48  ;;  %v1847_v29 = vrot.slane %v8741_v22, 1 }
 0x324   : > { %v4385_v2 = vunpack.c.l.b16 %v1809_v63  ;;  %v1899_v31 = vsel %vm345_vm1, %v1897_v33, %v1898_v53  ;;  %v1796_v63 = vunpack.c.l.bf16 %v5272_v34  ;;  %v1848_v33 = vrot.slane %v1794_v16, 1 }
 0x325   : > { %4441 = vrot.lane.b32.xlu1 %v4437_v40, %s5540_s28  ;;  %v1808_v40 = vpack.c.bf16 %v1791_v44, %v1791_v44  ;;  %v1929_v10 = vpack.c.bf16 %v1899_v31, %v1899_v31  ;;  %v1850_v53 = vrot.slane %v1795_v54, 1 }
 0x326   : > { %v3360_v46 = vpop.permute.xlu1 %3359  ;;  %v1849_v22 = vsel %vm294_vm0, %v1847_v29, %v1848_v33 }
 0x327   : > { %4413 = vrot.lane.b32.xlu0 %v4409_v58, %s5539_s27  ;;  %v8735_v6 = vpop.f32.mrf.mxu3  ;;  %v8752_v58 = vpack.c.b16 %v8738_v23, %v4403_v20  ;;  %v8758_v41 = vunpack.c.l.b16 %v1808_v40  ;;  %v3443_v40 = vsel %vm2117_vm6, %v3435_v43, %v3360_v46  ;;  %v1901_v46 = vrot.slane %v1796_v63, 2 }
 0x329   : > { %v2922_v0 = vpop.permute.xlu0 %2921  ;;  %v1902_v11 = vsel %vm345_vm1, %v1900_v4, %v1901_v46 }
 0x32a   : > { %v3005_v8 = vsel %vm2117_vm6, %v2997_v35, %v2922_v0 }
 0x32b   : > { %v8767_v20 = vpop.permute.xlu2 %3148  ;;  %v3013_v5 = vsel %vm2126_vm7, %v3005_v8, %v8650_v9  ;;  %v1121_v9 = vpack.c.bf16 %v8393_v60, %v8393_v60  ;;  %v4433_v8 = vunpack.c.l.b16 %v1929_v10 }
 0x32d   : > { %4483 = vrot.lane.b32.xlu1 %v4479_v25, %s5542_s30  ;;  %v4452_v25 = vpack.c.b16 %v4385_v2, %v8758_v41 }
 0x32e   : > { %v2947_v50 = vpop.permute.xlu1 %2946 }
 0x32f   : > { %4469 = vrot.lane.b32.xlu0 %v4465_v32, %s5541_s29  ;;  %v8760_v44 = vpop.f32.mrf.mxu3  ;;  %v3021_v36 = vsel %vm2135_vm8, %v3013_v5, %v2947_v50  ;;  %v8784_v32 = vunpack.c.l.b16 %v1806_v56  ;;  %v1810_v50 = vpack.c.bf16 %v1795_v54, %v1795_v54  ;;  %v1851_v5 = vrot.slane %v1796_v63, 1 }
 0x331   : > { %v3374_v42 = vpop.permute.xlu0 %3373  ;;  %v4451_v60 = vpack.c.b16 %v4383_v19, %v8784_v32  ;;  %v8798_v48 = vunpack.c.l.b16 %v1810_v50 }
 0x332   : > { %v3451_v47 = vsel %vm2126_vm7, %v3443_v40, %v3374_v42 }
 0x333   : > { %4455 = vrot.lane.b32.xlu2 %v4451_v60, %s5538_s26  ;;  %v3459_v61 = vsel %vm2135_vm8, %v3451_v47, %v8695_v26  ;;  %v8809_v31 = vpop.permute.xlu2 %3181  ;;  %v1852_v26 = vsel %vm294_vm0, %v1850_v53, %v1851_v5  ;;  %v4058_v60 = vpop.f32.mrf.mxu0  ;;  %v5276_v5 = vld [vmem:[%s5594_s25 + $0x30c] sm:$0x1] }
 0x334   : > { %v1880_v54 = vpack.c.bf16 %v1852_v26, %v1852_v26 }
 0x335   : > { %4516 = vrot.lane.b32.xlu1 %v4438_v17, %s5545_s6 }
 0x336   : > { %v3396_v13 = vpop.permute.xlu1 %3395 }
 0x337   : > { %4505 = vrot.lane.b32.xlu0 %v8752_v58, %s5544_s5  ;;  %v8803_v42 = vpop.f32.mrf.mxu3  ;;  %v3467_v56 = vsel %vm2144_vm9, %v3459_v61, %v3396_v13  ;;  %v4480_v13 = vpack.c.b16 %v4433_v8, %v8733_v45 }
 0x339   : > { %v2958_v0 = vpop.permute.xlu0 %2957 }
 0x33a   : > { %v3029_v30 = vsel %vm2144_vm9, %v3021_v36, %v2958_v0  ;;  %v1879_v36 = vpack.c.bf16 %v1849_v22, %v1849_v22 }
 0x33b   : > { %v3037_v51 = vsel %vm2153_vm10, %v3029_v30, %v8720_v18  ;;  %v3046_v18 = vunpack.c.l.b16 %v1121_v9  ;;  %v5273_v30 = vld [vmem:[%s5594_s25 + $0x300] sm:$0xf]  ;;  %v8828_v9 = vld [vmem:[%s5594_s25 + $0x304] sm:$0x1]  ;;  %v8855_v33 = vpop.permute.xlu2 %3122 }
 0x33c   : > { %5309 = vmatmul.msk.bf16.gmra.mxu0 %vm3940_vm11, %v3037_v51  ;;  %5353 = vmatmul.msk.bf16.gmra.mxu1 %vm3940_vm11, %v3037_v51  ;;  %v8832_v43 = vunpack.c.l.b16 %v1879_v36  ;;  %v1798_v10 = vunpack.c.l.bf16 %v8828_v9 }
 0x33d   : > { %5390 = vmatmul.msk.bf16.gmra.mxu2 %vm3940_vm11, %v3037_v51  ;;  %4457 = vrot.lane.b32.xlu1 %v4452_v25, %s5538_s26  ;;  %v3054_v0 = vpack.c.b16 %v8490_v12, %v3046_v18  ;;  %v1930_v25 = vpack.c.bf16 %v1902_v11, %v1902_v11  ;;  %v4406_v51 = vunpack.c.l.b16 %v1880_v54  ;;  %v8834_v12 = vunpack.c.l.bf16 %v5273_v30  ;;  %v5275_v11 = vld [vmem:[%s5594_s25 + $0x308] sm:$0xf] }
 0x33e   : > { %v3079_v35 = vpop.permute.xlu1 %3078  ;;  %v1854_v34 = vrot.slane %v1798_v10, 1 }
 0x33f   : > { %4443 = vrot.lane.b32.xlu0 %v4438_v17, %s5540_s28  ;;  %v8812_v17 = vpack.c.b16 %v8798_v48, %v4385_v2  ;;  %v8824_v2 = vpack.c.b16 %v8758_v41, %v4383_v19  ;;  %v3191_v45 = vsel %vm2086_vm3, %v3054_v0, %v3079_v35  ;;  %v8841_v19 = vunpack.c.l.b16 %v1930_v25  ;;  %v8846_v40 = vpop.f32.mrf.mxu3  ;;  %v4253_v35 = vpop.f32.mrf.mxu1 }
 0x340   : > { %v1853_v50 = vrot.slane %v8834_v12, 1  ;;  %v8849_v47 = vpack.c.b16 %v4406_v51, %v8832_v43  ;;  %v3202_v4 = vsel %vm2099_vm4, %v3191_v45, %v8730_v55  ;;  %v1811_v61 = vpack.c.bf16 %v8834_v12, %v8834_v12 }
 0x341   : > { %v3407_v27 = vpop.permute.xlu0 %3406  ;;  %4494 = vrot.lane.b32.xlu2 %v8824_v2, %s5543_s4  ;;  %v8858_v53 = vpack.c.b16 %v8841_v19, %v4433_v8  ;;  %v1800_v55 = vunpack.c.l.bf16 %v5276_v5  ;;  %v4254_v22 = vadd.f32 %v4253_v35, %v4058_v60 }
 0x342   : > { %v8816_v16 = vsel %vm2153_vm10, %v3467_v56, %v3407_v27  ;;  %v1855_v18 = vsel %vm294_vm0, %v1853_v50, %v1854_v34  ;;  %v1799_v27 = vunpack.c.l.bf16 %v5275_v11  ;;  %v4387_v0 = vunpack.c.l.b16 %v1811_v61 }
 0x343   : > { %5361 = vmatmul.msk.bf16.gmra.mxu3 %vm3940_vm11, %v8816_v16  ;;  %v1881_v46 = vpack.c.bf16 %v1855_v18, %v1855_v18  ;;  %v1857_v25 = vrot.slane %v1800_v55, 1  ;;  %v8892_v11 = vpop.permute.xlu2 %3161 }
 0x344   : > { %v1812_v18 = vpack.c.bf16 %v1799_v27, %v1799_v27 }
 0x345   : > { %4496 = vrot.lane.b32.xlu1 %v8812_v17, %s5543_s4  ;;  %v4407_v56 = vunpack.c.l.b16 %v1881_v46  ;;  %v4060_v46 = vpop.f32.mrf.mxu0 }
 0x346   : > { %v3135_v41 = vpop.permute.xlu1 %3134 }
 0x347   : > { %4485 = vrot.lane.b32.xlu0 %v4480_v13, %s5542_s30  ;;  %v1856_v13 = vrot.slane %v1799_v27, 1  ;;  %v4467_v50 = vpack.c.b16 %v4407_v56, %v4406_v51  ;;  %v8874_v34 = vpop.f32.mrf.mxu3  ;;  %v4255_v61 = vpop.f32.mrf.mxu1 }
 0x348   : > { %v4256_v5 = vadd.f32 %v4255_v61, %v4060_v46 }
 0x349   : > { %v3121_v63 = vpop.permute.xlu0 %3120  ;;  %4415 = vrot.lane.b32.xlu2 %v8752_v58, %s5539_s27  ;;  %v8876_v58 = vld [vmem:[#allocation2] ss:$0 sm:$0xff] }
 0x34a   : > { %v3210_v29 = vsel %vm2108_vm5, %v3202_v4, %v3121_v63 }
 0x34b   : > { %v3218_v26 = vsel %vm2117_vm6, %v3210_v29, %v3135_v41  ;;  %v1858_v41 = vsel %vm294_vm0, %v1856_v13, %v1857_v25  ;;  %v4466_v29 = vpack.c.b16 %v8832_v43, %v8738_v23  ;;  %v1903_v23 = vrot.slane %v8834_v12, 2 }
 0x34c   : > { %v3226_v30 = vsel %vm2126_vm7, %v3218_v26, %v8767_v20  ;;  %v1882_v4 = vpack.c.bf16 %v1858_v41, %v1858_v41  ;;  %v4453_v20 = vpack.c.b16 %v4387_v0, %v8798_v48  ;;  %v8896_v48 = vunpack.c.l.b16 %v1812_v18 }
 0x34d   : > { %4417 = vrot.lane.b32.xlu1 %v8849_v47, %s5539_s27  ;;  %v1904_v43 = vrot.slane %v1798_v10, 2  ;;  %v5277_v10 = vld [vmem:[%s5594_s25 + $0x310] sm:$0xf] }
 0x34e   : > { %v3171_v8 = vpop.permute.xlu1 %3170  ;;  %v8912_v9 = vpack.c.b16 %v8896_v48, %v4387_v0 }
 0x34f   : > { %v4673_v36 = vpop.f32.mrf.mxu2  ;;  %4518 = vrot.lane.b32.xlu0 %v8858_v53, %s5545_s6 }
 0x350   : > { %v4809_v54 = vadd.f32 %v4673_v36, %v4254_v22  ;;  %v8898_v22 = vunpack.c.l.b16 %v1882_v4  ;;  %v1906_v36 = vrot.slane %v1799_v27, 2  ;;  %v5278_v27 = vld [vmem:[%s5594_s25 + $0x314] sm:$0x1] }
 0x351   : > { %v3160_v45 = vpop.permute.xlu0 %3159  ;;  %4471 = vrot.lane.b32.xlu2 %v4466_v29, %s5541_s29  ;;  %v1802_v18 = vunpack.c.l.bf16 %v5278_v27 }
 0x352   : > { %v4877_v60 = vadd.f32 %v8876_v58, %v4809_v54  ;;  %v3234_v63 = vsel %vm2135_vm8, %v3226_v30, %v3160_v45  ;;  %v1905_v54 = vsel %vm345_vm1, %v1903_v23, %v1904_v43  ;;  %v8907_v45 = vpop.f32.mrf.mxu3  ;;  %v4412_v41 = vpack.c.b16 %v8898_v22, %v4407_v56 }
 0x353   : > { %v3242_v35 = vsel %vm2144_vm9, %v3234_v63, %v3171_v8  ;;  %5362 = vmatmul.msk.bf16.gmra.mxu3 %vm3940_vm11, %v7775_v62  ;;  %v1907_v8 = vrot.slane %v1800_v55, 2  ;;  %v8920_v63 = vunpack.c.l.bf16 %v5277_v10  ;;  %v1910_v29 = vrot.slane %v1802_v18, 2 }
 0x354   : > { %4941 = vst.msk [vmem:[%s7722_s17 + $0x80] sm:$0xff] %vm2153_vm10, %v4877_v60  ;;  %v3250_v51 = vsel %vm2153_vm10, %v3242_v35, %v8809_v31  ;;  %v1931_v60 = vpack.c.bf16 %v1905_v54, %v1905_v54 }
 0x355   : > { %5310 = vmatmul.msk.bf16.gmra.mxu0 %vm3940_vm11, %v3250_v51  ;;  %5354 = vmatmul.msk.bf16.gmra.mxu1 %vm3940_vm11, %v3250_v51  ;;  %v1908_v30 = vsel %vm345_vm1, %v1906_v36, %v1907_v8  ;;  %v1859_v56 = vrot.slane %v8920_v63, 1 }
 0x356   : > { %5391 = vmatmul.msk.bf16.gmra.mxu2 %vm3940_vm11, %v3250_v51  ;;  %4473 = vrot.lane.b32.xlu1 %v4467_v50, %s5541_s29  ;;  %v3109_v26 = vpop.permute.xlu1 %3108  ;;  %v1932_v12 = vpack.c.bf16 %v1908_v30, %v1908_v30  ;;  %v4435_v4 = vunpack.c.l.b16 %v1931_v60  ;;  %v1909_v51 = vrot.slane %v8920_v63, 2 }
 0x357   : > { %v4675_v31 = vpop.f32.mrf.mxu2  ;;  %4459 = vrot.lane.b32.xlu0 %v4453_v20, %s5538_s26  ;;  %v3083_v20 = vpop.permute.xlu2 %3082 }
 0x358   : > { %v4810_v13 = vadd.f32 %v4675_v31, %v4256_v5  ;;  %v4436_v46 = vunpack.c.l.b16 %v1932_v12  ;;  %v1911_v31 = vsel %vm345_vm1, %v1909_v51, %v1910_v29 }
 0x359   : > { %v3081_v25 = vpop.permute.xlu0 %3080  ;;  %4507 = vrot.lane.b32.xlu2 %v8849_v47, %s5544_s5  ;;  %v1933_v36 = vpack.c.bf16 %v1911_v31, %v1911_v31 }
 0x35a   : > { %v4878_v50 = vadd.f32 %v8876_v58, %v4810_v13  ;;  %v3194_v55 = vsel %vm2086_vm3, %v8513_v7, %v3081_v25  ;;  %v1860_v7 = vrot.slane %v1802_v18, 1  ;;  %v8934_v43 = vpack.c.b16 %v4436_v46, %v4435_v4  ;;  %v5279_v13 = vld [vmem:[%s5594_s25 + $0x318] sm:$0xf]  ;;  %v5280_v25 = vld [vmem:[%s5594_s25 + $0x31c] sm:$0x1]  ;;  %v8941_v54 = vpop.f32.mrf.mxu3 }
 0x35b   : > { %v3204_v35 = vsel %vm2099_vm4, %v3194_v55, %v3109_v26  ;;  %v4258_v26 = vpop.f32.mrf.mxu1  ;;  %v8943_v30 = vunpack.c.l.bf16 %v5279_v13 }
 0x35c   : > { %4942 = vst.msk [vmem:[%s7722_s17 + $0x88] sm:$0xff] %vm2153_vm10, %v4878_v50  ;;  %v1861_v5 = vsel %vm294_vm0, %v1859_v56, %v1860_v7  ;;  %v3212_v23 = vsel %vm2108_vm5, %v3204_v35, %v8855_v33  ;;  %v1804_v50 = vunpack.c.l.bf16 %v5280_v25  ;;  %v4478_v33 = vunpack.c.l.b16 %v1933_v36 }
 0x35d   : > { %v1883_v47 = vpack.c.bf16 %v1861_v5, %v1861_v5  ;;  %v1862_v12 = vrot.slane %v8943_v30, 1  ;;  %v1912_v18 = vrot.slane %v8943_v30, 2 }
 0x35e   : > { %4509 = vrot.lane.b32.xlu1 %v4412_v41, %s5544_s5  ;;  %v1863_v55 = vrot.slane %v1804_v50, 1  ;;  %v1913_v56 = vrot.slane %v1804_v50, 2  ;;  %v4482_v5 = vpack.c.b16 %v4478_v33, %v4436_v46 }
 0x35f   : > { %v3151_v0 = vpop.permute.xlu1 %3150  ;;  %4498 = vrot.lane.b32.xlu0 %v8912_v9, %s5543_s4  ;;  %v4464_v27 = vunpack.c.l.b16 %v1883_v47  ;;  %v3139_v7 = vpop.permute.xlu2 %3138 }
 0x360   : > { %v1864_v51 = vsel %vm294_vm0, %v1862_v12, %v1863_v55  ;;  %v1914_v29 = vsel %vm345_vm1, %v1912_v18, %v1913_v56 }
 0x361   : > { %v3137_v61 = vpop.permute.xlu0 %3136  ;;  %4445 = vrot.lane.b32.xlu2 %v8858_v53, %s5540_s28  ;;  %v1934_v31 = vpack.c.bf16 %v1914_v29, %v1914_v29  ;;  %v1884_v36 = vpack.c.bf16 %v1864_v51, %v1864_v51  ;;  %v1813_v51 = vpack.c.bf16 %v8920_v63, %v8920_v63  ;;  %v1814_v63 = vpack.c.bf16 %v8943_v30, %v8943_v30 }
 0x362   : > { %v3220_v8 = vsel %vm2117_vm6, %v3212_v23, %v3137_v61  ;;  %v4063_v61 = vpop.f32.mrf.mxu0  ;;  %v4468_v23 = vpack.c.b16 %v4464_v27, %v8898_v22  ;;  %v8960_v47 = vpop.f32.mrf.mxu3 }
 0x363   : > { %5363 = vmatmul.msk.bf16.gmra.mxu3 %vm3940_vm11, %v7872_v49  ;;  %v3228_v60 = vsel %vm2126_vm7, %v3220_v8, %v3151_v0  ;;  %v4260_v8 = vpop.f32.mrf.mxu1  ;;  %v4514_v46 = vunpack.c.l.b16 %v1934_v31  ;;  %v4259_v13 = vadd.f32 %v4258_v26, %v4063_v61  ;;  %v4503_v22 = vunpack.c.l.b16 %v1884_v36 }
 0x364   : > { %v3236_v35 = vsel %vm2135_vm8, %v3228_v60, %v8892_v11  ;;  %v4481_v11 = vpack.c.b16 %v4435_v4, %v8841_v19  ;;  %v3197_v19 = vsel %vm2086_vm3, %v8553_v39, %v3083_v20 }
 0x365   : > { %v4504_v55 = vpack.c.b16 %v4503_v22, %v4464_v27 }
 0x366   : > { %4447 = vrot.lane.b32.xlu1 %v8934_v43, %s5540_s28 }
 0x367   : > { %v3184_v10 = vpop.permute.xlu1 %3183  ;;  %4419 = vrot.lane.b32.xlu0 %v4412_v41, %s5539_s27  ;;  %v3175_v26 = vpop.permute.xlu2 %3174 }
 0x369   : > { %v3173_v0 = vpop.permute.xlu0 %3172  ;;  %4487 = vrot.lane.b32.xlu2 %v4481_v11, %s5542_s30 }
 0x36a   : > { %v3244_v41 = vsel %vm2144_vm9, %v3236_v35, %v3173_v0  ;;  %v4065_v18 = vpop.f32.mrf.mxu0  ;;  %v8977_v35 = vpop.f32.mrf.mxu3 }
 0x36b   : > { %v3252_v53 = vsel %vm2153_vm10, %v3244_v41, %v3184_v10  ;;  %v4515_v10 = vpack.c.b16 %v4514_v46, %v4478_v33  ;;  %v4263_v33 = vpop.f32.mrf.mxu1  ;;  %v4261_v0 = vadd.f32 %v4260_v8, %v4065_v18 }
 0x36c   : > { %5311 = vmatmul.msk.bf16.gmra.mxu0 %vm3940_vm11, %v3252_v53  ;;  %5355 = vmatmul.msk.bf16.gmra.mxu1 %vm3940_vm11, %v3252_v53 }
 0x36d   : > { %5392 = vmatmul.msk.bf16.gmra.mxu2 %vm3940_vm11, %v3252_v53 }
 0x36e   : > { %4489 = vrot.lane.b32.xlu1 %v4482_v5, %s5542_s30  ;;  %v4450_v5 = vunpack.c.l.b16 %v1813_v51 }
 0x36f   : > { %v3125_v25 = vpop.permute.xlu1 %3124  ;;  %4475 = vrot.lane.b32.xlu0 %v4468_v23, %s5541_s29  ;;  %v3113_v36 = vpop.permute.xlu2 %3112 }
 0x370   : > { %v4678_v50 = vpop.f32.mrf.mxu2  ;;  %v4454_v23 = vpack.c.b16 %v4450_v5, %v8896_v48  ;;  %v4492_v48 = vunpack.c.l.b16 %v1814_v63 }
 0x371   : > { %v4811_v60 = vadd.f32 %v4678_v50, %v4259_v13  ;;  %v3111_v12 = vpop.permute.xlu0 %3110  ;;  %4520 = vrot.lane.b32.xlu2 %v8934_v43, %s5545_s6 }
 0x372   : > { %v3206_v56 = vsel %vm2099_vm4, %v3197_v19, %v3111_v12  ;;  %v8992_v8 = vpop.f32.mrf.mxu3  ;;  %v4493_v22 = vpack.c.b16 %v4492_v48, %v4450_v5 }
 0x373   : > { %v4879_v4 = vadd.f32 %v8876_v58, %v4811_v60  ;;  %5364 = vmatmul.msk.bf16.gmra.mxu3 %vm3940_vm11, %v7952_v14  ;;  %v3214_v39 = vsel %vm2108_vm5, %v3206_v56, %v3125_v25 }
 0x374   : > { %v3222_v41 = vsel %vm2117_vm6, %v3214_v39, %v3139_v7  ;;  %v4265_v7 = vpop.f32.mrf.mxu1 }
 0x375   : > { %4943 = vst.msk [vmem:[%s7722_s17 + $0x90] sm:$0xff] %vm2153_vm10, %v4879_v4 }
 0x376   : > { %4522 = vrot.lane.b32.xlu1 %v4515_v10, %s5545_s6 }
 0x377   : > { %v3164_v20 = vpop.permute.xlu1 %3163  ;;  %4511 = vrot.lane.b32.xlu0 %v4504_v55, %s5544_s5  ;;  %v3155_v60 = vpop.permute.xlu2 %3154 }
 0x378   : > { %v4680_v27 = vpop.f32.mrf.mxu2 }
 0x379   : > { %v4812_v29 = vadd.f32 %v4680_v27, %v4261_v0  ;;  %v3153_v61 = vpop.permute.xlu0 %3152  ;;  %4461 = vrot.lane.b32.xlu2 %v4454_v23, %s5538_s26 }
 0x37a   : > { %v3230_v53 = vsel %vm2126_vm7, %v3222_v41, %v3153_v61  ;;  %v9008_v12 = vpop.f32.mrf.mxu3  ;;  %v9494_v61 = vld [vmem:[#allocation6_spill] sm:$0xff] }
 0x37b   : > { %v4880_v31 = vadd.f32 %v8876_v58, %v4812_v29  ;;  %v3238_v43 = vsel %vm2135_vm8, %v3230_v53, %v3164_v20  ;;  %v4068_v20 = vpop.f32.mrf.mxu0 }
 0x37c   : > { %v3246_v46 = vsel %vm2144_vm9, %v3238_v43, %v3175_v26  ;;  %v4268_v4 = vpop.f32.mrf.mxu1  ;;  %v4264_v5 = vadd.f32 %v4263_v33, %v4068_v20 }
 0x37d   : > { %4944 = vst.msk [vmem:[%s7722_s17 + $0x98] sm:$0xff] %vm2153_vm10, %v4880_v31 }
 0x37f   : > { %v3085_v11 = vpop.permute.xlu1 %3084  ;;  %v3188_v39 = vpop.permute.xlu2 %3187 }
 0x380   : > { %v3200_v30 = vsel %vm2086_vm3, %v8612_v28, %v3085_v11 }
 0x381   : > { %v3186_v13 = vpop.permute.xlu0 %3185  ;;  %4500 = vrot.lane.b32.xlu2 %v4493_v22, %s5543_s4  ;;  %v3208_v19 = vsel %vm2099_vm4, %v3200_v30, %v3113_v36 }
 0x382   : > { %v3254_v25 = vsel %vm2153_vm10, %v3246_v46, %v3186_v13  ;;  %v9013_v18 = vpop.f32.mrf.mxu3 }
 0x383   : > { %5312 = vmatmul.msk.bf16.gmra.mxu0 %vm3940_vm11, %v3254_v25  ;;  %5356 = vmatmul.msk.bf16.gmra.mxu1 %vm3940_vm11, %v3254_v25  ;;  %v4070_v63 = vpop.f32.mrf.mxu0 }
 0x384   : > { %5365 = vmatmul.msk.bf16.gmra.mxu3 %vm3940_vm11, %v8023_v37  ;;  %5393 = vmatmul.msk.bf16.gmra.mxu2 %vm3940_vm11, %v3254_v25  ;;  %v4270_v41 = vpop.f32.mrf.mxu1  ;;  %v4266_v13 = vadd.f32 %v4265_v7, %v4070_v63 }
 0x387   : > { %v3141_v50 = vpop.permute.xlu1 %3140 }
 0x389   : > { %v3127_v10 = vpop.permute.xlu0 %3126 }
 0x38a   : > { %v3216_v26 = vsel %vm2108_vm5, %v3208_v19, %v3127_v10  ;;  %v9024_v36 = vpop.f32.mrf.mxu3 }
 0x38b   : > { %v3224_v55 = vsel %vm2117_vm6, %v3216_v26, %v3141_v50  ;;  %v9495_v50 = vld [vmem:[#allocation22_spill] sm:$0xff] }
 0x38c   : > { %v3232_v0 = vsel %vm2126_vm7, %v3224_v55, %v3155_v60  ;;  %v1805_v55 = vpack.c.bf16 %v8675_v1, %v8675_v1 }
 0x38d   : > { %v4456_v46 = vpop.permute.xlu2 %4455 }
 0x38f   : > { %v3177_v56 = vpop.permute.xlu1 %3176 }
 0x391   : > { %v3166_v28 = vpop.permute.xlu0 %3165 }
 0x392   : > { %v3240_v27 = vsel %vm2135_vm8, %v3232_v0, %v3166_v28  ;;  %v9029_v30 = vpop.f32.mrf.mxu3  ;;  %v4073_v0 = vpop.f32.mrf.mxu0 }
 0x393   : > { %v3248_v51 = vsel %vm2144_vm9, %v3240_v27, %v3177_v56 }
 0x394   : > { %v3256_v29 = vsel %vm2153_vm10, %v3248_v51, %v3188_v39  ;;  %5403 = vmatmul.msk.bf16.vlgmr.msra.gmra.mxu3 %vm3940_vm11, %v9494_v61  ;;  %v9496_v39 = vld [vmem:[#allocation8_spill] sm:$0xff] }
 0x395   : > { %5313 = vmatmul.msk.bf16.gmra.mxu0 %vm3940_vm11, %v3256_v29  ;;  %5357 = vmatmul.msk.bf16.gmra.mxu1 %vm3940_vm11, %v3256_v29 }
 0x396   : > { %5394 = vmatmul.msk.bf16.gmra.mxu2 %vm3940_vm11, %v3256_v29 }
 0x397   : > { %v4442_v43 = vpop.permute.xlu1 %4441 }
 0x398   : > { %v4683_v31 = vpop.f32.mrf.mxu2 }
 0x399   : > { %v4813_v53 = vadd.f32 %v4683_v31, %v4264_v5  ;;  %v4414_v23 = vpop.permute.xlu0 %4413  ;;  %v4269_v31 = vadd.f32 %v4268_v4, %v4073_v0 }
 0x39a   : > { %v9040_v19 = vpop.f32.mrf.mxu3  ;;  %v4075_v29 = vpop.f32.mrf.mxu0 }
 0x39b   : > { %v4881_v11 = vadd.f32 %v8876_v58, %v4813_v53  ;;  %v4495_v7 = vpop.permute.xlu2 %4494 }
 0x39d   : > { %4945 = vst.msk [vmem:[%s7722_s17 + $0xa0] sm:$0xff] %vm2153_vm10, %v4881_v11 }
 0x39f   : > { %v4484_v60 = vpop.permute.xlu1 %4483 }
 0x3a0   : > { %v4685_v25 = vpop.f32.mrf.mxu2 }
 0x3a1   : > { %v4814_v48 = vadd.f32 %v4685_v25, %v4266_v13  ;;  %v4470_v22 = vpop.permute.xlu0 %4469 }
 0x3a2   : > { %v9044_v28 = vpop.f32.mrf.mxu3 }
 0x3a3   : > { %v4882_v33 = vadd.f32 %v8876_v58, %v4814_v48  ;;  %v4416_v56 = vpop.permute.xlu2 %4415 }
 0x3a4   : > { %5404 = vmatmul.msk.bf16.gmra.mxu3 %vm3940_vm11, %v9495_v50 }
 0x3a5   : > { %4946 = vst.msk [vmem:[%s7722_s17 + $0xa8] sm:$0xff] %vm2153_vm10, %v4882_v33  ;;  %5314 = vmatmul.msk.bf16.gmra.mxu0 %vm3940_vm11, %v8469_v24  ;;  %v9497_v33 = vld [vmem:[#allocation17_spill] sm:$0xff] }
 0x3a6   : > { %5395 = vmatmul.msk.bf16.gmra.mxu2 %vm3940_vm11, %v8469_v24  ;;  %v4381_v24 = vunpack.c.l.b16 %v1805_v55 }
 0x3a7   : > { %v4517_v26 = vpop.permute.xlu1 %4516 }
 0x3a8   : > { %v4389_v51 = vpack.c.b16 %v8784_v32, %v4381_v24  ;;  %v4078_v32 = vpop.f32.mrf.mxu0 }
 0x3a9   : > { %v4506_v10 = vpop.permute.xlu0 %4505 }
 0x3aa   : > { %v9053_v61 = vpop.f32.mrf.mxu3  ;;  %v4526_v5 = vsel %vm2086_vm3, %v4389_v51, %v4414_v23 }
 0x3ab   : > { %v4472_v1 = vpop.permute.xlu2 %4471  ;;  %v4537_v63 = vsel %vm2099_vm4, %v4526_v5, %v4442_v43  ;;  %v4271_v43 = vadd.f32 %v4270_v41, %v4075_v29  ;;  %v4529_v5 = vsel %vm2086_vm3, %v8824_v2, %v4416_v56 }
 0x3af   : > { %v4458_v27 = vpop.permute.xlu1 %4457 }
 0x3b0   : > { %v4080_v41 = vpop.f32.mrf.mxu0 }
 0x3b1   : > { %v4444_v20 = vpop.permute.xlu0 %4443 }
 0x3b3   : > { %v4508_v23 = vpop.permute.xlu2 %4507 }
 0x3b4   : > { %5405 = vmatmul.msk.bf16.gmra.mxu3 %vm3940_vm11, %v9496_v39 }
 0x3b5   : > { %5315 = vmatmul.msk.bf16.gmra.mxu0 %vm3940_vm11, %v8583_v3 }
 0x3b6   : > { %5396 = vmatmul.msk.bf16.gmra.mxu2 %vm3940_vm11, %v8583_v3  ;;  %v4545_v3 = vsel %vm2108_vm5, %v4537_v63, %v4456_v46  ;;  %v4273_v46 = vpop.f32.mrf.mxu1 }
 0x3b7   : > { %v4497_v25 = vpop.permute.xlu1 %4496  ;;  %v4553_v50 = vsel %vm2117_vm6, %v4545_v3, %v4470_v22  ;;  %v4539_v22 = vsel %vm2099_vm4, %v4529_v5, %v4444_v20  ;;  %v4274_v20 = vadd.f32 %v4273_v46, %v4078_v32 }
 0x3b8   : > { %v4561_v24 = vsel %vm2126_vm7, %v4553_v50, %v4484_v60  ;;  %v4547_v60 = vsel %vm2108_vm5, %v4539_v22, %v4458_v27  ;;  %v4083_v56 = vpop.f32.mrf.mxu0 }
 0x3b9   : > { %v4486_v53 = vpop.permute.xlu0 %4485  ;;  %v4555_v2 = vsel %vm2117_vm6, %v4547_v60, %v4472_v1 }
 0x3ba   : > { %v4563_v27 = vsel %vm2126_vm7, %v4555_v2, %v4486_v53 }
 0x3bb   : > { %v4446_v63 = vpop.permute.xlu2 %4445  ;;  %v4571_v50 = vsel %vm2135_vm8, %v4563_v27, %v4497_v25 }
 0x3c0   : > { %v4688_v11 = vpop.f32.mrf.mxu2  ;;  %v4085_v5 = vpop.f32.mrf.mxu0 }
 0x3c1   : > { %v4815_v13 = vadd.f32 %v4688_v11, %v4269_v31  ;;  %v4519_v39 = vpop.permute.xlu0 %4518  ;;  %v4418_v31 = vpop.permute.xlu1 %4417 }
 0x3c3   : > { %v4883_v48 = vadd.f32 %v8876_v58, %v4815_v13  ;;  %v4275_v13 = vpop.f32.mrf.mxu1 }
 0x3c4   : > { %5406 = vmatmul.msk.bf16.gmra.mxu3 %vm3940_vm11, %v9497_v33  ;;  %v4276_v46 = vadd.f32 %v4275_v13, %v4080_v41 }
 0x3c5   : > { %4947 = vst.msk [vmem:[%s7722_s17 + $0xb0] sm:$0xff] %vm2153_vm10, %v4883_v48  ;;  %5316 = vmatmul.msk.bf16.gmra.mxu0 %vm3940_vm11, %v8700_v52 }
 0x3c6   : > { %5397 = vmatmul.msk.bf16.gmra.mxu2 %vm3940_vm11, %v8700_v52  ;;  %v9067_v4 = vpop.f32.mrf.mxu3  ;;  %v4569_v52 = vsel %vm2135_vm8, %v4561_v24, %v4495_v7 }
 0x3c7   : > { %v4577_v29 = vsel %vm2144_vm9, %v4569_v52, %v4506_v10 }
 0x3c8   : > { %v4690_v55 = vpop.f32.mrf.mxu2  ;;  %v4585_v48 = vsel %vm2153_vm10, %v4577_v29, %v4517_v26  ;;  %v4088_v13 = vpop.f32.mrf.mxu0 }
 0x3c9   : > { %v4816_v0 = vadd.f32 %v4690_v55, %v4271_v43  ;;  %v4460_v3 = vpop.permute.xlu0 %4459  ;;  %v4474_v10 = vpop.permute.xlu1 %4473 }
 0x3ca   : > { %v4488_v43 = vpop.permute.xlu2 %4487 }
 0x3cb   : > { %v4884_v51 = vadd.f32 %v8876_v58, %v4816_v0  ;;  %v4278_v1 = vpop.f32.mrf.mxu1  ;;  %v4532_v0 = vsel %vm2086_vm3, %v8812_v17, %v4418_v31 }
 0x3cc   : > { %v4541_v53 = vsel %vm2099_vm4, %v4532_v0, %v4446_v63 }
 0x3cd   : > { %4948 = vst.msk [vmem:[%s7722_s17 + $0xb8] sm:$0xff] %vm2153_vm10, %v4884_v51  ;;  %v4549_v29 = vsel %vm2108_vm5, %v4541_v53, %v4460_v3 }
 0x3ce   : > { %v9077_v11 = vpop.f32.mrf.mxu3  ;;  %v4557_v31 = vsel %vm2117_vm6, %v4549_v29, %v4474_v10 }
 0x3cf   : > { %v4565_v63 = vsel %vm2126_vm7, %v4557_v31, %v4488_v43 }
 0x3d1   : > { %v4499_v24 = vpop.permute.xlu0 %4498  ;;  %v4510_v51 = vpop.permute.xlu1 %4509 }
 0x3d2   : > { %v4573_v3 = vsel %vm2135_vm8, %v4565_v63, %v4499_v24 }
 0x3d3   : > { %v4280_v60 = vpop.f32.mrf.mxu1  ;;  %v4581_v10 = vsel %vm2144_vm9, %v4573_v3, %v4510_v51 }
 0x3d4   : > { %5407 = vmatmul.msk.bf16.gmra.mxu3 %vm3940_vm11, %v4585_v48 }
 0x3d5   : > { %5317 = vmatmul.msk.bf16.gmra.mxu0 %vm3940_vm11, %v8816_v16 }
 0x3d6   : > { %5398 = vmatmul.msk.bf16.gmra.mxu2 %vm3940_vm11, %v8816_v16  ;;  %v9089_v7 = vpop.f32.mrf.mxu3  ;;  %v4579_v16 = vsel %vm2144_vm9, %v4571_v50, %v4508_v23  ;;  %v4521_v23 = vpop.permute.xlu2 %4520 }
 0x3d7   : > { %v4587_v25 = vsel %vm2153_vm10, %v4579_v16, %v4519_v39  ;;  %v4589_v43 = vsel %vm2153_vm10, %v4581_v10, %v4521_v23  ;;  %v4090_v16 = vpop.f32.mrf.mxu0 }
 0x3d9   : > { %v4693_v26 = vpop.f32.mrf.mxu2  ;;  %v4420_v39 = vpop.permute.xlu0 %4419 }
 0x3da   : > { %v4817_v33 = vadd.f32 %v4693_v26, %v4274_v20  ;;  %v4448_v48 = vpop.permute.xlu1 %4447  ;;  %v4535_v2 = vsel %vm2086_vm3, %v8912_v9, %v4420_v39  ;;  %v4279_v26 = vadd.f32 %v4278_v1, %v4083_v56 }
 0x3dc   : > { %v4885_v55 = vadd.f32 %v8876_v58, %v4817_v33  ;;  %v4283_v33 = vpop.f32.mrf.mxu1 }
 0x3de   : > { %4949 = vst.msk [vmem:[%s7722_s17 + $0xc0] sm:$0xff] %vm2153_vm10, %v4885_v55  ;;  %v9099_v32 = vpop.f32.mrf.mxu3  ;;  %v4462_v27 = vpop.permute.xlu2 %4461 }
 0x3e1   : > { %v4695_v52 = vpop.f32.mrf.mxu2  ;;  %v4476_v0 = vpop.permute.xlu0 %4475 }
 0x3e2   : > { %v4818_v22 = vadd.f32 %v4695_v52, %v4276_v46  ;;  %v4490_v53 = vpop.permute.xlu1 %4489  ;;  %v4281_v46 = vadd.f32 %v4280_v60, %v4085_v5 }
 0x3e4   : > { %v4886_v17 = vadd.f32 %v8876_v58, %v4818_v22  ;;  %5408 = vmatmul.msk.bf16.gmra.mxu3 %vm3940_vm11, %v4587_v25  ;;  %v4285_v29 = vpop.f32.mrf.mxu1 }
 0x3e6   : > { %4950 = vst.msk [vmem:[%s7722_s17 + $0xc8] sm:$0xff] %vm2153_vm10, %v4886_v17  ;;  %5399 = vmatmul.msk.bf16.gmra.mxu2 %vm3940_vm11, %v7775_v62  ;;  %v9111_v41 = vpop.f32.mrf.mxu3  ;;  %v4543_v62 = vsel %vm2099_vm4, %v4535_v2, %v4448_v48  ;;  %v4501_v52 = vpop.permute.xlu2 %4500  ;;  %v4284_v2 = vadd.f32 %v4283_v33, %v4088_v13  ;;  %v4334_v33 = vadd.f32 %v9013_v18, %v8606_v59 }
 0x3e7   : > { %v4551_v24 = vsel %vm2108_vm5, %v4543_v62, %v4462_v27  ;;  %v4093_v17 = vpop.f32.mrf.mxu0  ;;  %v4336_v59 = vadd.f32 %v9024_v36, %v8628_v15  ;;  %v4339_v15 = vadd.f32 %v9029_v30, %v8657_v57  ;;  %v4341_v57 = vadd.f32 %v9040_v19, %v8709_v38 }
 0x3e8   : > { %v4559_v56 = vsel %vm2117_vm6, %v4551_v24, %v4476_v0  ;;  %v4344_v38 = vadd.f32 %v9044_v28, %v8724_v21  ;;  %v4346_v21 = vadd.f32 %v9053_v61, %v8735_v6  ;;  %v4349_v6 = vadd.f32 %v9067_v4, %v8760_v44 }
 0x3e9   : > { %v4567_v25 = vsel %vm2126_vm7, %v4559_v56, %v4490_v53  ;;  %v4512_v39 = vpop.permute.xlu0 %4511  ;;  %v4351_v44 = vadd.f32 %v9077_v11, %v8803_v42 }
 0x3ea   : > { %v4575_v31 = vsel %vm2135_vm8, %v4567_v25, %v4501_v52  ;;  %v4523_v5 = vpop.permute.xlu1 %4522 }
 0x3ec   : > { %v4288_v48 = vpop.f32.mrf.mxu1 }
 0x3ee   : > { %v9118_v20 = vpop.f32.mrf.mxu3 }
 0x3ef   : > { %v4095_v3 = vpop.f32.mrf.mxu0 }
 0x3f0   : > { %v4698_v50 = vpop.f32.mrf.mxu2 }
 0x3f1   : > { %v4819_v55 = vadd.f32 %v4698_v50, %v4279_v26 }
 0x3f3   : > { %v4887_v9 = vadd.f32 %v8876_v58, %v4819_v55  ;;  %v4286_v55 = vadd.f32 %v4285_v29, %v4090_v16  ;;  %v4289_v16 = vadd.f32 %v4288_v48, %v4093_v17 }
 0x3f4   : > { %5409 = vmatmul.msk.bf16.gmra.mxu3 %vm3940_vm11, %v4589_v43  ;;  %v4290_v43 = vpop.f32.mrf.mxu1 }
 0x3f5   : > { %4951 = vst.msk [vmem:[%s7722_s17 + $0xd0] sm:$0xff] %vm2153_vm10, %v4887_v9  ;;  %v4291_v17 = vadd.f32 %v4290_v43, %v4095_v3 }
 0x3f6   : > { %5400 = vmatmul.msk.bf16.gmra.mxu2 %vm3940_vm11, %v7872_v49  ;;  %v9130_v1 = vpop.f32.mrf.mxu3  ;;  %v4583_v49 = vsel %vm2144_vm9, %v4575_v31, %v4512_v39 }
 0x3f7   : > { %v4591_v60 = vsel %vm2153_vm10, %v4583_v49, %v4523_v5  ;;  %v4098_v50 = vpop.f32.mrf.mxu0 }
 0x3f8   : > { %v4700_v51 = vpop.f32.mrf.mxu2 }
 0x3f9   : > { %v4820_v22 = vadd.f32 %v4700_v51, %v4281_v46 }
 0x3fb   : > { %v4888_v23 = vadd.f32 %v8876_v58, %v4820_v22 }
 0x3fd   : > { %4952 = vst.msk [vmem:[%s7722_s17 + $0xd8] sm:$0xff] %vm2153_vm10, %v4888_v23 }
 0x3fe   : > { %v9137_v63 = vpop.f32.mrf.mxu3 }
 0x3ff   : > { %v4100_v53 = vpop.f32.mrf.mxu0 }
 0x404   : > { %5410 = vmatmul.msk.bf16.gmra.mxu3 %vm3940_vm11, %v4591_v60 }
 0x406   : > { %5401 = vmatmul.msk.bf16.gmra.mxu2 %vm3940_vm11, %v7952_v14  ;;  %v4293_v14 = vpop.f32.mrf.mxu1 }
 0x407   : > { %v9144_v10 = vpop.f32.mrf.mxu3  ;;  %v4703_v27 = vpop.f32.mrf.mxu2  ;;  %v4294_v48 = vadd.f32 %v4293_v14, %v4098_v50 }
 0x408   : > { %v4821_v26 = vadd.f32 %v4703_v27, %v4284_v2 }
 0x40a   : > { %v4889_v62 = vadd.f32 %v8876_v58, %v4821_v26 }
 0x40c   : > { %4953 = vst.msk [vmem:[%s7722_s17 + $0xe0] sm:$0xff] %vm2153_vm10, %v4889_v62 }
 0x40e   : > { %v4295_v29 = vpop.f32.mrf.mxu1 }
 0x40f   : > { %v9149_v0 = vpop.f32.mrf.mxu3  ;;  %v4705_v24 = vpop.f32.mrf.mxu2 }
 0x410   : > { %v4822_v9 = vadd.f32 %v4705_v24, %v4286_v55  ;;  %v4296_v55 = vadd.f32 %v4295_v29, %v4100_v53 }
 0x412   : > { %v4890_v13 = vadd.f32 %v8876_v58, %v4822_v9 }
 0x414   : > { %4954 = vst.msk [vmem:[%s7722_s17 + $0xe8] sm:$0xff] %vm2153_vm10, %v4890_v13 }
 0x416   : > { %5402 = vmatmul.msk.bf16.gmra.mxu2 %vm3940_vm11, %v8023_v37  ;;  %v4103_v37 = vpop.f32.mrf.mxu0  ;;  %v4298_v60 = vpop.f32.mrf.mxu1 }
 0x417   : > { %v4753_v56 = vpop.f32.mrf.mxu3  ;;  %v4299_v53 = vadd.f32 %v4298_v60, %v4103_v37 }
 0x418   : > { %v4841_v46 = vadd.f32 %v4753_v56, %v4334_v33 }
 0x419   : > { %v4708_v51 = vpop.f32.mrf.mxu2 }
 0x41a   : > { %v4909_v25 = vadd.f32 %v8876_v58, %v4841_v46  ;;  %v4823_v52 = vadd.f32 %v4708_v51, %v4289_v16 }
 0x41c   : > { %4973 = vst.msk [vmem:[%s7722_s17 + $0x180] sm:$0xff] %vm2153_vm10, %v4909_v25  ;;  %v4891_v22 = vadd.f32 %v8876_v58, %v4823_v52 }
 0x41e   : > { %4955 = vst.msk [vmem:[%s7722_s17 + $0xf0] sm:$0xff] %vm2153_vm10, %v4891_v22  ;;  %v4105_v2 = vpop.f32.mrf.mxu0  ;;  %v4300_v13 = vpop.f32.mrf.mxu1 }
 0x41f   : > { %v4755_v18 = vpop.f32.mrf.mxu3  ;;  %v4301_v37 = vadd.f32 %v4300_v13, %v4105_v2 }
 0x420   : > { %v4842_v23 = vadd.f32 %v4755_v18, %v4336_v59 }
 0x421   : > { %v4710_v31 = vpop.f32.mrf.mxu2 }
 0x422   : > { %v4910_v39 = vadd.f32 %v8876_v58, %v4842_v23  ;;  %v4824_v49 = vadd.f32 %v4710_v31, %v4291_v17 }
 0x424   : > { %4974 = vst.msk [vmem:[%s7722_s17 + $0x188] sm:$0xff] %vm2153_vm10, %v4910_v39  ;;  %v4892_v5 = vadd.f32 %v8876_v58, %v4824_v49 }
 0x426   : > { %4956 = vst.msk [vmem:[%s7722_s17 + $0xf8] sm:$0xff] %vm2153_vm10, %v4892_v5  ;;  %v4108_v24 = vpop.f32.mrf.mxu0  ;;  %v4303_v51 = vpop.f32.mrf.mxu1 }
 0x427   : > { %v4758_v36 = vpop.f32.mrf.mxu3  ;;  %v4304_v5 = vadd.f32 %v4303_v51, %v4108_v24  ;;  %v4354_v24 = vadd.f32 %v9089_v7, %v8846_v40 }
 0x428   : > { %v4843_v3 = vadd.f32 %v4758_v36, %v4339_v15 }
 0x429   : > { %v4713_v27 = vpop.f32.mrf.mxu2 }
 0x42a   : > { %v4911_v26 = vadd.f32 %v8876_v58, %v4843_v3  ;;  %v4825_v62 = vadd.f32 %v4713_v27, %v4294_v48 }
 0x42c   : > { %4975 = vst.msk [vmem:[%s7722_s17 + $0x190] sm:$0xff] %vm2153_vm10, %v4911_v26  ;;  %v4893_v43 = vadd.f32 %v8876_v58, %v4825_v62 }
 0x42e   : > { %4957 = vst.msk [vmem:[%s7722_s17 + $0x100] sm:$0xff] %vm2153_vm10, %v4893_v43  ;;  %v4110_v22 = vpop.f32.mrf.mxu0  ;;  %v4305_v39 = vpop.f32.mrf.mxu1 }
 0x42f   : > { %v4760_v30 = vpop.f32.mrf.mxu3  ;;  %v4306_v26 = vadd.f32 %v4305_v39, %v4110_v22 }
 0x430   : > { %v4844_v50 = vadd.f32 %v4760_v30, %v4341_v57 }
 0x431   : > { %v4715_v9 = vpop.f32.mrf.mxu2 }
 0x432   : > { %v4912_v14 = vadd.f32 %v8876_v58, %v4844_v50  ;;  %v4826_v33 = vadd.f32 %v4715_v9, %v4296_v55 }
 0x434   : > { %4976 = vst.msk [vmem:[%s7722_s17 + $0x198] sm:$0xff] %vm2153_vm10, %v4912_v14  ;;  %v4894_v56 = vadd.f32 %v8876_v58, %v4826_v33 }
 0x436   : > { %4958 = vst.msk [vmem:[%s7722_s17 + $0x108] sm:$0xff] %vm2153_vm10, %v4894_v56  ;;  %v4113_v31 = vpop.f32.mrf.mxu0  ;;  %v4308_v3 = vpop.f32.mrf.mxu1 }
 0x437   : > { %v4763_v19 = vpop.f32.mrf.mxu3  ;;  %v4309_v9 = vadd.f32 %v4308_v3, %v4113_v31 }
 0x438   : > { %v4845_v16 = vadd.f32 %v4763_v19, %v4344_v38  ;;  %v4356_v19 = vadd.f32 %v9099_v32, %v8874_v34  ;;  %v4359_v34 = vadd.f32 %v9111_v41, %v8907_v45  ;;  %v4361_v45 = vadd.f32 %v9118_v20, %v8941_v54 }
 0x439   : > { %v4718_v46 = vpop.f32.mrf.mxu2  ;;  %v4364_v54 = vadd.f32 %v9130_v1, %v8960_v47 }
 0x43a   : > { %v4913_v25 = vadd.f32 %v8876_v58, %v4845_v16  ;;  %v4827_v52 = vadd.f32 %v4718_v46, %v4299_v53 }
 0x43c   : > { %4977 = vst.msk [vmem:[%s7722_s17 + $0x1a0] sm:$0xff] %vm2153_vm10, %v4913_v25  ;;  %v4895_v59 = vadd.f32 %v8876_v58, %v4827_v52 }
 0x43e   : > { %4959 = vst.msk [vmem:[%s7722_s17 + $0x110] sm:$0xff] %vm2153_vm10, %v4895_v59  ;;  %v4115_v27 = vpop.f32.mrf.mxu0  ;;  %v4310_v50 = vpop.f32.mrf.mxu1 }
 0x43f   : > { %v4765_v28 = vpop.f32.mrf.mxu3  ;;  %v4311_v53 = vadd.f32 %v4310_v50, %v4115_v27 }
 0x440   : > { %v4846_v18 = vadd.f32 %v4765_v28, %v4346_v21 }
 0x441   : > { %v4720_v29 = vpop.f32.mrf.mxu2 }
 0x442   : > { %v4914_v17 = vadd.f32 %v8876_v58, %v4846_v18  ;;  %v4828_v23 = vadd.f32 %v4720_v29, %v4301_v37 }
 0x444   : > { %4978 = vst.msk [vmem:[%s7722_s17 + $0x1a8] sm:$0xff] %vm2153_vm10, %v4914_v17  ;;  %v4896_v49 = vadd.f32 %v8876_v58, %v4828_v23 }
 0x446   : > { %4960 = vst.msk [vmem:[%s7722_s17 + $0x118] sm:$0xff] %vm2153_vm10, %v4896_v49  ;;  %v4118_v42 = vpop.f32.mrf.mxu0  ;;  %v4313_v40 = vpop.f32.mrf.mxu1 }
 0x447   : > { %v4768_v61 = vpop.f32.mrf.mxu3  ;;  %v4314_v59 = vadd.f32 %v4313_v40, %v4118_v42 }
 0x448   : > { %v4847_v15 = vadd.f32 %v4768_v61, %v4349_v6 }
 0x449   : > { %v4723_v36 = vpop.f32.mrf.mxu2 }
 0x44a   : > { %v4915_v60 = vadd.f32 %v8876_v58, %v4847_v15  ;;  %v4829_v48 = vadd.f32 %v4723_v36, %v4304_v5 }
 0x44c   : > { %4979 = vst.msk [vmem:[%s7722_s17 + $0x1b0] sm:$0xff] %vm2153_vm10, %v4915_v60  ;;  %v4897_v2 = vadd.f32 %v8876_v58, %v4829_v48 }
 0x44e   : > { %4961 = vst.msk [vmem:[%s7722_s17 + $0x120] sm:$0xff] %vm2153_vm10, %v4897_v2  ;;  %v4120_v46 = vpop.f32.mrf.mxu0  ;;  %v4315_v28 = vpop.f32.mrf.mxu1 }
 0x44f   : > { %v4770_v4 = vpop.f32.mrf.mxu3  ;;  %v4316_v31 = vadd.f32 %v4315_v28, %v4120_v46 }
 0x450   : > { %v4848_v62 = vadd.f32 %v4770_v4, %v4351_v44 }
 0x451   : > { %v4725_v43 = vpop.f32.mrf.mxu2 }
 0x452   : > { %v4916_v57 = vadd.f32 %v8876_v58, %v4848_v62  ;;  %v4830_v30 = vadd.f32 %v4725_v43, %v4306_v26  ;;  %v4366_v26 = vadd.f32 %v9137_v63, %v8977_v35  ;;  %v4369_v35 = vadd.f32 %v9144_v10, %v8992_v8 }
 0x454   : > { %4980 = vst.msk [vmem:[%s7722_s17 + $0x1b8] sm:$0xff] %vm2153_vm10, %v4916_v57  ;;  %v4898_v55 = vadd.f32 %v8876_v58, %v4830_v30 }
 0x456   : > { %4962 = vst.msk [vmem:[%s7722_s17 + $0x128] sm:$0xff] %vm2153_vm10, %v4898_v55  ;;  %v4123_v17 = vpop.f32.mrf.mxu0  ;;  %v4318_v49 = vpop.f32.mrf.mxu1 }
 0x457   : > { %v4773_v11 = vpop.f32.mrf.mxu3  ;;  %v4319_v60 = vadd.f32 %v4318_v49, %v4123_v17 }
 0x458   : > { %v4849_v13 = vadd.f32 %v4773_v11, %v4354_v24 }
 0x459   : > { %v4728_v14 = vpop.f32.mrf.mxu2 }
 0x45a   : > { %v4917_v33 = vadd.f32 %v8876_v58, %v4849_v13  ;;  %v4831_v56 = vadd.f32 %v4728_v14, %v4309_v9  ;;  %v5478_v14 = vld [vmem:[#allocation2] ss:$0 sm:$0xff] }
 0x45c   : > { %4981 = vst.msk [vmem:[%s7722_s17 + $0x1c0] sm:$0xff] %vm2153_vm10, %v4917_v33  ;;  %v4899_v38 = vadd.f32 %v8876_v58, %v4831_v56 }
 0x45e   : > { %4963 = vst.msk [vmem:[%s7722_s17 + $0x130] sm:$0xff] %vm2153_vm10, %v4899_v38  ;;  %v4125_v36 = vpop.f32.mrf.mxu0  ;;  %v4320_v44 = vpop.f32.mrf.mxu1 }
 0x45f   : > { %v4775_v7 = vpop.f32.mrf.mxu3  ;;  %v4321_v62 = vadd.f32 %v4320_v44, %v4125_v36 }
 0x460   : > { %v4850_v16 = vadd.f32 %v4775_v7, %v4356_v19 }
 0x461   : > { %v4730_v51 = vpop.f32.mrf.mxu2 }
 0x462   : > { %v4918_v25 = vadd.f32 %v8876_v58, %v4850_v16  ;;  %v4832_v52 = vadd.f32 %v4730_v51, %v4311_v53 }
 0x464   : > { %4982 = vst.msk [vmem:[%s7722_s17 + $0x1c8] sm:$0xff] %vm2153_vm10, %v4918_v25  ;;  %v4900_v22 = vadd.f32 %v8876_v58, %v4832_v52 }
 0x466   : > { %4964 = vst.msk [vmem:[%s7722_s17 + $0x138] sm:$0xff] %vm2153_vm10, %v4900_v22  ;;  %v4128_v47 = vpop.f32.mrf.mxu0  ;;  %v4323_v50 = vpop.f32.mrf.mxu1 }
 0x467   : > { %v4778_v32 = vpop.f32.mrf.mxu3  ;;  %v4324_v42 = vadd.f32 %v4323_v50, %v4128_v47 }
 0x468   : > { %v4851_v21 = vadd.f32 %v4778_v32, %v4359_v34 }
 0x469   : > { %v4733_v37 = vpop.f32.mrf.mxu2 }
 0x46a   : > { %v4919_v18 = vadd.f32 %v8876_v58, %v4851_v21  ;;  %v4833_v29 = vadd.f32 %v4733_v37, %v4314_v59 }
 0x46c   : > { %4983 = vst.msk [vmem:[%s7722_s17 + $0x1d0] sm:$0xff] %vm2153_vm10, %v4919_v18  ;;  %v4901_v23 = vadd.f32 %v8876_v58, %v4833_v29 }
 0x46e   : > { %4965 = vst.msk [vmem:[%s7722_s17 + $0x140] sm:$0xff] %vm2153_vm10, %v4901_v23  ;;  %v4130_v9 = vpop.f32.mrf.mxu0  ;;  %v4325_v19 = vpop.f32.mrf.mxu1 }
 0x46f   : > { %v4780_v41 = vpop.f32.mrf.mxu3  ;;  %v4326_v10 = vadd.f32 %v4325_v19, %v4130_v9 }
 0x470   : > { %v4852_v39 = vadd.f32 %v4780_v41, %v4361_v45 }
 0x471   : > { %v4735_v6 = vpop.f32.mrf.mxu2 }
 0x472   : > { %v4920_v61 = vadd.f32 %v8876_v58, %v4852_v39  ;;  %v4834_v5 = vadd.f32 %v4735_v6, %v4316_v31 }
 0x474   : > { %4984 = vst.msk [vmem:[%s7722_s17 + $0x1d8] sm:$0xff] %vm2153_vm10, %v4920_v61  ;;  %v4902_v15 = vadd.f32 %v8876_v58, %v4834_v5 }
 0x476   : > { %4966 = vst.msk [vmem:[%s7722_s17 + $0x148] sm:$0xff] %vm2153_vm10, %v4902_v15  ;;  %v4133_v46 = vpop.f32.mrf.mxu0  ;;  %v4328_v25 = vpop.f32.mrf.mxu1 }
 0x477   : > { %v4783_v20 = vpop.f32.mrf.mxu3  ;;  %v4329_v52 = vadd.f32 %v4328_v25, %v4133_v46 }
 0x478   : > { %v4853_v48 = vadd.f32 %v4783_v20, %v4364_v54 }
 0x479   : > { %v4738_v3 = vpop.f32.mrf.mxu2 }
 0x47a   : > { %v4921_v2 = vadd.f32 %v8876_v58, %v4853_v48  ;;  %v4835_v27 = vadd.f32 %v4738_v3, %v4319_v60 }
 0x47c   : > { %4985 = vst.msk [vmem:[%s7722_s17 + $0x1e0] sm:$0xff] %vm2153_vm10, %v4921_v2  ;;  %v4903_v4 = vadd.f32 %v8876_v58, %v4835_v27 }
 0x47e   : > { %4967 = vst.msk [vmem:[%s7722_s17 + $0x150] sm:$0xff] %vm2153_vm10, %v4903_v4  ;;  %v4135_v34 = vpop.f32.mrf.mxu0  ;;  %v4330_v32 = vpop.f32.mrf.mxu1 }
 0x47f   : > { %v4785_v1 = vpop.f32.mrf.mxu3  ;;  %v4331_v59 = vadd.f32 %v4330_v32, %v4135_v34 }
 0x480   : > { %v4854_v43 = vadd.f32 %v4785_v1, %v4366_v26 }
 0x481   : > { %v4740_v57 = vpop.f32.mrf.mxu2 }
 0x482   : > { %v4922_v30 = vadd.f32 %v8876_v58, %v4854_v43  ;;  %v4836_v55 = vadd.f32 %v4740_v57, %v4321_v62 }
 0x484   : > { %4986 = vst.msk [vmem:[%s7722_s17 + $0x1e8] sm:$0xff] %vm2153_vm10, %v4922_v30  ;;  %v4904_v24 = vadd.f32 %v8876_v58, %v4836_v55  ;;  %v4371_v58 = vadd.f32 %v9149_v0, %v9008_v12 }
 0x486   : > { %4968 = vst.msk [vmem:[%s7722_s17 + $0x158] sm:$0xff] %vm2153_vm10, %v4904_v24 }
 0x487   : > { %v4788_v63 = vpop.f32.mrf.mxu3 }
 0x488   : > { %v4855_v11 = vadd.f32 %v4788_v63, %v4369_v35 }
 0x489   : > { %v4743_v13 = vpop.f32.mrf.mxu2 }
 0x48a   : > { %v4923_v33 = vadd.f32 %v5478_v14, %v4855_v11  ;;  %v4837_v56 = vadd.f32 %v4743_v13, %v4324_v42 }
 0x48c   : > { %4987 = vst.msk [vmem:[%s7722_s17 + $0x1f0] sm:$0xff] %vm2153_vm10, %v4923_v33  ;;  %v4905_v38 = vadd.f32 %v5478_v14, %v4837_v56 }
 0x48e   : > { %4969 = vst.msk [vmem:[%s7722_s17 + $0x160] sm:$0xff] %vm2153_vm10, %v4905_v38 }
 0x48f   : > { %v4790_v8 = vpop.f32.mrf.mxu3 }
 0x490   : > { %v4856_v40 = vadd.f32 %v4790_v8, %v4371_v58 }
 0x491   : > { %v4745_v7 = vpop.f32.mrf.mxu2 }
 0x492   : > { %v4924_v53 = vadd.f32 %v5478_v14, %v4856_v40  ;;  %v4838_v16 = vadd.f32 %v4745_v7, %v4326_v10 }
 0x494   : > { %4988 = vst.msk [vmem:[%s7722_s17 + $0x1f8] sm:$0xff] %vm2153_vm10, %v4924_v53  ;;  %v4906_v51 = vadd.f32 %v5478_v14, %v4838_v16 }
 0x496   : > { %4970 = vst.msk [vmem:[%s7722_s17 + $0x168] sm:$0xff] %vm2153_vm10, %v4906_v51 }
 0x499   : > { %v4748_v22 = vpop.f32.mrf.mxu2 }
 0x49a   : > { %v4839_v12 = vadd.f32 %v4748_v22, %v4329_v52 }
 0x49c   : > { %v4907_v0 = vadd.f32 %v5478_v14, %v4839_v12 }
 0x49e   : > { %4971 = vst.msk [vmem:[%s7722_s17 + $0x170] sm:$0xff] %vm2153_vm10, %v4907_v0 }
 0x4a1   : > { %v4750_v21 = vpop.f32.mrf.mxu2 }
 0x4a2   : > { %v4840_v28 = vadd.f32 %v4750_v21, %v4331_v59 }
 0x4a4   : > { %v4908_v37 = vadd.f32 %v5478_v14, %v4840_v28 }
 0x4a6   : > { %4972 = vst.msk [vmem:[%s7722_s17 + $0x178] sm:$0xff] %vm2153_vm10, %v4908_v37 }
 0x4a7 PF: > { %s14_s14 = sadd.s32 1, %s5535_s14   ;;  %s9498_s12 = smov %s5531_s13 }
 0x4a8   : > { %p11_p8 = scmp.ge.s32.totalorder %s14_s14, 4   ;;  %s9499_s13 = smov %s9501_s16 }
 0x4aa   :  { %13 = sbr.rel (!%p11_p8) target bundleno = 2 (0x2), region = 78 }
 0x4af   :  { %5019 = vsyncpa [#allocation3], 1 }
 0x4b0   :  { %5021 = vsyncpa [#allocation3 + $0x1], 1 }

</bundles_post_ra>
